<compile_context>
chip_gen: v7x
topology: tpu7x:2x2x1
jax: 0.10.0
libtpu: 0.0.40
codegen_flags: <defaults>
</compile_context>

<pallas_src>
import functools

import jax
import jax.numpy as jnp
from jax.experimental import pallas as pl
from jax.experimental.pallas import tpu as pltpu


# ----------------------------------------------------------------------------
# Fused BasicBlock kernel builder (one grid step == one sample).
# ----------------------------------------------------------------------------
def _make_fused_kernel(*, Hin, Win, Cin, Ho, Wo, Cout, stride, has_proj, eps,
                       mxu_dtype):
    M = Ho * Wo

    def conv3x3(xpad_ref, w_ref, cin, s):
        # im2col: lane-concat the 9 shifted taps and issue ONE MXU matmul
        # (M, 9*cin) x (9*cin, Cout) -> f32 accumulation.
        taps = []
        for kh in range(3):
            for kw in range(3):
                if s == 1:
                    taps.append(xpad_ref[kh:kh + Ho, kw:kw + Wo, :])
                else:
                    taps.append(xpad_ref[pl.ds(kh, Ho, s), pl.ds(kw, Wo, s), :])
        patches = jnp.concatenate(taps, axis=-1).reshape(M, 9 * cin)
        return jnp.dot(patches.astype(mxu_dtype), w_ref[...],
                       preferred_element_type=jnp.float32)          # (M, Cout) f32

    def ln_affine(y, g_ref, b_ref):
        # LayerNorm over all (C,H,W) elements of the sample, single pass.
        inv_cnt = 1.0 / float(M * Cout)
        mean = jnp.sum(y) * inv_cnt
        var = jnp.sum(y * y) * inv_cnt - mean * mean
        inv = jax.lax.rsqrt(var + eps)                               # EUP
        return (y - mean) * inv * g_ref[...] + b_ref[...]

    def body(x_ref, w1_ref, w2_ref, wsc_ref, g1_ref, b1_ref, g2_ref, b2_ref,
             gsc_ref, bsc_ref, o_ref, xpad1_ref, xpad2_ref):
        # ---- halo pad input in VMEM (no HBM jnp.pad round trip) ----
        xpad1_ref[...] = jnp.zeros(xpad1_ref.shape, xpad1_ref.dtype)
        xpad1_ref[1:1 + Hin, 1:1 + Win, :] = x_ref[0].astype(jnp.float32)

        # ---- conv1 -> LN1 -> ReLU (resident in VMEM/vregs) ----
        y1 = conv3x3(xpad1_ref, w1_ref, Cin, stride)
        h1 = jnp.maximum(ln_affine(y1, g1_ref, b1_ref), 0.0)

        # ---- pad conv1 activation for conv2 ----
        xpad2_ref[...] = jnp.zeros(xpad2_ref.shape, xpad2_ref.dtype)
        xpad2_ref[1:1 + Ho, 1:1 + Wo, :] = h1.reshape(Ho, Wo, Cout)

        # ---- conv2 -> LN2 ----
        y2 = ln_affine(conv3x3(xpad2_ref, w2_ref, Cout, 1), g2_ref, b2_ref)

        # ---- shortcut: identity, or 1x1 strided conv + LN ----
        if has_proj:
            if stride == 1:
                xs = xpad1_ref[1:1 + Ho, 1:1 + Wo, :]
            else:
                xs = xpad1_ref[pl.ds(1, Ho, stride), pl.ds(1, Wo, stride), :]
            sc = jnp.dot(xs.reshape(M, Cin).astype(mxu_dtype), wsc_ref[...],
                         preferred_element_type=jnp.float32)
            sc = ln_affine(sc, gsc_ref, bsc_ref)
        else:
            sc = x_ref[0].astype(jnp.float32).reshape(M, Cin)

        # ---- residual add + ReLU ----
        # TODO(synk): fake_relu only changes the backward pass; fwd == relu.
        out = jnp.maximum(y2 + sc, 0.0).astype(o_ref.dtype)

        # ---- lane-dense store: (M, Cout) -> (1, Ho, Wo*Cout) output block ----
        # (Wo*Cout >= 128, so the output VMEM buffer / HBM DMA are lane-dense.)
        out3 = out.reshape(Ho, Wo, Cout)
        for wo in range(Wo):
            o_ref[0, :, wo * Cout:(wo + 1) * Cout] = out3[:, wo, :]

    if has_proj:
        def kernel(x_ref, w1_ref, w2_ref, wsc_ref, g1_ref, b1_ref, g2_ref,
                   b2_ref, gsc_ref, bsc_ref, o_ref, xpad1_ref, xpad2_ref):
            body(x_ref, w1_ref, w2_ref, wsc_ref, g1_ref, b1_ref, g2_ref, b2_ref,
                 gsc_ref, bsc_ref, o_ref, xpad1_ref, xpad2_ref)
    else:
        def kernel(x_ref, w1_ref, w2_ref, g1_ref, b1_ref, g2_ref, b2_ref,
                   o_ref, xpad1_ref, xpad2_ref):
            body(x_ref, w1_ref, w2_ref, None, g1_ref, b1_ref, g2_ref, b2_ref,
                 None, None, o_ref, xpad1_ref, xpad2_ref)
    return kernel


# ----------------------------------------------------------------------------
# Param layout converters (PyTorch layouts -> kernel layouts).
# ----------------------------------------------------------------------------
def _conv_w_as_mat(w_oihw, mxu_dtype):
    # (Cout, Cin, K, K) -> (K*K*Cin, Cout), row order (kh, kw, cin) = im2col order.
    co, ci, kh, kw = w_oihw.shape
    return jnp.transpose(w_oihw, (2, 3, 1, 0)).reshape(kh * kw * ci, co).astype(mxu_dtype)


def _ln_p_as_mat(p_chw):
    # torch LayerNorm((C,H,W)) params -> (H*W, C) matching the (M, C) activations.
    c, h, w = p_chw.shape
    return jnp.transpose(p_chw, (1, 2, 0)).reshape(h * w, c).astype(jnp.float32)


# ----------------------------------------------------------------------------
# Public forward: NCHW in, NCHW out (PyTorch convention).
# ----------------------------------------------------------------------------
def basic_block_forward(x_nchw, params, *, stride, mxu_dtype=jnp.float32,
                        eps=1e-5):
    N, Cin, Hin, Win = x_nchw.shape
    Cout = params["conv1_w"].shape[0]
    has_proj = (stride != 1) or (Cin != Cout)
    Ho = (Hin - 1) // stride + 1
    Wo = (Win - 1) // stride + 1
    M = Ho * Wo

    x = jnp.transpose(x_nchw, (0, 2, 3, 1))            # NCHW -> NHWC

    w1 = _conv_w_as_mat(params["conv1_w"], mxu_dtype)
    w2 = _conv_w_as_mat(params["conv2_w"], mxu_dtype)
    g1 = _ln_p_as_mat(params["ln1_g"]); b1 = _ln_p_as_mat(params["ln1_b"])
    g2 = _ln_p_as_mat(params["ln2_g"]); b2 = _ln_p_as_mat(params["ln2_b"])

    operands = [x, w1, w2]
    in_specs = [
        pl.BlockSpec((1, Hin, Win, Cin), lambda n: (n, 0, 0, 0)),
        pl.BlockSpec((9 * Cin, Cout), lambda n: (0, 0)),
        pl.BlockSpec((9 * Cout, Cout), lambda n: (0, 0)),
    ]
    if has_proj:
        operands.append(_conv_w_as_mat(params["conv_sc_w"], mxu_dtype))
        in_specs.append(pl.BlockSpec((Cin, Cout), lambda n: (0, 0)))
        ln_ops = [g1, b1, g2, b2,
                  _ln_p_as_mat(params["ln_sc_g"]),
                  _ln_p_as_mat(params["ln_sc_b"])]
    else:
        ln_ops = [g1, b1, g2, b2]
    operands += ln_ops
    in_specs += [pl.BlockSpec((M, Cout), lambda n: (0, 0))] * len(ln_ops)

    kernel = _make_fused_kernel(
        Hin=Hin, Win=Win, Cin=Cin, Ho=Ho, Wo=Wo, Cout=Cout,
        stride=stride, has_proj=has_proj, eps=eps, mxu_dtype=mxu_dtype)

    out = pl.pallas_call(
        kernel,
        out_shape=jax.ShapeDtypeStruct((N, Ho, Wo * Cout), x.dtype),
        grid=(N,),
        in_specs=in_specs,
        out_specs=pl.BlockSpec((1, Ho, Wo * Cout), lambda n: (n, 0, 0)),
        scratch_shapes=[
            pltpu.VMEM((Hin + 2, Win + 2, Cin), jnp.float32),   # padded input
            pltpu.VMEM((Ho + 2, Wo + 2, Cout), jnp.float32),    # padded conv1 act
        ],
        compiler_params=pltpu.CompilerParams(
            dimension_semantics=("parallel",)),                  # v7x: 2 TCs
    )(*operands)

    # (N, Ho, Wo*Cout) -> (N, Ho, Wo, Cout) is a free row-major regroup.
    return jnp.transpose(out.reshape(N, Ho, Wo, Cout), (0, 3, 1, 2))


# ----------------------------------------------------------------------------
# Init (PyTorch layouts: conv OIHW, LayerNorm (C, H, W)); `size` is the OUTPUT
# spatial size (the LayerNorm normalized shape), so input spatial = size*stride.
# ----------------------------------------------------------------------------
def init_basic_block(key, in_planes, planes, size, stride):
    ks = jax.random.split(key, 9)
    p = {
        "conv1_w": jax.random.normal(ks[0], (planes, in_planes, 3, 3),
                                     jnp.float32) / (3.0 * in_planes ** 0.5),
        "conv2_w": jax.random.normal(ks[1], (planes, planes, 3, 3),
                                     jnp.float32) / (3.0 * planes ** 0.5),
        "ln1_g": 1.0 + 0.1 * jax.random.normal(ks[2], (planes, size, size), jnp.float32),
        "ln1_b": 0.1 * jax.random.normal(ks[3], (planes, size, size), jnp.float32),
        "ln2_g": 1.0 + 0.1 * jax.random.normal(ks[4], (planes, size, size), jnp.float32),
        "ln2_b": 0.1 * jax.random.normal(ks[5], (planes, size, size), jnp.float32),
    }
    if stride != 1 or in_planes != planes:
        p["conv_sc_w"] = jax.random.normal(ks[6], (planes, in_planes, 1, 1),
                                           jnp.float32) / (in_planes ** 0.5)
        p["ln_sc_g"] = 1.0 + 0.1 * jax.random.normal(ks[7], (planes, size, size), jnp.float32)
        p["ln_sc_b"] = 0.1 * jax.random.normal(ks[8], (planes, size, size), jnp.float32)
    return p


# ----------------------------------------------------------------------------
# Pure-JAX (NCHW / torch-faithful) reference.
# ----------------------------------------------------------------------------
def ref_forward(x, params, stride, eps=1e-5):
    def conv(x, w, s, pad):
        return jax.lax.conv_general_dilated(
            x, w, (s, s), ((pad, pad), (pad, pad)),
            dimension_numbers=("NCHW", "OIHW", "NCHW"))

    def ln(x, g, b):
        m = jnp.mean(x, axis=(1, 2, 3), keepdims=True)
        v = jnp.mean(jnp.square(x - m), axis=(1, 2, 3), keepdims=True)
        return (x - m) * jax.lax.rsqrt(v + eps) * g[None] + b[None]

    out = jax.nn.relu(ln(conv(x, params["conv1_w"], stride, 1),
                         params["ln1_g"], params["ln1_b"]))
    out = ln(conv(out, params["conv2_w"], 1, 1),
             params["ln2_g"], params["ln2_b"])
    if "conv_sc_w" in params:
        sc = ln(conv(x, params["conv_sc_w"], stride, 0),
                params["ln_sc_g"], params["ln_sc_b"])
    else:
        sc = x
    return jax.nn.relu(out + sc)


if __name__ == "__main__":
    key = jax.random.PRNGKey(0)

    # --- Case 1: identity shortcut (stride=1, in_planes == planes), CIFAR-ish ---
    N, cin, planes, size, stride = 2, 16, 16, 16, 1
    k1, k2, key = jax.random.split(key, 3)
    x = jax.random.normal(k1, (N, cin, size * stride, size * stride), jnp.float32)
    params = init_basic_block(k2, cin, planes, size, stride)
    fwd = jax.jit(functools.partial(basic_block_forward, stride=stride))
    out = jax.block_until_ready(fwd(x, params))
    ref = ref_forward(x, params, stride)
    assert out.shape == (N, planes, size, size)
    assert jnp.allclose(out, ref, atol=1e-3, rtol=1e-3), (
        float(jnp.max(jnp.abs(out - ref))))

    # --- Case 2: projection shortcut (stride=2, in_planes != planes) ---
    N2, cin2, planes2, size2, stride2 = 2, 16, 32, 8, 2
    k3, k4, key = jax.random.split(key, 3)
    x2 = jax.random.normal(k3, (N2, cin2, size2 * stride2, size2 * stride2),
                           jnp.float32)
    params2 = init_basic_block(k4, cin2, planes2, size2, stride2)
    fwd2 = jax.jit(functools.partial(basic_block_forward, stride=stride2))
    out2 = jax.block_until_ready(fwd2(x2, params2))
    ref2 = ref_forward(x2, params2, stride2)
    assert out2.shape == (N2, planes2, size2, size2)
    assert jnp.allclose(out2, ref2, atol=1e-3, rtol=1e-3), (
        float(jnp.max(jnp.abs(out2 - ref2))))

    # --- Case 3: bf16 MXU feeding (v6e/v7x fast path); LN math stays f32 ---
    fwd_bf16 = jax.jit(functools.partial(basic_block_forward, stride=1,
                                         mxu_dtype=jnp.bfloat16))
    out_bf = jax.block_until_ready(fwd_bf16(x, params))
    rel = float(jnp.sqrt(jnp.sum((out_bf - ref) ** 2)) /
                (jnp.sqrt(jnp.sum(ref ** 2)) + 1e-12))
    assert rel < 0.05, rel

    print("KERNEL_OK")
</pallas_src>

<mosaic_0001>
module attributes {stable_mosaic.version = 11 : i64} {
  func.func @kernel(%arg0: i32, %arg1: memref<1x16x16x16xf32, #tpu.memory_space<vmem>>, %arg2: memref<144x16xf32, #tpu.memory_space<vmem>>, %arg3: memref<144x16xf32, #tpu.memory_space<vmem>>, %arg4: memref<256x16xf32, #tpu.memory_space<vmem>>, %arg5: memref<256x16xf32, #tpu.memory_space<vmem>>, %arg6: memref<256x16xf32, #tpu.memory_space<vmem>>, %arg7: memref<256x16xf32, #tpu.memory_space<vmem>>, %arg8: memref<1x16x256xf32, #tpu.memory_space<vmem>>, %arg9: memref<18x18x16xf32, #tpu.memory_space<vmem>>, %arg10: memref<18x18x16xf32, #tpu.memory_space<vmem>>) attributes {dimension_semantics = [#tpu.dimension_semantics<parallel>], iteration_bounds = array<i64: 2>, scalar_prefetch = 0 : i64, scratch_operands = 2 : i64, tpu.core_type = #tpu.core_type<tc>, window_params = [{transform_indices = @transform_0, window_bounds = array<i64: 1, 16, 16, 16>}, {pipeline_mode = #tpu.pipeline_mode<synchronous>, transform_indices = @transform_1, window_bounds = array<i64: 144, 16>}, {pipeline_mode = #tpu.pipeline_mode<synchronous>, transform_indices = @transform_2, window_bounds = array<i64: 144, 16>}, {pipeline_mode = #tpu.pipeline_mode<synchronous>, transform_indices = @transform_3, window_bounds = array<i64: 256, 16>}, {pipeline_mode = #tpu.pipeline_mode<synchronous>, transform_indices = @transform_4, window_bounds = array<i64: 256, 16>}, {pipeline_mode = #tpu.pipeline_mode<synchronous>, transform_indices = @transform_5, window_bounds = array<i64: 256, 16>}, {pipeline_mode = #tpu.pipeline_mode<synchronous>, transform_indices = @transform_6, window_bounds = array<i64: 256, 16>}, {transform_indices = @transform_7, window_bounds = array<i64: 1, 16, 256>}]} {
    %cst = arith.constant 0.000000e+00 : f32
    %0 = vector.broadcast %cst : f32 to vector<18x18x16xf32>
    %c0 = arith.constant 0 : index
    %c0_0 = arith.constant 0 : index
    %c0_1 = arith.constant 0 : index
    %1 = vector.load %arg9[%c0, %c0_0, %c0_1] : memref<18x18x16xf32, #tpu.memory_space<vmem>>, vector<18x18x16xf32>
    tpu.vector_store %arg9[%c0, %c0_0, %c0_1], %0 {strides = array<i32>} : memref<18x18x16xf32, #tpu.memory_space<vmem>>, vector<18x18x16xf32>,
    %c0_2 = arith.constant 0 : index
    %c0_3 = arith.constant 0 : index
    %c0_4 = arith.constant 0 : index
    %c0_5 = arith.constant 0 : index
    %2 = vector.load %arg1[%c0_2, %c0_3, %c0_4, %c0_5] : memref<1x16x16x16xf32, #tpu.memory_space<vmem>>, vector<1x16x16x16xf32>
    %3 = vector.shape_cast %2 : vector<1x16x16x16xf32> to vector<16x16x16xf32>
    %c1 = arith.constant 1 : index
    %c1_6 = arith.constant 1 : index
    %c0_7 = arith.constant 0 : index
    %4 = vector.load %arg9[%c1, %c1_6, %c0_7] : memref<18x18x16xf32, #tpu.memory_space<vmem>>, vector<16x16x16xf32>
    tpu.vector_store %arg9[%c1, %c1_6, %c0_7], %3 {strides = array<i32>} : memref<18x18x16xf32, #tpu.memory_space<vmem>>, vector<16x16x16xf32>,
    %c0_8 = arith.constant 0 : index
    %c0_9 = arith.constant 0 : index
    %c0_10 = arith.constant 0 : index
    %5 = vector.load %arg9[%c0_8, %c0_9, %c0_10] : memref<18x18x16xf32, #tpu.memory_space<vmem>>, vector<16x16x16xf32>
    %c0_11 = arith.constant 0 : index
    %c1_12 = arith.constant 1 : index
    %c0_13 = arith.constant 0 : index
    %6 = vector.load %arg9[%c0_11, %c1_12, %c0_13] : memref<18x18x16xf32, #tpu.memory_space<vmem>>, vector<16x16x16xf32>
    %c0_14 = arith.constant 0 : index
    %c2 = arith.constant 2 : index
    %c0_15 = arith.constant 0 : index
    %7 = vector.load %arg9[%c0_14, %c2, %c0_15] : memref<18x18x16xf32, #tpu.memory_space<vmem>>, vector<16x16x16xf32>
    %c1_16 = arith.constant 1 : index
    %c0_17 = arith.constant 0 : index
    %c0_18 = arith.constant 0 : index
    %8 = vector.load %arg9[%c1_16, %c0_17, %c0_18] : memref<18x18x16xf32, #tpu.memory_space<vmem>>, vector<16x16x16xf32>
    %c1_19 = arith.constant 1 : index
    %c1_20 = arith.constant 1 : index
    %c0_21 = arith.constant 0 : index
    %9 = vector.load %arg9[%c1_19, %c1_20, %c0_21] : memref<18x18x16xf32, #tpu.memory_space<vmem>>, vector<16x16x16xf32>
    %c1_22 = arith.constant 1 : index
    %c2_23 = arith.constant 2 : index
    %c0_24 = arith.constant 0 : index
    %10 = vector.load %arg9[%c1_22, %c2_23, %c0_24] : memref<18x18x16xf32, #tpu.memory_space<vmem>>, vector<16x16x16xf32>
    %c2_25 = arith.constant 2 : index
    %c0_26 = arith.constant 0 : index
    %c0_27 = arith.constant 0 : index
    %11 = vector.load %arg9[%c2_25, %c0_26, %c0_27] : memref<18x18x16xf32, #tpu.memory_space<vmem>>, vector<16x16x16xf32>
    %c2_28 = arith.constant 2 : index
    %c1_29 = arith.constant 1 : index
    %c0_30 = arith.constant 0 : index
    %12 = vector.load %arg9[%c2_28, %c1_29, %c0_30] : memref<18x18x16xf32, #tpu.memory_space<vmem>>, vector<16x16x16xf32>
    %c2_31 = arith.constant 2 : index
    %c2_32 = arith.constant 2 : index
    %c0_33 = arith.constant 0 : index
    %13 = vector.load %arg9[%c2_31, %c2_32, %c0_33] : memref<18x18x16xf32, #tpu.memory_space<vmem>>, vector<16x16x16xf32>
    %14 = tpu.concatenate %5, %6, %7, %8, %9, %10, %11, %12, %13 in 2 : vector<16x16x16xf32>, vector<16x16x16xf32>, vector<16x16x16xf32>, vector<16x16x16xf32>, vector<16x16x16xf32>, vector<16x16x16xf32>, vector<16x16x16xf32>, vector<16x16x16xf32>, vector<16x16x16xf32> -> vector<16x16x144xf32>
    %15 = vector.shape_cast %14 : vector<16x16x144xf32> to vector<256x144xf32>
    %c0_34 = arith.constant 0 : index
    %c0_35 = arith.constant 0 : index
    %16 = vector.load %arg2[%c0_34, %c0_35] : memref<144x16xf32, #tpu.memory_space<vmem>>, vector<144x16xf32>
    %cst_36 = arith.constant dense<0.000000e+00> : vector<256x16xf32>
    %17 = tpu.matmul %15, %16, %cst_36 {dimension_numbers = #tpu.dot_dimension_numbers<[1], [0], [0], [1], [0, 0, 1, 1], [], []>} : vector<256x144xf32>, vector<144x16xf32>, vector<256x16xf32> -> vector<256x16xf32>
    %18 = vector.shape_cast %17 : vector<256x16xf32> to vector<1x256x16xf32>
    %cst_37 = arith.constant dense<0.000000e+00> : vector<1xf32>
    %19 = vector.multi_reduction <add>, %18, %cst_37 [1, 2] : vector<1x256x16xf32> to vector<1xf32>
    %20 = vector.shape_cast %19 : vector<1xf32> to vector<1x1x1xf32>
    %21 = vector.extract %20[0, 0, 0] : f32 from vector<1x1x1xf32>
    %cst_38 = arith.constant 2.44140625E-4 : f32
    %22 = arith.mulf %21, %cst_38 : f32
    %23 = arith.mulf %17, %17 : vector<256x16xf32>
    %24 = vector.shape_cast %23 : vector<256x16xf32> to vector<1x256x16xf32>
    %cst_39 = arith.constant dense<0.000000e+00> : vector<1xf32>
    %25 = vector.multi_reduction <add>, %24, %cst_39 [1, 2] : vector<1x256x16xf32> to vector<1xf32>
    %26 = vector.shape_cast %25 : vector<1xf32> to vector<1x1x1xf32>
    %27 = vector.extract %26[0, 0, 0] : f32 from vector<1x1x1xf32>
    %cst_40 = arith.constant 2.44140625E-4 : f32
    %28 = arith.mulf %27, %cst_40 : f32
    %29 = arith.mulf %22, %22 : f32
    %30 = arith.subf %28, %29 : f32
    %cst_41 = arith.constant 9.99999974E-6 : f32
    %31 = arith.addf %30, %cst_41 : f32
    %32 = math.rsqrt %31 : f32
    %33 = vector.broadcast %22 : f32 to vector<256x16xf32>
    %34 = arith.subf %17, %33 : vector<256x16xf32>
    %35 = vector.broadcast %32 : f32 to vector<256x16xf32>
    %36 = arith.mulf %34, %35 : vector<256x16xf32>
    %c0_42 = arith.constant 0 : index
    %c0_43 = arith.constant 0 : index
    %37 = vector.load %arg4[%c0_42, %c0_43] : memref<256x16xf32, #tpu.memory_space<vmem>>, vector<256x16xf32>
    %38 = arith.mulf %36, %37 : vector<256x16xf32>
    %c0_44 = arith.constant 0 : index
    %c0_45 = arith.constant 0 : index
    %39 = vector.load %arg5[%c0_44, %c0_45] : memref<256x16xf32, #tpu.memory_space<vmem>>, vector<256x16xf32>
    %40 = arith.addf %38, %39 : vector<256x16xf32>
    %cst_46 = arith.constant 0.000000e+00 : f32
    %41 = vector.broadcast %cst_46 : f32 to vector<256x16xf32>
    %42 = arith.maximumf %40, %41 : vector<256x16xf32>
    %cst_47 = arith.constant 0.000000e+00 : f32
    %43 = vector.broadcast %cst_47 : f32 to vector<18x18x16xf32>
    %c0_48 = arith.constant 0 : index
    %c0_49 = arith.constant 0 : index
    %c0_50 = arith.constant 0 : index
    %44 = vector.load %arg10[%c0_48, %c0_49, %c0_50] : memref<18x18x16xf32, #tpu.memory_space<vmem>>, vector<18x18x16xf32>
    tpu.vector_store %arg10[%c0_48, %c0_49, %c0_50], %43 {strides = array<i32>} : memref<18x18x16xf32, #tpu.memory_space<vmem>>, vector<18x18x16xf32>,
    %45 = vector.shape_cast %42 : vector<256x16xf32> to vector<16x16x16xf32>
    %c1_51 = arith.constant 1 : index
    %c1_52 = arith.constant 1 : index
    %c0_53 = arith.constant 0 : index
    %46 = vector.load %arg10[%c1_51, %c1_52, %c0_53] : memref<18x18x16xf32, #tpu.memory_space<vmem>>, vector<16x16x16xf32>
    tpu.vector_store %arg10[%c1_51, %c1_52, %c0_53], %45 {strides = array<i32>} : memref<18x18x16xf32, #tpu.memory_space<vmem>>, vector<16x16x16xf32>,
    %c0_54 = arith.constant 0 : index
    %c0_55 = arith.constant 0 : index
    %c0_56 = arith.constant 0 : index
    %47 = vector.load %arg10[%c0_54, %c0_55, %c0_56] : memref<18x18x16xf32, #tpu.memory_space<vmem>>, vector<16x16x16xf32>
    %c0_57 = arith.constant 0 : index
    %c1_58 = arith.constant 1 : index
    %c0_59 = arith.constant 0 : index
    %48 = vector.load %arg10[%c0_57, %c1_58, %c0_59] : memref<18x18x16xf32, #tpu.memory_space<vmem>>, vector<16x16x16xf32>
    %c0_60 = arith.constant 0 : index
    %c2_61 = arith.constant 2 : index
    %c0_62 = arith.constant 0 : index
    %49 = vector.load %arg10[%c0_60, %c2_61, %c0_62] : memref<18x18x16xf32, #tpu.memory_space<vmem>>, vector<16x16x16xf32>
    %c1_63 = arith.constant 1 : index
    %c0_64 = arith.constant 0 : index
    %c0_65 = arith.constant 0 : index
    %50 = vector.load %arg10[%c1_63, %c0_64, %c0_65] : memref<18x18x16xf32, #tpu.memory_space<vmem>>, vector<16x16x16xf32>
    %c1_66 = arith.constant 1 : index
    %c1_67 = arith.constant 1 : index
    %c0_68 = arith.constant 0 : index
    %51 = vector.load %arg10[%c1_66, %c1_67, %c0_68] : memref<18x18x16xf32, #tpu.memory_space<vmem>>, vector<16x16x16xf32>
    %c1_69 = arith.constant 1 : index
    %c2_70 = arith.constant 2 : index
    %c0_71 = arith.constant 0 : index
    %52 = vector.load %arg10[%c1_69, %c2_70, %c0_71] : memref<18x18x16xf32, #tpu.memory_space<vmem>>, vector<16x16x16xf32>
    %c2_72 = arith.constant 2 : index
    %c0_73 = arith.constant 0 : index
    %c0_74 = arith.constant 0 : index
    %53 = vector.load %arg10[%c2_72, %c0_73, %c0_74] : memref<18x18x16xf32, #tpu.memory_space<vmem>>, vector<16x16x16xf32>
    %c2_75 = arith.constant 2 : index
    %c1_76 = arith.constant 1 : index
    %c0_77 = arith.constant 0 : index
    %54 = vector.load %arg10[%c2_75, %c1_76, %c0_77] : memref<18x18x16xf32, #tpu.memory_space<vmem>>, vector<16x16x16xf32>
    %c2_78 = arith.constant 2 : index
    %c2_79 = arith.constant 2 : index
    %c0_80 = arith.constant 0 : index
    %55 = vector.load %arg10[%c2_78, %c2_79, %c0_80] : memref<18x18x16xf32, #tpu.memory_space<vmem>>, vector<16x16x16xf32>
    %56 = tpu.concatenate %47, %48, %49, %50, %51, %52, %53, %54, %55 in 2 : vector<16x16x16xf32>, vector<16x16x16xf32>, vector<16x16x16xf32>, vector<16x16x16xf32>, vector<16x16x16xf32>, vector<16x16x16xf32>, vector<16x16x16xf32>, vector<16x16x16xf32>, vector<16x16x16xf32> -> vector<16x16x144xf32>
    %57 = vector.shape_cast %56 : vector<16x16x144xf32> to vector<256x144xf32>
    %c0_81 = arith.constant 0 : index
    %c0_82 = arith.constant 0 : index
    %58 = vector.load %arg3[%c0_81, %c0_82] : memref<144x16xf32, #tpu.memory_space<vmem>>, vector<144x16xf32>
    %cst_83 = arith.constant dense<0.000000e+00> : vector<256x16xf32>
    %59 = tpu.matmul %57, %58, %cst_83 {dimension_numbers = #tpu.dot_dimension_numbers<[1], [0], [0], [1], [0, 0, 1, 1], [], []>} : vector<256x144xf32>, vector<144x16xf32>, vector<256x16xf32> -> vector<256x16xf32>
    %60 = vector.shape_cast %59 : vector<256x16xf32> to vector<1x256x16xf32>
    %cst_84 = arith.constant dense<0.000000e+00> : vector<1xf32>
    %61 = vector.multi_reduction <add>, %60, %cst_84 [1, 2] : vector<1x256x16xf32> to vector<1xf32>
    %62 = vector.shape_cast %61 : vector<1xf32> to vector<1x1x1xf32>
    %63 = vector.extract %62[0, 0, 0] : f32 from vector<1x1x1xf32>
    %cst_85 = arith.constant 2.44140625E-4 : f32
    %64 = arith.mulf %63, %cst_85 : f32
    %65 = arith.mulf %59, %59 : vector<256x16xf32>
    %66 = vector.shape_cast %65 : vector<256x16xf32> to vector<1x256x16xf32>
    %cst_86 = arith.constant dense<0.000000e+00> : vector<1xf32>
    %67 = vector.multi_reduction <add>, %66, %cst_86 [1, 2] : vector<1x256x16xf32> to vector<1xf32>
    %68 = vector.shape_cast %67 : vector<1xf32> to vector<1x1x1xf32>
    %69 = vector.extract %68[0, 0, 0] : f32 from vector<1x1x1xf32>
    %cst_87 = arith.constant 2.44140625E-4 : f32
    %70 = arith.mulf %69, %cst_87 : f32
    %71 = arith.mulf %64, %64 : f32
    %72 = arith.subf %70, %71 : f32
    %cst_88 = arith.constant 9.99999974E-6 : f32
    %73 = arith.addf %72, %cst_88 : f32
    %74 = math.rsqrt %73 : f32
    %75 = vector.broadcast %64 : f32 to vector<256x16xf32>
    %76 = arith.subf %59, %75 : vector<256x16xf32>
    %77 = vector.broadcast %74 : f32 to vector<256x16xf32>
    %78 = arith.mulf %76, %77 : vector<256x16xf32>
    %c0_89 = arith.constant 0 : index
    %c0_90 = arith.constant 0 : index
    %79 = vector.load %arg6[%c0_89, %c0_90] : memref<256x16xf32, #tpu.memory_space<vmem>>, vector<256x16xf32>
    %80 = arith.mulf %78, %79 : vector<256x16xf32>
    %c0_91 = arith.constant 0 : index
    %c0_92 = arith.constant 0 : index
    %81 = vector.load %arg7[%c0_91, %c0_92] : memref<256x16xf32, #tpu.memory_space<vmem>>, vector<256x16xf32>
    %82 = arith.addf %80, %81 : vector<256x16xf32>
    %c0_93 = arith.constant 0 : index
    %c0_94 = arith.constant 0 : index
    %c0_95 = arith.constant 0 : index
    %c0_96 = arith.constant 0 : index
    %83 = vector.load %arg1[%c0_93, %c0_94, %c0_95, %c0_96] : memref<1x16x16x16xf32, #tpu.memory_space<vmem>>, vector<1x16x16x16xf32>
    %84 = vector.shape_cast %83 : vector<1x16x16x16xf32> to vector<16x16x16xf32>
    %85 = vector.shape_cast %84 : vector<16x16x16xf32> to vector<256x16xf32>
    %86 = arith.addf %82, %85 : vector<256x16xf32>
    %cst_97 = arith.constant 0.000000e+00 : f32
    %87 = vector.broadcast %cst_97 : f32 to vector<256x16xf32>
    %88 = arith.maximumf %86, %87 : vector<256x16xf32>
    %89 = vector.shape_cast %88 : vector<256x16xf32> to vector<16x16x16xf32>
    %90 = vector.extract_strided_slice %89 {offsets = [0, 0, 0], sizes = [16, 1, 16], strides = [1, 1, 1]} : vector<16x16x16xf32> to vector<16x1x16xf32>
    %91 = vector.shape_cast %90 : vector<16x1x16xf32> to vector<16x16xf32>
    %c0_98 = arith.constant 0 : index
    %c0_99 = arith.constant 0 : index
    %c0_100 = arith.constant 0 : index
    %92 = vector.load %arg8[%c0_98, %c0_99, %c0_100] : memref<1x16x256xf32, #tpu.memory_space<vmem>>, vector<1x16x16xf32>
    %93 = vector.shape_cast %92 : vector<1x16x16xf32> to vector<16x16xf32>
    %94 = vector.shape_cast %91 : vector<16x16xf32> to vector<1x16x16xf32>
    tpu.vector_store %arg8[%c0_98, %c0_99, %c0_100], %94 {strides = array<i32>} : memref<1x16x256xf32, #tpu.memory_space<vmem>>, vector<1x16x16xf32>,
    %95 = vector.extract_strided_slice %89 {offsets = [0, 1, 0], sizes = [16, 1, 16], strides = [1, 1, 1]} : vector<16x16x16xf32> to vector<16x1x16xf32>
    %96 = vector.shape_cast %95 : vector<16x1x16xf32> to vector<16x16xf32>
    %c0_101 = arith.constant 0 : index
    %c0_102 = arith.constant 0 : index
    %c16 = arith.constant 16 : index
    %97 = vector.load %arg8[%c0_101, %c0_102, %c16] : memref<1x16x256xf32, #tpu.memory_space<vmem>>, vector<1x16x16xf32>
    %98 = vector.shape_cast %97 : vector<1x16x16xf32> to vector<16x16xf32>
    %99 = vector.shape_cast %96 : vector<16x16xf32> to vector<1x16x16xf32>
    tpu.vector_store %arg8[%c0_101, %c0_102, %c16], %99 {strides = array<i32>} : memref<1x16x256xf32, #tpu.memory_space<vmem>>, vector<1x16x16xf32>,
    %100 = vector.extract_strided_slice %89 {offsets = [0, 2, 0], sizes = [16, 1, 16], strides = [1, 1, 1]} : vector<16x16x16xf32> to vector<16x1x16xf32>
    %101 = vector.shape_cast %100 : vector<16x1x16xf32> to vector<16x16xf32>
    %c0_103 = arith.constant 0 : index
    %c0_104 = arith.constant 0 : index
    %c32 = arith.constant 32 : index
    %102 = vector.load %arg8[%c0_103, %c0_104, %c32] : memref<1x16x256xf32, #tpu.memory_space<vmem>>, vector<1x16x16xf32>
    %103 = vector.shape_cast %102 : vector<1x16x16xf32> to vector<16x16xf32>
    %104 = vector.shape_cast %101 : vector<16x16xf32> to vector<1x16x16xf32>
    tpu.vector_store %arg8[%c0_103, %c0_104, %c32], %104 {strides = array<i32>} : memref<1x16x256xf32, #tpu.memory_space<vmem>>, vector<1x16x16xf32>,
    %105 = vector.extract_strided_slice %89 {offsets = [0, 3, 0], sizes = [16, 1, 16], strides = [1, 1, 1]} : vector<16x16x16xf32> to vector<16x1x16xf32>
    %106 = vector.shape_cast %105 : vector<16x1x16xf32> to vector<16x16xf32>
    %c0_105 = arith.constant 0 : index
    %c0_106 = arith.constant 0 : index
    %c48 = arith.constant 48 : index
    %107 = vector.load %arg8[%c0_105, %c0_106, %c48] : memref<1x16x256xf32, #tpu.memory_space<vmem>>, vector<1x16x16xf32>
    %108 = vector.shape_cast %107 : vector<1x16x16xf32> to vector<16x16xf32>
    %109 = vector.shape_cast %106 : vector<16x16xf32> to vector<1x16x16xf32>
    tpu.vector_store %arg8[%c0_105, %c0_106, %c48], %109 {strides = array<i32>} : memref<1x16x256xf32, #tpu.memory_space<vmem>>, vector<1x16x16xf32>,
    %110 = vector.extract_strided_slice %89 {offsets = [0, 4, 0], sizes = [16, 1, 16], strides = [1, 1, 1]} : vector<16x16x16xf32> to vector<16x1x16xf32>
    %111 = vector.shape_cast %110 : vector<16x1x16xf32> to vector<16x16xf32>
    %c0_107 = arith.constant 0 : index
    %c0_108 = arith.constant 0 : index
    %c64 = arith.constant 64 : index
    %112 = vector.load %arg8[%c0_107, %c0_108, %c64] : memref<1x16x256xf32, #tpu.memory_space<vmem>>, vector<1x16x16xf32>
    %113 = vector.shape_cast %112 : vector<1x16x16xf32> to vector<16x16xf32>
    %114 = vector.shape_cast %111 : vector<16x16xf32> to vector<1x16x16xf32>
    tpu.vector_store %arg8[%c0_107, %c0_108, %c64], %114 {strides = array<i32>} : memref<1x16x256xf32, #tpu.memory_space<vmem>>, vector<1x16x16xf32>,
    %115 = vector.extract_strided_slice %89 {offsets = [0, 5, 0], sizes = [16, 1, 16], strides = [1, 1, 1]} : vector<16x16x16xf32> to vector<16x1x16xf32>
    %116 = vector.shape_cast %115 : vector<16x1x16xf32> to vector<16x16xf32>
    %c0_109 = arith.constant 0 : index
    %c0_110 = arith.constant 0 : index
    %c80 = arith.constant 80 : index
    %117 = vector.load %arg8[%c0_109, %c0_110, %c80] : memref<1x16x256xf32, #tpu.memory_space<vmem>>, vector<1x16x16xf32>
    %118 = vector.shape_cast %117 : vector<1x16x16xf32> to vector<16x16xf32>
    %119 = vector.shape_cast %116 : vector<16x16xf32> to vector<1x16x16xf32>
    tpu.vector_store %arg8[%c0_109, %c0_110, %c80], %119 {strides = array<i32>} : memref<1x16x256xf32, #tpu.memory_space<vmem>>, vector<1x16x16xf32>,
    %120 = vector.extract_strided_slice %89 {offsets = [0, 6, 0], sizes = [16, 1, 16], strides = [1, 1, 1]} : vector<16x16x16xf32> to vector<16x1x16xf32>
    %121 = vector.shape_cast %120 : vector<16x1x16xf32> to vector<16x16xf32>
    %c0_111 = arith.constant 0 : index
    %c0_112 = arith.constant 0 : index
    %c96 = arith.constant 96 : index
    %122 = vector.load %arg8[%c0_111, %c0_112, %c96] : memref<1x16x256xf32, #tpu.memory_space<vmem>>, vector<1x16x16xf32>
    %123 = vector.shape_cast %122 : vector<1x16x16xf32> to vector<16x16xf32>
    %124 = vector.shape_cast %121 : vector<16x16xf32> to vector<1x16x16xf32>
    tpu.vector_store %arg8[%c0_111, %c0_112, %c96], %124 {strides = array<i32>} : memref<1x16x256xf32, #tpu.memory_space<vmem>>, vector<1x16x16xf32>,
    %125 = vector.extract_strided_slice %89 {offsets = [0, 7, 0], sizes = [16, 1, 16], strides = [1, 1, 1]} : vector<16x16x16xf32> to vector<16x1x16xf32>
    %126 = vector.shape_cast %125 : vector<16x1x16xf32> to vector<16x16xf32>
    %c0_113 = arith.constant 0 : index
    %c0_114 = arith.constant 0 : index
    %c112 = arith.constant 112 : index
    %127 = vector.load %arg8[%c0_113, %c0_114, %c112] : memref<1x16x256xf32, #tpu.memory_space<vmem>>, vector<1x16x16xf32>
    %128 = vector.shape_cast %127 : vector<1x16x16xf32> to vector<16x16xf32>
    %129 = vector.shape_cast %126 : vector<16x16xf32> to vector<1x16x16xf32>
    tpu.vector_store %arg8[%c0_113, %c0_114, %c112], %129 {strides = array<i32>} : memref<1x16x256xf32, #tpu.memory_space<vmem>>, vector<1x16x16xf32>,
    %130 = vector.extract_strided_slice %89 {offsets = [0, 8, 0], sizes = [16, 1, 16], strides = [1, 1, 1]} : vector<16x16x16xf32> to vector<16x1x16xf32>
    %131 = vector.shape_cast %130 : vector<16x1x16xf32> to vector<16x16xf32>
    %c0_115 = arith.constant 0 : index
    %c0_116 = arith.constant 0 : index
    %c128 = arith.constant 128 : index
    %132 = vector.load %arg8[%c0_115, %c0_116, %c128] : memref<1x16x256xf32, #tpu.memory_space<vmem>>, vector<1x16x16xf32>
    %133 = vector.shape_cast %132 : vector<1x16x16xf32> to vector<16x16xf32>
    %134 = vector.shape_cast %131 : vector<16x16xf32> to vector<1x16x16xf32>
    tpu.vector_store %arg8[%c0_115, %c0_116, %c128], %134 {strides = array<i32>} : memref<1x16x256xf32, #tpu.memory_space<vmem>>, vector<1x16x16xf32>,
    %135 = vector.extract_strided_slice %89 {offsets = [0, 9, 0], sizes = [16, 1, 16], strides = [1, 1, 1]} : vector<16x16x16xf32> to vector<16x1x16xf32>
    %136 = vector.shape_cast %135 : vector<16x1x16xf32> to vector<16x16xf32>
    %c0_117 = arith.constant 0 : index
    %c0_118 = arith.constant 0 : index
    %c144 = arith.constant 144 : index
    %137 = vector.load %arg8[%c0_117, %c0_118, %c144] : memref<1x16x256xf32, #tpu.memory_space<vmem>>, vector<1x16x16xf32>
    %138 = vector.shape_cast %137 : vector<1x16x16xf32> to vector<16x16xf32>
    %139 = vector.shape_cast %136 : vector<16x16xf32> to vector<1x16x16xf32>
    tpu.vector_store %arg8[%c0_117, %c0_118, %c144], %139 {strides = array<i32>} : memref<1x16x256xf32, #tpu.memory_space<vmem>>, vector<1x16x16xf32>,
    %140 = vector.extract_strided_slice %89 {offsets = [0, 10, 0], sizes = [16, 1, 16], strides = [1, 1, 1]} : vector<16x16x16xf32> to vector<16x1x16xf32>
    %141 = vector.shape_cast %140 : vector<16x1x16xf32> to vector<16x16xf32>
    %c0_119 = arith.constant 0 : index
    %c0_120 = arith.constant 0 : index
    %c160 = arith.constant 160 : index
    %142 = vector.load %arg8[%c0_119, %c0_120, %c160] : memref<1x16x256xf32, #tpu.memory_space<vmem>>, vector<1x16x16xf32>
    %143 = vector.shape_cast %142 : vector<1x16x16xf32> to vector<16x16xf32>
    %144 = vector.shape_cast %141 : vector<16x16xf32> to vector<1x16x16xf32>
    tpu.vector_store %arg8[%c0_119, %c0_120, %c160], %144 {strides = array<i32>} : memref<1x16x256xf32, #tpu.memory_space<vmem>>, vector<1x16x16xf32>,
    %145 = vector.extract_strided_slice %89 {offsets = [0, 11, 0], sizes = [16, 1, 16], strides = [1, 1, 1]} : vector<16x16x16xf32> to vector<16x1x16xf32>
    %146 = vector.shape_cast %145 : vector<16x1x16xf32> to vector<16x16xf32>
    %c0_121 = arith.constant 0 : index
    %c0_122 = arith.constant 0 : index
    %c176 = arith.constant 176 : index
    %147 = vector.load %arg8[%c0_121, %c0_122, %c176] : memref<1x16x256xf32, #tpu.memory_space<vmem>>, vector<1x16x16xf32>
    %148 = vector.shape_cast %147 : vector<1x16x16xf32> to vector<16x16xf32>
    %149 = vector.shape_cast %146 : vector<16x16xf32> to vector<1x16x16xf32>
    tpu.vector_store %arg8[%c0_121, %c0_122, %c176], %149 {strides = array<i32>} : memref<1x16x256xf32, #tpu.memory_space<vmem>>, vector<1x16x16xf32>,
    %150 = vector.extract_strided_slice %89 {offsets = [0, 12, 0], sizes = [16, 1, 16], strides = [1, 1, 1]} : vector<16x16x16xf32> to vector<16x1x16xf32>
    %151 = vector.shape_cast %150 : vector<16x1x16xf32> to vector<16x16xf32>
    %c0_123 = arith.constant 0 : index
    %c0_124 = arith.constant 0 : index
    %c192 = arith.constant 192 : index
    %152 = vector.load %arg8[%c0_123, %c0_124, %c192] : memref<1x16x256xf32, #tpu.memory_space<vmem>>, vector<1x16x16xf32>
    %153 = vector.shape_cast %152 : vector<1x16x16xf32> to vector<16x16xf32>
    %154 = vector.shape_cast %151 : vector<16x16xf32> to vector<1x16x16xf32>
    tpu.vector_store %arg8[%c0_123, %c0_124, %c192], %154 {strides = array<i32>} : memref<1x16x256xf32, #tpu.memory_space<vmem>>, vector<1x16x16xf32>,
    %155 = vector.extract_strided_slice %89 {offsets = [0, 13, 0], sizes = [16, 1, 16], strides = [1, 1, 1]} : vector<16x16x16xf32> to vector<16x1x16xf32>
    %156 = vector.shape_cast %155 : vector<16x1x16xf32> to vector<16x16xf32>
    %c0_125 = arith.constant 0 : index
    %c0_126 = arith.constant 0 : index
    %c208 = arith.constant 208 : index
    %157 = vector.load %arg8[%c0_125, %c0_126, %c208] : memref<1x16x256xf32, #tpu.memory_space<vmem>>, vector<1x16x16xf32>
    %158 = vector.shape_cast %157 : vector<1x16x16xf32> to vector<16x16xf32>
    %159 = vector.shape_cast %156 : vector<16x16xf32> to vector<1x16x16xf32>
    tpu.vector_store %arg8[%c0_125, %c0_126, %c208], %159 {strides = array<i32>} : memref<1x16x256xf32, #tpu.memory_space<vmem>>, vector<1x16x16xf32>,
    %160 = vector.extract_strided_slice %89 {offsets = [0, 14, 0], sizes = [16, 1, 16], strides = [1, 1, 1]} : vector<16x16x16xf32> to vector<16x1x16xf32>
    %161 = vector.shape_cast %160 : vector<16x1x16xf32> to vector<16x16xf32>
    %c0_127 = arith.constant 0 : index
    %c0_128 = arith.constant 0 : index
    %c224 = arith.constant 224 : index
    %162 = vector.load %arg8[%c0_127, %c0_128, %c224] : memref<1x16x256xf32, #tpu.memory_space<vmem>>, vector<1x16x16xf32>
    %163 = vector.shape_cast %162 : vector<1x16x16xf32> to vector<16x16xf32>
    %164 = vector.shape_cast %161 : vector<16x16xf32> to vector<1x16x16xf32>
    tpu.vector_store %arg8[%c0_127, %c0_128, %c224], %164 {strides = array<i32>} : memref<1x16x256xf32, #tpu.memory_space<vmem>>, vector<1x16x16xf32>,
    %165 = vector.extract_strided_slice %89 {offsets = [0, 15, 0], sizes = [16, 1, 16], strides = [1, 1, 1]} : vector<16x16x16xf32> to vector<16x1x16xf32>
    %166 = vector.shape_cast %165 : vector<16x1x16xf32> to vector<16x16xf32>
    %c0_129 = arith.constant 0 : index
    %c0_130 = arith.constant 0 : index
    %c240 = arith.constant 240 : index
    %167 = vector.load %arg8[%c0_129, %c0_130, %c240] : memref<1x16x256xf32, #tpu.memory_space<vmem>>, vector<1x16x16xf32>
    %168 = vector.shape_cast %167 : vector<1x16x16xf32> to vector<16x16xf32>
    %169 = vector.shape_cast %166 : vector<16x16xf32> to vector<1x16x16xf32>
    tpu.vector_store %arg8[%c0_129, %c0_130, %c240], %169 {strides = array<i32>} : memref<1x16x256xf32, #tpu.memory_space<vmem>>, vector<1x16x16xf32>,
    return
  }
  func.func @transform_0(%arg0: i32) -> (i32, i32, i32, i32) {
    %c0_i32 = arith.constant 0 : i32
    %c0_i32_0 = arith.constant 0 : i32
    %c0_i32_1 = arith.constant 0 : i32
    %c0_i32_2 = arith.constant 0 : i32
    return %arg0, %c0_i32, %c0_i32_0, %c0_i32_1 : i32, i32, i32, i32
  }
  func.func @transform_1(%arg0: i32) -> (i32, i32) {
    %c0_i32 = arith.constant 0 : i32
    %c0_i32_0 = arith.constant 0 : i32
    %c0_i32_1 = arith.constant 0 : i32
    return %c0_i32, %c0_i32_0 : i32, i32
  }
  func.func @transform_2(%arg0: i32) -> (i32, i32) {
    %c0_i32 = arith.constant 0 : i32
    %c0_i32_0 = arith.constant 0 : i32
    %c0_i32_1 = arith.constant 0 : i32
    return %c0_i32, %c0_i32_0 : i32, i32
  }
  func.func @transform_3(%arg0: i32) -> (i32, i32) {
    %c0_i32 = arith.constant 0 : i32
    %c0_i32_0 = arith.constant 0 : i32
    %c0_i32_1 = arith.constant 0 : i32
    return %c0_i32, %c0_i32_0 : i32, i32
  }
  func.func @transform_4(%arg0: i32) -> (i32, i32) {
    %c0_i32 = arith.constant 0 : i32
    %c0_i32_0 = arith.constant 0 : i32
    %c0_i32_1 = arith.constant 0 : i32
    return %c0_i32, %c0_i32_0 : i32, i32
  }
  func.func @transform_5(%arg0: i32) -> (i32, i32) {
    %c0_i32 = arith.constant 0 : i32
    %c0_i32_0 = arith.constant 0 : i32
    %c0_i32_1 = arith.constant 0 : i32
    return %c0_i32, %c0_i32_0 : i32, i32
  }
  func.func @transform_6(%arg0: i32) -> (i32, i32) {
    %c0_i32 = arith.constant 0 : i32
    %c0_i32_0 = arith.constant 0 : i32
    %c0_i32_1 = arith.constant 0 : i32
    return %c0_i32, %c0_i32_0 : i32, i32
  }
  func.func @transform_7(%arg0: i32) -> (i32, i32, i32) {
    %c0_i32 = arith.constant 0 : i32
    %c0_i32_0 = arith.constant 0 : i32
    %c0_i32_1 = arith.constant 0 : i32
    return %arg0, %c0_i32, %c0_i32_0 : i32, i32, i32
  }
}

</mosaic_0001>

<bundles_post_ra>
// kernel: basic_block_forward.1
= control target key start
LH: loop header
LB: loop body
LE: loop exit
PB: predicated region body
PF: predicated region fallthrough
CT: control target
= control target key end

     0   :  { %s6853_s24 = smov 0   ;;  %s10315_s0 = inlined_call_operand.vmem [shape: f32[2,16,16,16], index: 0, kind: input, shape index: {}]   ;;  %s10316_s1 = inlined_call_operand.vmem [shape: f32[144,16], index: 1, kind: input, shape index: {}]   ;;  %s10317_s2 = inlined_call_operand.vmem [shape: f32[144,16], index: 2, kind: input, shape index: {}]   ;;  %s10318_s3 = inlined_call_operand.vmem [shape: f32[256,16], index: 3, kind: input, shape index: {}]   ;;  %s10319_s4 = inlined_call_operand.vmem [shape: f32[256,16], index: 4, kind: input, shape index: {}]   ;;  %s10320_s5 = inlined_call_operand.vmem [shape: f32[256,16], index: 5, kind: input, shape index: {}]   ;;  %s10321_s6 = inlined_call_operand.vmem [shape: f32[256,16], index: 6, kind: input, shape index: {}]   ;;  %s10322_s7 = inlined_call_operand.vmem [shape: f32[2,16,256], index: 7, kind: output, shape index: {}]  }
   0x1 LB: > { %s5542_s25 = sadd.s32 4294967295, %s6802_s24   ;;  %p5546_p0 = scmp.ge.s32.totalorder %s6802_s24, 1  ;;  %s6802_s24 = sphi %s6853_s24, %s17_s24  }
   0x2   : > { %p237_p1 = scmp.lt.s32.totalorder %s6802_s24, 3 }
   0x4   : > { %p238_p2 = pnand %p5546_p0, %p237_p1 }
   0x6   : > { %241 = sbr.rel (%p238_p2) target bundleno = 2037 (0x7f5), region = 48 }
   0xd   : > { %vm279_vm0 = vcmask 130048   ;;  %vm282_vm1 = vcmask 123904   ;;  %v6804_v0 = vmov 0.0   ;;  %p269_p3 = scmp.lt.s32.totalorder %s5542_s25, 1  ;;  %v6805_v1 = vmov 0.0|0.0   ;;  %v1815_v2 = vld [vmem:[%s10316_s1] sm:$0xff] }
   0xe   : > { %280 = vst.msk [vmem:[#allocation2] sm:$0xff] %vm279_vm0, %v6804_v0  ;;  %281 = vst.msk [vmem:[#allocation2 + $0x8] sm:$0xff] %vm279_vm0, %v6804_v0  ;;  %5619 = vmatprep.subr.bf16.mxu0 %v6805_v1  ;;  %v1816_v3 = vld [vmem:[%s10316_s1 + $0x8] sm:$0xff]  ;;  %v1817_v4 = vld [vmem:[%s10316_s1 + $0x10] sm:$0xff]  ;;  %5646 = vmatprep.subr.bf16.mxu1 %v6805_v1  ;;  %s6806_s23 = smov 16   ;;  %s6807_s30 = smov 32  }
   0xf   : > { %283 = vst.msk [vmem:[#allocation2 + $0x10] sm:$0x3] %vm282_vm1, %v6804_v0  ;;  %286 = vst.msk [vmem:[#allocation2 + $0x28] sm:$0x3] %vm282_vm1, %v6804_v0  ;;  %v5620_v5 = vpack.c.bf16 %v1816_v3, %v1815_v2  ;;  %v1818_v6 = vld [vmem:[%s10316_s1 + $0x18] sm:$0xff]  ;;  %s10337_s25 = smov (!%p269_p3, %s5542_s25), 1 }
  0x10   : > { %284 = vst.msk [vmem:[#allocation2 + $0x18] sm:$0xff] %vm279_vm0, %v6804_v0  ;;  %285 = vst.msk [vmem:[#allocation2 + $0x20] sm:$0xff] %vm279_vm0, %v6804_v0  ;;  %v5623_v7 = vpack.c.bf16 %v1818_v6, %v1817_v4  ;;  %s5617_s11 = sshll.u32 %s10337_s25, 8  ;;  %v1819_v8 = vld [vmem:[%s10316_s1 + $0x20] sm:$0xff]  ;;  %v1820_v9 = vld [vmem:[%s10316_s1 + $0x28] sm:$0xff]  ;;  %s6808_s12 = smov 48  }
  0x11   : > { %287 = vst.msk [vmem:[#allocation2 + $0x30] sm:$0xff] %vm279_vm0, %v6804_v0  ;;  %288 = vst.msk [vmem:[#allocation2 + $0x38] sm:$0xff] %vm279_vm0, %v6804_v0  ;;  %5621 = vmatpush1.bf16.msra.mxu0 %v5620_v5  ;;  %s7108_s18 = scalar_lea.vmem %s10315_s0, %s5617_s11  ;;  %v1821_v13 = vld [vmem:[%s10316_s1 + $0x30] sm:$0xff]  ;;  %v1822_v14 = vld [vmem:[%s10316_s1 + $0x38] sm:$0xff]  ;;  %v5626_v18 = vpack.c.bf16 %v1820_v9, %v1819_v8  ;;  %s6809_s13 = smov 80   ;;  %vm1617_vm2 = vcmask 261120  }
  0x12   : > { %289 = vst.msk [vmem:[#allocation2 + $0x40] sm:$0x3] %vm282_vm1, %v6804_v0  ;;  %292 = vst.msk [vmem:[#allocation2 + $0x58] sm:$0x3] %vm282_vm1, %v6804_v0  ;;  %5622 = vmatprep.subr.bf16.mxu0 %v6805_v1  ;;  %v335_v10 = vld [vmem:[%s7108_s18] sm:$0xff]  ;;  %v336_v11 = vld [vmem:[%s7108_s18 + $0x8] sm:$0xff]  ;;  %v5629_v35 = vpack.c.bf16 %v1822_v14, %v1821_v13 }
  0x13   : > { %290 = vst.msk [vmem:[#allocation2 + $0x48] sm:$0xff] %vm279_vm0, %v6804_v0  ;;  %291 = vst.msk [vmem:[#allocation2 + $0x50] sm:$0xff] %vm279_vm0, %v6804_v0  ;;  %v337_v12 = vld [vmem:[%s7108_s18 + $0x10] sm:$0xff]  ;;  %v338_v21 = vld [vmem:[%s7108_s18 + $0x18] sm:$0xff]  ;;  %s6810_s19 = smov 64   ;;  %s6811_s20 = smov 112  }
  0x14   : > { %293 = vst.msk [vmem:[#allocation2 + $0x60] sm:$0xff] %vm279_vm0, %v6804_v0  ;;  %294 = vst.msk [vmem:[#allocation2 + $0x68] sm:$0xff] %vm279_vm0, %v6804_v0  ;;  %v339_v22 = vld [vmem:[%s7108_s18 + $0x20] sm:$0xff]  ;;  %v340_v23 = vld [vmem:[%s7108_s18 + $0x28] sm:$0xff]  ;;  %s6812_s21 = smov 96   ;;  %vm1650_vm3 = vcmask 392192  }
  0x15   : > { %295 = vst.msk [vmem:[#allocation2 + $0x70] sm:$0x3] %vm282_vm1, %v6804_v0  ;;  %298 = vst.msk [vmem:[#allocation2 + $0x88] sm:$0x3] %vm282_vm1, %v6804_v0  ;;  %v432_v15 = vld [vmem:[#allocation2 + $0x1] sm:$0xff]  ;;  %5624 = vmatpush1.bf16.msra.mxu0 %v5623_v7  ;;  %v341_v24 = vld [vmem:[%s7108_s18 + $0x30] sm:$0xff] }
  0x16   : > { %296 = vst.msk [vmem:[#allocation2 + $0x78] sm:$0xff] %vm279_vm0, %v6804_v0  ;;  %297 = vst.msk [vmem:[#allocation2 + $0x80] sm:$0xff] %vm279_vm0, %v6804_v0  ;;  %v433_v16 = vld [vmem:[#allocation2 + $0x9] sm:$0xff]  ;;  %5625 = vmatprep.subr.bf16.mxu0 %v6805_v1  ;;  %v342_v25 = vld [vmem:[%s7108_s18 + $0x38] sm:$0xff]  ;;  %vm1683_vm4 = vcmask 523264   ;;  %vm1716_vm5 = vcmask 654336  }
  0x17   : > { %299 = vst.msk [vmem:[#allocation2 + $0x90] sm:$0xff] %vm279_vm0, %v6804_v0  ;;  %300 = vst.msk [vmem:[#allocation2 + $0x98] sm:$0xff] %vm279_vm0, %v6804_v0  ;;  %v464_v17 = vld [vmem:[#allocation2 + $0x2] sm:$0xff]  ;;  %v5702_v19 = vpack.i.bf16 %v433_v16, %v432_v15  ;;  %v465_v20 = vld [vmem:[#allocation2 + $0xa] sm:$0xff]  ;;  %vm1749_vm6 = vcmask 785408   ;;  %vm1782_vm7 = vcmask 916480  }
  0x18   : > { %301 = vst.msk [vmem:[#allocation2 + $0xa0] sm:$0x3] %vm282_vm1, %v6804_v0  ;;  %304 = vst.msk [vmem:[#allocation2 + $0xb8] sm:$0x3] %vm282_vm1, %v6804_v0  ;;  %v5707_v26 = vpack.i.bf16 %v465_v20, %v464_v17  ;;  %v343_v27 = vld [vmem:[%s7108_s18 + $0x40] sm:$0xff]  ;;  %v344_v28 = vld [vmem:[%s7108_s18 + $0x48] sm:$0xff] }
  0x19   : > { %302 = vst.msk [vmem:[#allocation2 + $0xa8] sm:$0xff] %vm279_vm0, %v6804_v0  ;;  %303 = vst.msk [vmem:[#allocation2 + $0xb0] sm:$0xff] %vm279_vm0, %v6804_v0  ;;  %5703 = vrot.lane.b32.xlu0 %v5702_v19, %s6806_s23  ;;  %v345_v29 = vld [vmem:[%s7108_s18 + $0x50] sm:$0xff]  ;;  %v1823_v30 = vld [vmem:[%s10316_s1 + $0x40] sm:$0xff]  ;;  %5627 = vmatpush1.bf16.msra.mxu0 %v5626_v18  ;;  %vm4890_vm8 = vcmask 1041409   ;;  %vm4893_vm9 = vcmask 1042434  }
  0x1a   : > { %305 = vst.msk [vmem:[#allocation2 + $0xc0] sm:$0xff] %vm279_vm0, %v6804_v0  ;;  %306 = vst.msk [vmem:[#allocation2 + $0xc8] sm:$0xff] %vm279_vm0, %v6804_v0  ;;  %v1824_v31 = vld [vmem:[%s10316_s1 + $0x48] sm:$0xff]  ;;  %v346_v32 = vld [vmem:[%s7108_s18 + $0x58] sm:$0xff]  ;;  %5628 = vmatprep.subr.bf16.mxu0 %v6805_v1  ;;  %vm4896_vm10 = vcmask 1043459   ;;  %vm4899_vm11 = vcmask 1044484  }
  0x1b   : > { %307 = vst.msk [vmem:[#allocation2 + $0xd0] sm:$0x3] %vm282_vm1, %v6804_v0  ;;  %310 = vst.msk [vmem:[#allocation2 + $0xe8] sm:$0x3] %vm282_vm1, %v6804_v0  ;;  %v347_v33 = vld [vmem:[%s7108_s18 + $0x60] sm:$0xff]  ;;  %v348_v34 = vld [vmem:[%s7108_s18 + $0x68] sm:$0xff]  ;;  %v5632_v48 = vpack.c.bf16 %v1824_v31, %v1823_v30 }
  0x1c   : > { %308 = vst.msk [vmem:[#allocation2 + $0xd8] sm:$0xff] %vm279_vm0, %v6804_v0  ;;  %309 = vst.msk [vmem:[#allocation2 + $0xe0] sm:$0xff] %vm279_vm0, %v6804_v0  ;;  %v349_v36 = vld [vmem:[%s7108_s18 + $0x70] sm:$0xff]  ;;  %v350_v37 = vld [vmem:[%s7108_s18 + $0x78] sm:$0xff]  ;;  %vm4902_vm12 = vcmask 1045509   ;;  %vm4905_vm13 = vcmask 1046534  }
  0x1d   : > { %311 = vst.msk [vmem:[#allocation2 + $0xf0] sm:$0xff] %vm279_vm0, %v6804_v0  ;;  %312 = vst.msk [vmem:[#allocation2 + $0xf8] sm:$0xff] %vm279_vm0, %v6804_v0  ;;  %v351_v38 = vld [vmem:[%s7108_s18 + $0x80] sm:$0xff]  ;;  %v352_v39 = vld [vmem:[%s7108_s18 + $0x88] sm:$0xff]  ;;  %5708 = vrot.lane.b32.xlu0 %v5707_v26, %s6807_s30  ;;  %5630 = vmatpush1.bf16.msra.mxu0 %v5629_v35  ;;  %vm4908_vm14 = vcmask 1047559   ;;  %vm4962_vm15 = vcmask 261248  }
  0x1e   : > { %313 = vst.msk [vmem:[#allocation2 + $0x100] sm:$0x3] %vm282_vm1, %v6804_v0  ;;  %316 = vst.msk [vmem:[#allocation2 + $0x118] sm:$0x3] %vm282_vm1, %v6804_v0  ;;  %v1825_v43 = vld [vmem:[%s10316_s1 + $0x50] sm:$0xff]  ;;  %5631 = vmatprep.subr.bf16.mxu0 %v6805_v1  ;;  %v1826_v52 = vld [vmem:[%s10316_s1 + $0x58] sm:$0xff] }
  0x1f   : > { %314 = vst.msk [vmem:[#allocation2 + $0x108] sm:$0xff] %vm279_vm0, %v6804_v0  ;;  %315 = vst.msk [vmem:[#allocation2 + $0x110] sm:$0xff] %vm279_vm0, %v6804_v0  ;;  %v5635_v58 = vpack.c.bf16 %v1826_v52, %v1825_v43  ;;  %v1827_v59 = vld [vmem:[%s10316_s1 + $0x60] sm:$0xff]  ;;  %v1828_v60 = vld [vmem:[%s10316_s1 + $0x68] sm:$0xff] }
  0x20   : > { %317 = vst.msk [vmem:[#allocation2 + $0x120] sm:$0xff] %vm279_vm0, %v6804_v0  ;;  %318 = vst.msk [vmem:[#allocation2 + $0x128] sm:$0xff] %vm279_vm0, %v6804_v0  ;;  %v5638_v62 = vpack.c.bf16 %v1828_v60, %v1827_v59  ;;  %v353_v6 = vld [vmem:[%s7108_s18 + $0x90] sm:$0xff]  ;;  %v354_v7 = vld [vmem:[%s7108_s18 + $0x98] sm:$0xff] }
  0x21   : > { %319 = vst.msk [vmem:[#allocation2 + $0x130] sm:$0x3] %vm282_vm1, %v6804_v0  ;;  %322 = vst.msk [vmem:[#allocation2 + $0x148] sm:$0x3] %vm282_vm1, %v6804_v0  ;;  %5633 = vmatpush1.bf16.msra.mxu0 %v5632_v48  ;;  %v1829_v8 = vld [vmem:[%s10316_s1 + $0x70] sm:$0xff]  ;;  %v355_v14 = vld [vmem:[%s7108_s18 + $0xa0] sm:$0xff] }
  0x22   : > { %320 = vst.msk [vmem:[#allocation2 + $0x138] sm:$0xff] %vm279_vm0, %v6804_v0  ;;  %321 = vst.msk [vmem:[#allocation2 + $0x140] sm:$0xff] %vm279_vm0, %v6804_v0  ;;  %5634 = vmatprep.subr.bf16.mxu0 %v6805_v1  ;;  %v356_v15 = vld [vmem:[%s7108_s18 + $0xa8] sm:$0xff]  ;;  %v357_v16 = vld [vmem:[%s7108_s18 + $0xb0] sm:$0xff] }
  0x23   : > { %323 = vst.msk [vmem:[#allocation2 + $0x150] sm:$0xff] %vm279_vm0, %v6804_v0  ;;  %324 = vst.msk [vmem:[#allocation2 + $0x158] sm:$0xff] %vm279_vm0, %v6804_v0  ;;  %v358_v17 = vld [vmem:[%s7108_s18 + $0xb8] sm:$0xff]  ;;  %v359_v19 = vld [vmem:[%s7108_s18 + $0xc0] sm:$0xff] }
  0x24   : > { %325 = vst.msk [vmem:[#allocation2 + $0x160] sm:$0x3] %vm282_vm1, %v6804_v0  ;;  %328 = vst.msk [vmem:[#allocation2 + $0x178] sm:$0x3] %vm282_vm1, %v6804_v0  ;;  %v360_v20 = vld [vmem:[%s7108_s18 + $0xc8] sm:$0xff]  ;;  %v361_v31 = vld [vmem:[%s7108_s18 + $0xd0] sm:$0xff] }
  0x25   : > { %326 = vst.msk [vmem:[#allocation2 + $0x168] sm:$0xff] %vm279_vm0, %v6804_v0  ;;  %327 = vst.msk [vmem:[#allocation2 + $0x170] sm:$0xff] %vm279_vm0, %v6804_v0  ;;  %5636 = vmatpush1.bf16.msra.mxu0 %v5635_v58  ;;  %v363_v43 = vld [vmem:[%s7108_s18 + $0xe0] sm:$0xff]  ;;  %v366_v58 = vld [vmem:[%s7108_s18 + $0xf8] sm:$0xff] }
  0x26   : > { %329 = vst.msk [vmem:[#allocation2 + $0x180] sm:$0xff] %vm279_vm0, %v6804_v0  ;;  %330 = vst.msk [vmem:[#allocation2 + $0x188] sm:$0xff] %vm279_vm0, %v6804_v0  ;;  %5637 = vmatprep.subr.bf16.mxu0 %v6805_v1 }
  0x27   : > { %331 = vst.msk [vmem:[#allocation2 + $0x190] sm:$0x3] %vm282_vm1, %v6804_v0  ;;  %334 = vst.msk [vmem:[#allocation2 + $0x1a8] sm:$0x3] %vm282_vm1, %v6804_v0 }
  0x28   : > { %332 = vst.msk [vmem:[#allocation2 + $0x198] sm:$0xff] %vm279_vm0, %v6804_v0  ;;  %333 = vst.msk [vmem:[#allocation2 + $0x1a0] sm:$0xff] %vm279_vm0, %v6804_v0 }
  0x29   : > { %2564 = vst.msk [vmem:[#allocation3] sm:$0xff] %vm279_vm0, %v6804_v0  ;;  %2565 = vst.msk [vmem:[#allocation3 + $0x8] sm:$0xff] %vm279_vm0, %v6804_v0  ;;  %5639 = vmatpush1.bf16.msra.mxu0 %v5638_v62 }
  0x2a   : > { %2566 = vst.msk [vmem:[#allocation3 + $0x10] sm:$0x3] %vm282_vm1, %v6804_v0  ;;  %2569 = vst.msk [vmem:[#allocation3 + $0x28] sm:$0x3] %vm282_vm1, %v6804_v0  ;;  %5640 = vmatprep.subr.bf16.mxu0 %v6805_v1 }
  0x2b   : > { %2567 = vst.msk [vmem:[#allocation3 + $0x18] sm:$0xff] %vm279_vm0, %v6804_v0  ;;  %2568 = vst.msk [vmem:[#allocation3 + $0x20] sm:$0xff] %vm279_vm0, %v6804_v0 }
  0x2c   : > { %2570 = vst.msk [vmem:[#allocation3 + $0x30] sm:$0xff] %vm279_vm0, %v6804_v0  ;;  %2571 = vst.msk [vmem:[#allocation3 + $0x38] sm:$0xff] %vm279_vm0, %v6804_v0 }
  0x2d   : > { %2572 = vst.msk [vmem:[#allocation3 + $0x40] sm:$0x3] %vm282_vm1, %v6804_v0  ;;  %2575 = vst.msk [vmem:[#allocation3 + $0x58] sm:$0x3] %vm282_vm1, %v6804_v0 }
  0x2e   : > { %2573 = vst.msk [vmem:[#allocation3 + $0x48] sm:$0xff] %vm279_vm0, %v6804_v0  ;;  %2574 = vst.msk [vmem:[#allocation3 + $0x50] sm:$0xff] %vm279_vm0, %v6804_v0 }
  0x2f   : > { %2576 = vst.msk [vmem:[#allocation3 + $0x60] sm:$0xff] %vm279_vm0, %v6804_v0  ;;  %2577 = vst.msk [vmem:[#allocation3 + $0x68] sm:$0xff] %vm279_vm0, %v6804_v0 }
  0x30   : > { %2578 = vst.msk [vmem:[#allocation3 + $0x70] sm:$0x3] %vm282_vm1, %v6804_v0  ;;  %2581 = vst.msk [vmem:[#allocation3 + $0x88] sm:$0x3] %vm282_vm1, %v6804_v0 }
  0x31   : > { %2579 = vst.msk [vmem:[#allocation3 + $0x78] sm:$0xff] %vm279_vm0, %v6804_v0  ;;  %2580 = vst.msk [vmem:[#allocation3 + $0x80] sm:$0xff] %vm279_vm0, %v6804_v0 }
  0x32   : > { %2582 = vst.msk [vmem:[#allocation3 + $0x90] sm:$0xff] %vm279_vm0, %v6804_v0  ;;  %2583 = vst.msk [vmem:[#allocation3 + $0x98] sm:$0xff] %vm279_vm0, %v6804_v0 }
  0x33   : > { %2584 = vst.msk [vmem:[#allocation3 + $0xa0] sm:$0x3] %vm282_vm1, %v6804_v0  ;;  %2587 = vst.msk [vmem:[#allocation3 + $0xb8] sm:$0x3] %vm282_vm1, %v6804_v0 }
  0x34   : > { %2585 = vst.msk [vmem:[#allocation3 + $0xa8] sm:$0xff] %vm279_vm0, %v6804_v0  ;;  %2586 = vst.msk [vmem:[#allocation3 + $0xb0] sm:$0xff] %vm279_vm0, %v6804_v0 }
  0x35   : > { %2588 = vst.msk [vmem:[#allocation3 + $0xc0] sm:$0xff] %vm279_vm0, %v6804_v0  ;;  %2589 = vst.msk [vmem:[#allocation3 + $0xc8] sm:$0xff] %vm279_vm0, %v6804_v0 }
  0x36   : > { %2590 = vst.msk [vmem:[#allocation3 + $0xd0] sm:$0x3] %vm282_vm1, %v6804_v0  ;;  %2593 = vst.msk [vmem:[#allocation3 + $0xe8] sm:$0x3] %vm282_vm1, %v6804_v0 }
  0x37   : > { %2591 = vst.msk [vmem:[#allocation3 + $0xd8] sm:$0xff] %vm279_vm0, %v6804_v0  ;;  %2592 = vst.msk [vmem:[#allocation3 + $0xe0] sm:$0xff] %vm279_vm0, %v6804_v0 }
  0x38   : > { %2594 = vst.msk [vmem:[#allocation3 + $0xf0] sm:$0xff] %vm279_vm0, %v6804_v0  ;;  %2595 = vst.msk [vmem:[#allocation3 + $0xf8] sm:$0xff] %vm279_vm0, %v6804_v0 }
  0x39   : > { %2596 = vst.msk [vmem:[#allocation3 + $0x100] sm:$0x3] %vm282_vm1, %v6804_v0  ;;  %2599 = vst.msk [vmem:[#allocation3 + $0x118] sm:$0x3] %vm282_vm1, %v6804_v0 }
  0x3a   : > { %2597 = vst.msk [vmem:[#allocation3 + $0x108] sm:$0xff] %vm279_vm0, %v6804_v0  ;;  %2598 = vst.msk [vmem:[#allocation3 + $0x110] sm:$0xff] %vm279_vm0, %v6804_v0 }
  0x3b   : > { %2600 = vst.msk [vmem:[#allocation3 + $0x120] sm:$0xff] %vm279_vm0, %v6804_v0  ;;  %2601 = vst.msk [vmem:[#allocation3 + $0x128] sm:$0xff] %vm279_vm0, %v6804_v0 }
  0x3c   : > { %2602 = vst.msk [vmem:[#allocation3 + $0x130] sm:$0x3] %vm282_vm1, %v6804_v0  ;;  %2605 = vst.msk [vmem:[#allocation3 + $0x148] sm:$0x3] %vm282_vm1, %v6804_v0 }
  0x3d   : > { %2603 = vst.msk [vmem:[#allocation3 + $0x138] sm:$0xff] %vm279_vm0, %v6804_v0  ;;  %2604 = vst.msk [vmem:[#allocation3 + $0x140] sm:$0xff] %vm279_vm0, %v6804_v0 }
  0x3e   : > { %2606 = vst.msk [vmem:[#allocation3 + $0x150] sm:$0xff] %vm279_vm0, %v6804_v0  ;;  %2607 = vst.msk [vmem:[#allocation3 + $0x158] sm:$0xff] %vm279_vm0, %v6804_v0 }
  0x3f   : > { %2608 = vst.msk [vmem:[#allocation3 + $0x160] sm:$0x3] %vm282_vm1, %v6804_v0  ;;  %2611 = vst.msk [vmem:[#allocation3 + $0x178] sm:$0x3] %vm282_vm1, %v6804_v0 }
  0x40   : > { %2609 = vst.msk [vmem:[#allocation3 + $0x168] sm:$0xff] %vm279_vm0, %v6804_v0  ;;  %2610 = vst.msk [vmem:[#allocation3 + $0x170] sm:$0xff] %vm279_vm0, %v6804_v0 }
  0x41   : > { %2612 = vst.msk [vmem:[#allocation3 + $0x180] sm:$0xff] %vm279_vm0, %v6804_v0  ;;  %2613 = vst.msk [vmem:[#allocation3 + $0x188] sm:$0xff] %vm279_vm0, %v6804_v0 }
  0x42   : > { %2614 = vst.msk [vmem:[#allocation3 + $0x190] sm:$0x3] %vm282_vm1, %v6804_v0  ;;  %2617 = vst.msk [vmem:[#allocation3 + $0x1a8] sm:$0x3] %vm282_vm1, %v6804_v0  ;;  %vm4999_vm1 = vcmask 392448  }
  0x43   : > { %2615 = vst.msk [vmem:[#allocation3 + $0x198] sm:$0xff] %vm279_vm0, %v6804_v0  ;;  %2616 = vst.msk [vmem:[#allocation3 + $0x1a0] sm:$0xff] %vm279_vm0, %v6804_v0 }
  0x44   : > { %368 = vst.msk [vmem:[#allocation2 + $0x19] sm:$0xff] %vm279_vm0, %v335_v10  ;;  %369 = vst.msk [vmem:[#allocation2 + $0x21] sm:$0xff] %vm279_vm0, %v336_v11  ;;  %v1830_v10 = vld [vmem:[%s10316_s1 + $0x78] sm:$0xff]  ;;  %v1831_v11 = vld [vmem:[%s10316_s1 + $0x80] sm:$0xff] }
  0x45   : > { %370 = vst.msk [vmem:[#allocation2 + $0x31] sm:$0xff] %vm279_vm0, %v337_v12  ;;  %371 = vst.msk [vmem:[#allocation2 + $0x39] sm:$0xff] %vm279_vm0, %v338_v21  ;;  %v1832_v12 = vld [vmem:[%s10316_s1 + $0x88] sm:$0xff]  ;;  %v5641_v13 = vpack.c.bf16 %v1830_v10, %v1829_v8 }
  0x46   : > { %372 = vst.msk [vmem:[#allocation2 + $0x49] sm:$0xff] %vm279_vm0, %v339_v22  ;;  %373 = vst.msk [vmem:[#allocation2 + $0x51] sm:$0xff] %vm279_vm0, %v340_v23  ;;  %v5644_v18 = vpack.c.bf16 %v1832_v12, %v1831_v11 }
  0x47   : > { %374 = vst.msk [vmem:[#allocation2 + $0x61] sm:$0xff] %vm279_vm0, %v341_v24  ;;  %375 = vst.msk [vmem:[#allocation2 + $0x69] sm:$0xff] %vm279_vm0, %v342_v25  ;;  %5642 = vmatpush1.bf16.msra.mxu0 %v5641_v13 }
  0x48   : > { %376 = vst.msk [vmem:[#allocation2 + $0x79] sm:$0xff] %vm279_vm0, %v343_v27  ;;  %377 = vst.msk [vmem:[#allocation2 + $0x81] sm:$0xff] %vm279_vm0, %v344_v28  ;;  %5643 = vmatprep.subr.bf16.mxu0 %v6805_v1 }
  0x49   : > { %378 = vst.msk [vmem:[#allocation2 + $0x91] sm:$0xff] %vm279_vm0, %v345_v29  ;;  %379 = vst.msk [vmem:[#allocation2 + $0x99] sm:$0xff] %vm279_vm0, %v346_v32  ;;  %v362_v32 = vld [vmem:[%s7108_s18 + $0xd8] sm:$0xff] }
  0x4a   : > { %380 = vst.msk [vmem:[#allocation2 + $0xa9] sm:$0xff] %vm279_vm0, %v347_v33  ;;  %381 = vst.msk [vmem:[#allocation2 + $0xb1] sm:$0xff] %vm279_vm0, %v348_v34 }
  0x4b   : > { %382 = vst.msk [vmem:[#allocation2 + $0xc1] sm:$0xff] %vm279_vm0, %v349_v36  ;;  %383 = vst.msk [vmem:[#allocation2 + $0xc9] sm:$0xff] %vm279_vm0, %v350_v37  ;;  %v7161_v40 = vld [vmem:[#allocation2 + $0x18] sm:$0xff]  ;;  %v7163_v41 = vld [vmem:[#allocation2 + $0x20] sm:$0xff]  ;;  %5645 = vmatpush1.bf16.msra.mxu0 %v5644_v18 }
  0x4c   : > { %384 = vst.msk [vmem:[#allocation2 + $0xd9] sm:$0xff] %vm279_vm0, %v351_v38  ;;  %v560_v42 = vld [vmem:[#allocation2 + $0x1a] sm:$0xff]  ;;  %385 = vst.msk [vmem:[#allocation2 + $0xe1] sm:$0xff] %vm279_vm0, %v352_v39  ;;  %v5712_v44 = vpack.i.bf16 %v7163_v41, %v7161_v40  ;;  %v561_v45 = vld [vmem:[#allocation2 + $0x22] sm:$0xff] }
  0x4d   : > { %v528_v46 = vld [vmem:[#allocation2 + $0x19] sm:$0xff]  ;;  %v529_v47 = vld [vmem:[#allocation2 + $0x21] sm:$0xff]  ;;  %v5722_v49 = vpack.i.bf16 %v561_v45, %v560_v42  ;;  %v625_v50 = vld [vmem:[#allocation2 + $0x31] sm:$0xff]  ;;  %386 = vst.msk [vmem:[#allocation2 + $0xf1] sm:$0xff] %vm279_vm0, %v353_v6 }
  0x4e   : > { %v626_v51 = vld [vmem:[#allocation2 + $0x39] sm:$0xff]  ;;  %5713 = vrot.lane.b32.xlu1 %v5712_v44, %s6808_s12  ;;  %v5717_v53 = vpack.i.bf16 %v529_v47, %v528_v46  ;;  %v7177_v55 = vld [vmem:[#allocation2 + $0x30] sm:$0xff]  ;;  %v7196_v63 = vld [vmem:[#allocation2 + $0x48] sm:$0xff]  ;;  %387 = vst.msk [vmem:[#allocation2 + $0xf9] sm:$0xff] %vm279_vm0, %v354_v7 }
  0x4f   : > { %5723 = vrot.lane.b32.xlu0 %v5722_v49, %s6809_s13  ;;  %v5732_v54 = vpack.i.bf16 %v626_v51, %v625_v50  ;;  %v7179_v56 = vld [vmem:[#allocation2 + $0x38] sm:$0xff]  ;;  %v7198_v0 = vld [vmem:[#allocation2 + $0x50] sm:$0xff]  ;;  %388 = vst.msk [vmem:[#allocation2 + $0x109] sm:$0xff] %vm279_vm0, %v355_v14  ;;  %389 = vst.msk [vmem:[#allocation2 + $0x111] sm:$0xff] %vm279_vm0, %v356_v15 }
  0x50   : > { %v562_v57 = vld [vmem:[#allocation2 + $0x32] sm:$0xff]  ;;  %v5727_v61 = vpack.i.bf16 %v7179_v56, %v7177_v55  ;;  %v5762_v2 = vpack.i.bf16 %v7198_v0, %v7196_v63  ;;  %v7205_v3 = vld [vmem:[#allocation2 + $0x3a] sm:$0xff]  ;;  %v627_v4 = vld [vmem:[#allocation2 + $0x49] sm:$0xff]  ;;  %390 = vst.msk [vmem:[#allocation2 + $0x121] sm:$0xff] %vm279_vm0, %v357_v16 }
  0x51   : > { %5551 = vmatprep.mubr.msk.f32.mxu0 %vm279_vm0, %v562_v57  ;;  %v628_v5 = vld [vmem:[#allocation2 + $0x51] sm:$0xff]  ;;  %v5757_v9 = vpack.i.bf16 %v7205_v3, %v562_v57  ;;  %391 = vst.msk [vmem:[#allocation2 + $0x129] sm:$0xff] %vm279_vm0, %v358_v17  ;;  %392 = vst.msk [vmem:[#allocation2 + $0x139] sm:$0xff] %vm279_vm0, %v359_v19  ;;  %v629_v25 = vld [vmem:[#allocation2 + $0x61] sm:$0xff] }
  0x52   : > { %5718 = vrot.lane.b32.xlu1 %v5717_v53, %s6810_s19  ;;  %v5767_v21 = vpack.i.bf16 %v628_v5, %v627_v4  ;;  %393 = vst.msk [vmem:[#allocation2 + $0x141] sm:$0xff] %vm279_vm0, %v360_v20  ;;  %v7241_v22 = vld [vmem:[#allocation2 + $0x4a] sm:$0xff]  ;;  %v7243_v23 = vld [vmem:[#allocation2 + $0x52] sm:$0xff]  ;;  %v7251_v28 = vld [vmem:[#allocation2 + $0x60] sm:$0xff] }
  0x53   : > { %5733 = vrot.lane.b32.xlu0 %v5732_v54, %s6811_s20  ;;  %v5792_v24 = vpack.i.bf16 %v7243_v23, %v7241_v22  ;;  %v630_v26 = vld [vmem:[#allocation2 + $0x69] sm:$0xff]  ;;  %394 = vst.msk [vmem:[#allocation2 + $0x151] sm:$0xff] %vm279_vm0, %v361_v31  ;;  %395 = vst.msk [vmem:[#allocation2 + $0x159] sm:$0xff] %vm279_vm0, %v362_v32  ;;  %v599_v33 = vld [vmem:[#allocation2 + $0x78] sm:$0xff] }
  0x54   : > { %v5802_v27 = vpack.i.bf16 %v630_v26, %v629_v25  ;;  %v7253_v29 = vld [vmem:[#allocation2 + $0x68] sm:$0xff]  ;;  %v600_v34 = vld [vmem:[#allocation2 + $0x80] sm:$0xff]  ;;  %396 = vst.msk [vmem:[#allocation2 + $0x169] sm:$0xff] %vm279_vm0, %v363_v43  ;;  %v601_v52 = vld [vmem:[#allocation2 + $0x90] sm:$0xff] }
  0x55   : > { %v5797_v30 = vpack.i.bf16 %v7253_v29, %v7251_v28  ;;  %v5832_v35 = vpack.i.bf16 %v600_v34, %v599_v33  ;;  %v7267_v36 = vld [vmem:[#allocation2 + $0x62] sm:$0xff]  ;;  %v7269_v37 = vld [vmem:[#allocation2 + $0x6a] sm:$0xff]  ;;  %v631_v39 = vld [vmem:[#allocation2 + $0x79] sm:$0xff]  ;;  %399 = vst.msk [vmem:[#allocation2 + $0x189] sm:$0xff] %vm279_vm0, %v366_v58 }
  0x56   : > { %5728 = vrot.lane.b32.xlu1 %v5727_v61, %s6812_s21  ;;  %v5827_v38 = vpack.i.bf16 %v7269_v37, %v7267_v36  ;;  %v632_v42 = vld [vmem:[#allocation2 + $0x81] sm:$0xff]  ;;  %v634_v50 = vld [vmem:[#allocation2 + $0x99] sm:$0xff]  ;;  %v365_v57 = vld [vmem:[%s7108_s18 + $0xf0] sm:$0xff] }
  0x57   : > { %5743 = vrot.lane.b32.xlu0 %v5722_v49, %s6807_s30  ;;  %v364_v44 = vld [vmem:[%s7108_s18 + $0xe8] sm:$0xff]  ;;  %v5837_v45 = vpack.i.bf16 %v632_v42, %v631_v39  ;;  %v7281_v46 = vld [vmem:[#allocation2 + $0x7a] sm:$0xff]  ;;  %v633_v49 = vld [vmem:[#allocation2 + $0x91] sm:$0xff]  ;;  %398 = vst.msk [vmem:[#allocation2 + $0x181] sm:$0xff] %vm279_vm0, %v365_v57 }
  0x58   : > { %397 = vst.msk [vmem:[#allocation2 + $0x171] sm:$0xff] %vm279_vm0, %v364_v44  ;;  %v7283_v47 = vld [vmem:[#allocation2 + $0x82] sm:$0xff]  ;;  %v5872_v51 = vpack.i.bf16 %v634_v50, %v633_v49  ;;  %v604_v60 = vld [vmem:[#allocation2 + $0xb0] sm:$0xff]  ;;  %v607_v17 = vld [vmem:[#allocation2 + $0xd8] sm:$0xff] }
  0x59   : > { %v5862_v48 = vpack.i.bf16 %v7283_v47, %v7281_v46  ;;  %v603_v59 = vld [vmem:[#allocation2 + $0xa8] sm:$0xff]  ;;  %v7301_v62 = vld [vmem:[#allocation2 + $0x92] sm:$0xff]  ;;  %v605_v14 = vld [vmem:[#allocation2 + $0xc0] sm:$0xff] }
  0x5a   : > { %5738 = vrot.lane.b32.xlu1 %v5717_v53, %s6806_s23  ;;  %v602_v53 = vld [vmem:[#allocation2 + $0x98] sm:$0xff]  ;;  %v635_v5 = vld [vmem:[#allocation2 + $0xa9] sm:$0xff]  ;;  %v637_v11 = vld [vmem:[#allocation2 + $0xc1] sm:$0xff] }
  0x5b   : > { %5753 = vrot.lane.b32.xlu0 %v5732_v54, %s6810_s19  ;;  %v636_v6 = vld [vmem:[#allocation2 + $0xb1] sm:$0xff]  ;;  %v638_v12 = vld [vmem:[#allocation2 + $0xc9] sm:$0xff]  ;;  %v608_v18 = vld [vmem:[#allocation2 + $0xe0] sm:$0xff] }
  0x5c   : > { %v5907_v7 = vpack.i.bf16 %v636_v6, %v635_v5  ;;  %v572_v8 = vld [vmem:[#allocation2 + $0xaa] sm:$0xff]  ;;  %v5942_v13 = vpack.i.bf16 %v638_v12, %v637_v11  ;;  %v5972_v19 = vpack.i.bf16 %v608_v18, %v607_v17  ;;  %v574_v20 = vld [vmem:[#allocation2 + $0xc2] sm:$0xff]  ;;  %v639_v25 = vld [vmem:[#allocation2 + $0xd9] sm:$0xff] }
  0x5d   : > { %v606_v15 = vld [vmem:[#allocation2 + $0xc8] sm:$0xff]  ;;  %v400_v39 = vld [vmem:[#allocation2] sm:$0xff]  ;;  %v609_v49 = vld [vmem:[#allocation2 + $0xf0] sm:$0xff] }
  0x5e   : > { %5748 = vrot.lane.b32.xlu1 %v5727_v61, %s6808_s12  ;;  %v5902_v61 = vpack.i.bf16 %v604_v60, %v603_v59  ;;  %v5937_v16 = vpack.i.bf16 %v606_v15, %v605_v14  ;;  %v640_v26 = vld [vmem:[#allocation2 + $0xe1] sm:$0xff]  ;;  %v610_v50 = vld [vmem:[#allocation2 + $0xf8] sm:$0xff] }
  0x5f   : > { %5763 = vrot.lane.b32.xlu0 %v5762_v2, %s6812_s21  ;;  %v577_v31 = vld [vmem:[#allocation2 + $0xe2] sm:$0xff]  ;;  %v6007_v59 = vpack.i.bf16 %v610_v50, %v609_v49  ;;  %v644_v49 = vld [vmem:[#allocation2 + $0x111] sm:$0xff] }
  0x60   : > { %v401_v44 = vld [vmem:[#allocation2 + $0x8] sm:$0xff] }
  0x61   : > { %v611_v15 = vld [vmem:[#allocation2 + $0x108] sm:$0xff] }
  0x62   : > { %5758 = vrot.lane.b32.xlu1 %v5757_v9, %s6809_s13 }
  0x63   : > { %5773 = vrot.lane.b32.xlu0 %v5732_v54, %s6806_s23  ;;  %v5867_v54 = vpack.i.bf16 %v602_v53, %v601_v52 }
  0x66   : > { %5768 = vrot.lane.b32.xlu1 %v5767_v21, %s6811_s20 }
  0x67   : > { %5783 = vrot.lane.b32.xlu0 %v5762_v2, %s6808_s12  ;;  %v571_v2 = vld [vmem:[#allocation2 + $0x9a] sm:$0xff] }
  0x68   : > { %v5897_v4 = vpack.i.bf16 %v571_v2, %v7301_v62 }
  0x6a   : > { %5778 = vrot.lane.b32.xlu1 %v5757_v9, %s6807_s30  ;;  %v573_v9 = vld [vmem:[#allocation2 + $0xb2] sm:$0xff] }
  0x6b   : > { %5793 = vrot.lane.b32.xlu0 %v5792_v24, %s6809_s13  ;;  %v5932_v10 = vpack.i.bf16 %v573_v9, %v572_v8 }
  0x6e   : > { %5788 = vrot.lane.b32.xlu1 %v5767_v21, %s6810_s19 }
  0x6f   : > { %5803 = vrot.lane.b32.xlu0 %v5802_v27, %s6811_s20 }
  0x72   : > { %5798 = vrot.lane.b32.xlu1 %v5797_v30, %s6812_s21 }
  0x73   : > { %5813 = vrot.lane.b32.xlu0 %v5792_v24, %s6807_s30 }
  0x76   : > { %5808 = vrot.lane.b32.xlu1 %v5767_v21, %s6806_s23  ;;  %v575_v21 = vld [vmem:[#allocation2 + $0xca] sm:$0xff] }
  0x77   : > { %5823 = vrot.lane.b32.xlu0 %v5802_v27, %s6810_s19  ;;  %v5967_v24 = vpack.i.bf16 %v575_v21, %v574_v20 }
  0x7a   : > { %5818 = vrot.lane.b32.xlu1 %v5797_v30, %s6808_s12  ;;  %v576_v30 = vld [vmem:[#allocation2 + $0xda] sm:$0xff] }
  0x7b   : > { %5833 = vrot.lane.b32.xlu0 %v5832_v35, %s6812_s21  ;;  %v6002_v33 = vpack.i.bf16 %v577_v31, %v576_v30  ;;  %v579_v30 = vld [vmem:[#allocation2 + $0xfa] sm:$0xff] }
  0x7e   : > { %5828 = vrot.lane.b32.xlu1 %v5827_v38, %s6809_s13 }
  0x7f   : > { %5843 = vrot.lane.b32.xlu0 %v5802_v27, %s6806_s23  ;;  %v5977_v27 = vpack.i.bf16 %v640_v26, %v639_v25  ;;  %v578_v26 = vld [vmem:[#allocation2 + $0xf2] sm:$0xff] }
  0x82   : > { %5838 = vrot.lane.b32.xlu1 %v5837_v45, %s6811_s20 }
  0x83   : > { %5853 = vrot.lane.b32.xlu0 %v5832_v35, %s6808_s12  ;;  %v641_v35 = vld [vmem:[#allocation2 + $0xf1] sm:$0xff] }
  0x86   : > { %5848 = vrot.lane.b32.xlu1 %v5827_v38, %s6807_s30  ;;  %v642_v38 = vld [vmem:[#allocation2 + $0xf9] sm:$0xff] }
  0x87   : > { %5863 = vrot.lane.b32.xlu0 %v5862_v48, %s6809_s13 }
  0x8a   : > { %5858 = vrot.lane.b32.xlu1 %v5837_v45, %s6810_s19 }
  0x8b   : > { %5873 = vrot.lane.b32.xlu0 %v5872_v51, %s6811_s20  ;;  %v5704_v32 = vpop.permute.xlu0 %5703 }
  0x8c   : > { %v5705_v34 = vunpack.i.l.bf16 %v5704_v32  ;;  %v5706_v43 = vunpack.i.h.bf16 %v5704_v32 }
  0x8e   : > { %5868 = vrot.lane.b32.xlu1 %v5867_v54, %s6812_s21  ;;  %v1586_v57 = vsel %vm279_vm0, %v401_v44, %v5706_v43 }
  0x8f   : > { %5883 = vrot.lane.b32.xlu0 %v5862_v48, %s6807_s30  ;;  %v5709_v42 = vpop.permute.xlu0 %5708  ;;  %v7326_v48 = vpack.i.bf16 %v642_v38, %v641_v35 }
  0x90   : > { %v5711_v53 = vunpack.i.h.bf16 %v5709_v42 }
  0x92   : > { %5878 = vrot.lane.b32.xlu1 %v5837_v45, %s6806_s23  ;;  %v5710_v45 = vunpack.i.l.bf16 %v5709_v42  ;;  %v6037_v42 = vpack.i.bf16 %v579_v30, %v578_v26  ;;  %v613_v30 = vld [vmem:[#allocation2 + $0x120] sm:$0xff] }
  0x93   : > { %5893 = vrot.lane.b32.xlu0 %v5872_v51, %s6810_s19 }
  0x96   : > { %5888 = vrot.lane.b32.xlu1 %v5867_v54, %s6808_s12 }
  0x97   : > { %5903 = vrot.lane.b32.xlu0 %v5902_v61, %s6812_s21 }
  0x9a   : > { %5898 = vrot.lane.b32.xlu1 %v5897_v4, %s6809_s13 }
  0x9b   : > { %5913 = vrot.lane.b32.xlu0 %v5872_v51, %s6806_s23  ;;  %v1585_v51 = vsel %vm279_vm0, %v400_v39, %v5705_v34 }
  0x9c   : > { %v1618_v60 = vsel %vm1617_vm2, %v1585_v51, %v5710_v45  ;;  %v643_v45 = vld [vmem:[#allocation2 + $0x109] sm:$0xff] }
  0x9e   : > { %5908 = vrot.lane.b32.xlu1 %v5907_v7, %s6811_s20 }
  0x9f   : > { %5923 = vrot.lane.b32.xlu0 %v5902_v61, %s6808_s12 }
  0xa2   : > { %5918 = vrot.lane.b32.xlu1 %v5897_v4, %s6807_s30  ;;  %v1619_v4 = vsel %vm1617_vm2, %v1586_v57, %v5711_v53 }
  0xa3   : > { %5933 = vrot.lane.b32.xlu0 %v5932_v10, %s6809_s13 }
  0xa6   : > { %5928 = vrot.lane.b32.xlu1 %v5907_v7, %s6810_s19 }
  0xa7   : > { %5943 = vrot.lane.b32.xlu0 %v5942_v13, %s6811_s20 }
  0xaa   : > { %5938 = vrot.lane.b32.xlu1 %v5937_v16, %s6812_s21 }
  0xab   : > { %5953 = vrot.lane.b32.xlu0 %v5932_v10, %s6807_s30 }
  0xae   : > { %5948 = vrot.lane.b32.xlu1 %v5907_v7, %s6806_s23 }
  0xaf   : > { %5963 = vrot.lane.b32.xlu0 %v5942_v13, %s6810_s19 }
  0xb2   : > { %5958 = vrot.lane.b32.xlu1 %v5937_v16, %s6808_s12  ;;  %v612_v16 = vld [vmem:[#allocation2 + $0x110] sm:$0xff] }
  0xb3   : > { %5973 = vrot.lane.b32.xlu0 %v5972_v19, %s6812_s21  ;;  %v6042_v25 = vpack.i.bf16 %v612_v16, %v611_v15 }
  0xb6   : > { %5968 = vrot.lane.b32.xlu1 %v5967_v24, %s6809_s13 }
  0xb7   : > { %5983 = vrot.lane.b32.xlu0 %v5942_v13, %s6806_s23 }
  0xba   : > { %5978 = vrot.lane.b32.xlu1 %v5977_v27, %s6811_s20 }
  0xbb   : > { %5993 = vrot.lane.b32.xlu0 %v5972_v19, %s6808_s12 }
  0xbe   : > { %5988 = vrot.lane.b32.xlu1 %v5967_v24, %s6807_s30 }
  0xbf   : > { %6003 = vrot.lane.b32.xlu0 %v6002_v33, %s6809_s13 }
  0xc0   : > { %v5714_v52 = vpop.permute.xlu1 %5713 }
  0xc1   : > { %v5724_v54 = vpop.permute.xlu0 %5723  ;;  %v5715_v58 = vunpack.i.l.bf16 %v5714_v52  ;;  %v5716_v61 = vunpack.i.h.bf16 %v5714_v52 }
  0xc2   : > { %5998 = vrot.lane.b32.xlu1 %v5977_v27, %s6810_s19  ;;  %v5725_v9 = vunpack.i.l.bf16 %v5724_v54  ;;  %v5726_v12 = vunpack.i.h.bf16 %v5724_v54 }
  0xc3   : > { %6013 = vrot.lane.b32.xlu0 %v7326_v48, %s6811_s20  ;;  %v1651_v8 = vsel %vm1650_vm3, %v1618_v60, %v5715_v58  ;;  %v1652_v11 = vsel %vm1650_vm3, %v1619_v4, %v5716_v61  ;;  %v581_v4 = vld [vmem:[#allocation2 + $0x112] sm:$0xff] }
  0xc4   : > { %v5719_v2 = vpop.permute.xlu1 %5718 }
  0xc5   : > { %v5721_v5 = vunpack.i.h.bf16 %v5719_v2  ;;  %v5720_v6 = vunpack.i.l.bf16 %v5719_v2  ;;  %v5734_v7 = vpop.permute.xlu0 %5733  ;;  %v580_v2 = vld [vmem:[#allocation2 + $0x10a] sm:$0xff] }
  0xc6   : > { %6008 = vrot.lane.b32.xlu1 %v6007_v59, %s6812_s21  ;;  %v5735_v13 = vunpack.i.l.bf16 %v5734_v7  ;;  %v5736_v31 = vunpack.i.h.bf16 %v5734_v7 }
  0xc7   : > { %v1684_v10 = vsel %vm1683_vm4, %v1651_v8, %v5720_v6  ;;  %6023 = vrot.lane.b32.xlu0 %v6002_v33, %s6807_s30  ;;  %v1685_v17 = vsel %vm1683_vm4, %v1652_v11, %v5721_v5 }
  0xc8   : > { %v5729_v14 = vpop.permute.xlu1 %5728  ;;  %v1717_v21 = vsel %vm1716_vm5, %v1684_v10, %v5725_v9  ;;  %v1718_v34 = vsel %vm1716_vm5, %v1685_v17, %v5726_v12 }
  0xc9   : > { %v5731_v18 = vunpack.i.h.bf16 %v5729_v14  ;;  %v5730_v19 = vunpack.i.l.bf16 %v5729_v14  ;;  %v5744_v20 = vpop.permute.xlu0 %5743  ;;  %v646_v14 = vld [vmem:[#allocation2 + $0x129] sm:$0xff] }
  0xca   : > { %6018 = vrot.lane.b32.xlu1 %v5977_v27, %s6806_s23  ;;  %v5745_v39 = vunpack.i.l.bf16 %v5744_v20  ;;  %v5746_v54 = vunpack.i.h.bf16 %v5744_v20 }
  0xcb   : > { %6033 = vrot.lane.b32.xlu0 %v7326_v48, %s6810_s19  ;;  %v1750_v24 = vsel %vm1749_vm6, %v1717_v21, %v5730_v19  ;;  %v1751_v27 = vsel %vm1749_vm6, %v1718_v34, %v5731_v18 }
  0xcc   : > { %v5739_v32 = vpop.permute.xlu1 %5738  ;;  %v1783_v33 = vsel %vm1782_vm7, %v1750_v24, %v5735_v13  ;;  %v1784_v51 = vsel %vm1782_vm7, %v1751_v27, %v5736_v31  ;;  %v645_v13 = vld [vmem:[#allocation2 + $0x121] sm:$0xff] }
  0xcd   : > { %v5740_v35 = vunpack.i.l.bf16 %v5739_v32  ;;  %1994 = vmatmul.mubr.f32.vlgmr.msra.gmra.mrb[0].mxu0 %v1783_v33  ;;  %v5754_v38 = vpop.permute.xlu0 %5753  ;;  %v5741_v43 = vunpack.i.h.bf16 %v5739_v32  ;;  %v614_v31 = vld [vmem:[#allocation2 + $0x128] sm:$0xff] }
  0xce   : > { %6028 = vrot.lane.b32.xlu1 %v6007_v59, %s6808_s12  ;;  %5552 = vmatprep.mubr.msk.f32.mxu0 %vm279_vm0, %v7205_v3  ;;  %v5755_v57 = vunpack.i.l.bf16 %v5754_v38  ;;  %v7358_v3 = vpack.i.bf16 %v644_v49, %v643_v45  ;;  %v5756_v7 = vunpack.i.h.bf16 %v5754_v38 }
  0xcf   : > { %v1587_v44 = vsel %vm279_vm0, %v7161_v40, %v5740_v35  ;;  %6043 = vrot.lane.b32.xlu0 %v6042_v25, %s6812_s21  ;;  %v1588_v40 = vsel %vm279_vm0, %v7163_v41, %v5741_v43  ;;  %v6077_v43 = vpack.i.bf16 %v614_v31, %v613_v30 }
  0xd0   : > { %v5749_v50 = vpop.permute.xlu1 %5748  ;;  %v1620_v58 = vsel %vm1617_vm2, %v1587_v44, %v5745_v39  ;;  %v1621_v8 = vsel %vm1617_vm2, %v1588_v40, %v5746_v54 }
  0xd1   : > { %v5750_v52 = vunpack.i.l.bf16 %v5749_v50  ;;  %1999 = vmatmul.mubr.f32.gmra.mrb[2].mxu0 %v1784_v51  ;;  %v5764_v53 = vpop.permute.xlu0 %5763  ;;  %v5751_v59 = vunpack.i.h.bf16 %v5749_v50 }
  0xd2   : > { %6038 = vrot.lane.b32.xlu1 %v6037_v42, %s6809_s13  ;;  %5553 = vmatprep.mubr.msk.f32.mxu0 %vm279_vm0, %v7241_v22  ;;  %v5765_v9 = vunpack.i.l.bf16 %v5764_v53  ;;  %v5766_v17 = vunpack.i.h.bf16 %v5764_v53 }
  0xd3   : > { %v1653_v60 = vsel %vm1650_vm3, %v1620_v58, %v5750_v52  ;;  %6053 = vrot.lane.b32.xlu0 %v7326_v48, %s6806_s23  ;;  %v1654_v22 = vsel %vm1650_vm3, %v1621_v8, %v5751_v59  ;;  %v6072_v48 = vpack.i.bf16 %v581_v4, %v580_v2  ;;  %v616_v2 = vld [vmem:[#allocation2 + $0x140] sm:$0xff] }
  0xd4   : > { %v5759_v61 = vpop.permute.xlu1 %5758  ;;  %v1686_v41 = vsel %vm1683_vm4, %v1653_v60, %v5755_v57  ;;  %v1687_v20 = vsel %vm1683_vm4, %v1654_v22, %v5756_v7  ;;  %v7412_v22 = vld [vmem:[#allocation2 + $0x12a] sm:$0xff] }
  0xd5   : > { %v5760_v5 = vunpack.i.l.bf16 %v5759_v61  ;;  %v5774_v6 = vpop.permute.xlu0 %5773  ;;  %v5761_v10 = vunpack.i.h.bf16 %v5759_v61  ;;  %v615_v61 = vld [vmem:[#allocation2 + $0x138] sm:$0xff] }
  0xd6   : > { %6048 = vrot.lane.b32.xlu1 %v7358_v3, %s6811_s20  ;;  %v5775_v18 = vunpack.i.l.bf16 %v5774_v6  ;;  %v5776_v32 = vunpack.i.h.bf16 %v5774_v6 }
  0xd7   : > { %6063 = vrot.lane.b32.xlu0 %v6042_v25, %s6808_s12  ;;  %v1719_v11 = vsel %vm1716_vm5, %v1686_v41, %v5760_v5  ;;  %v7379_v25 = vpack.i.bf16 %v646_v14, %v645_v13  ;;  %v1720_v26 = vsel %vm1716_vm5, %v1687_v20, %v5761_v10  ;;  %v7410_v41 = vld [vmem:[#allocation2 + $0x122] sm:$0xff] }
  0xd8   : > { %v5769_v12 = vpop.permute.xlu1 %5768  ;;  %v1752_v19 = vsel %vm1749_vm6, %v1719_v11, %v5765_v9  ;;  %v1589_v27 = vsel %vm279_vm0, %v7177_v55, %v5775_v18  ;;  %v6112_v9 = vpack.i.bf16 %v616_v2, %v615_v61  ;;  %v648_v20 = vld [vmem:[#allocation2 + $0x141] sm:$0xff] }
  0xd9   : > { %v5770_v15 = vunpack.i.l.bf16 %v5769_v12  ;;  %v5784_v16 = vpop.permute.xlu0 %5783  ;;  %v5771_v21 = vunpack.i.h.bf16 %v5769_v12 }
  0xda   : > { %6058 = vrot.lane.b32.xlu1 %v6037_v42, %s6807_s30  ;;  %v5785_v39 = vunpack.i.l.bf16 %v5784_v16  ;;  %v1753_v42 = vsel %vm1749_vm6, %v1720_v26, %v5766_v17  ;;  %v5786_v49 = vunpack.i.h.bf16 %v5784_v16  ;;  %v6107_v16 = vpack.i.bf16 %v7412_v22, %v7410_v41 }
  0xdb   : > { %6073 = vrot.lane.b32.xlu0 %v6072_v48, %s6809_s13  ;;  %v1785_v24 = vsel %vm1782_vm7, %v1752_v19, %v5770_v15  ;;  %v1786_v45 = vsel %vm1782_vm7, %v1753_v42, %v5771_v21  ;;  %v647_v19 = vld [vmem:[#allocation2 + $0x139] sm:$0xff] }
  0xdc   : > { %v5779_v33 = vpop.permute.xlu1 %5778  ;;  %2004 = vmatmul.mubr.f32.gmra.mrb[4].mxu0 %v1785_v24 }
  0xdd   : > { %v5781_v34 = vunpack.i.h.bf16 %v5779_v33  ;;  %v5780_v35 = vunpack.i.l.bf16 %v5779_v33  ;;  %v5794_v38 = vpop.permute.xlu0 %5793  ;;  %5554 = vmatprep.mubr.msk.f32.mxu0 %vm279_vm0, %v7243_v23  ;;  %v1590_v23 = vsel %vm279_vm0, %v7179_v56, %v5776_v32  ;;  %v7428_v33 = vpack.i.bf16 %v648_v20, %v647_v19 }
  0xde   : > { %6068 = vrot.lane.b32.xlu1 %v7358_v3, %s6810_s19  ;;  %v5795_v54 = vunpack.i.l.bf16 %v5794_v38  ;;  %v5796_v56 = vunpack.i.h.bf16 %v5794_v38 }
  0xdf   : > { %v1622_v44 = vsel %vm1617_vm2, %v1589_v27, %v5780_v35  ;;  %6083 = vrot.lane.b32.xlu0 %v7379_v25, %s6811_s20  ;;  %v1623_v55 = vsel %vm1617_vm2, %v1590_v23, %v5781_v34  ;;  %v7437_v27 = vld [vmem:[#allocation2 + $0x13a] sm:$0xff] }
  0xe0   : > { %v5789_v50 = vpop.permute.xlu1 %5788  ;;  %2009 = vmatmul.mubr.f32.gmra.mrb[6].mxu0 %v1786_v45  ;;  %v1655_v57 = vsel %vm1650_vm3, %v1622_v44, %v5785_v39  ;;  %v1656_v40 = vsel %vm1650_vm3, %v1623_v55, %v5786_v49  ;;  %v7439_v39 = vld [vmem:[#allocation2 + $0x142] sm:$0xff] }
  0xe1   : > { %v5791_v51 = vunpack.i.h.bf16 %v5789_v50  ;;  %v5790_v52 = vunpack.i.l.bf16 %v5789_v50  ;;  %v5804_v53 = vpop.permute.xlu0 %5803  ;;  %5555 = vmatprep.mubr.msk.f32.mxu0 %vm279_vm0, %v7267_v36 }
  0xe2   : > { %6078 = vrot.lane.b32.xlu1 %v6077_v43, %s6812_s21  ;;  %v5805_v59 = vunpack.i.l.bf16 %v5804_v53  ;;  %v5806_v10 = vunpack.i.h.bf16 %v5804_v53 }
  0xe3   : > { %v1688_v58 = vsel %vm1683_vm4, %v1655_v57, %v5790_v52  ;;  %6093 = vrot.lane.b32.xlu0 %v6072_v48, %s6807_s30  ;;  %v1689_v4 = vsel %vm1683_vm4, %v1656_v40, %v5791_v51  ;;  %v649_v51 = vld [vmem:[#allocation2 + $0x151] sm:$0xff]  ;;  %v650_v52 = vld [vmem:[#allocation2 + $0x159] sm:$0xff] }
  0xe4   : > { %v5799_v60 = vpop.permute.xlu1 %5798  ;;  %v1721_v7 = vsel %vm1716_vm5, %v1688_v58, %v5795_v54  ;;  %v1722_v12 = vsel %vm1716_vm5, %v1689_v4, %v5796_v56  ;;  %v7455_v61 = vpack.i.bf16 %v650_v52, %v649_v51  ;;  %v7458_v4 = vld [vmem:[#allocation2 + $0x150] sm:$0xff] }
  0xe5   : > { %v5801_v5 = vunpack.i.h.bf16 %v5799_v60  ;;  %v5800_v36 = vunpack.i.l.bf16 %v5799_v60  ;;  %v5814_v6 = vpop.permute.xlu0 %5813 }
  0xe6   : > { %6088 = vrot.lane.b32.xlu1 %v7358_v3, %s6806_s23  ;;  %v5815_v15 = vunpack.i.l.bf16 %v5814_v6  ;;  %v5816_v31 = vunpack.i.h.bf16 %v5814_v6 }
  0xe7   : > { %6103 = vrot.lane.b32.xlu0 %v7379_v25, %s6810_s19  ;;  %v1754_v8 = vsel %vm1749_vm6, %v1721_v7, %v5800_v36  ;;  %v1755_v14 = vsel %vm1749_vm6, %v1722_v12, %v5801_v5  ;;  %v7460_v5 = vld [vmem:[#allocation2 + $0x158] sm:$0xff] }
  0xe8   : > { %v5809_v48 = vpop.permute.xlu1 %5808  ;;  %v1787_v11 = vsel %vm1782_vm7, %v1754_v8, %v5805_v59  ;;  %v1788_v24 = vsel %vm1782_vm7, %v1755_v14, %v5806_v10  ;;  %v6147_v12 = vpack.i.bf16 %v7460_v5, %v7458_v4 }
  0xe9   : > { %v5810_v13 = vunpack.i.l.bf16 %v5809_v48  ;;  %2014 = vmatmul.mubr.f32.gmra.mrb[8].mxu0 %v1787_v11  ;;  %v5824_v3 = vpop.permute.xlu0 %5823  ;;  %v5811_v17 = vunpack.i.h.bf16 %v5809_v48 }
  0xea   : > { %6098 = vrot.lane.b32.xlu1 %v6077_v43, %s6808_s12  ;;  %5556 = vmatprep.mubr.msk.f32.mxu0 %vm279_vm0, %v7269_v37  ;;  %v5825_v32 = vunpack.i.l.bf16 %v5824_v3  ;;  %v5826_v44 = vunpack.i.h.bf16 %v5824_v3 }
  0xeb   : > { %v1591_v18 = vsel %vm279_vm0, %v7196_v63, %v5810_v13  ;;  %6113 = vrot.lane.b32.xlu0 %v6112_v9, %s6812_s21  ;;  %v1592_v63 = vsel %vm279_vm0, %v7198_v0, %v5811_v17 }
  0xec   : > { %v5819_v21 = vpop.permute.xlu1 %5818  ;;  %v1624_v37 = vsel %vm1617_vm2, %v1591_v18, %v5815_v15  ;;  %v1625_v45 = vsel %vm1617_vm2, %v1592_v63, %v5816_v31  ;;  %v7485_v31 = vld [vmem:[#allocation2 + $0x168] sm:$0xff] }
  0xed   : > { %v5820_v26 = vunpack.i.l.bf16 %v5819_v21  ;;  %2019 = vmatmul.mubr.f32.gmra.mrb[10].mxu0 %v1788_v24  ;;  %v5834_v30 = vpop.permute.xlu0 %5833  ;;  %v5821_v34 = vunpack.i.h.bf16 %v5819_v21 }
  0xee   : > { %6108 = vrot.lane.b32.xlu1 %v6107_v16, %s6809_s13  ;;  %5557 = vmatprep.mubr.msk.f32.mxu0 %vm279_vm0, %v7281_v46  ;;  %v5835_v46 = vunpack.i.l.bf16 %v5834_v30  ;;  %v5836_v57 = vunpack.i.h.bf16 %v5834_v30 }
  0xef   : > { %v1657_v35 = vsel %vm1650_vm3, %v1624_v37, %v5820_v26  ;;  %6123 = vrot.lane.b32.xlu0 %v7379_v25, %s6806_s23  ;;  %v1658_v23 = vsel %vm1650_vm3, %v1625_v45, %v5821_v34  ;;  %v6142_v25 = vpack.i.bf16 %v7439_v39, %v7437_v27  ;;  %v7500_v45 = vld [vmem:[#allocation2 + $0x15a] sm:$0xff] }
  0xf0   : > { %v5829_v38 = vpop.permute.xlu1 %5828  ;;  %v1690_v0 = vsel %vm1683_vm4, %v1657_v35, %v5825_v32  ;;  %v1691_v40 = vsel %vm1683_vm4, %v1658_v23, %v5826_v44  ;;  %v7487_v32 = vld [vmem:[#allocation2 + $0x170] sm:$0xff] }
  0xf1   : > { %v5830_v42 = vunpack.i.l.bf16 %v5829_v38  ;;  %v5844_v43 = vpop.permute.xlu0 %5843  ;;  %v5831_v49 = vunpack.i.h.bf16 %v5829_v38  ;;  %v7498_v44 = vld [vmem:[#allocation2 + $0x152] sm:$0xff] }
  0xf2   : > { %6118 = vrot.lane.b32.xlu1 %v7428_v33, %s6811_s20  ;;  %v5845_v58 = vunpack.i.l.bf16 %v5844_v43  ;;  %v5846_v36 = vunpack.i.h.bf16 %v5844_v43  ;;  %v666_v43 = vld [vmem:[#allocation2 + $0x9a] sm:$0xff]  ;;  %v6177_v52 = vpack.i.bf16 %v7500_v45, %v7498_v44 }
  0xf3   : > { %6133 = vrot.lane.b32.xlu0 %v6112_v9, %s6808_s12  ;;  %v1723_v50 = vsel %vm1716_vm5, %v1690_v0, %v5830_v42  ;;  %v1724_v2 = vsel %vm1716_vm5, %v1691_v40, %v5831_v49  ;;  %v6182_v42 = vpack.i.bf16 %v7487_v32, %v7485_v31  ;;  %v410_v0 = vld [vmem:[#allocation2 + $0x78] sm:$0xff]  ;;  %v411_v40 = vld [vmem:[#allocation2 + $0x80] sm:$0xff] }
  0xf4   : > { %v5839_v55 = vpop.permute.xlu1 %5838  ;;  %v1756_v56 = vsel %vm1749_vm6, %v1723_v50, %v5835_v46  ;;  %v1593_v10 = vsel %vm279_vm0, %v7251_v28, %v5845_v58  ;;  %v1757_v11 = vsel %vm1749_vm6, %v1724_v2, %v5836_v57  ;;  %v651_v57 = vld [vmem:[#allocation2 + $0x169] sm:$0xff]  ;;  %v652_v58 = vld [vmem:[#allocation2 + $0x171] sm:$0xff] }
  0xf5   : > { %v5840_v53 = vunpack.i.l.bf16 %v5839_v55  ;;  %v5854_v54 = vpop.permute.xlu0 %5853  ;;  %v5841_v59 = vunpack.i.h.bf16 %v5839_v55 }
  0xf6   : > { %6128 = vrot.lane.b32.xlu1 %v6107_v16, %s6807_s30  ;;  %v5855_v48 = vunpack.i.l.bf16 %v5854_v54  ;;  %v5856_v28 = vunpack.i.h.bf16 %v5854_v54 }
  0xf7   : > { %6143 = vrot.lane.b32.xlu0 %v6142_v25, %s6809_s13  ;;  %v1789_v60 = vsel %vm1782_vm7, %v1756_v56, %v5840_v53  ;;  %v1790_v3 = vsel %vm1782_vm7, %v1757_v11, %v5841_v59  ;;  %v667_v56 = vld [vmem:[#allocation2 + $0xaa] sm:$0xff] }
  0xf8   : > { %v5849_v6 = vpop.permute.xlu1 %5848  ;;  %2024 = vmatmul.mubr.f32.gmra.mrb[12].mxu0 %v1789_v60 }
  0xf9   : > { %v5851_v7 = vunpack.i.h.bf16 %v5849_v6  ;;  %v5850_v8 = vunpack.i.l.bf16 %v5849_v6  ;;  %v5864_v9 = vpop.permute.xlu0 %5863  ;;  %5558 = vmatprep.mubr.msk.f32.mxu0 %vm279_vm0, %v7283_v47  ;;  %v1594_v47 = vsel %vm279_vm0, %v7253_v29, %v5846_v36 }
  0xfa   : > { %6138 = vrot.lane.b32.xlu1 %v7428_v33, %s6810_s19  ;;  %v5865_v19 = vunpack.i.l.bf16 %v5864_v9  ;;  %v5866_v29 = vunpack.i.h.bf16 %v5864_v9  ;;  %v7514_v9 = vpack.i.bf16 %v652_v58, %v651_v57 }
  0xfb   : > { %v1626_v13 = vsel %vm1617_vm2, %v1593_v10, %v5850_v8  ;;  %6153 = vrot.lane.b32.xlu0 %v7455_v61, %s6811_s20  ;;  %v1627_v15 = vsel %vm1617_vm2, %v1594_v47, %v5851_v7 }
  0xfc   : > { %v5859_v14 = vpop.permute.xlu1 %5858  ;;  %2029 = vmatmul.mubr.f32.gmra.mrb[14].mxu0 %v1790_v3  ;;  %v1659_v20 = vsel %vm1650_vm3, %v1626_v13, %v5855_v48  ;;  %v1660_v24 = vsel %vm1650_vm3, %v1627_v15, %v5856_v28  ;;  %v7521_v13 = vld [vmem:[#allocation2 + $0x16a] sm:$0xff]  ;;  %v7523_v3 = vld [vmem:[#allocation2 + $0x172] sm:$0xff] }
  0xfd   : > { %v5861_v16 = vunpack.i.h.bf16 %v5859_v14  ;;  %v5860_v17 = vunpack.i.l.bf16 %v5859_v14  ;;  %v5874_v18 = vpop.permute.xlu0 %5873  ;;  %5559 = vmatprep.mubr.msk.f32.mxu0 %vm279_vm0, %v7301_v62 }
  0xfe   : > { %6148 = vrot.lane.b32.xlu1 %v6147_v12, %s6812_s21  ;;  %v5875_v26 = vunpack.i.l.bf16 %v5874_v18  ;;  %v5876_v46 = vunpack.i.h.bf16 %v5874_v18 }
  0xff   : > { %v1692_v21 = vsel %vm1683_vm4, %v1659_v20, %v5860_v17  ;;  %6163 = vrot.lane.b32.xlu0 %v6142_v25, %s6807_s30  ;;  %v1693_v62 = vsel %vm1683_vm4, %v1660_v24, %v5861_v16  ;;  %v654_v24 = vld [vmem:[#allocation2 + $0x189] sm:$0xff] }
 0x100   : > { %v5869_v30 = vpop.permute.xlu1 %5868  ;;  %v1725_v35 = vsel %vm1716_vm5, %v1692_v21, %v5865_v19  ;;  %v1726_v49 = vsel %vm1716_vm5, %v1693_v62, %v5866_v29  ;;  %v653_v29 = vld [vmem:[#allocation2 + $0x181] sm:$0xff] }
 0x101   : > { %v5871_v37 = vunpack.i.h.bf16 %v5869_v30  ;;  %v5870_v63 = vunpack.i.l.bf16 %v5869_v30  ;;  %v5884_v34 = vpop.permute.xlu0 %5883 }
 0x102   : > { %6158 = vrot.lane.b32.xlu1 %v7428_v33, %s6806_s23  ;;  %v5885_v51 = vunpack.i.l.bf16 %v5884_v34  ;;  %v5886_v6 = vunpack.i.h.bf16 %v5884_v34  ;;  %v668_v34 = vld [vmem:[#allocation2 + $0xb2] sm:$0xff] }
 0x103   : > { %6173 = vrot.lane.b32.xlu0 %v7455_v61, %s6810_s19  ;;  %v1758_v38 = vsel %vm1749_vm6, %v1725_v35, %v5870_v63  ;;  %v1759_v55 = vsel %vm1749_vm6, %v1726_v49, %v5871_v37 }
 0x104   : > { %v5879_v23 = vpop.permute.xlu1 %5878  ;;  %v1791_v33 = vsel %vm1782_vm7, %v1758_v38, %v5875_v26  ;;  %v1792_v60 = vsel %vm1782_vm7, %v1759_v55, %v5876_v46  ;;  %v412_v38 = vld [vmem:[#allocation2 + $0x90] sm:$0xff]  ;;  %v6222_v46 = vpack.i.bf16 %v654_v24, %v653_v29  ;;  %v414_v24 = vld [vmem:[#allocation2 + $0xa8] sm:$0xff] }
 0x105   : > { %v5880_v25 = vunpack.i.l.bf16 %v5879_v23  ;;  %2034 = vmatmul.mubr.f32.gmra.mrb[16].mxu0 %v1791_v33  ;;  %v5894_v50 = vpop.permute.xlu0 %5893  ;;  %v5881_v53 = vunpack.i.h.bf16 %v5879_v23  ;;  %v621_v23 = vld [vmem:[#allocation2 + $0x180] sm:$0xff]  ;;  %v622_v33 = vld [vmem:[#allocation2 + $0x188] sm:$0xff] }
 0x106   : > { %6168 = vrot.lane.b32.xlu1 %v6147_v12, %s6808_s12  ;;  %5560 = vmatprep.mubr.msk.f32.mxu0 %vm279_vm0, %v666_v43  ;;  %v5895_v7 = vunpack.i.l.bf16 %v5894_v50  ;;  %v5896_v14 = vunpack.i.h.bf16 %v5894_v50  ;;  %v413_v50 = vld [vmem:[#allocation2 + $0x98] sm:$0xff]  ;;  %v6217_v58 = vpack.i.bf16 %v622_v33, %v621_v23 }
 0x107   : > { %v1595_v54 = vsel %vm279_vm0, %v410_v0, %v5880_v25  ;;  %6183 = vrot.lane.b32.xlu0 %v6182_v42, %s6812_s21  ;;  %v1596_v10 = vsel %vm279_vm0, %v411_v40, %v5881_v53 }
 0x108   : > { %v5889_v59 = vpop.permute.xlu1 %5888  ;;  %v1628_v8 = vsel %vm1617_vm2, %v1595_v54, %v5885_v51  ;;  %v1629_v15 = vsel %vm1617_vm2, %v1596_v10, %v5886_v6 }
 0x109   : > { %v5890_v2 = vunpack.i.l.bf16 %v5889_v59  ;;  %2039 = vmatmul.mubr.f32.gmra.mrb[18].mxu0 %v1792_v60  ;;  %v5904_v36 = vpop.permute.xlu0 %5903  ;;  %v5891_v48 = vunpack.i.h.bf16 %v5889_v59 }
 0x10a   : > { %6178 = vrot.lane.b32.xlu1 %v6177_v52, %s6809_s13  ;;  %5561 = vmatprep.mubr.msk.f32.mxu0 %vm279_vm0, %v667_v56  ;;  %v5905_v16 = vunpack.i.l.bf16 %v5904_v36  ;;  %v5906_v62 = vunpack.i.h.bf16 %v5904_v36  ;;  %v669_v56 = vld [vmem:[#allocation2 + $0xc2] sm:$0xff] }
 0x10b   : > { %v1661_v11 = vsel %vm1650_vm3, %v1628_v8, %v5890_v2  ;;  %6193 = vrot.lane.b32.xlu0 %v7455_v61, %s6806_s23  ;;  %v1662_v18 = vsel %vm1650_vm3, %v1629_v15, %v5891_v48  ;;  %v6212_v61 = vpack.i.bf16 %v7523_v3, %v7521_v13 }
 0x10c   : > { %v5899_v12 = vpop.permute.xlu1 %5898  ;;  %v1694_v17 = vsel %vm1683_vm4, %v1661_v11, %v5895_v7  ;;  %v1695_v35 = vsel %vm1683_vm4, %v1662_v18, %v5896_v14 }
 0x10d   : > { %v5900_v47 = vunpack.i.l.bf16 %v5899_v12  ;;  %v5914_v28 = vpop.permute.xlu0 %5913  ;;  %v5901_v19 = vunpack.i.h.bf16 %v5899_v12 }
 0x10e   : > { %6188 = vrot.lane.b32.xlu1 %v7514_v9, %s6811_s20  ;;  %v5915_v37 = vunpack.i.l.bf16 %v5914_v28  ;;  %v5916_v49 = vunpack.i.h.bf16 %v5914_v28 }
 0x10f   : > { %6203 = vrot.lane.b32.xlu0 %v6182_v42, %s6808_s12  ;;  %v1727_v20 = vsel %vm1716_vm5, %v1694_v17, %v5900_v47  ;;  %v1728_v0 = vsel %vm1716_vm5, %v1695_v35, %v5901_v19 }
 0x110   : > { %v5909_v21 = vpop.permute.xlu1 %5908  ;;  %v1760_v63 = vsel %vm1749_vm6, %v1727_v20, %v5905_v16  ;;  %v1597_v53 = vsel %vm279_vm0, %v412_v38, %v5915_v37  ;;  %v1761_v57 = vsel %vm1749_vm6, %v1728_v0, %v5906_v62  ;;  %v1598_v60 = vsel %vm279_vm0, %v413_v50, %v5916_v49  ;;  %v623_v62 = vld [vmem:[#allocation2 + $0x198] sm:$0xff]  ;;  %v415_v0 = vld [vmem:[#allocation2 + $0xb0] sm:$0xff] }
 0x111   : > { %v5910_v26 = vunpack.i.l.bf16 %v5909_v21  ;;  %v5924_v30 = vpop.permute.xlu0 %5923  ;;  %v5911_v42 = vunpack.i.h.bf16 %v5909_v21  ;;  %v7572_v49 = vld [vmem:[#allocation2 + $0x18a] sm:$0xff] }
 0x112   : > { %6198 = vrot.lane.b32.xlu1 %v6177_v52, %s6807_s30  ;;  %v5925_v54 = vunpack.i.l.bf16 %v5924_v30  ;;  %v5926_v2 = vunpack.i.h.bf16 %v5924_v30 }
 0x113   : > { %6213 = vrot.lane.b32.xlu0 %v6212_v61, %s6809_s13  ;;  %v1793_v43 = vsel %vm1782_vm7, %v1760_v63, %v5910_v26  ;;  %v1794_v59 = vsel %vm1782_vm7, %v1761_v57, %v5911_v42 }
 0x114   : > { %v5919_v25 = vpop.permute.xlu1 %5918  ;;  %2044 = vmatmul.mubr.f32.gmra.mrb[20].mxu0 %v1793_v43  ;;  %v7569_v43 = vld [vmem:[#allocation2 + $0x182] sm:$0xff] }
 0x115   : > { %v5921_v55 = vunpack.i.h.bf16 %v5919_v25  ;;  %v5920_v51 = vunpack.i.l.bf16 %v5919_v25  ;;  %v5934_v52 = vpop.permute.xlu0 %5933  ;;  %5562 = vmatprep.mubr.msk.f32.mxu0 %vm279_vm0, %v668_v34 }
 0x116   : > { %6208 = vrot.lane.b32.xlu1 %v7514_v9, %s6810_s19  ;;  %v5935_v48 = vunpack.i.l.bf16 %v5934_v52  ;;  %v5936_v47 = vunpack.i.h.bf16 %v5934_v52 }
 0x117   : > { %v1630_v40 = vsel %vm1617_vm2, %v1597_v53, %v5920_v51  ;;  %6223 = vrot.lane.b32.xlu0 %v6222_v46, %s6811_s20  ;;  %v1631_v6 = vsel %vm1617_vm2, %v1598_v60, %v5921_v55 }
 0x118   : > { %v5929_v36 = vpop.permute.xlu1 %5928  ;;  %2049 = vmatmul.mubr.f32.gmra.mrb[22].mxu0 %v1794_v59  ;;  %v1663_v11 = vsel %vm1650_vm3, %v1630_v40, %v5925_v54  ;;  %v1664_v28 = vsel %vm1650_vm3, %v1631_v6, %v5926_v2  ;;  %v656_v40 = vld [vmem:[#allocation2 + $0x1a1] sm:$0xff] }
 0x119   : > { %v5931_v7 = vunpack.i.h.bf16 %v5929_v36  ;;  %v5930_v8 = vunpack.i.l.bf16 %v5929_v36  ;;  %v5944_v10 = vpop.permute.xlu0 %5943  ;;  %5563 = vmatprep.mubr.msk.f32.mxu0 %vm279_vm0, %v669_v56 }
 0x11a   : > { %6218 = vrot.lane.b32.xlu1 %v6217_v58, %s6812_s21  ;;  %v5945_v14 = vunpack.i.l.bf16 %v5944_v10  ;;  %v5946_v29 = vunpack.i.h.bf16 %v5944_v10 }
 0x11b   : > { %v1696_v12 = vsel %vm1683_vm4, %v1663_v11, %v5930_v8  ;;  %6233 = vrot.lane.b32.xlu0 %v6212_v61, %s6807_s30  ;;  %v1697_v16 = vsel %vm1683_vm4, %v1664_v28, %v5931_v7  ;;  %v670_v61 = vld [vmem:[#allocation2 + $0xca] sm:$0xff] }
 0x11c   : > { %v5939_v15 = vpop.permute.xlu1 %5938  ;;  %v1729_v20 = vsel %vm1716_vm5, %v1696_v12, %v5935_v48  ;;  %v1730_v37 = vsel %vm1716_vm5, %v1697_v16, %v5936_v47  ;;  %v624_v48 = vld [vmem:[#allocation2 + $0x1a0] sm:$0xff] }
 0x11d   : > { %v5941_v17 = vunpack.i.h.bf16 %v5939_v15  ;;  %v5940_v18 = vunpack.i.l.bf16 %v5939_v15  ;;  %v5954_v19 = vpop.permute.xlu0 %5953 }
 0x11e   : > { %6228 = vrot.lane.b32.xlu1 %v7514_v9, %s6806_s23  ;;  %v5955_v35 = vunpack.i.l.bf16 %v5954_v19  ;;  %v5956_v55 = vunpack.i.h.bf16 %v5954_v19  ;;  %v416_v19 = vld [vmem:[#allocation2 + $0xc0] sm:$0xff] }
 0x11f   : > { %6243 = vrot.lane.b32.xlu0 %v6222_v46, %s6810_s19  ;;  %v1762_v21 = vsel %vm1749_vm6, %v1729_v20, %v5940_v18  ;;  %v1763_v9 = vsel %vm1749_vm6, %v1730_v37, %v5941_v17  ;;  %v671_v46 = vld [vmem:[#allocation2 + $0xda] sm:$0xff]  ;;  %v672_v17 = vld [vmem:[#allocation2 + $0xe2] sm:$0xff] }
 0x120   : > { %v5949_v26 = vpop.permute.xlu1 %5948  ;;  %v1795_v30 = vsel %vm1782_vm7, %v1762_v21, %v5945_v14  ;;  %v1796_v33 = vsel %vm1782_vm7, %v1763_v9, %v5946_v29 }
 0x121   : > { %v5950_v63 = vunpack.i.l.bf16 %v5949_v26  ;;  %2054 = vmatmul.mubr.f32.gmra.mrb[24].mxu0 %v1795_v30  ;;  %v5964_v34 = vpop.permute.xlu0 %5963  ;;  %v5951_v38 = vunpack.i.h.bf16 %v5949_v26  ;;  %v417_v26 = vld [vmem:[#allocation2 + $0xc8] sm:$0xff] }
 0x122   : > { %6238 = vrot.lane.b32.xlu1 %v6217_v58, %s6808_s12  ;;  %5564 = vmatprep.mubr.msk.f32.mxu0 %vm279_vm0, %v670_v61  ;;  %v5965_v51 = vunpack.i.l.bf16 %v5964_v34  ;;  %v655_v58 = vld [vmem:[#allocation2 + $0x199] sm:$0xff]  ;;  %v5966_v2 = vunpack.i.h.bf16 %v5964_v34 }
 0x123   : > { %v1599_v42 = vsel %vm279_vm0, %v414_v24, %v5950_v63  ;;  %1421 = vrot.lane.b32.xlu0 %v623_v62, %s6812_s21  ;;  %v1600_v53 = vsel %vm279_vm0, %v415_v0, %v5951_v38 }
 0x124   : > { %v5959_v23 = vpop.permute.xlu1 %5958  ;;  %v1632_v52 = vsel %vm1617_vm2, %v1599_v42, %v5955_v35  ;;  %v1633_v36 = vsel %vm1617_vm2, %v1600_v53, %v5956_v55  ;;  %v673_v35 = vld [vmem:[#allocation2 + $0xf2] sm:$0xff] }
 0x125   : > { %v5960_v25 = vunpack.i.l.bf16 %v5959_v23  ;;  %2059 = vmatmul.mubr.f32.gmra.mrb[26].mxu0 %v1796_v33  ;;  %v5974_v50 = vpop.permute.xlu0 %5973  ;;  %v5961_v54 = vunpack.i.h.bf16 %v5959_v23 }
 0x126   : > { %1293 = vrot.lane.b32.xlu1 %v7569_v43, %s6809_s13  ;;  %5565 = vmatprep.mubr.msk.f32.mxu0 %vm279_vm0, %v671_v46  ;;  %v5975_v6 = vunpack.i.l.bf16 %v5974_v50  ;;  %v5976_v14 = vunpack.i.h.bf16 %v5974_v50 }
 0x127   : > { %v1665_v57 = vsel %vm1650_vm3, %v1632_v52, %v5960_v25  ;;  %1295 = vrot.lane.b32.xlu0 %v7572_v49, %s6809_s13  ;;  %v1666_v8 = vsel %vm1650_vm3, %v1633_v36, %v5961_v54 }
 0x128   : > { %v5969_v56 = vpop.permute.xlu1 %5968  ;;  %v1698_v7 = vsel %vm1683_vm4, %v1665_v57, %v5965_v51  ;;  %v1699_v18 = vsel %vm1683_vm4, %v1666_v8, %v5966_v2 }
 0x129   : > { %v5970_v59 = vunpack.i.l.bf16 %v5969_v56  ;;  %v5984_v60 = vpop.permute.xlu0 %5983  ;;  %v5971_v10 = vunpack.i.h.bf16 %v5969_v56 }
 0x12a   : > { %1549 = vrot.lane.b32.xlu1 %v655_v58, %s6811_s20  ;;  %v5985_v15 = vunpack.i.l.bf16 %v5984_v60  ;;  %v5986_v29 = vunpack.i.h.bf16 %v5984_v60 }
 0x12b   : > { %1551 = vrot.lane.b32.xlu0 %v656_v40, %s6811_s20  ;;  %v1731_v11 = vsel %vm1716_vm5, %v1698_v7, %v5970_v59  ;;  %v1732_v61 = vsel %vm1716_vm5, %v1699_v18, %v5971_v10  ;;  %v674_v7 = vld [vmem:[#allocation2 + $0xfa] sm:$0xff]  ;;  %v675_v18 = vld [vmem:[#allocation2 + $0x10a] sm:$0xff] }
 0x12c   : > { %v5979_v12 = vpop.permute.xlu1 %5978  ;;  %v1764_v16 = vsel %vm1749_vm6, %v1731_v11, %v5975_v6  ;;  %v1601_v63 = vsel %vm279_vm0, %v416_v19, %v5985_v15  ;;  %v1765_v9 = vsel %vm1749_vm6, %v1732_v61, %v5976_v14  ;;  %v1602_v46 = vsel %vm279_vm0, %v417_v26, %v5986_v29  ;;  %v418_v10 = vld [vmem:[#allocation2 + $0xd8] sm:$0xff]  ;;  %v419_v19 = vld [vmem:[#allocation2 + $0xe0] sm:$0xff] }
 0x12d   : > { %v5980_v47 = vunpack.i.l.bf16 %v5979_v12  ;;  %v5994_v28 = vpop.permute.xlu0 %5993  ;;  %v5981_v20 = vunpack.i.h.bf16 %v5979_v12 }
 0x12e   : > { %1423 = vrot.lane.b32.xlu1 %v624_v48, %s6812_s21  ;;  %v5995_v34 = vunpack.i.l.bf16 %v5994_v28  ;;  %v5996_v0 = vunpack.i.h.bf16 %v5994_v28 }
 0x12f   : > { %v1797_v21 = vsel %vm1782_vm7, %v1764_v16, %v5980_v47  ;;  %v1798_v42 = vsel %vm1782_vm7, %v1765_v9, %v5981_v20 }
 0x130   : > { %v5989_v24 = vpop.permute.xlu1 %5988  ;;  %2064 = vmatmul.mubr.f32.gmra.mrb[28].mxu0 %v1797_v21 }
 0x131   : > { %v5991_v30 = vunpack.i.h.bf16 %v5989_v24  ;;  %v5990_v62 = vunpack.i.l.bf16 %v5989_v24  ;;  %v6004_v37 = vpop.permute.xlu0 %6003  ;;  %5566 = vmatprep.mubr.msk.f32.mxu0 %vm279_vm0, %v672_v17 }
 0x132   : > { %v6005_v51 = vunpack.i.l.bf16 %v6004_v37  ;;  %v6006_v54 = vunpack.i.h.bf16 %v6004_v37 }
 0x133   : > { %v1634_v38 = vsel %vm1617_vm2, %v1601_v63, %v5990_v62  ;;  %v1635_v33 = vsel %vm1617_vm2, %v1602_v46, %v5991_v30 }
 0x134   : > { %v5999_v23 = vpop.permute.xlu1 %5998  ;;  %2069 = vmatmul.mubr.f32.gmra.mrb[30].mxu0 %v1798_v42  ;;  %v1667_v52 = vsel %vm1650_vm3, %v1634_v38, %v5995_v34  ;;  %v1668_v57 = vsel %vm1650_vm3, %v1635_v33, %v5996_v0 }
 0x135   : > { %v6001_v25 = vunpack.i.h.bf16 %v5999_v23  ;;  %v6000_v50 = vunpack.i.l.bf16 %v5999_v23  ;;  %v6014_v55 = vpop.permute.xlu0 %6013  ;;  %5567 = vmatprep.mubr.msk.f32.mxu0 %vm279_vm0, %v673_v35 }
 0x136   : > { %v6015_v58 = vunpack.i.l.bf16 %v6014_v55  ;;  %v6016_v8 = vunpack.i.h.bf16 %v6014_v55 }
 0x137   : > { %v1700_v53 = vsel %vm1683_vm4, %v1667_v52, %v6000_v50  ;;  %v1701_v40 = vsel %vm1683_vm4, %v1668_v57, %v6001_v25  ;;  %v676_v57 = vld [vmem:[#allocation2 + $0x112] sm:$0xff] }
 0x138   : > { %v6009_v56 = vpop.permute.xlu1 %6008  ;;  %v1733_v36 = vsel %vm1716_vm5, %v1700_v53, %v6005_v51  ;;  %v1734_v12 = vsel %vm1716_vm5, %v1701_v40, %v6006_v54 }
 0x139   : > { %v6011_v59 = vunpack.i.h.bf16 %v6009_v56  ;;  %v6010_v60 = vunpack.i.l.bf16 %v6009_v56  ;;  %v6024_v2 = vpop.permute.xlu0 %6023  ;;  %v420_v56 = vld [vmem:[#allocation2 + $0xf0] sm:$0xff] }
 0x13a   : > { %v6025_v15 = vunpack.i.l.bf16 %v6024_v2  ;;  %v6026_v24 = vunpack.i.h.bf16 %v6024_v2 }
 0x13b   : > { %v1766_v6 = vsel %vm1749_vm6, %v1733_v36, %v6010_v60  ;;  %v1767_v14 = vsel %vm1749_vm6, %v1734_v12, %v6011_v59 }
 0x13c   : > { %v6019_v48 = vpop.permute.xlu1 %6018  ;;  %v1799_v11 = vsel %vm1782_vm7, %v1766_v6, %v6015_v58  ;;  %v1800_v21 = vsel %vm1782_vm7, %v1767_v14, %v6016_v8  ;;  %v421_v6 = vld [vmem:[#allocation2 + $0xf8] sm:$0xff] }
 0x13d   : > { %v6020_v47 = vunpack.i.l.bf16 %v6019_v48  ;;  %2074 = vmatmul.mubr.f32.gmra.mrb[32].mxu0 %v1799_v11  ;;  %v6034_v28 = vpop.permute.xlu0 %6033  ;;  %v6021_v16 = vunpack.i.h.bf16 %v6019_v48 }
 0x13e   : > { %5568 = vmatprep.mubr.msk.f32.mxu0 %vm279_vm0, %v674_v7  ;;  %v6035_v26 = vunpack.i.l.bf16 %v6034_v28  ;;  %v6036_v38 = vunpack.i.h.bf16 %v6034_v28 }
 0x13f   : > { %v1603_v17 = vsel %vm279_vm0, %v418_v10, %v6020_v47  ;;  %v1604_v62 = vsel %vm279_vm0, %v419_v19, %v6021_v16 }
 0x140   : > { %v6029_v20 = vpop.permute.xlu1 %6028  ;;  %v1636_v30 = vsel %vm1617_vm2, %v1603_v17, %v6025_v15  ;;  %v1637_v42 = vsel %vm1617_vm2, %v1604_v62, %v6026_v24 }
 0x141   : > { %v6030_v61 = vunpack.i.l.bf16 %v6029_v20  ;;  %2079 = vmatmul.mubr.f32.gmra.mrb[34].mxu0 %v1800_v21  ;;  %v6044_v29 = vpop.permute.xlu0 %6043  ;;  %v6031_v37 = vunpack.i.h.bf16 %v6029_v20 }
 0x142   : > { %5569 = vmatprep.mubr.msk.f32.mxu0 %vm279_vm0, %v675_v18  ;;  %v6045_v46 = vunpack.i.l.bf16 %v6044_v29  ;;  %v6046_v52 = vunpack.i.h.bf16 %v6044_v29 }
 0x143   : > { %v1669_v63 = vsel %vm1650_vm3, %v1636_v30, %v6030_v61  ;;  %v1670_v23 = vsel %vm1650_vm3, %v1637_v42, %v6031_v37  ;;  %v422_v42 = vld [vmem:[#allocation2 + $0x108] sm:$0xff] }
 0x144   : > { %v6039_v34 = vpop.permute.xlu1 %6038  ;;  %v1702_v0 = vsel %vm1683_vm4, %v1669_v63, %v6035_v26  ;;  %v1703_v58 = vsel %vm1683_vm4, %v1670_v23, %v6036_v38 }
 0x145   : > { %v6040_v9 = vunpack.i.l.bf16 %v6039_v34  ;;  %v6054_v35 = vpop.permute.xlu0 %6053  ;;  %v6041_v33 = vunpack.i.h.bf16 %v6039_v34 }
 0x146   : > { %v6055_v53 = vunpack.i.l.bf16 %v6054_v35  ;;  %v6056_v2 = vunpack.i.h.bf16 %v6054_v35 }
 0x147   : > { %v1735_v25 = vsel %vm1716_vm5, %v1702_v0, %v6040_v9  ;;  %v1736_v60 = vsel %vm1716_vm5, %v1703_v58, %v6041_v33 }
 0x148   : > { %v6049_v50 = vpop.permute.xlu1 %6048  ;;  %v1768_v54 = vsel %vm1749_vm6, %v1735_v25, %v6045_v46  ;;  %v1605_v48 = vsel %vm279_vm0, %v420_v56, %v6055_v53  ;;  %v1769_v12 = vsel %vm1749_vm6, %v1736_v60, %v6046_v52  ;;  %v1606_v14 = vsel %vm279_vm0, %v421_v6, %v6056_v2  ;;  %v423_v53 = vld [vmem:[#allocation2 + $0x110] sm:$0xff] }
 0x149   : > { %v6050_v55 = vunpack.i.l.bf16 %v6049_v50  ;;  %v6064_v51 = vpop.permute.xlu0 %6063  ;;  %v6051_v40 = vunpack.i.h.bf16 %v6049_v50 }
 0x14a   : > { %v6065_v11 = vunpack.i.l.bf16 %v6064_v51  ;;  %v6066_v15 = vunpack.i.h.bf16 %v6064_v51 }
 0x14b   : > { %v1801_v59 = vsel %vm1782_vm7, %v1768_v54, %v6050_v55  ;;  %v1802_v28 = vsel %vm1782_vm7, %v1769_v12, %v6051_v40 }
 0x14c   : > { %v6059_v36 = vpop.permute.xlu1 %6058  ;;  %2084 = vmatmul.mubr.f32.gmra.mrb[36].mxu0 %v1801_v59 }
 0x14d   : > { %v6061_v7 = vunpack.i.h.bf16 %v6059_v36  ;;  %v6060_v8 = vunpack.i.l.bf16 %v6059_v36  ;;  %v6074_v10 = vpop.permute.xlu0 %6073  ;;  %5570 = vmatprep.mubr.msk.f32.mxu0 %vm279_vm0, %v676_v57 }
 0x14e   : > { %v6075_v21 = vunpack.i.l.bf16 %v6074_v10  ;;  %v6076_v24 = vunpack.i.h.bf16 %v6074_v10 }
 0x14f   : > { %v1638_v47 = vsel %vm1617_vm2, %v1605_v48, %v6060_v8  ;;  %v1639_v17 = vsel %vm1617_vm2, %v1606_v14, %v6061_v7 }
 0x150   : > { %v6069_v16 = vpop.permute.xlu1 %6068  ;;  %2089 = vmatmul.mubr.f32.gmra.mrb[38].mxu0 %v1802_v28  ;;  %v1671_v61 = vsel %vm1650_vm3, %v1638_v47, %v6065_v11  ;;  %v1672_v26 = vsel %vm1650_vm3, %v1639_v17, %v6066_v15 }
 0x151   : > { %v6071_v18 = vunpack.i.h.bf16 %v6069_v16  ;;  %v6070_v19 = vunpack.i.l.bf16 %v6069_v16  ;;  %v6084_v20 = vpop.permute.xlu0 %6083  ;;  %5571 = vmatprep.mubr.msk.f32.mxu0 %vm279_vm0, %v7410_v41 }
 0x152   : > { %v6085_v30 = vunpack.i.l.bf16 %v6084_v20  ;;  %v6086_v41 = vunpack.i.h.bf16 %v6084_v20 }
 0x153   : > { %v1704_v29 = vsel %vm1683_vm4, %v1671_v61, %v6070_v19  ;;  %v1705_v37 = vsel %vm1683_vm4, %v1672_v26, %v6071_v18 }
 0x154   : > { %v6079_v62 = vpop.permute.xlu1 %6078  ;;  %v1737_v35 = vsel %vm1716_vm5, %v1704_v29, %v6075_v21  ;;  %v1738_v23 = vsel %vm1716_vm5, %v1705_v37, %v6076_v24  ;;  %v424_v21 = vld [vmem:[#allocation2 + $0x120] sm:$0xff] }
 0x155   : > { %v6081_v63 = vunpack.i.h.bf16 %v6079_v62  ;;  %v6080_v34 = vunpack.i.l.bf16 %v6079_v62  ;;  %v6094_v9 = vpop.permute.xlu0 %6093  ;;  %v425_v62 = vld [vmem:[#allocation2 + $0x128] sm:$0xff] }
 0x156   : > { %v6095_v55 = vunpack.i.l.bf16 %v6094_v9  ;;  %v6096_v40 = vunpack.i.h.bf16 %v6094_v9 }
 0x157   : > { %v1770_v38 = vsel %vm1749_vm6, %v1737_v35, %v6080_v34  ;;  %v1771_v50 = vsel %vm1749_vm6, %v1738_v23, %v6081_v63 }
 0x158   : > { %v6089_v46 = vpop.permute.xlu1 %6088  ;;  %v1803_v0 = vsel %vm1782_vm7, %v1770_v38, %v6085_v30  ;;  %v1804_v57 = vsel %vm1782_vm7, %v1771_v50, %v6086_v41 }
 0x159   : > { %v6090_v33 = vunpack.i.l.bf16 %v6089_v46  ;;  %2094 = vmatmul.mubr.f32.gmra.mrb[40].mxu0 %v1803_v0  ;;  %v6104_v25 = vpop.permute.xlu0 %6103  ;;  %v6091_v51 = vunpack.i.h.bf16 %v6089_v46 }
 0x15a   : > { %5572 = vmatprep.mubr.msk.f32.mxu0 %vm279_vm0, %v7412_v22  ;;  %v6105_v59 = vunpack.i.l.bf16 %v6104_v25  ;;  %v6106_v10 = vunpack.i.h.bf16 %v6104_v25 }
 0x15b   : > { %v1607_v52 = vsel %vm279_vm0, %v422_v42, %v6090_v33  ;;  %v1608_v2 = vsel %vm279_vm0, %v423_v53, %v6091_v51 }
 0x15c   : > { %v6099_v54 = vpop.permute.xlu1 %6098  ;;  %v1640_v60 = vsel %vm1617_vm2, %v1607_v52, %v6095_v55  ;;  %v1641_v48 = vsel %vm1617_vm2, %v1608_v2, %v6096_v40 }
 0x15d   : > { %v6100_v58 = vunpack.i.l.bf16 %v6099_v54  ;;  %2099 = vmatmul.mubr.f32.gmra.mrb[42].mxu0 %v1804_v57  ;;  %v6114_v56 = vpop.permute.xlu0 %6113  ;;  %v6101_v22 = vunpack.i.h.bf16 %v6099_v54 }
 0x15e   : > { %5573 = vmatprep.mubr.msk.f32.mxu0 %vm279_vm0, %v7437_v27  ;;  %v6115_v11 = vunpack.i.l.bf16 %v6114_v56  ;;  %v6116_v17 = vunpack.i.h.bf16 %v6114_v56 }
 0x15f   : > { %v1673_v36 = vsel %vm1650_vm3, %v1640_v60, %v6100_v58  ;;  %v1674_v47 = vsel %vm1650_vm3, %v1641_v48, %v6101_v22 }
 0x160   : > { %v6109_v6 = vpop.permute.xlu1 %6108  ;;  %v1706_v12 = vsel %vm1683_vm4, %v1673_v36, %v6105_v59  ;;  %v1707_v20 = vsel %vm1683_vm4, %v1674_v47, %v6106_v10  ;;  %v426_v36 = vld [vmem:[#allocation2 + $0x138] sm:$0xff] }
 0x161   : > { %v6110_v7 = vunpack.i.l.bf16 %v6109_v6  ;;  %v6124_v8 = vpop.permute.xlu0 %6123  ;;  %v6111_v28 = vunpack.i.h.bf16 %v6109_v6 }
 0x162   : > { %v6125_v18 = vunpack.i.l.bf16 %v6124_v8  ;;  %v6126_v26 = vunpack.i.h.bf16 %v6124_v8 }
 0x163   : > { %v1739_v14 = vsel %vm1716_vm5, %v1706_v12, %v6110_v7  ;;  %v1740_v24 = vsel %vm1716_vm5, %v1707_v20, %v6111_v28 }
 0x164   : > { %v6119_v27 = vpop.permute.xlu1 %6118  ;;  %v1772_v19 = vsel %vm1749_vm6, %v1739_v14, %v6115_v11  ;;  %v1609_v9 = vsel %vm279_vm0, %v424_v21, %v6125_v18  ;;  %v1773_v38 = vsel %vm1749_vm6, %v1740_v24, %v6116_v17  ;;  %v1610_v46 = vsel %vm279_vm0, %v425_v62, %v6126_v26  ;;  %v427_v14 = vld [vmem:[#allocation2 + $0x140] sm:$0xff] }
 0x165   : > { %v6120_v15 = vunpack.i.l.bf16 %v6119_v27  ;;  %v6134_v16 = vpop.permute.xlu0 %6133  ;;  %v6121_v61 = vunpack.i.h.bf16 %v6119_v27 }
 0x166   : > { %v6135_v35 = vunpack.i.l.bf16 %v6134_v16  ;;  %v6136_v0 = vunpack.i.h.bf16 %v6134_v16 }
 0x167   : > { %v1805_v29 = vsel %vm1782_vm7, %v1772_v19, %v6120_v15  ;;  %v1806_v42 = vsel %vm1782_vm7, %v1773_v38, %v6121_v61 }
 0x168   : > { %v6129_v30 = vpop.permute.xlu1 %6128  ;;  %2104 = vmatmul.mubr.f32.gmra.mrb[44].mxu0 %v1805_v29 }
 0x169   : > { %v6131_v37 = vunpack.i.h.bf16 %v6129_v30  ;;  %v6130_v63 = vunpack.i.l.bf16 %v6129_v30  ;;  %v6144_v34 = vpop.permute.xlu0 %6143  ;;  %5574 = vmatprep.mubr.msk.f32.mxu0 %vm279_vm0, %v7439_v39 }
 0x16a   : > { %v6145_v39 = vunpack.i.l.bf16 %v6144_v34  ;;  %v6146_v53 = vunpack.i.h.bf16 %v6144_v34 }
 0x16b   : > { %v1642_v41 = vsel %vm1617_vm2, %v1609_v9, %v6130_v63  ;;  %v1643_v33 = vsel %vm1617_vm2, %v1610_v46, %v6131_v37 }
 0x16c   : > { %v6139_v23 = vpop.permute.xlu1 %6138  ;;  %2109 = vmatmul.mubr.f32.gmra.mrb[46].mxu0 %v1806_v42  ;;  %v1675_v51 = vsel %vm1650_vm3, %v1642_v41, %v6135_v35  ;;  %v1676_v54 = vsel %vm1650_vm3, %v1643_v33, %v6136_v0 }
 0x16d   : > { %v6141_v25 = vunpack.i.h.bf16 %v6139_v23  ;;  %v6140_v50 = vunpack.i.l.bf16 %v6139_v23  ;;  %v6154_v55 = vpop.permute.xlu0 %6153  ;;  %5575 = vmatprep.mubr.msk.f32.mxu0 %vm279_vm0, %v7498_v44 }
 0x16e   : > { %v6155_v57 = vunpack.i.l.bf16 %v6154_v55  ;;  %v6156_v44 = vunpack.i.h.bf16 %v6154_v55 }
 0x16f   : > { %v1708_v52 = vsel %vm1683_vm4, %v1675_v51, %v6140_v50  ;;  %v1709_v56 = vsel %vm1683_vm4, %v1676_v54, %v6141_v25 }
 0x170   : > { %v6149_v58 = vpop.permute.xlu1 %6148  ;;  %v1741_v2 = vsel %vm1716_vm5, %v1708_v52, %v6145_v39  ;;  %v1742_v8 = vsel %vm1716_vm5, %v1709_v56, %v6146_v53 }
 0x171   : > { %v6151_v40 = vunpack.i.h.bf16 %v6149_v58  ;;  %v6150_v59 = vunpack.i.l.bf16 %v6149_v58  ;;  %v6164_v60 = vpop.permute.xlu0 %6163 }
 0x172   : > { %v6165_v12 = vunpack.i.l.bf16 %v6164_v60  ;;  %v6166_v18 = vunpack.i.h.bf16 %v6164_v60 }
 0x173   : > { %v1774_v22 = vsel %vm1749_vm6, %v1741_v2, %v6150_v59  ;;  %v1775_v11 = vsel %vm1749_vm6, %v1742_v8, %v6151_v40 }
 0x174   : > { %v6159_v6 = vpop.permute.xlu1 %6158  ;;  %v1807_v7 = vsel %vm1782_vm7, %v1774_v22, %v6155_v57  ;;  %v1808_v15 = vsel %vm1782_vm7, %v1775_v11, %v6156_v44 }
 0x175   : > { %v6160_v10 = vunpack.i.l.bf16 %v6159_v6  ;;  %2114 = vmatmul.mubr.f32.gmra.mrb[48].mxu0 %v1807_v7  ;;  %v6174_v48 = vpop.permute.xlu0 %6173  ;;  %v6161_v47 = vunpack.i.h.bf16 %v6159_v6 }
 0x176   : > { %5576 = vmatprep.mubr.msk.f32.mxu0 %vm279_vm0, %v7500_v45  ;;  %v6175_v19 = vunpack.i.l.bf16 %v6174_v48  ;;  %v6176_v30 = vunpack.i.h.bf16 %v6174_v48 }
 0x177   : > { %v1611_v28 = vsel %vm279_vm0, %v426_v36, %v6160_v10  ;;  %v1612_v21 = vsel %vm279_vm0, %v427_v14, %v6161_v47 }
 0x178   : > { %v6169_v27 = vpop.permute.xlu1 %6168  ;;  %v1644_v20 = vsel %vm1617_vm2, %v1611_v28, %v6165_v12  ;;  %v1645_v62 = vsel %vm1617_vm2, %v1612_v21, %v6166_v18 }
 0x179   : > { %v6170_v16 = vunpack.i.l.bf16 %v6169_v27  ;;  %2119 = vmatmul.mubr.f32.gmra.mrb[50].mxu0 %v1808_v15  ;;  %v6184_v17 = vpop.permute.xlu0 %6183  ;;  %v6171_v45 = vunpack.i.h.bf16 %v6169_v27 }
 0x17a   : > { %5577 = vmatprep.mubr.msk.f32.mxu0 %vm279_vm0, %v7521_v13  ;;  %v6185_v37 = vunpack.i.l.bf16 %v6184_v17  ;;  %v6186_v42 = vunpack.i.h.bf16 %v6184_v17 }
 0x17b   : > { %v1677_v61 = vsel %vm1650_vm3, %v1644_v20, %v6170_v16  ;;  %v1678_v34 = vsel %vm1650_vm3, %v1645_v62, %v6171_v45 }
 0x17c   : > { %v6179_v29 = vpop.permute.xlu1 %6178  ;;  %v1710_v63 = vsel %vm1683_vm4, %v1677_v61, %v6175_v19  ;;  %v1711_v23 = vsel %vm1683_vm4, %v1678_v34, %v6176_v30  ;;  %v687_v61 = vld [vmem:[#allocation2 + $0x19a] sm:$0xff] }
 0x17d   : > { %v6180_v24 = vunpack.i.l.bf16 %v6179_v29  ;;  %v6194_v26 = vpop.permute.xlu0 %6193  ;;  %v6181_v9 = vunpack.i.h.bf16 %v6179_v29 }
 0x17e   : > { %v6195_v46 = vunpack.i.l.bf16 %v6194_v26  ;;  %v6196_v55 = vunpack.i.h.bf16 %v6194_v26 }
 0x17f   : > { %v1743_v35 = vsel %vm1716_vm5, %v1710_v63, %v6180_v24  ;;  %v1744_v50 = vsel %vm1716_vm5, %v1711_v23, %v6181_v9 }
 0x180   : > { %v6189_v13 = vpop.permute.xlu1 %6188  ;;  %v1776_v0 = vsel %vm1749_vm6, %v1743_v35, %v6185_v37  ;;  %v1613_v54 = vsel %vm279_vm0, %v7458_v4, %v6195_v46  ;;  %v1777_v58 = vsel %vm1749_vm6, %v1744_v50, %v6186_v42  ;;  %v1614_v59 = vsel %vm279_vm0, %v7460_v5, %v6196_v55 }
 0x181   : > { %v6190_v38 = vunpack.i.l.bf16 %v6189_v13  ;;  %v6204_v41 = vpop.permute.xlu0 %6203  ;;  %v6191_v33 = vunpack.i.h.bf16 %v6189_v13 }
 0x182   : > { %v6205_v57 = vunpack.i.l.bf16 %v6204_v41  ;;  %v6206_v60 = vunpack.i.h.bf16 %v6204_v41 }
 0x183   : > { %v1809_v25 = vsel %vm1782_vm7, %v1776_v0, %v6190_v38  ;;  %v1810_v40 = vsel %vm1782_vm7, %v1777_v58, %v6191_v33 }
 0x184   : > { %v6199_v39 = vpop.permute.xlu1 %6198  ;;  %2124 = vmatmul.mubr.f32.gmra.mrb[52].mxu0 %v1809_v25  ;;  %v688_v25 = vld [vmem:[#allocation2 + $0x1a2] sm:$0xff] }
 0x185   : > { %v6201_v51 = vunpack.i.h.bf16 %v6199_v39  ;;  %v6200_v52 = vunpack.i.l.bf16 %v6199_v39  ;;  %v6214_v53 = vpop.permute.xlu0 %6213  ;;  %5578 = vmatprep.mubr.msk.f32.mxu0 %vm279_vm0, %v7523_v3 }
 0x186   : > { %v6215_v4 = vunpack.i.l.bf16 %v6214_v53  ;;  %v6216_v8 = vunpack.i.h.bf16 %v6214_v53 }
 0x187   : > { %v1646_v56 = vsel %vm1617_vm2, %v1613_v54, %v6200_v52  ;;  %v1647_v22 = vsel %vm1617_vm2, %v1614_v59, %v6201_v51 }
 0x188   : > { %v6209_v2 = vpop.permute.xlu1 %6208  ;;  %2129 = vmatmul.mubr.f32.gmra.mrb[54].mxu0 %v1810_v40  ;;  %v1679_v6 = vsel %vm1650_vm3, %v1646_v56, %v6205_v57  ;;  %v1680_v10 = vsel %vm1650_vm3, %v1647_v22, %v6206_v60 }
 0x189   : > { %v6211_v44 = vunpack.i.h.bf16 %v6209_v2  ;;  %v6210_v3 = vunpack.i.l.bf16 %v6209_v2  ;;  %v6224_v36 = vpop.permute.xlu0 %6223  ;;  %5579 = vmatprep.mubr.msk.f32.mxu0 %vm279_vm0, %v7569_v43 }
 0x18a   : > { %v6225_v5 = vunpack.i.l.bf16 %v6224_v36  ;;  %v6226_v43 = vunpack.i.h.bf16 %v6224_v36 }
 0x18b   : > { %v1712_v7 = vsel %vm1683_vm4, %v1679_v6, %v6210_v3  ;;  %v1713_v11 = vsel %vm1683_vm4, %v1680_v10, %v6211_v44 }
 0x18c   : > { %v6219_v48 = vpop.permute.xlu1 %6218  ;;  %v1745_v14 = vsel %vm1716_vm5, %v1712_v7, %v6215_v4  ;;  %v1746_v17 = vsel %vm1716_vm5, %v1713_v11, %v6216_v8 }
 0x18d   : > { %v6221_v12 = vunpack.i.h.bf16 %v6219_v48  ;;  %v6220_v47 = vunpack.i.l.bf16 %v6219_v48  ;;  %v6234_v28 = vpop.permute.xlu0 %6233 }
 0x18e   : > { %v6235_v21 = vunpack.i.l.bf16 %v6234_v28  ;;  %v6236_v34 = vunpack.i.h.bf16 %v6234_v28 }
 0x18f   : > { %v1778_v27 = vsel %vm1749_vm6, %v1745_v14, %v6220_v47  ;;  %v1779_v20 = vsel %vm1749_vm6, %v1746_v17, %v6221_v12 }
 0x190   : > { %v6229_v15 = vpop.permute.xlu1 %6228  ;;  %v1811_v16 = vsel %vm1782_vm7, %v1778_v27, %v6225_v5  ;;  %v1812_v30 = vsel %vm1782_vm7, %v1779_v20, %v6226_v43 }
 0x191   : > { %v6230_v18 = vunpack.i.l.bf16 %v6229_v15  ;;  %2134 = vmatmul.mubr.f32.gmra.mrb[56].mxu0 %v1811_v16  ;;  %v6244_v19 = vpop.permute.xlu0 %6243  ;;  %v6231_v29 = vunpack.i.h.bf16 %v6229_v15 }
 0x192   : > { %5580 = vmatprep.mubr.msk.f32.mxu0 %vm279_vm0, %v7572_v49  ;;  %v6245_v24 = vunpack.i.l.bf16 %v6244_v19  ;;  %v6246_v41 = vunpack.i.h.bf16 %v6244_v19 }
 0x193   : > { %v1615_v45 = vsel %vm279_vm0, %v7485_v31, %v6230_v18  ;;  %v1616_v49 = vsel %vm279_vm0, %v7487_v32, %v6231_v29 }
 0x194   : > { %v6239_v26 = vpop.permute.xlu1 %6238  ;;  %v1648_v63 = vsel %vm1617_vm2, %v1615_v45, %v6235_v21  ;;  %v1649_v46 = vsel %vm1617_vm2, %v1616_v49, %v6236_v34 }
 0x195   : > { %v6240_v62 = vunpack.i.l.bf16 %v6239_v26  ;;  %2139 = vmatmul.mubr.f32.gmra.mrb[58].mxu0 %v1812_v30  ;;  %v1422_v37 = vpop.permute.xlu0 %1421  ;;  %v6241_v31 = vunpack.i.h.bf16 %v6239_v26 }
 0x196   : > { %5581 = vmatprep.mubr.msk.f32.mxu0 %vm279_vm0, %v687_v61 }
 0x197   : > { %v1681_v9 = vsel %vm1650_vm3, %v1648_v63, %v6240_v62  ;;  %v1682_v0 = vsel %vm1650_vm3, %v1649_v46, %v6241_v31 }
 0x198   : > { %v1294_v35 = vpop.permute.xlu1 %1293  ;;  %v1714_v13 = vsel %vm1683_vm4, %v1681_v9, %v6245_v24  ;;  %v1715_v32 = vsel %vm1683_vm4, %v1682_v0, %v6246_v41 }
 0x199   : > { %v1747_v38 = vsel %vm1716_vm5, %v1714_v13, %v1294_v35  ;;  %v1296_v42 = vpop.permute.xlu0 %1295 }
 0x19a   : > { %v1780_v33 = vsel %vm1749_vm6, %v1747_v38, %v1422_v37  ;;  %v1748_v39 = vsel %vm1716_vm5, %v1715_v32, %v1296_v42 }
 0x19c   : > { %v1550_v23 = vpop.permute.xlu1 %1549 }
 0x19d   : > { %v1813_v50 = vsel %vm1782_vm7, %v1780_v33, %v1550_v23  ;;  %v1552_v55 = vpop.permute.xlu0 %1551 }
 0x19e   : > { %2144 = vmatmul.mubr.f32.gmra.mrb[60].mxu0 %v1813_v50 }
 0x19f   : > { %5582 = vmatprep.mubr.msk.f32.mxu0 %vm279_vm0, %v688_v25 }
 0x1a0   : > { %v7736_v51 = vpop.f32.mrb[0].mxu0  ;;  %v1424_v52 = vpop.permute.xlu1 %1423 }
 0x1a1   : > { %v1781_v53 = vsel %vm1749_vm6, %v1748_v39, %v1424_v52  ;;  %v1997_v54 = vpop.f32.mrb[1].mxu0  ;;  %v2227_v58 = vmul.f32 %v7736_v51, %v7736_v51  ;;  %v2154_v40 = vsel %vm279_vm0, %v7736_v51, 0.0 }
 0x1a2   : > { %v1814_v57 = vsel %vm1782_vm7, %v1781_v53, %v1552_v55 }
 0x1a3   : > { %2149 = vmatmul.mubr.f32.gmra.mrb[62].mxu0 %v1814_v57  ;;  %v2259_v44 = vsel %vm279_vm0, %v2227_v58, 0.0 }
 0x1a4   : > { %v7742_v56 = vpop.f32.mrb[2].mxu0 }
 0x1a5   : > { %v2155_v59 = vsel %vm279_vm0, %v7742_v56, 0.0  ;;  %v2228_v60 = vmul.f32 %v7742_v56, %v7742_v56  ;;  %v2002_v2 = vpop.f32.mrb[3].mxu0 }
 0x1a6   : > { %v2156_v22 = vadd.f32 %v2155_v59, %v2154_v40 }
 0x1a7   : > { %v2260_v3 = vsel %vm279_vm0, %v2228_v60, 0.0 }
 0x1a8   : > { %v2261_v36 = vadd.f32 %v2260_v3, %v2259_v44 }
 0x1af   : > { %v7752_v4 = vpop.f32.mrb[4].mxu0 }
 0x1b0   : > { %v2157_v6 = vsel %vm279_vm0, %v7752_v4, 0.0  ;;  %v2229_v7 = vmul.f32 %v7752_v4, %v7752_v4  ;;  %v2007_v8 = vpop.f32.mrb[5].mxu0 }
 0x1b1   : > { %v2158_v10 = vadd.f32 %v2157_v6, %v2156_v22 }
 0x1b2   : > { %v2262_v5 = vsel %vm279_vm0, %v2229_v7, 0.0 }
 0x1b3   : > { %v2263_v48 = vadd.f32 %v2262_v5, %v2261_v36  ;;  %v7759_v11 = vpop.f32.mrb[6].mxu0 }
 0x1b4   : > { %v2159_v12 = vsel %vm279_vm0, %v7759_v11, 0.0  ;;  %v2230_v47 = vmul.f32 %v7759_v11, %v7759_v11  ;;  %v2012_v28 = vpop.f32.mrb[7].mxu0 }
 0x1b5   : > { %v2160_v14 = vadd.f32 %v2159_v12, %v2158_v10 }
 0x1b6   : > { %v2264_v27 = vsel %vm279_vm0, %v2230_v47, 0.0 }
 0x1b7   : > { %v2265_v43 = vadd.f32 %v2264_v27, %v2263_v48 }
 0x1bc   : > { %v7766_v15 = vpop.f32.mrb[8].mxu0 }
 0x1bd   : > { %v2161_v16 = vsel %vm279_vm0, %v7766_v15, 0.0  ;;  %v2231_v17 = vmul.f32 %v7766_v15, %v7766_v15  ;;  %v2017_v18 = vpop.f32.mrb[9].mxu0 }
 0x1be   : > { %v2162_v19 = vadd.f32 %v2161_v16, %v2160_v14 }
 0x1bf   : > { %v2266_v20 = vsel %vm279_vm0, %v2231_v17, 0.0 }
 0x1c0   : > { %v2267_v21 = vadd.f32 %v2266_v20, %v2265_v43  ;;  %v7773_v45 = vpop.f32.mrb[10].mxu0 }
 0x1c1   : > { %v2163_v61 = vsel %vm279_vm0, %v7773_v45, 0.0  ;;  %v2232_v29 = vmul.f32 %v7773_v45, %v7773_v45  ;;  %v2022_v24 = vpop.f32.mrb[11].mxu0 }
 0x1c2   : > { %v2164_v26 = vadd.f32 %v2163_v61, %v2162_v19 }
 0x1c3   : > { %v2268_v30 = vsel %vm279_vm0, %v2232_v29, 0.0 }
 0x1c4   : > { %v2269_v62 = vadd.f32 %v2268_v30, %v2267_v21 }
 0x1cb   : > { %v7780_v37 = vpop.f32.mrb[12].mxu0 }
 0x1cc   : > { %v2165_v63 = vsel %vm279_vm0, %v7780_v37, 0.0  ;;  %v2233_v34 = vmul.f32 %v7780_v37, %v7780_v37  ;;  %v2027_v9 = vpop.f32.mrb[13].mxu0 }
 0x1cd   : > { %v2166_v49 = vadd.f32 %v2165_v63, %v2164_v26 }
 0x1ce   : > { %v2270_v31 = vsel %vm279_vm0, %v2233_v34, 0.0 }
 0x1cf   : > { %v2271_v35 = vadd.f32 %v2270_v31, %v2269_v62  ;;  %v7787_v13 = vpop.f32.mrb[14].mxu0 }
 0x1d0   : > { %v2167_v38 = vsel %vm279_vm0, %v7787_v13, 0.0  ;;  %v2234_v41 = vmul.f32 %v7787_v13, %v7787_v13  ;;  %v2032_v42 = vpop.f32.mrb[15].mxu0 }
 0x1d1   : > { %v2168_v46 = vadd.f32 %v2167_v38, %v2166_v49 }
 0x1d2   : > { %v2272_v0 = vsel %vm279_vm0, %v2234_v41, 0.0 }
 0x1d3   : > { %v2273_v23 = vadd.f32 %v2272_v0, %v2271_v35 }
 0x1d8   : > { %v7794_v33 = vpop.f32.mrb[16].mxu0 }
 0x1d9   : > { %v2169_v25 = vsel %vm279_vm0, %v7794_v33, 0.0  ;;  %v2235_v50 = vmul.f32 %v7794_v33, %v7794_v33  ;;  %v2037_v32 = vpop.f32.mrb[17].mxu0 }
 0x1da   : > { %v2170_v55 = vadd.f32 %v2169_v25, %v2168_v46 }
 0x1db   : > { %v2274_v39 = vsel %vm279_vm0, %v2235_v50, 0.0 }
 0x1dc   : > { %v2275_v52 = vadd.f32 %v2274_v39, %v2273_v23  ;;  %v7801_v53 = vpop.f32.mrb[18].mxu0 }
 0x1dd   : > { %v2171_v54 = vsel %vm279_vm0, %v7801_v53, 0.0  ;;  %v2236_v57 = vmul.f32 %v7801_v53, %v7801_v53  ;;  %v2042_v58 = vpop.f32.mrb[19].mxu0 }
 0x1de   : > { %v2172_v40 = vadd.f32 %v2171_v54, %v2170_v55 }
 0x1df   : > { %v2276_v59 = vsel %vm279_vm0, %v2236_v57, 0.0 }
 0x1e0   : > { %v2277_v60 = vadd.f32 %v2276_v59, %v2275_v52 }
 0x1e7   : > { %v7808_v2 = vpop.f32.mrb[20].mxu0 }
 0x1e8   : > { %v2173_v22 = vsel %vm279_vm0, %v7808_v2, 0.0  ;;  %v2237_v44 = vmul.f32 %v7808_v2, %v7808_v2  ;;  %v2047_v3 = vpop.f32.mrb[21].mxu0 }
 0x1e9   : > { %v2174_v36 = vadd.f32 %v2173_v22, %v2172_v40 }
 0x1ea   : > { %v2278_v6 = vsel %vm279_vm0, %v2237_v44, 0.0 }
 0x1eb   : > { %v2279_v7 = vadd.f32 %v2278_v6, %v2277_v60  ;;  %v7815_v8 = vpop.f32.mrb[22].mxu0 }
 0x1ec   : > { %v2175_v10 = vsel %vm279_vm0, %v7815_v8, 0.0  ;;  %v2238_v5 = vmul.f32 %v7815_v8, %v7815_v8  ;;  %v2052_v48 = vpop.f32.mrb[23].mxu0 }
 0x1ed   : > { %v2176_v12 = vadd.f32 %v2175_v10, %v2174_v36 }
 0x1ee   : > { %v2280_v47 = vsel %vm279_vm0, %v2238_v5, 0.0 }
 0x1ef   : > { %v2281_v28 = vadd.f32 %v2280_v47, %v2279_v7 }
 0x1f4   : > { %v7822_v14 = vpop.f32.mrb[24].mxu0 }
 0x1f5   : > { %v2177_v27 = vsel %vm279_vm0, %v7822_v14, 0.0  ;;  %v2239_v43 = vmul.f32 %v7822_v14, %v7822_v14  ;;  %v2057_v16 = vpop.f32.mrb[25].mxu0 }
 0x1f6   : > { %v2178_v17 = vadd.f32 %v2177_v27, %v2176_v12 }
 0x1f7   : > { %v2282_v18 = vsel %vm279_vm0, %v2239_v43, 0.0 }
 0x1f8   : > { %v2283_v19 = vadd.f32 %v2282_v18, %v2281_v28  ;;  %v7829_v20 = vpop.f32.mrb[26].mxu0 }
 0x1f9   : > { %v2179_v21 = vsel %vm279_vm0, %v7829_v20, 0.0  ;;  %v2240_v61 = vmul.f32 %v7829_v20, %v7829_v20  ;;  %v2062_v29 = vpop.f32.mrb[27].mxu0 }
 0x1fa   : > { %v2180_v24 = vadd.f32 %v2179_v21, %v2178_v17 }
 0x1fb   : > { %v2284_v26 = vsel %vm279_vm0, %v2240_v61, 0.0 }
 0x1fc   : > { %v2285_v30 = vadd.f32 %v2284_v26, %v2283_v19 }
 0x203   : > { %v7836_v62 = vpop.f32.mrb[28].mxu0 }
 0x204   : > { %v2181_v63 = vsel %vm279_vm0, %v7836_v62, 0.0  ;;  %v2241_v34 = vmul.f32 %v7836_v62, %v7836_v62  ;;  %v2067_v9 = vpop.f32.mrb[29].mxu0 }
 0x205   : > { %v2182_v49 = vadd.f32 %v2181_v63, %v2180_v24 }
 0x206   : > { %v2286_v31 = vsel %vm279_vm0, %v2241_v34, 0.0 }
 0x207   : > { %v2287_v35 = vadd.f32 %v2286_v31, %v2285_v30  ;;  %v7843_v38 = vpop.f32.mrb[30].mxu0 }
 0x208   : > { %v2183_v41 = vsel %vm279_vm0, %v7843_v38, 0.0  ;;  %v2242_v42 = vmul.f32 %v7843_v38, %v7843_v38  ;;  %v2072_v46 = vpop.f32.mrb[31].mxu0 }
 0x209   : > { %v2184_v0 = vadd.f32 %v2183_v41, %v2182_v49 }
 0x20a   : > { %v2288_v23 = vsel %vm279_vm0, %v2242_v42, 0.0 }
 0x20b   : > { %v2289_v25 = vadd.f32 %v2288_v23, %v2287_v35 }
 0x210   : > { %v7850_v50 = vpop.f32.mrb[32].mxu0 }
 0x211   : > { %v2185_v32 = vsel %vm279_vm0, %v7850_v50, 0.0  ;;  %v2243_v55 = vmul.f32 %v7850_v50, %v7850_v50  ;;  %v2077_v39 = vpop.f32.mrb[33].mxu0 }
 0x212   : > { %v2186_v52 = vadd.f32 %v2185_v32, %v2184_v0 }
 0x213   : > { %v2290_v54 = vsel %vm279_vm0, %v2243_v55, 0.0 }
 0x214   : > { %v2291_v57 = vadd.f32 %v2290_v54, %v2289_v25  ;;  %v7857_v58 = vpop.f32.mrb[34].mxu0 }
 0x215   : > { %v2187_v40 = vsel %vm279_vm0, %v7857_v58, 0.0  ;;  %v2244_v59 = vmul.f32 %v7857_v58, %v7857_v58  ;;  %v2082_v60 = vpop.f32.mrb[35].mxu0 }
 0x216   : > { %v2188_v22 = vadd.f32 %v2187_v40, %v2186_v52 }
 0x217   : > { %v2292_v44 = vsel %vm279_vm0, %v2244_v59, 0.0 }
 0x218   : > { %v2293_v3 = vadd.f32 %v2292_v44, %v2291_v57 }
 0x21f   : > { %v7864_v36 = vpop.f32.mrb[36].mxu0 }
 0x220   : > { %v2189_v6 = vsel %vm279_vm0, %v7864_v36, 0.0  ;;  %v2245_v7 = vmul.f32 %v7864_v36, %v7864_v36  ;;  %v2087_v10 = vpop.f32.mrb[37].mxu0 }
 0x221   : > { %v2190_v5 = vadd.f32 %v2189_v6, %v2188_v22 }
 0x222   : > { %v2294_v48 = vsel %vm279_vm0, %v2245_v7, 0.0 }
 0x223   : > { %v2295_v12 = vadd.f32 %v2294_v48, %v2293_v3  ;;  %v7871_v47 = vpop.f32.mrb[38].mxu0 }
 0x224   : > { %v2191_v28 = vsel %vm279_vm0, %v7871_v47, 0.0  ;;  %v2246_v27 = vmul.f32 %v7871_v47, %v7871_v47  ;;  %v2092_v43 = vpop.f32.mrb[39].mxu0 }
 0x225   : > { %v2192_v16 = vadd.f32 %v2191_v28, %v2190_v5 }
 0x226   : > { %v2296_v17 = vsel %vm279_vm0, %v2246_v27, 0.0 }
 0x227   : > { %v2297_v18 = vadd.f32 %v2296_v17, %v2295_v12 }
 0x22c   : > { %v7878_v19 = vpop.f32.mrb[40].mxu0 }
 0x22d   : > { %v2193_v21 = vsel %vm279_vm0, %v7878_v19, 0.0  ;;  %v2247_v61 = vmul.f32 %v7878_v19, %v7878_v19  ;;  %v2097_v29 = vpop.f32.mrb[41].mxu0 }
 0x22e   : > { %v2194_v24 = vadd.f32 %v2193_v21, %v2192_v16 }
 0x22f   : > { %v2298_v26 = vsel %vm279_vm0, %v2247_v61, 0.0 }
 0x230   : > { %v2299_v30 = vadd.f32 %v2298_v26, %v2297_v18  ;;  %v7885_v63 = vpop.f32.mrb[42].mxu0 }
 0x231   : > { %v2195_v34 = vsel %vm279_vm0, %v7885_v63, 0.0  ;;  %v2248_v9 = vmul.f32 %v7885_v63, %v7885_v63  ;;  %v2102_v49 = vpop.f32.mrb[43].mxu0 }
 0x232   : > { %v2196_v31 = vadd.f32 %v2195_v34, %v2194_v24 }
 0x233   : > { %v2300_v35 = vsel %vm279_vm0, %v2248_v9, 0.0 }
 0x234   : > { %v2301_v41 = vadd.f32 %v2300_v35, %v2299_v30 }
 0x23b   : > { %v7892_v42 = vpop.f32.mrb[44].mxu0 }
 0x23c   : > { %v2197_v46 = vsel %vm279_vm0, %v7892_v42, 0.0  ;;  %v2249_v0 = vmul.f32 %v7892_v42, %v7892_v42  ;;  %v2107_v23 = vpop.f32.mrb[45].mxu0 }
 0x23d   : > { %v2198_v25 = vadd.f32 %v2197_v46, %v2196_v31 }
 0x23e   : > { %v2302_v32 = vsel %vm279_vm0, %v2249_v0, 0.0 }
 0x23f   : > { %v2303_v55 = vadd.f32 %v2302_v32, %v2301_v41  ;;  %v7899_v39 = vpop.f32.mrb[46].mxu0 }
 0x240   : > { %v2199_v52 = vsel %vm279_vm0, %v7899_v39, 0.0  ;;  %v2250_v54 = vmul.f32 %v7899_v39, %v7899_v39  ;;  %v2112_v57 = vpop.f32.mrb[47].mxu0 }
 0x241   : > { %v2200_v40 = vadd.f32 %v2199_v52, %v2198_v25 }
 0x242   : > { %v2304_v59 = vsel %vm279_vm0, %v2250_v54, 0.0 }
 0x243   : > { %v2305_v60 = vadd.f32 %v2304_v59, %v2303_v55 }
 0x248   : > { %v7906_v22 = vpop.f32.mrb[48].mxu0 }
 0x249   : > { %v2201_v44 = vsel %vm279_vm0, %v7906_v22, 0.0  ;;  %v2251_v3 = vmul.f32 %v7906_v22, %v7906_v22  ;;  %v2117_v6 = vpop.f32.mrb[49].mxu0 }
 0x24a   : > { %v2202_v7 = vadd.f32 %v2201_v44, %v2200_v40 }
 0x24b   : > { %v2306_v10 = vsel %vm279_vm0, %v2251_v3, 0.0 }
 0x24c   : > { %v2307_v5 = vadd.f32 %v2306_v10, %v2305_v60  ;;  %v7913_v48 = vpop.f32.mrb[50].mxu0 }
 0x24d   : > { %v2203_v12 = vsel %vm279_vm0, %v7913_v48, 0.0  ;;  %v2252_v28 = vmul.f32 %v7913_v48, %v7913_v48  ;;  %v2122_v27 = vpop.f32.mrb[51].mxu0 }
 0x24e   : > { %v2204_v43 = vadd.f32 %v2203_v12, %v2202_v7 }
 0x24f   : > { %v2308_v16 = vsel %vm279_vm0, %v2252_v28, 0.0 }
 0x250   : > { %v2309_v17 = vadd.f32 %v2308_v16, %v2307_v5 }
 0x257   : > { %v7920_v18 = vpop.f32.mrb[52].mxu0 }
 0x258   : > { %v2205_v21 = vsel %vm279_vm0, %v7920_v18, 0.0  ;;  %v2253_v61 = vmul.f32 %v7920_v18, %v7920_v18  ;;  %v2127_v29 = vpop.f32.mrb[53].mxu0 }
 0x259   : > { %v2206_v24 = vadd.f32 %v2205_v21, %v2204_v43 }
 0x25a   : > { %v2310_v26 = vsel %vm279_vm0, %v2253_v61, 0.0 }
 0x25b   : > { %v2311_v30 = vadd.f32 %v2310_v26, %v2309_v17  ;;  %v7927_v34 = vpop.f32.mrb[54].mxu0 }
 0x25c   : > { %v2207_v9 = vsel %vm279_vm0, %v7927_v34, 0.0  ;;  %v2254_v49 = vmul.f32 %v7927_v34, %v7927_v34  ;;  %v2132_v31 = vpop.f32.mrb[55].mxu0 }
 0x25d   : > { %v2208_v35 = vadd.f32 %v2207_v9, %v2206_v24 }
 0x25e   : > { %v2312_v41 = vsel %vm279_vm0, %v2254_v49, 0.0 }
 0x25f   : > { %v2313_v46 = vadd.f32 %v2312_v41, %v2311_v30 }
 0x264   : > { %v7934_v0 = vpop.f32.mrb[56].mxu0 }
 0x265   : > { %v2209_v23 = vsel %vm279_vm0, %v7934_v0, 0.0  ;;  %v2255_v25 = vmul.f32 %v7934_v0, %v7934_v0  ;;  %v2137_v32 = vpop.f32.mrb[57].mxu0 }
 0x266   : > { %v2210_v55 = vadd.f32 %v2209_v23, %v2208_v35 }
 0x267   : > { %v2314_v52 = vsel %vm279_vm0, %v2255_v25, 0.0 }
 0x268   : > { %v2315_v54 = vadd.f32 %v2314_v52, %v2313_v46  ;;  %v7941_v57 = vpop.f32.mrb[58].mxu0 }
 0x269   : > { %v2211_v40 = vsel %vm279_vm0, %v7941_v57, 0.0  ;;  %v2256_v59 = vmul.f32 %v7941_v57, %v7941_v57  ;;  %v2142_v60 = vpop.f32.mrb[59].mxu0 }
 0x26a   : > { %v2212_v44 = vadd.f32 %v2211_v40, %v2210_v55  ;;  %v2684_v60 = vld [vmem:[#allocation3 + $0x9] sm:$0xff] }
 0x26b   : > { %v2316_v3 = vsel %vm279_vm0, %v2256_v59, 0.0  ;;  %v2683_v59 = vld [vmem:[#allocation3 + $0x1] sm:$0xff] }
 0x26c   : > { %v2317_v6 = vadd.f32 %v2316_v3, %v2315_v54  ;;  %v2715_v3 = vld [vmem:[#allocation3 + $0x2] sm:$0xff] }
 0x271   : > { %v7948_v7 = vpop.f32.mrb[60].mxu0 }
 0x272   : > { %v2213_v10 = vsel %vm279_vm0, %v7948_v7, 0.0  ;;  %v2257_v5 = vmul.f32 %v7948_v7, %v7948_v7  ;;  %v2147_v12 = vpop.f32.mrb[61].mxu0 }
 0x273   : > { %v2214_v28 = vadd.f32 %v2213_v10, %v2212_v44  ;;  %v6247_v44 = vpack.i.bf16 %v2684_v60, %v2683_v59 }
 0x274   : > { %v2318_v27 = vsel %vm279_vm0, %v2257_v5, 0.0  ;;  %v2874_v5 = vld [vmem:[#allocation3 + $0x198] sm:$0xff] }
 0x275   : > { %v2319_v43 = vadd.f32 %v2318_v27, %v2317_v6  ;;  %v2716_v6 = vld [vmem:[#allocation3 + $0xa] sm:$0xff] }
 0x276   : > { %v7955_v16 = vpop.f32.mrb[62].mxu0  ;;  %v6252_v10 = vpack.i.bf16 %v2716_v6, %v2715_v3  ;;  %v2408_v3 = vld [vmem:[%s10318_s3 + $0x20] sm:$0xff]  ;;  %v2409_v6 = vld [vmem:[%s10318_s3 + $0x28] sm:$0xff] }
 0x277   : > { %v2215_v17 = vsel %vm279_vm0, %v7955_v16, 0.0  ;;  %v2258_v21 = vmul.f32 %v7955_v16, %v7955_v16  ;;  %v2152_v61 = vpop.f32.mrb[63].mxu0 }
 0x278   : > { %v2216_v29 = vadd.f32 %v2215_v17, %v2214_v28 }
 0x279   : > { %v2320_v24 = vsel %vm279_vm0, %v2258_v21, 0.0 }
 0x27a   : > { %2217 = vadd.xlane.f32.xlu1 %v2216_v29  ;;  %v2321_v26 = vadd.f32 %v2320_v24, %v2319_v43 }
 0x27c   : > { %2322 = vadd.xlane.f32.xlu0 %v2321_v26 }
 0x28b   : > { %6253 = vrot.lane.b32.xlu1 %v6252_v10, %s6807_s30  ;;  %v2410_v10 = vld [vmem:[%s10318_s3 + $0x30] sm:$0xff] }
 0x28f   : > { %3672 = vrot.lane.b32.xlu1 %v2874_v5, %s6812_s21  ;;  %v2411_v5 = vld [vmem:[%s10318_s3 + $0x38] sm:$0xff] }
 0x292   : > { %6248 = vrot.lane.b32.xlu0 %v6247_v44, %s6806_s23 }
 0x307   : > { %v2218_v30 = vpop.xlane.xlu1 %2217 }
 0x308   : > { %v2219_v9 = vrot.slane %v2218_v30, 4 }
 0x309   : > { %v2323_v49 = vpop.xlane.xlu0 %2322 }
 0x30a   : > { %v2220_v31 = vadd.f32 %v2219_v9, %v2218_v30  ;;  %v2324_v35 = vrot.slane %v2323_v49, 4 }
 0x30c   : > { %v2325_v41 = vadd.f32 %v2324_v35, %v2323_v49  ;;  %v2221_v46 = vrot.slane %v2220_v31, 2 }
 0x30e   : > { %v2222_v23 = vadd.f32 %v2221_v46, %v2220_v31  ;;  %v2326_v25 = vrot.slane %v2325_v41, 2 }
 0x310   : > { %v2223_v32 = vrot.slane %v2222_v23, 1  ;;  %v2327_v55 = vadd.f32 %v2326_v25, %v2325_v41 }
 0x312   : > { %v2224_v52 = vadd.f32 %v2223_v32, %v2222_v23  ;;  %v2328_v54 = vrot.slane %v2327_v55, 1  ;;  %v2404_v32 = vld [vmem:[%s10318_s3] sm:$0xff] }
 0x314   : > { %5673 = vpush %v2224_v52  ;;  %v2329_v40 = vadd.f32 %v2328_v54, %v2327_v55  ;;  %v2405_v55 = vld [vmem:[%s10318_s3 + $0x8] sm:$0xff]  ;;  %v2406_v52 = vld [vmem:[%s10318_s3 + $0x10] sm:$0xff]  ;;  %v2407_v54 = vld [vmem:[%s10318_s3 + $0x18] sm:$0xff] }
 0x316   : > { %5675 = vpush %v2329_v40 }
 0x345   : > { %s5674_s11 = spop %5673 }
 0x346   : > { %s2226_s14 = smul.f32 0.00024414063, %s5674_s11 }
 0x347   : > { %s5676_s15 = spop %5675 }
 0x348   : > { %s2332_s16 = smul.f32 %s2226_s14, %s2226_s14  ;;  %v7965_v12 = vstv %s2226_s14 }
 0x349   : > { %v2339_v28 = vsub.f32 %v7736_v51, %v7965_v12  ;;  %v2340_v27 = vsub.f32 %v7742_v56, %v7965_v12  ;;  %v2341_v43 = vsub.f32 %v7752_v4, %v7965_v12  ;;  %v2342_v17 = vsub.f32 %v7759_v11, %v7965_v12  ;;  %s2331_s17 = smul.f32 0.00024414063, %s5676_s15 }
 0x34a   : > { %v2343_v21 = vsub.f32 %v7766_v15, %v7965_v12  ;;  %v2344_v61 = vsub.f32 %v7773_v45, %v7965_v12  ;;  %v2345_v29 = vsub.f32 %v7780_v37, %v7965_v12  ;;  %v2346_v51 = vsub.f32 %v7787_v13, %v7965_v12 }
 0x34b   : > { %v2347_v56 = vsub.f32 %v7794_v33, %v7965_v12  ;;  %v2348_v4 = vsub.f32 %v7801_v53, %v7965_v12  ;;  %v2349_v11 = vsub.f32 %v7808_v2, %v7965_v12  ;;  %v2350_v15 = vsub.f32 %v7815_v8, %v7965_v12  ;;  %s2333_s22 = ssub.f32 %s2331_s17, %s2332_s16 }
 0x34c   : > { %v2351_v45 = vsub.f32 %v7822_v14, %v7965_v12  ;;  %v2352_v37 = vsub.f32 %v7829_v20, %v7965_v12  ;;  %v2353_v13 = vsub.f32 %v7836_v62, %v7965_v12  ;;  %v2354_v33 = vsub.f32 %v7843_v38, %v7965_v12 }
 0x34d   : > { %v2355_v53 = vsub.f32 %v7850_v50, %v7965_v12  ;;  %v2356_v2 = vsub.f32 %v7857_v58, %v7965_v12  ;;  %v2357_v8 = vsub.f32 %v7864_v36, %v7965_v12  ;;  %v2358_v14 = vsub.f32 %v7871_v47, %v7965_v12  ;;  %s2334_s26 = sadd.f32 1e-05, %s2333_s22 }
 0x34e   : > { %v2359_v20 = vsub.f32 %v7878_v19, %v7965_v12  ;;  %v2360_v62 = vsub.f32 %v7885_v63, %v7965_v12  ;;  %v2361_v38 = vsub.f32 %v7892_v42, %v7965_v12  ;;  %v2362_v50 = vsub.f32 %v7899_v39, %v7965_v12 }
 0x34f   : > { %v2363_v58 = vsub.f32 %v7906_v22, %v7965_v12  ;;  %v2364_v36 = vsub.f32 %v7913_v48, %v7965_v12  ;;  %v2365_v47 = vsub.f32 %v7920_v18, %v7965_v12  ;;  %v2366_v19 = vsub.f32 %v7927_v34, %v7965_v12  ;;  %v4060_v18 = vld [vmem:[%s10317_s2] sm:$0xff]  ;;  %v4061_v34 = vld [vmem:[%s10317_s2 + $0x8] sm:$0xff] }
 0x350   : > { %v2367_v63 = vsub.f32 %v7934_v0, %v7965_v12  ;;  %v2368_v42 = vsub.f32 %v7941_v57, %v7965_v12  ;;  %v2369_v39 = vsub.f32 %v7948_v7, %v7965_v12  ;;  %v2370_v22 = vsub.f32 %v7955_v16, %v7965_v12 }
 0x351   : > { %v2335_v24 = vstv %s2334_s26  ;;  %v5647_v0 = vpack.c.bf16 %v4061_v34, %v4060_v18 }
 0x352   : > { %6792 = vrsqrt.f32 %v2335_v24  ;;  %v2425_v24 = vld [vmem:[%s10318_s3 + $0xa8] sm:$0xff] }
 0x353   : > { %5648 = vmatpush1.bf16.msra.mxu1 %v5647_v0 }
 0x354   : > { %5649 = vmatprep.subr.bf16.mxu1 %v6805_v1 }
 0x35c   : > { %v6793_v48 = vpop.eup %6792 }
 0x35d   : > { %5677 = vpush %v6793_v48  ;;  %v2426_v48 = vld [vmem:[%s10318_s3 + $0xb0] sm:$0xff] }
 0x38e   : > { %s5678_s9 = spop %5677 }
 0x38f   : > { %v2371_v57 = vstv %s5678_s9 }
 0x390   : > { %v2372_v26 = vmul.f32 %v2371_v57, %v2339_v28  ;;  %v2373_v7 = vmul.f32 %v2371_v57, %v2340_v27  ;;  %v2374_v30 = vmul.f32 %v2371_v57, %v2341_v43  ;;  %v2375_v9 = vmul.f32 %v2371_v57, %v2342_v17  ;;  %v2412_v17 = vld [vmem:[%s10318_s3 + $0x40] sm:$0xff] }
 0x391   : > { %v2376_v16 = vmul.f32 %v2371_v57, %v2343_v21  ;;  %v2377_v49 = vmul.f32 %v2371_v57, %v2344_v61  ;;  %v2378_v31 = vmul.f32 %v2371_v57, %v2345_v29  ;;  %v2379_v35 = vmul.f32 %v2371_v57, %v2346_v51  ;;  %v2413_v21 = vld [vmem:[%s10318_s3 + $0x48] sm:$0xff]  ;;  %v2414_v61 = vld [vmem:[%s10318_s3 + $0x50] sm:$0xff] }
 0x392   : > { %v2380_v41 = vmul.f32 %v2371_v57, %v2347_v56  ;;  %v2381_v46 = vmul.f32 %v2371_v57, %v2348_v4  ;;  %v2382_v23 = vmul.f32 %v2371_v57, %v2349_v11  ;;  %v2383_v25 = vmul.f32 %v2371_v57, %v2350_v15  ;;  %v2415_v11 = vld [vmem:[%s10318_s3 + $0x58] sm:$0xff]  ;;  %v2416_v15 = vld [vmem:[%s10318_s3 + $0x60] sm:$0xff] }
 0x393   : > { %v2384_v40 = vmul.f32 %v2371_v57, %v2351_v45  ;;  %v2385_v59 = vmul.f32 %v2371_v57, %v2352_v37  ;;  %v2386_v60 = vmul.f32 %v2371_v57, %v2353_v13  ;;  %v2387_v44 = vmul.f32 %v2371_v57, %v2354_v33  ;;  %v2417_v45 = vld [vmem:[%s10318_s3 + $0x68] sm:$0xff] }
 0x394   : > { %v8062_v12 = vmul.f32 %v2371_v57, %v2355_v53  ;;  %v8064_v28 = vmul.f32 %v2371_v57, %v2356_v2  ;;  %v8066_v27 = vmul.f32 %v2371_v57, %v2357_v8  ;;  %v8068_v43 = vmul.f32 %v2371_v57, %v2358_v14  ;;  %v2418_v2 = vld [vmem:[%s10318_s3 + $0x70] sm:$0xff]  ;;  %v2419_v8 = vld [vmem:[%s10318_s3 + $0x78] sm:$0xff]  ;;  %v2420_v14 = vld [vmem:[%s10318_s3 + $0x80] sm:$0xff] }
 0x395   : > { %v8079_v29 = vmul.f32 %v2371_v57, %v2359_v20  ;;  %v8081_v51 = vmul.f32 %v2371_v57, %v2360_v62  ;;  %v8083_v56 = vmul.f32 %v2371_v57, %v2361_v38  ;;  %v8085_v4 = vmul.f32 %v2371_v57, %v2362_v50 }
 0x396   : > { %v8096_v37 = vmul.f32 %v2371_v57, %v2363_v58  ;;  %v8098_v13 = vmul.f32 %v2371_v57, %v2364_v36  ;;  %v8100_v33 = vmul.f32 %v2371_v57, %v2365_v47  ;;  %v8102_v53 = vmul.f32 %v2371_v57, %v2366_v19  ;;  %v2421_v58 = vld [vmem:[%s10318_s3 + $0x88] sm:$0xff]  ;;  %v2422_v36 = vld [vmem:[%s10318_s3 + $0x90] sm:$0xff]  ;;  %v2423_v47 = vld [vmem:[%s10318_s3 + $0x98] sm:$0xff] }
 0x397   : > { %v8113_v20 = vmul.f32 %v2371_v57, %v2367_v63  ;;  %v8115_v62 = vmul.f32 %v2371_v57, %v2368_v42  ;;  %v8117_v38 = vmul.f32 %v2371_v57, %v2369_v39  ;;  %v8119_v50 = vmul.f32 %v2371_v57, %v2370_v22  ;;  %v2424_v22 = vld [vmem:[%s10318_s3 + $0xa0] sm:$0xff] }
 0x398   : > { %v8130_v19 = vmul.f32 %v2404_v32, %v2372_v26  ;;  %v8132_v63 = vmul.f32 %v2405_v55, %v2373_v7  ;;  %v8134_v42 = vmul.f32 %v2406_v52, %v2374_v30  ;;  %v8136_v39 = vmul.f32 %v2407_v54, %v2375_v9  ;;  %v2427_v26 = vld [vmem:[%s10318_s3 + $0xb8] sm:$0xff]  ;;  %v2428_v7 = vld [vmem:[%s10318_s3 + $0xc0] sm:$0xff]  ;;  %v2429_v30 = vld [vmem:[%s10318_s3 + $0xc8] sm:$0xff] }
 0x399   : > { %v8147_v18 = vmul.f32 %v2408_v3, %v2376_v16  ;;  %v8149_v34 = vmul.f32 %v2409_v6, %v2377_v49  ;;  %v8151_v0 = vmul.f32 %v2410_v10, %v2378_v31  ;;  %v8153_v57 = vmul.f32 %v2411_v5, %v2379_v35  ;;  %v2468_v35 = vld [vmem:[%s10319_s4] sm:$0xff]  ;;  %v2469_v32 = vld [vmem:[%s10319_s4 + $0x8] sm:$0xff]  ;;  %v2470_v55 = vld [vmem:[%s10319_s4 + $0x10] sm:$0xff] }
 0x39a   : > { %v8164_v9 = vmul.f32 %v2412_v17, %v2380_v41  ;;  %v8166_v16 = vmul.f32 %v2413_v21, %v2381_v46  ;;  %v8168_v49 = vmul.f32 %v2414_v61, %v2382_v23  ;;  %v8170_v31 = vmul.f32 %v2415_v11, %v2383_v25  ;;  %v2471_v41 = vld [vmem:[%s10319_s4 + $0x18] sm:$0xff]  ;;  %v2430_v46 = vld [vmem:[%s10318_s3 + $0xd0] sm:$0xff]  ;;  %v2432_v25 = vld [vmem:[%s10318_s3 + $0xe0] sm:$0xff] }
 0x39b   : > { %v2431_v23 = vld [vmem:[%s10318_s3 + $0xd8] sm:$0xff]  ;;  %v2448_v52 = vmul.f32 %v2416_v15, %v2384_v40  ;;  %v2449_v54 = vmul.f32 %v2417_v45, %v2385_v59  ;;  %v2450_v3 = vmul.f32 %v2418_v2, %v2386_v60  ;;  %v2451_v6 = vmul.f32 %v2419_v8, %v2387_v44  ;;  %v2472_v10 = vld [vmem:[%s10319_s4 + $0x20] sm:$0xff]  ;;  %v2473_v5 = vld [vmem:[%s10319_s4 + $0x28] sm:$0xff] }
 0x39c   : > { %v2474_v17 = vld [vmem:[%s10319_s4 + $0x30] sm:$0xff]  ;;  %v2475_v21 = vld [vmem:[%s10319_s4 + $0x38] sm:$0xff]  ;;  %v2433_v40 = vld [vmem:[%s10318_s3 + $0xe8] sm:$0xff]  ;;  %v2452_v44 = vmul.f32 %v2420_v14, %v8062_v12  ;;  %v2453_v61 = vmul.f32 %v2421_v58, %v8064_v28  ;;  %v2454_v11 = vmul.f32 %v2422_v36, %v8066_v27  ;;  %v2455_v15 = vmul.f32 %v2423_v47, %v8068_v43 }
 0x39d   : > { %v2434_v59 = vld [vmem:[%s10318_s3 + $0xf0] sm:$0xff]  ;;  %v2435_v60 = vld [vmem:[%s10318_s3 + $0xf8] sm:$0xff]  ;;  %v2476_v45 = vld [vmem:[%s10319_s4 + $0x40] sm:$0xff]  ;;  %v2456_v12 = vmul.f32 %v2424_v22, %v8079_v29  ;;  %v2457_v28 = vmul.f32 %v2425_v24, %v8081_v51  ;;  %v2458_v27 = vmul.f32 %v2426_v48, %v8083_v56  ;;  %v2459_v43 = vmul.f32 %v2427_v26, %v8085_v4 }
 0x39e   : > { %v2477_v2 = vld [vmem:[%s10319_s4 + $0x48] sm:$0xff]  ;;  %v2478_v8 = vld [vmem:[%s10319_s4 + $0x50] sm:$0xff]  ;;  %v2479_v14 = vld [vmem:[%s10319_s4 + $0x58] sm:$0xff]  ;;  %v2460_v29 = vmul.f32 %v2428_v7, %v8096_v37  ;;  %v2461_v51 = vmul.f32 %v2429_v30, %v8098_v13  ;;  %v2462_v56 = vmul.f32 %v2430_v46, %v8100_v33  ;;  %v2463_v4 = vmul.f32 %v2431_v23, %v8102_v53 }
 0x39f   : > { %v2480_v58 = vld [vmem:[%s10319_s4 + $0x60] sm:$0xff]  ;;  %v2481_v36 = vld [vmem:[%s10319_s4 + $0x68] sm:$0xff]  ;;  %v2482_v47 = vld [vmem:[%s10319_s4 + $0x70] sm:$0xff]  ;;  %v2464_v37 = vmul.f32 %v2432_v25, %v8113_v20  ;;  %v2465_v13 = vmul.f32 %v2433_v40, %v8115_v62  ;;  %v2466_v33 = vmul.f32 %v2434_v59, %v8117_v38  ;;  %v2467_v53 = vmul.f32 %v2435_v60, %v8119_v50 }
 0x3a0   : > { %v2483_v22 = vld [vmem:[%s10319_s4 + $0x78] sm:$0xff]  ;;  %v2484_v24 = vld [vmem:[%s10319_s4 + $0x80] sm:$0xff]  ;;  %v2485_v48 = vld [vmem:[%s10319_s4 + $0x88] sm:$0xff]  ;;  %v2500_v20 = vadd.f32 %v2468_v35, %v8130_v19  ;;  %v2501_v62 = vadd.f32 %v2469_v32, %v8132_v63  ;;  %v2502_v38 = vadd.f32 %v2470_v55, %v8134_v42  ;;  %v2503_v50 = vadd.f32 %v2471_v41, %v8136_v39 }
 0x3a1   : > { %v2486_v26 = vld [vmem:[%s10319_s4 + $0x90] sm:$0xff]  ;;  %v2487_v7 = vld [vmem:[%s10319_s4 + $0x98] sm:$0xff]  ;;  %v2488_v30 = vld [vmem:[%s10319_s4 + $0xa0] sm:$0xff]  ;;  %v2504_v19 = vadd.f32 %v2472_v10, %v8147_v18  ;;  %v2505_v63 = vadd.f32 %v2473_v5, %v8149_v34  ;;  %v2506_v42 = vadd.f32 %v2474_v17, %v8151_v0  ;;  %v2507_v39 = vadd.f32 %v2475_v21, %v8153_v57 }
 0x3a2   : > { %v2489_v46 = vld [vmem:[%s10319_s4 + $0xa8] sm:$0xff]  ;;  %v2490_v23 = vld [vmem:[%s10319_s4 + $0xb0] sm:$0xff]  ;;  %v2491_v35 = vld [vmem:[%s10319_s4 + $0xb8] sm:$0xff]  ;;  %v2508_v18 = vadd.f32 %v2476_v45, %v8164_v9  ;;  %v2509_v34 = vadd.f32 %v2477_v2, %v8166_v16  ;;  %v2510_v0 = vadd.f32 %v2478_v8, %v8168_v49  ;;  %v2511_v57 = vadd.f32 %v2479_v14, %v8170_v31 }
 0x3a3   : > { %v2492_v32 = vld [vmem:[%s10319_s4 + $0xc0] sm:$0xff]  ;;  %v2493_v55 = vld [vmem:[%s10319_s4 + $0xc8] sm:$0xff]  ;;  %v2494_v41 = vld [vmem:[%s10319_s4 + $0xd0] sm:$0xff]  ;;  %v2512_v5 = vadd.f32 %v2480_v58, %v2448_v52  ;;  %v2513_v9 = vadd.f32 %v2481_v36, %v2449_v54  ;;  %v2514_v17 = vadd.f32 %v2482_v47, %v2450_v3  ;;  %v2515_v16 = vadd.f32 %v2483_v22, %v2451_v6 }
 0x3a4   : > { %v2495_v25 = vld [vmem:[%s10319_s4 + $0xd8] sm:$0xff]  ;;  %v2496_v10 = vld [vmem:[%s10319_s4 + $0xe0] sm:$0xff]  ;;  %v2497_v49 = vld [vmem:[%s10319_s4 + $0xe8] sm:$0xff]  ;;  %v8314_v40 = vadd.f32 %v2484_v24, %v2452_v44  ;;  %v8316_v59 = vadd.f32 %v2485_v48, %v2453_v61  ;;  %v8318_v52 = vadd.f32 %v2486_v26, %v2454_v11  ;;  %v8320_v54 = vadd.f32 %v2487_v7, %v2455_v15 }
 0x3a5   : > { %v2498_v31 = vld [vmem:[%s10319_s4 + $0xf0] sm:$0xff]  ;;  %v2499_v21 = vld [vmem:[%s10319_s4 + $0xf8] sm:$0xff]  ;;  %v8322_v3 = vadd.f32 %v2488_v30, %v2456_v12  ;;  %v8324_v6 = vadd.f32 %v2489_v46, %v2457_v28  ;;  %v8326_v60 = vadd.f32 %v2490_v23, %v2458_v27  ;;  %v8328_v45 = vadd.f32 %v2491_v35, %v2459_v43 }
 0x3a6   : > { %v8330_v2 = vadd.f32 %v2492_v32, %v2460_v29  ;;  %v8332_v8 = vadd.f32 %v2493_v55, %v2461_v51  ;;  %v8334_v44 = vadd.f32 %v2494_v41, %v2462_v56  ;;  %v8336_v61 = vadd.f32 %v2495_v25, %v2463_v4  ;;  %v4062_v46 = vld [vmem:[%s10317_s2 + $0x10] sm:$0xff]  ;;  %v4063_v23 = vld [vmem:[%s10317_s2 + $0x18] sm:$0xff] }
 0x3a7   : > { %v8338_v11 = vadd.f32 %v2496_v10, %v2464_v37  ;;  %v8340_v15 = vadd.f32 %v2497_v49, %v2465_v13  ;;  %v8342_v12 = vadd.f32 %v2498_v31, %v2466_v33  ;;  %v8344_v28 = vadd.f32 %v2499_v21, %v2467_v53  ;;  %v4066_v49 = vld [vmem:[%s10317_s2 + $0x30] sm:$0xff] }
 0x3a8   : > { %v2532_v27 = vmax.f32 %v2500_v20, 0.0  ;;  %v2533_v14 = vmax.f32 %v2501_v62, 0.0  ;;  %v2534_v43 = vmax.f32 %v2502_v38, 0.0  ;;  %v2535_v58 = vmax.f32 %v2503_v50, 0.0 }
 0x3a9   : > { %v2536_v36 = vmax.f32 %v2504_v19, 0.0  ;;  %v2537_v29 = vmax.f32 %v2505_v63, 0.0  ;;  %v2538_v51 = vmax.f32 %v2506_v42, 0.0  ;;  %v2539_v47 = vmax.f32 %v2507_v39, 0.0 }
 0x3aa   : > { %v2540_v56 = vmax.f32 %v2508_v18, 0.0  ;;  %v2541_v22 = vmax.f32 %v2509_v34, 0.0  ;;  %v2542_v4 = vmax.f32 %v2510_v0, 0.0  ;;  %v2543_v24 = vmax.f32 %v2511_v57, 0.0  ;;  %2621 = vst.msk [vmem:[#allocation3 + $0x31] sm:$0xff] %vm279_vm0, %v2534_v43  ;;  %2622 = vst.msk [vmem:[#allocation3 + $0x39] sm:$0xff] %vm279_vm0, %v2535_v58 }
 0x3ab   : > { %2619 = vst.msk [vmem:[#allocation3 + $0x19] sm:$0xff] %vm279_vm0, %v2532_v27  ;;  %2620 = vst.msk [vmem:[#allocation3 + $0x21] sm:$0xff] %vm279_vm0, %v2533_v14  ;;  %v2544_v37 = vmax.f32 %v2512_v5, 0.0  ;;  %v2545_v13 = vmax.f32 %v2513_v9, 0.0  ;;  %v2546_v33 = vmax.f32 %v2514_v17, 0.0  ;;  %v2547_v53 = vmax.f32 %v2515_v16, 0.0 }
 0x3ac   : > { %2623 = vst.msk [vmem:[#allocation3 + $0x49] sm:$0xff] %vm279_vm0, %v2536_v36  ;;  %2624 = vst.msk [vmem:[#allocation3 + $0x51] sm:$0xff] %vm279_vm0, %v2537_v29  ;;  %v2548_v48 = vmax.f32 %v8314_v40, 0.0  ;;  %v2549_v26 = vmax.f32 %v8316_v59, 0.0  ;;  %v2550_v7 = vmax.f32 %v8318_v52, 0.0  ;;  %v2551_v20 = vmax.f32 %v8320_v54, 0.0 }
 0x3ad   : > { %2625 = vst.msk [vmem:[#allocation3 + $0x61] sm:$0xff] %vm279_vm0, %v2538_v51  ;;  %2626 = vst.msk [vmem:[#allocation3 + $0x69] sm:$0xff] %vm279_vm0, %v2539_v47  ;;  %v2552_v62 = vmax.f32 %v8322_v3, 0.0  ;;  %v2553_v38 = vmax.f32 %v8324_v6, 0.0  ;;  %v2554_v50 = vmax.f32 %v8326_v60, 0.0  ;;  %v2555_v30 = vmax.f32 %v8328_v45, 0.0 }
 0x3ae   : > { %2627 = vst.msk [vmem:[#allocation3 + $0x79] sm:$0xff] %vm279_vm0, %v2540_v56  ;;  %2628 = vst.msk [vmem:[#allocation3 + $0x81] sm:$0xff] %vm279_vm0, %v2541_v22  ;;  %v2556_v19 = vmax.f32 %v8330_v2, 0.0  ;;  %v2557_v63 = vmax.f32 %v8332_v8, 0.0  ;;  %v2558_v42 = vmax.f32 %v8334_v44, 0.0  ;;  %v2559_v39 = vmax.f32 %v8336_v61, 0.0 }
 0x3af   : > { %2629 = vst.msk [vmem:[#allocation3 + $0x91] sm:$0xff] %vm279_vm0, %v2542_v4  ;;  %2630 = vst.msk [vmem:[#allocation3 + $0x99] sm:$0xff] %vm279_vm0, %v2543_v24  ;;  %v2560_v35 = vmax.f32 %v8338_v11, 0.0  ;;  %v2561_v32 = vmax.f32 %v8340_v15, 0.0  ;;  %v2562_v55 = vmax.f32 %v8342_v12, 0.0  ;;  %v2563_v18 = vmax.f32 %v8344_v28, 0.0 }
 0x3b0   : > { %2631 = vst.msk [vmem:[#allocation3 + $0xa9] sm:$0xff] %vm279_vm0, %v2544_v37  ;;  %2632 = vst.msk [vmem:[#allocation3 + $0xb1] sm:$0xff] %vm279_vm0, %v2545_v13  ;;  %v4064_v34 = vld [vmem:[%s10317_s2 + $0x20] sm:$0xff]  ;;  %v4065_v0 = vld [vmem:[%s10317_s2 + $0x28] sm:$0xff]  ;;  %v5650_v57 = vpack.c.bf16 %v4063_v23, %v4062_v46 }
 0x3b1   : > { %2633 = vst.msk [vmem:[#allocation3 + $0xc1] sm:$0xff] %vm279_vm0, %v2546_v33  ;;  %2634 = vst.msk [vmem:[#allocation3 + $0xc9] sm:$0xff] %vm279_vm0, %v2547_v53  ;;  %v2908_v41 = vld [vmem:[#allocation3 + $0x32] sm:$0xff]  ;;  %v5653_v16 = vpack.c.bf16 %v4065_v0, %v4064_v34  ;;  %v4067_v59 = vld [vmem:[%s10317_s2 + $0x38] sm:$0xff] }
 0x3b2   : > { %2635 = vst.msk [vmem:[#allocation3 + $0xd9] sm:$0xff] %vm279_vm0, %v2548_v48  ;;  %2636 = vst.msk [vmem:[#allocation3 + $0xe1] sm:$0xff] %vm279_vm0, %v2549_v26  ;;  %v2779_v25 = vld [vmem:[#allocation3 + $0x19] sm:$0xff]  ;;  %v2780_v10 = vld [vmem:[#allocation3 + $0x21] sm:$0xff]  ;;  %5583 = vmatprep.mubr.msk.f32.mxu1 %vm279_vm0, %v2908_v41  ;;  %5651 = vmatpush1.bf16.msra.mxu1 %v5650_v57  ;;  %v5656_v6 = vpack.c.bf16 %v4067_v59, %v4066_v49 }
 0x3b3   : > { %2637 = vst.msk [vmem:[#allocation3 + $0xf1] sm:$0xff] %vm279_vm0, %v2550_v7  ;;  %2638 = vst.msk [vmem:[#allocation3 + $0xf9] sm:$0xff] %vm279_vm0, %v2551_v20  ;;  %v6262_v5 = vpack.i.bf16 %v2780_v10, %v2779_v25  ;;  %v8407_v9 = vld [vmem:[#allocation3 + $0x18] sm:$0xff]  ;;  %v8409_v17 = vld [vmem:[#allocation3 + $0x20] sm:$0xff]  ;;  %5652 = vmatprep.subr.bf16.mxu1 %v6805_v1 }
 0x3b4   : > { %2639 = vst.msk [vmem:[#allocation3 + $0x109] sm:$0xff] %vm279_vm0, %v2552_v62  ;;  %2640 = vst.msk [vmem:[#allocation3 + $0x111] sm:$0xff] %vm279_vm0, %v2553_v38  ;;  %v6257_v31 = vpack.i.bf16 %v8409_v17, %v8407_v9  ;;  %v8416_v21 = vld [vmem:[#allocation3 + $0x30] sm:$0xff]  ;;  %v8418_v40 = vld [vmem:[#allocation3 + $0x38] sm:$0xff] }
 0x3b5   : > { %2641 = vst.msk [vmem:[#allocation3 + $0x121] sm:$0xff] %vm279_vm0, %v2554_v50  ;;  %2642 = vst.msk [vmem:[#allocation3 + $0x129] sm:$0xff] %vm279_vm0, %v2555_v30  ;;  %6263 = vrot.lane.b32.xlu0 %v6262_v5, %s6810_s19  ;;  %v2811_v52 = vld [vmem:[#allocation3 + $0x1a] sm:$0xff]  ;;  %v2812_v54 = vld [vmem:[#allocation3 + $0x22] sm:$0xff]  ;;  %v6272_v3 = vpack.i.bf16 %v8418_v40, %v8416_v21 }
 0x3b6   : > { %2643 = vst.msk [vmem:[#allocation3 + $0x139] sm:$0xff] %vm279_vm0, %v2556_v19  ;;  %2644 = vst.msk [vmem:[#allocation3 + $0x141] sm:$0xff] %vm279_vm0, %v2557_v63  ;;  %6258 = vrot.lane.b32.xlu1 %v6257_v31, %s6808_s12  ;;  %5654 = vmatpush1.bf16.msra.mxu1 %v5653_v16  ;;  %v6267_v60 = vpack.i.bf16 %v2812_v54, %v2811_v52  ;;  %v4068_v45 = vld [vmem:[%s10317_s2 + $0x40] sm:$0xff]  ;;  %v4069_v2 = vld [vmem:[%s10317_s2 + $0x48] sm:$0xff] }
 0x3b7   : > { %2645 = vst.msk [vmem:[#allocation3 + $0x151] sm:$0xff] %vm279_vm0, %v2558_v42  ;;  %2646 = vst.msk [vmem:[#allocation3 + $0x159] sm:$0xff] %vm279_vm0, %v2559_v39  ;;  %5655 = vmatprep.subr.bf16.mxu1 %v6805_v1  ;;  %v2876_v8 = vld [vmem:[#allocation3 + $0x31] sm:$0xff]  ;;  %v2877_v44 = vld [vmem:[#allocation3 + $0x39] sm:$0xff]  ;;  %v5659_v61 = vpack.c.bf16 %v4069_v2, %v4068_v45 }
 0x3b8   : > { %2647 = vst.msk [vmem:[#allocation3 + $0x169] sm:$0xff] %vm279_vm0, %v2560_v35  ;;  %2648 = vst.msk [vmem:[#allocation3 + $0x171] sm:$0xff] %vm279_vm0, %v2561_v32  ;;  %v6277_v11 = vpack.i.bf16 %v2877_v44, %v2876_v8  ;;  %v4070_v15 = vld [vmem:[%s10317_s2 + $0x50] sm:$0xff]  ;;  %v4071_v12 = vld [vmem:[%s10317_s2 + $0x58] sm:$0xff] }
 0x3b9   : > { %2649 = vst.msk [vmem:[#allocation3 + $0x181] sm:$0xff] %vm279_vm0, %v2562_v55  ;;  %2650 = vst.msk [vmem:[#allocation3 + $0x189] sm:$0xff] %vm279_vm0, %v2563_v18  ;;  %6273 = vrot.lane.b32.xlu0 %v6272_v3, %s6812_s21  ;;  %v5662_v28 = vpack.c.bf16 %v4071_v12, %v4070_v15  ;;  %v8446_v27 = vld [vmem:[#allocation3 + $0x3a] sm:$0xff]  ;;  %v4072_v14 = vld [vmem:[%s10317_s2 + $0x60] sm:$0xff] }
 0x3ba   : > { %6268 = vrot.lane.b32.xlu1 %v6267_v60, %s6809_s13  ;;  %5657 = vmatpush1.bf16.msra.mxu1 %v5656_v6  ;;  %v4073_v43 = vld [vmem:[%s10317_s2 + $0x68] sm:$0xff]  ;;  %v6302_v58 = vpack.i.bf16 %v8446_v27, %v2908_v41  ;;  %v4074_v29 = vld [vmem:[%s10317_s2 + $0x70] sm:$0xff]  ;;  %v2878_v51 = vld [vmem:[#allocation3 + $0x49] sm:$0xff] }
 0x3bb   : > { %5658 = vmatprep.subr.bf16.mxu1 %v6805_v1  ;;  %v5665_v36 = vpack.c.bf16 %v4073_v43, %v4072_v14  ;;  %v2879_v47 = vld [vmem:[#allocation3 + $0x51] sm:$0xff]  ;;  %v4075_v56 = vld [vmem:[%s10317_s2 + $0x78] sm:$0xff]  ;;  %v8485_v26 = vld [vmem:[#allocation3 + $0x60] sm:$0xff] }
 0x3bc   : > { %v8466_v22 = vld [vmem:[#allocation3 + $0x48] sm:$0xff]  ;;  %v8468_v4 = vld [vmem:[#allocation3 + $0x50] sm:$0xff]  ;;  %v6312_v24 = vpack.i.bf16 %v2879_v47, %v2878_v51  ;;  %v5668_v37 = vpack.c.bf16 %v4075_v56, %v4074_v29  ;;  %v4077_v53 = vld [vmem:[%s10317_s2 + $0x88] sm:$0xff] }
 0x3bd   : > { %6283 = vrot.lane.b32.xlu0 %v6262_v5, %s6806_s23  ;;  %v6307_v13 = vpack.i.bf16 %v8468_v4, %v8466_v22  ;;  %v4076_v33 = vld [vmem:[%s10317_s2 + $0x80] sm:$0xff]  ;;  %v8487_v7 = vld [vmem:[#allocation3 + $0x68] sm:$0xff]  ;;  %v2882_v42 = vld [vmem:[#allocation3 + $0x79] sm:$0xff] }
 0x3be   : > { %6278 = vrot.lane.b32.xlu1 %v6277_v11, %s6811_s20  ;;  %5660 = vmatpush1.bf16.msra.mxu1 %v5659_v61  ;;  %v5671_v48 = vpack.c.bf16 %v4077_v53, %v4076_v33  ;;  %v8490_v20 = vld [vmem:[#allocation3 + $0x4a] sm:$0xff]  ;;  %v8492_v62 = vld [vmem:[#allocation3 + $0x52] sm:$0xff]  ;;  %v2880_v50 = vld [vmem:[#allocation3 + $0x61] sm:$0xff]  ;;  %v6254_v33 = vpop.permute.xlu1 %6253  ;;  %v6249_v53 = vpop.permute.xlu0 %6248 }
 0x3bf   : > { %5661 = vmatprep.subr.bf16.mxu1 %v6805_v1  ;;  %v6337_v38 = vpack.i.bf16 %v8492_v62, %v8490_v20  ;;  %v2881_v30 = vld [vmem:[#allocation3 + $0x69] sm:$0xff]  ;;  %v2883_v39 = vld [vmem:[#allocation3 + $0x81] sm:$0xff]  ;;  %v8512_v35 = vld [vmem:[#allocation3 + $0x78] sm:$0xff] }
 0x3c0   : > { %v6347_v46 = vpack.i.bf16 %v2881_v30, %v2880_v50  ;;  %v8503_v23 = vld [vmem:[#allocation3 + $0x62] sm:$0xff]  ;;  %v8505_v19 = vld [vmem:[#allocation3 + $0x6a] sm:$0xff]  ;;  %v6382_v55 = vpack.i.bf16 %v2883_v39, %v2882_v42  ;;  %v2853_v0 = vld [vmem:[#allocation3 + $0x98] sm:$0xff]  ;;  %v6255_v42 = vunpack.i.l.bf16 %v6254_v33  ;;  %v6251_v39 = vunpack.i.h.bf16 %v6249_v53 }
 0x3c1   : > { %6293 = vrot.lane.b32.xlu0 %v6272_v3, %s6808_s12  ;;  %v6372_v63 = vpack.i.bf16 %v8505_v19, %v8503_v23  ;;  %v8514_v32 = vld [vmem:[#allocation3 + $0x80] sm:$0xff]  ;;  %v2852_v34 = vld [vmem:[#allocation3 + $0x90] sm:$0xff]  ;;  %v2854_v6 = vld [vmem:[#allocation3 + $0xa8] sm:$0xff] }
 0x3c2   : > { %6288 = vrot.lane.b32.xlu1 %v6267_v60, %s6807_s30  ;;  %5663 = vmatpush1.bf16.msra.mxu1 %v5662_v28  ;;  %v6377_v18 = vpack.i.bf16 %v8514_v32, %v8512_v35  ;;  %v8524_v57 = vld [vmem:[#allocation3 + $0x7a] sm:$0xff]  ;;  %v8526_v41 = vld [vmem:[#allocation3 + $0x82] sm:$0xff]  ;;  %v6412_v25 = vpack.i.bf16 %v2853_v0, %v2852_v34  ;;  %v2884_v5 = vld [vmem:[#allocation3 + $0x91] sm:$0xff] }
 0x3c3   : > { %5664 = vmatprep.subr.bf16.mxu1 %v6805_v1  ;;  %v6407_v10 = vpack.i.bf16 %v8526_v41, %v8524_v57  ;;  %v2885_v16 = vld [vmem:[#allocation3 + $0x99] sm:$0xff]  ;;  %v2886_v54 = vld [vmem:[#allocation3 + $0xa9] sm:$0xff]  ;;  %v2887_v3 = vld [vmem:[#allocation3 + $0xb1] sm:$0xff] }
 0x3c4   : > { %v6417_v49 = vpack.i.bf16 %v2885_v16, %v2884_v5  ;;  %v8535_v31 = vld [vmem:[#allocation3 + $0x92] sm:$0xff]  ;;  %v8537_v59 = vld [vmem:[#allocation3 + $0x9a] sm:$0xff]  ;;  %v6452_v45 = vpack.i.bf16 %v2887_v3, %v2886_v54  ;;  %v2857_v44 = vld [vmem:[#allocation3 + $0xc8] sm:$0xff] }
 0x3c5   : > { %6303 = vrot.lane.b32.xlu0 %v6302_v58, %s6809_s13  ;;  %v6442_v52 = vpack.i.bf16 %v8537_v59, %v8535_v31  ;;  %v2855_v60 = vld [vmem:[#allocation3 + $0xb0] sm:$0xff]  ;;  %v2856_v8 = vld [vmem:[#allocation3 + $0xc0] sm:$0xff]  ;;  %v2858_v56 = vld [vmem:[#allocation3 + $0xd8] sm:$0xff] }
 0x3c6   : > { %6298 = vrot.lane.b32.xlu1 %v6277_v11, %s6810_s19  ;;  %5666 = vmatpush1.bf16.msra.mxu1 %v5665_v36  ;;  %v6447_v2 = vpack.i.bf16 %v2855_v60, %v2854_v6  ;;  %v8550_v61 = vld [vmem:[#allocation3 + $0xaa] sm:$0xff]  ;;  %v6482_v15 = vpack.i.bf16 %v2857_v44, %v2856_v8  ;;  %v2888_v28 = vld [vmem:[#allocation3 + $0xc1] sm:$0xff]  ;;  %v2890_v51 = vld [vmem:[#allocation3 + $0xd9] sm:$0xff] }
 0x3c7   : > { %5667 = vmatprep.subr.bf16.mxu1 %v6805_v1  ;;  %v2889_v14 = vld [vmem:[#allocation3 + $0xc9] sm:$0xff]  ;;  %v2891_v47 = vld [vmem:[#allocation3 + $0xe1] sm:$0xff]  ;;  %v2861_v30 = vld [vmem:[#allocation3 + $0xf8] sm:$0xff] }
 0x3c8   : > { %v6487_v43 = vpack.i.bf16 %v2889_v14, %v2888_v28  ;;  %v2826_v36 = vld [vmem:[#allocation3 + $0xca] sm:$0xff] }
 0x3c9   : > { %6313 = vrot.lane.b32.xlu0 %v6312_v24, %s6811_s20  ;;  %v2860_v50 = vld [vmem:[#allocation3 + $0xf0] sm:$0xff]  ;;  %v2652_v0 = vld [vmem:[#allocation3 + $0x8] sm:$0xff] }
 0x3ca   : > { %6308 = vrot.lane.b32.xlu1 %v6307_v13, %s6812_s21  ;;  %5669 = vmatpush1.bf16.msra.mxu1 %v5668_v37  ;;  %v6522_v37 = vpack.i.bf16 %v2891_v47, %v2890_v51  ;;  %v6552_v34 = vpack.i.bf16 %v2861_v30, %v2860_v50  ;;  %v2892_v16 = vld [vmem:[#allocation3 + $0xf1] sm:$0xff]  ;;  %v3837_v6 = vsel %vm279_vm0, %v2652_v0, %v6251_v39 }
 0x3cb   : > { %5670 = vmatprep.subr.bf16.mxu1 %v6805_v1  ;;  %v6342_v1 = vpack.i.bf16 %v8487_v7, %v8485_v26 }
 0x3cd   : > { %6323 = vrot.lane.b32.xlu0 %v6302_v58, %s6807_s30  ;;  %v8558_v58 = vld [vmem:[#allocation3 + $0xc2] sm:$0xff] }
 0x3ce   : > { %6318 = vrot.lane.b32.xlu1 %v6277_v11, %s6806_s23  ;;  %5672 = vmatpush1.bf16.msra.mxu1 %v5671_v48  ;;  %v2824_v11 = vld [vmem:[#allocation3 + $0xb2] sm:$0xff]  ;;  %v6512_v29 = vpack.i.bf16 %v2826_v36, %v8558_v58  ;;  %v8569_v48 = vpop.permute.xlu1 %3672 }
 0x3cf   : > { %v6477_v12 = vpack.i.bf16 %v2824_v11, %v8550_v61 }
 0x3d1   : > { %6333 = vrot.lane.b32.xlu0 %v6312_v24, %s6810_s19 }
 0x3d2   : > { %6328 = vrot.lane.b32.xlu1 %v6307_v13, %s6808_s12 }
 0x3d5   : > { %6343 = vrot.lane.b32.xlu0 %v6342_v1, %s6812_s21 }
 0x3d6   : > { %6338 = vrot.lane.b32.xlu1 %v6337_v38, %s6809_s13 }
 0x3d9   : > { %6353 = vrot.lane.b32.xlu0 %v6312_v24, %s6806_s23  ;;  %v2859_v24 = vld [vmem:[#allocation3 + $0xe0] sm:$0xff] }
 0x3da   : > { %6348 = vrot.lane.b32.xlu1 %v6347_v46, %s6811_s20  ;;  %v6517_v13 = vpack.i.bf16 %v2859_v24, %v2858_v56  ;;  %v8591_v56 = vld [vmem:[#allocation3 + $0xf2] sm:$0xff]  ;;  %v2830_v24 = vld [vmem:[#allocation3 + $0xfa] sm:$0xff] }
 0x3dd   : > { %6363 = vrot.lane.b32.xlu0 %v6342_v1, %s6808_s12  ;;  %v6250_v1 = vunpack.i.l.bf16 %v6249_v53 }
 0x3de   : > { %6358 = vrot.lane.b32.xlu1 %v6337_v38, %s6807_s30  ;;  %v2651_v38 = vld [vmem:[#allocation3] sm:$0xff] }
 0x3e1   : > { %6373 = vrot.lane.b32.xlu0 %v6372_v63, %s6809_s13 }
 0x3e2   : > { %6368 = vrot.lane.b32.xlu1 %v6347_v46, %s6810_s19 }
 0x3e5   : > { %6383 = vrot.lane.b32.xlu0 %v6382_v55, %s6811_s20 }
 0x3e6   : > { %6378 = vrot.lane.b32.xlu1 %v6377_v18, %s6812_s21 }
 0x3e9   : > { %6393 = vrot.lane.b32.xlu0 %v6372_v63, %s6807_s30  ;;  %v2828_v63 = vld [vmem:[#allocation3 + $0xe2] sm:$0xff] }
 0x3ea   : > { %6388 = vrot.lane.b32.xlu1 %v6347_v46, %s6806_s23  ;;  %v8572_v46 = vld [vmem:[#allocation3 + $0xda] sm:$0xff] }
 0x3ed   : > { %6403 = vrot.lane.b32.xlu0 %v6382_v55, %s6810_s19 }
 0x3ee   : > { %6398 = vrot.lane.b32.xlu1 %v6377_v18, %s6808_s12 }
 0x3f1   : > { %6413 = vrot.lane.b32.xlu0 %v6412_v25, %s6812_s21 }
 0x3f2   : > { %6408 = vrot.lane.b32.xlu1 %v6407_v10, %s6809_s13 }
 0x3f5   : > { %6423 = vrot.lane.b32.xlu0 %v6382_v55, %s6806_s23  ;;  %v3836_v55 = vsel %vm279_vm0, %v2651_v38, %v6250_v1 }
 0x3f6   : > { %6418 = vrot.lane.b32.xlu1 %v6417_v49, %s6811_s20  ;;  %v3868_v54 = vsel %vm1617_vm2, %v3836_v55, %v6255_v42 }
 0x3f9   : > { %6433 = vrot.lane.b32.xlu0 %v6412_v25, %s6808_s12 }
 0x3fa   : > { %6428 = vrot.lane.b32.xlu1 %v6407_v10, %s6807_s30  ;;  %v6547_v10 = vpack.i.bf16 %v2828_v63, %v8572_v46  ;;  %v6582_v63 = vpack.i.bf16 %v2830_v24, %v8591_v56 }
 0x3fd   : > { %6443 = vrot.lane.b32.xlu0 %v6442_v52, %s6809_s13 }
 0x3fe   : > { %6438 = vrot.lane.b32.xlu1 %v6417_v49, %s6810_s19 }
 0x401   : > { %6453 = vrot.lane.b32.xlu0 %v6452_v45, %s6811_s20 }
 0x402   : > { %6448 = vrot.lane.b32.xlu1 %v6447_v2, %s6812_s21 }
 0x405   : > { %6463 = vrot.lane.b32.xlu0 %v6442_v52, %s6807_s30  ;;  %v6256_v52 = vunpack.i.h.bf16 %v6254_v33 }
 0x406   : > { %6458 = vrot.lane.b32.xlu1 %v6417_v49, %s6806_s23  ;;  %v2893_v49 = vld [vmem:[#allocation3 + $0xf9] sm:$0xff] }
 0x407   : > { %v8582_v44 = vpack.i.bf16 %v2893_v49, %v2892_v16 }
 0x409   : > { %6473 = vrot.lane.b32.xlu0 %v6452_v45, %s6810_s19 }
 0x40a   : > { %6468 = vrot.lane.b32.xlu1 %v6447_v2, %s6808_s12 }
 0x40d   : > { %6483 = vrot.lane.b32.xlu0 %v6482_v15, %s6812_s21 }
 0x40e   : > { %6478 = vrot.lane.b32.xlu1 %v6477_v12, %s6809_s13 }
 0x411   : > { %6493 = vrot.lane.b32.xlu0 %v6452_v45, %s6806_s23 }
 0x412   : > { %6488 = vrot.lane.b32.xlu1 %v6487_v43, %s6811_s20 }
 0x415   : > { %6503 = vrot.lane.b32.xlu0 %v6482_v15, %s6808_s12  ;;  %v3869_v15 = vsel %vm1617_vm2, %v3837_v6, %v6256_v52 }
 0x416   : > { %6498 = vrot.lane.b32.xlu1 %v6477_v12, %s6807_s30 }
 0x419   : > { %6513 = vrot.lane.b32.xlu0 %v6512_v29, %s6809_s13 }
 0x41a   : > { %6508 = vrot.lane.b32.xlu1 %v6487_v43, %s6810_s19 }
 0x41d   : > { %6523 = vrot.lane.b32.xlu0 %v6522_v37, %s6811_s20 }
 0x41e   : > { %6518 = vrot.lane.b32.xlu1 %v6517_v13, %s6812_s21 }
 0x421   : > { %6533 = vrot.lane.b32.xlu0 %v6512_v29, %s6807_s30 }
 0x422   : > { %6528 = vrot.lane.b32.xlu1 %v6487_v43, %s6806_s23 }
 0x425   : > { %6543 = vrot.lane.b32.xlu0 %v6522_v37, %s6810_s19 }
 0x426   : > { %6538 = vrot.lane.b32.xlu1 %v6517_v13, %s6808_s12 }
 0x427   : > { %v6264_v18 = vpop.permute.xlu0 %6263 }
 0x428   : > { %v6259_v25 = vpop.permute.xlu1 %6258  ;;  %v6265_v3 = vunpack.i.l.bf16 %v6264_v18  ;;  %v6266_v12 = vunpack.i.h.bf16 %v6264_v18  ;;  %v2894_v18 = vld [vmem:[#allocation3 + $0x109] sm:$0xff] }
 0x429   : > { %v6260_v5 = vunpack.i.l.bf16 %v6259_v25  ;;  %6553 = vrot.lane.b32.xlu0 %v6552_v34, %s6812_s21  ;;  %v6261_v60 = vunpack.i.h.bf16 %v6259_v25 }
 0x42a   : > { %6548 = vrot.lane.b32.xlu1 %v6547_v10, %s6809_s13 }
 0x42b   : > { %v3900_v45 = vsel %vm1650_vm3, %v3868_v54, %v6260_v5  ;;  %v6274_v2 = vpop.permute.xlu0 %6273  ;;  %v3901_v43 = vsel %vm1650_vm3, %v3869_v15, %v6261_v60  ;;  %v2863_v5 = vld [vmem:[#allocation3 + $0x110] sm:$0xff] }
 0x42c   : > { %v6269_v8 = vpop.permute.xlu1 %6268  ;;  %v6275_v28 = vunpack.i.l.bf16 %v6274_v2  ;;  %v3932_v14 = vsel %vm1683_vm4, %v3900_v45, %v6265_v3  ;;  %v6276_v13 = vunpack.i.h.bf16 %v6274_v2  ;;  %v3933_v1 = vsel %vm1683_vm4, %v3901_v43, %v6266_v12 }
 0x42d   : > { %v6270_v11 = vunpack.i.l.bf16 %v6269_v8  ;;  %6563 = vrot.lane.b32.xlu0 %v6522_v37, %s6806_s23  ;;  %v6271_v36 = vunpack.i.h.bf16 %v6269_v8 }
 0x42e   : > { %6558 = vrot.lane.b32.xlu1 %v8582_v44, %s6811_s20 }
 0x42f   : > { %v6284_v29 = vpop.permute.xlu0 %6283  ;;  %v3964_v51 = vsel %vm1716_vm5, %v3932_v14, %v6270_v11  ;;  %v3965_v42 = vsel %vm1716_vm5, %v3933_v1, %v6271_v36 }
 0x430   : > { %v6279_v47 = vpop.permute.xlu1 %6278  ;;  %v6285_v33 = vunpack.i.l.bf16 %v6284_v29  ;;  %v3996_v53 = vsel %vm1749_vm6, %v3964_v51, %v6275_v28  ;;  %v6286_v39 = vunpack.i.h.bf16 %v6284_v29  ;;  %v3997_v52 = vsel %vm1749_vm6, %v3965_v42, %v6276_v13  ;;  %v2865_v42 = vld [vmem:[#allocation3 + $0x128] sm:$0xff] }
 0x431   : > { %v6280_v37 = vunpack.i.l.bf16 %v6279_v47  ;;  %6573 = vrot.lane.b32.xlu0 %v6552_v34, %s6808_s12  ;;  %v6281_v38 = vunpack.i.h.bf16 %v6279_v47  ;;  %v2895_v34 = vld [vmem:[#allocation3 + $0x111] sm:$0xff] }
 0x432   : > { %6568 = vrot.lane.b32.xlu1 %v6547_v10, %s6807_s30  ;;  %v2862_v10 = vld [vmem:[#allocation3 + $0x108] sm:$0xff]  ;;  %v3838_v16 = vsel %vm279_vm0, %v8407_v9, %v6285_v33  ;;  %v8610_v60 = vpack.i.bf16 %v2895_v34, %v2894_v18 }
 0x433   : > { %v6294_v50 = vpop.permute.xlu0 %6293  ;;  %v4028_v30 = vsel %vm1782_vm7, %v3996_v53, %v6280_v37  ;;  %v4029_v6 = vsel %vm1782_vm7, %v3997_v52, %v6281_v38  ;;  %v6587_v9 = vpack.i.bf16 %v2863_v5, %v2862_v10 }
 0x434   : > { %v6289_v55 = vpop.permute.xlu1 %6288  ;;  %4239 = vmatmul.mubr.f32.vlgmr.msra.gmra.mrb[0].mxu1 %v4028_v30  ;;  %v6295_v49 = vunpack.i.l.bf16 %v6294_v50  ;;  %v6296_v45 = vunpack.i.h.bf16 %v6294_v50  ;;  %v2864_v30 = vld [vmem:[#allocation3 + $0x120] sm:$0xff] }
 0x435   : > { %v6291_v0 = vunpack.i.h.bf16 %v6289_v55  ;;  %v6290_v25 = vunpack.i.l.bf16 %v6289_v55  ;;  %5584 = vmatprep.mubr.msk.f32.mxu1 %vm279_vm0, %v8446_v27  ;;  %6583 = vrot.lane.b32.xlu0 %v6582_v63, %s6809_s13  ;;  %v3839_v27 = vsel %vm279_vm0, %v8409_v17, %v6286_v39  ;;  %v8636_v55 = vld [vmem:[#allocation3 + $0x112] sm:$0xff]  ;;  %v6622_v10 = vpack.i.bf16 %v2865_v42, %v2864_v30 }
 0x436   : > { %6578 = vrot.lane.b32.xlu1 %v8582_v44, %s6810_s19 }
 0x437   : > { %v3870_v54 = vsel %vm1617_vm2, %v3838_v16, %v6290_v25  ;;  %v6304_v3 = vpop.permute.xlu0 %6303  ;;  %v3871_v8 = vsel %vm1617_vm2, %v3839_v27, %v6291_v0 }
 0x438   : > { %v6299_v2 = vpop.permute.xlu1 %6298  ;;  %4244 = vmatmul.mubr.f32.gmra.mrb[2].mxu1 %v4029_v6  ;;  %v6305_v12 = vunpack.i.l.bf16 %v6304_v3  ;;  %v3902_v28 = vsel %vm1650_vm3, %v3870_v54, %v6295_v49  ;;  %v6306_v43 = vunpack.i.h.bf16 %v6304_v3  ;;  %v3903_v36 = vsel %vm1650_vm3, %v3871_v8, %v6296_v45  ;;  %v2896_v54 = vld [vmem:[#allocation3 + $0x121] sm:$0xff]  ;;  %v2897_v3 = vld [vmem:[#allocation3 + $0x129] sm:$0xff] }
 0x439   : > { %v6301_v11 = vunpack.i.h.bf16 %v6299_v2  ;;  %v6300_v15 = vunpack.i.l.bf16 %v6299_v2  ;;  %5585 = vmatprep.mubr.msk.f32.mxu1 %vm279_vm0, %v8490_v20  ;;  %6593 = vrot.lane.b32.xlu0 %v8610_v60, %s6811_s20 }
 0x43a   : > { %6588 = vrot.lane.b32.xlu1 %v6587_v9, %s6812_s21 }
 0x43b   : > { %v3934_v17 = vsel %vm1683_vm4, %v3902_v28, %v6300_v15  ;;  %v6314_v14 = vpop.permute.xlu0 %6313  ;;  %v3935_v47 = vsel %vm1683_vm4, %v3903_v36, %v6301_v11  ;;  %v8654_v11 = vpack.i.bf16 %v2897_v3, %v2896_v54 }
 0x43c   : > { %v6315_v29 = vunpack.i.l.bf16 %v6314_v14  ;;  %v6309_v51 = vpop.permute.xlu1 %6308  ;;  %v3966_v37 = vsel %vm1716_vm5, %v3934_v17, %v6305_v12  ;;  %v6316_v53 = vunpack.i.h.bf16 %v6314_v14  ;;  %v3967_v50 = vsel %vm1716_vm5, %v3935_v47, %v6306_v43  ;;  %v8666_v47 = vld [vmem:[#allocation3 + $0x12a] sm:$0xff] }
 0x43d   : > { %v6311_v24 = vunpack.i.h.bf16 %v6309_v51  ;;  %v6310_v20 = vunpack.i.l.bf16 %v6309_v51  ;;  %6603 = vrot.lane.b32.xlu0 %v6582_v63, %s6807_s30  ;;  %v8634_v63 = vld [vmem:[#allocation3 + $0x10a] sm:$0xff]  ;;  %v8664_v51 = vld [vmem:[#allocation3 + $0x122] sm:$0xff] }
 0x43e   : > { %6598 = vrot.lane.b32.xlu1 %v8582_v44, %s6806_s23  ;;  %v6617_v49 = vpack.i.bf16 %v8636_v55, %v8634_v63 }
 0x43f   : > { %v6324_v13 = vpop.permute.xlu0 %6323  ;;  %v3998_v33 = vsel %vm1749_vm6, %v3966_v37, %v6310_v20  ;;  %v3999_v44 = vsel %vm1749_vm6, %v3967_v50, %v6311_v24 }
 0x440   : > { %v6319_v1 = vpop.permute.xlu1 %6318  ;;  %v4030_v38 = vsel %vm1782_vm7, %v3998_v33, %v6315_v29  ;;  %v6325_v18 = vunpack.i.l.bf16 %v6324_v13  ;;  %v4031_v16 = vsel %vm1782_vm7, %v3999_v44, %v6316_v53  ;;  %v6326_v6 = vunpack.i.h.bf16 %v6324_v13  ;;  %v2899_v44 = vld [vmem:[#allocation3 + $0x141] sm:$0xff] }
 0x441   : > { %v6320_v39 = vunpack.i.l.bf16 %v6319_v1  ;;  %4249 = vmatmul.mubr.f32.gmra.mrb[4].mxu1 %v4030_v38  ;;  %6613 = vrot.lane.b32.xlu0 %v8610_v60, %s6810_s19  ;;  %v6321_v34 = vunpack.i.h.bf16 %v6319_v1  ;;  %v6652_v38 = vpack.i.bf16 %v8666_v47, %v8664_v51 }
 0x442   : > { %6608 = vrot.lane.b32.xlu1 %v6587_v9, %s6808_s12  ;;  %5586 = vmatprep.mubr.msk.f32.mxu1 %vm279_vm0, %v8492_v62 }
 0x443   : > { %v3840_v0 = vsel %vm279_vm0, %v8416_v21, %v6320_v39  ;;  %v6334_v25 = vpop.permute.xlu0 %6333  ;;  %v3841_v21 = vsel %vm279_vm0, %v8418_v40, %v6321_v34  ;;  %v2898_v39 = vld [vmem:[#allocation3 + $0x139] sm:$0xff] }
 0x444   : > { %v6329_v5 = vpop.permute.xlu1 %6328  ;;  %v6335_v62 = vunpack.i.l.bf16 %v6334_v25  ;;  %v3872_v27 = vsel %vm1617_vm2, %v3840_v0, %v6325_v18  ;;  %v6336_v12 = vunpack.i.h.bf16 %v6334_v25  ;;  %v3873_v28 = vsel %vm1617_vm2, %v3841_v21, %v6326_v6  ;;  %v8679_v0 = vld [vmem:[#allocation3 + $0x138] sm:$0xff]  ;;  %v8681_v25 = vld [vmem:[#allocation3 + $0x140] sm:$0xff] }
 0x445   : > { %v6330_v52 = vunpack.i.l.bf16 %v6329_v5  ;;  %4254 = vmatmul.mubr.f32.gmra.mrb[6].mxu1 %v4031_v16  ;;  %6623 = vrot.lane.b32.xlu0 %v6622_v10, %s6812_s21  ;;  %v6331_v45 = vunpack.i.h.bf16 %v6329_v5  ;;  %v8690_v54 = vpack.i.bf16 %v2899_v44, %v2898_v39 }
 0x446   : > { %6618 = vrot.lane.b32.xlu1 %v6617_v49, %s6809_s13  ;;  %5587 = vmatprep.mubr.msk.f32.mxu1 %vm279_vm0, %v8503_v23 }
 0x447   : > { %v3904_v2 = vsel %vm1650_vm3, %v3872_v27, %v6330_v52  ;;  %v6344_v9 = vpop.permute.xlu0 %6343  ;;  %v3905_v23 = vsel %vm1650_vm3, %v3873_v28, %v6331_v45 }
 0x448   : > { %v6339_v8 = vpop.permute.xlu1 %6338  ;;  %v6345_v17 = vunpack.i.l.bf16 %v6344_v9  ;;  %v3936_v40 = vsel %vm1683_vm4, %v3904_v2, %v6335_v62  ;;  %v6346_v24 = vunpack.i.h.bf16 %v6344_v9  ;;  %v3937_v13 = vsel %vm1683_vm4, %v3905_v23, %v6336_v12 }
 0x449   : > { %v6340_v15 = vunpack.i.l.bf16 %v6339_v8  ;;  %6633 = vrot.lane.b32.xlu0 %v8610_v60, %s6806_s23  ;;  %v6341_v14 = vunpack.i.h.bf16 %v6339_v8 }
 0x44a   : > { %6628 = vrot.lane.b32.xlu1 %v8654_v11, %s6811_s20 }
 0x44b   : > { %v6354_v43 = vpop.permute.xlu0 %6353  ;;  %v3968_v36 = vsel %vm1716_vm5, %v3936_v40, %v6340_v15  ;;  %v3969_v50 = vsel %vm1716_vm5, %v3937_v13, %v6341_v14  ;;  %v8715_v13 = vld [vmem:[#allocation3 + $0x158] sm:$0xff] }
 0x44c   : > { %v6349_v29 = vpop.permute.xlu1 %6348  ;;  %v6355_v20 = vunpack.i.l.bf16 %v6354_v43  ;;  %v4000_v37 = vsel %vm1749_vm6, %v3968_v36, %v6345_v17  ;;  %v6356_v30 = vunpack.i.h.bf16 %v6354_v43  ;;  %v4001_v16 = vsel %vm1749_vm6, %v3969_v50, %v6346_v24 }
 0x44d   : > { %v6350_v60 = vunpack.i.l.bf16 %v6349_v29  ;;  %6643 = vrot.lane.b32.xlu0 %v6622_v10, %s6808_s12  ;;  %v6351_v33 = vunpack.i.h.bf16 %v6349_v29 }
 0x44e   : > { %6638 = vrot.lane.b32.xlu1 %v6617_v49, %s6807_s30  ;;  %v3842_v10 = vsel %vm279_vm0, %v8466_v22, %v6355_v20  ;;  %v3843_v3 = vsel %vm279_vm0, %v8468_v4, %v6356_v30  ;;  %v6657_v22 = vpack.i.bf16 %v8681_v25, %v8679_v0 }
 0x44f   : > { %v6364_v53 = vpop.permute.xlu0 %6363  ;;  %v4032_v1 = vsel %vm1782_vm7, %v4000_v37, %v6350_v60  ;;  %v8713_v37 = vld [vmem:[#allocation3 + $0x150] sm:$0xff] }
 0x450   : > { %v6359_v42 = vpop.permute.xlu1 %6358  ;;  %4259 = vmatmul.mubr.f32.gmra.mrb[8].mxu1 %v4032_v1  ;;  %v6365_v5 = vunpack.i.l.bf16 %v6364_v53  ;;  %v6366_v6 = vunpack.i.h.bf16 %v6364_v53  ;;  %v8720_v53 = vld [vmem:[#allocation3 + $0x13a] sm:$0xff]  ;;  %v8722_v1 = vld [vmem:[#allocation3 + $0x142] sm:$0xff]  ;;  %v6692_v39 = vpack.i.bf16 %v8715_v13, %v8713_v37 }
 0x451   : > { %v6361_v18 = vunpack.i.h.bf16 %v6359_v42  ;;  %v6360_v34 = vunpack.i.l.bf16 %v6359_v42  ;;  %5588 = vmatprep.mubr.msk.f32.mxu1 %vm279_vm0, %v8505_v19  ;;  %6653 = vrot.lane.b32.xlu0 %v6652_v38, %s6809_s13  ;;  %v4033_v19 = vsel %vm1782_vm7, %v4001_v16, %v6351_v33 }
 0x452   : > { %6648 = vrot.lane.b32.xlu1 %v8654_v11, %s6810_s19 }
 0x453   : > { %v3874_v49 = vsel %vm1617_vm2, %v3842_v10, %v6360_v34  ;;  %v6374_v52 = vpop.permute.xlu0 %6373  ;;  %v3875_v27 = vsel %vm1617_vm2, %v3843_v3, %v6361_v18  ;;  %v6687_v34 = vpack.i.bf16 %v8722_v1, %v8720_v53 }
 0x454   : > { %v6369_v62 = vpop.permute.xlu1 %6368  ;;  %4264 = vmatmul.mubr.f32.gmra.mrb[10].mxu1 %v4033_v19  ;;  %v6375_v2 = vunpack.i.l.bf16 %v6374_v52  ;;  %v3906_v9 = vsel %vm1650_vm3, %v3874_v49, %v6365_v5  ;;  %v6376_v15 = vunpack.i.h.bf16 %v6374_v52  ;;  %v3907_v12 = vsel %vm1650_vm3, %v3875_v27, %v6366_v6  ;;  %v2900_v5 = vld [vmem:[#allocation3 + $0x151] sm:$0xff] }
 0x455   : > { %v6371_v21 = vunpack.i.h.bf16 %v6369_v62  ;;  %v6370_v45 = vunpack.i.l.bf16 %v6369_v62  ;;  %5589 = vmatprep.mubr.msk.f32.mxu1 %vm279_vm0, %v8524_v57  ;;  %6663 = vrot.lane.b32.xlu0 %v8690_v54, %s6811_s20 }
 0x456   : > { %6658 = vrot.lane.b32.xlu1 %v6657_v22, %s6812_s21 }
 0x457   : > { %v3938_v4 = vsel %vm1683_vm4, %v3906_v9, %v6370_v45  ;;  %v6384_v8 = vpop.permute.xlu0 %6383  ;;  %v3939_v40 = vsel %vm1683_vm4, %v3907_v12, %v6371_v21  ;;  %v8752_v12 = vld [vmem:[#allocation3 + $0x152] sm:$0xff] }
 0x458   : > { %v6385_v28 = vunpack.i.l.bf16 %v6384_v8  ;;  %v6379_v17 = vpop.permute.xlu1 %6378  ;;  %v3970_v14 = vsel %vm1716_vm5, %v3938_v4, %v6375_v2  ;;  %v6386_v29 = vunpack.i.h.bf16 %v6384_v8  ;;  %v3971_v20 = vsel %vm1716_vm5, %v3939_v40, %v6376_v15 }
 0x459   : > { %v6381_v23 = vunpack.i.h.bf16 %v6379_v17  ;;  %v6380_v57 = vunpack.i.l.bf16 %v6379_v17  ;;  %6673 = vrot.lane.b32.xlu0 %v6652_v38, %s6807_s30 }
 0x45a   : > { %6668 = vrot.lane.b32.xlu1 %v8654_v11, %s6806_s23 }
 0x45b   : > { %v6394_v43 = vpop.permute.xlu0 %6393  ;;  %v4002_v36 = vsel %vm1749_vm6, %v3970_v14, %v6380_v57  ;;  %v4003_v11 = vsel %vm1749_vm6, %v3971_v20, %v6381_v23 }
 0x45c   : > { %v6389_v60 = vpop.permute.xlu1 %6388  ;;  %v4034_v24 = vsel %vm1782_vm7, %v4002_v36, %v6385_v28  ;;  %v6395_v38 = vunpack.i.l.bf16 %v6394_v43  ;;  %v4035_v18 = vsel %vm1782_vm7, %v4003_v11, %v6386_v29  ;;  %v6396_v16 = vunpack.i.h.bf16 %v6394_v43  ;;  %v8754_v28 = vld [vmem:[#allocation3 + $0x15a] sm:$0xff]  ;;  %v2903_v11 = vld [vmem:[#allocation3 + $0x171] sm:$0xff] }
 0x45d   : > { %v6390_v33 = vunpack.i.l.bf16 %v6389_v60  ;;  %4269 = vmatmul.mubr.f32.gmra.mrb[12].mxu1 %v4034_v24  ;;  %6683 = vrot.lane.b32.xlu0 %v8690_v54, %s6810_s19  ;;  %v6391_v50 = vunpack.i.h.bf16 %v6389_v60  ;;  %v6722_v29 = vpack.i.bf16 %v8754_v28, %v8752_v12 }
 0x45e   : > { %6678 = vrot.lane.b32.xlu1 %v6657_v22, %s6808_s12  ;;  %5590 = vmatprep.mubr.msk.f32.mxu1 %vm279_vm0, %v8526_v41  ;;  %v2901_v41 = vld [vmem:[#allocation3 + $0x159] sm:$0xff] }
 0x45f   : > { %v3844_v30 = vsel %vm279_vm0, %v8485_v26, %v6390_v33  ;;  %v6404_v42 = vpop.permute.xlu0 %6403  ;;  %v3845_v52 = vsel %vm279_vm0, %v8487_v7, %v6391_v50  ;;  %v8742_v22 = vpack.i.bf16 %v2901_v41, %v2900_v5  ;;  %v2902_v33 = vld [vmem:[#allocation3 + $0x169] sm:$0xff] }
 0x460   : > { %v6399_v44 = vpop.permute.xlu1 %6398  ;;  %v6405_v49 = vunpack.i.l.bf16 %v6404_v42  ;;  %v3876_v26 = vsel %vm1617_vm2, %v3844_v30, %v6395_v38  ;;  %v6406_v21 = vunpack.i.h.bf16 %v6404_v42  ;;  %v3877_v45 = vsel %vm1617_vm2, %v3845_v52, %v6396_v16  ;;  %v8767_v30 = vld [vmem:[#allocation3 + $0x168] sm:$0xff]  ;;  %v8769_v42 = vld [vmem:[#allocation3 + $0x170] sm:$0xff] }
 0x461   : > { %v6400_v10 = vunpack.i.l.bf16 %v6399_v44  ;;  %4274 = vmatmul.mubr.f32.gmra.mrb[14].mxu1 %v4035_v18  ;;  %6693 = vrot.lane.b32.xlu0 %v6692_v39, %s6812_s21  ;;  %v6401_v19 = vunpack.i.h.bf16 %v6399_v44  ;;  %v8778_v5 = vpack.i.bf16 %v2903_v11, %v2902_v33 }
 0x462   : > { %6688 = vrot.lane.b32.xlu1 %v6687_v34, %s6809_s13  ;;  %5591 = vmatprep.mubr.msk.f32.mxu1 %vm279_vm0, %v8535_v31 }
 0x463   : > { %v3908_v3 = vsel %vm1650_vm3, %v3876_v26, %v6400_v10  ;;  %v6414_v6 = vpop.permute.xlu0 %6413  ;;  %v3909_v31 = vsel %vm1650_vm3, %v3877_v45, %v6401_v19 }
 0x464   : > { %v6409_v62 = vpop.permute.xlu1 %6408  ;;  %v6415_v2 = vunpack.i.l.bf16 %v6414_v6  ;;  %v3940_v7 = vsel %vm1683_vm4, %v3908_v3, %v6405_v49  ;;  %v6416_v17 = vunpack.i.h.bf16 %v6414_v6  ;;  %v3941_v57 = vsel %vm1683_vm4, %v3909_v31, %v6406_v21 }
 0x465   : > { %v6410_v27 = vunpack.i.l.bf16 %v6409_v62  ;;  %6703 = vrot.lane.b32.xlu0 %v8690_v54, %s6806_s23  ;;  %v6411_v9 = vunpack.i.h.bf16 %v6409_v62 }
 0x466   : > { %6698 = vrot.lane.b32.xlu1 %v8742_v22, %s6811_s20 }
 0x467   : > { %v6424_v4 = vpop.permute.xlu0 %6423  ;;  %v3972_v8 = vsel %vm1716_vm5, %v3940_v7, %v6410_v27  ;;  %v3973_v60 = vsel %vm1716_vm5, %v3941_v57, %v6411_v9  ;;  %v2873_v57 = vld [vmem:[#allocation3 + $0x188] sm:$0xff] }
 0x468   : > { %v6419_v15 = vpop.permute.xlu1 %6418  ;;  %v6425_v40 = vunpack.i.l.bf16 %v6424_v4  ;;  %v4004_v23 = vsel %vm1749_vm6, %v3972_v8, %v6415_v2  ;;  %v6426_v24 = vunpack.i.h.bf16 %v6424_v4  ;;  %v4005_v18 = vsel %vm1749_vm6, %v3973_v60, %v6416_v17 }
 0x469   : > { %v6420_v54 = vunpack.i.l.bf16 %v6419_v15  ;;  %6713 = vrot.lane.b32.xlu0 %v6692_v39, %s6808_s12  ;;  %v6421_v14 = vunpack.i.h.bf16 %v6419_v15 }
 0x46a   : > { %6708 = vrot.lane.b32.xlu1 %v6687_v34, %s6807_s30  ;;  %v3846_v39 = vsel %vm279_vm0, %v8512_v35, %v6425_v40  ;;  %v3847_v41 = vsel %vm279_vm0, %v8514_v32, %v6426_v24  ;;  %v6727_v35 = vpack.i.bf16 %v8769_v42, %v8767_v30  ;;  %v2663_v24 = vld [vmem:[#allocation3 + $0x90] sm:$0xff] }
 0x46b   : > { %v6434_v43 = vpop.permute.xlu0 %6433  ;;  %v4036_v36 = vsel %vm1782_vm7, %v4004_v23, %v6420_v54  ;;  %v2872_v23 = vld [vmem:[#allocation3 + $0x180] sm:$0xff] }
 0x46c   : > { %v6429_v20 = vpop.permute.xlu1 %6428  ;;  %4279 = vmatmul.mubr.f32.gmra.mrb[16].mxu1 %v4036_v36  ;;  %v6435_v44 = vunpack.i.l.bf16 %v6434_v43  ;;  %v6436_v16 = vunpack.i.h.bf16 %v6434_v43  ;;  %v2919_v43 = vld [vmem:[#allocation3 + $0xb2] sm:$0xff]  ;;  %v8804_v36 = vld [vmem:[#allocation3 + $0x16a] sm:$0xff] }
 0x46d   : > { %v6431_v38 = vunpack.i.h.bf16 %v6429_v20  ;;  %v6430_v50 = vunpack.i.l.bf16 %v6429_v20  ;;  %5592 = vmatprep.mubr.msk.f32.mxu1 %vm279_vm0, %v8537_v59  ;;  %6723 = vrot.lane.b32.xlu0 %v6722_v29, %s6809_s13  ;;  %v4037_v59 = vsel %vm1782_vm7, %v4005_v18, %v6421_v14 }
 0x46e   : > { %6718 = vrot.lane.b32.xlu1 %v8742_v22, %s6810_s19 }
 0x46f   : > { %v3878_v34 = vsel %vm1617_vm2, %v3846_v39, %v6430_v50  ;;  %v6444_v10 = vpop.permute.xlu0 %6443  ;;  %v3879_v26 = vsel %vm1617_vm2, %v3847_v41, %v6431_v38  ;;  %v6762_v38 = vpack.i.bf16 %v2873_v57, %v2872_v23  ;;  %v2664_v41 = vld [vmem:[#allocation3 + $0x98] sm:$0xff] }
 0x470   : > { %v6439_v49 = vpop.permute.xlu1 %6438  ;;  %4284 = vmatmul.mubr.f32.gmra.mrb[18].mxu1 %v4037_v59  ;;  %v6445_v3 = vunpack.i.l.bf16 %v6444_v10  ;;  %v3910_v6 = vsel %vm1650_vm3, %v3878_v34, %v6435_v44  ;;  %v6446_v27 = vunpack.i.h.bf16 %v6444_v10  ;;  %v3911_v21 = vsel %vm1650_vm3, %v3879_v26, %v6436_v16  ;;  %v2904_v34 = vld [vmem:[#allocation3 + $0x181] sm:$0xff]  ;;  %v2905_v10 = vld [vmem:[#allocation3 + $0x189] sm:$0xff] }
 0x471   : > { %v6441_v52 = vunpack.i.h.bf16 %v6439_v49  ;;  %v6440_v19 = vunpack.i.l.bf16 %v6439_v49  ;;  %5593 = vmatprep.mubr.msk.f32.mxu1 %vm279_vm0, %v8550_v61  ;;  %6733 = vrot.lane.b32.xlu0 %v8778_v5, %s6811_s20 }
 0x472   : > { %6728 = vrot.lane.b32.xlu1 %v6727_v35, %s6812_s21 }
 0x473   : > { %v3942_v32 = vsel %vm1683_vm4, %v3910_v6, %v6440_v19  ;;  %v6454_v62 = vpop.permute.xlu0 %6453  ;;  %v3943_v7 = vsel %vm1683_vm4, %v3911_v21, %v6441_v52  ;;  %v6767_v6 = vpack.i.bf16 %v2905_v10, %v2904_v34 }
 0x474   : > { %v6455_v45 = vunpack.i.l.bf16 %v6454_v62  ;;  %v6449_v2 = vpop.permute.xlu1 %6448  ;;  %v3974_v9 = vsel %vm1716_vm5, %v3942_v32, %v6445_v3  ;;  %v6456_v15 = vunpack.i.h.bf16 %v6454_v62  ;;  %v3975_v40 = vsel %vm1716_vm5, %v3943_v7, %v6446_v27 }
 0x475   : > { %v6451_v31 = vunpack.i.h.bf16 %v6449_v2  ;;  %v6450_v61 = vunpack.i.l.bf16 %v6449_v2  ;;  %6743 = vrot.lane.b32.xlu0 %v6722_v29, %s6807_s30  ;;  %v8806_v29 = vld [vmem:[#allocation3 + $0x172] sm:$0xff] }
 0x476   : > { %6738 = vrot.lane.b32.xlu1 %v8742_v22, %s6806_s23  ;;  %v6757_v44 = vpack.i.bf16 %v8806_v29, %v8804_v36 }
 0x477   : > { %v6464_v4 = vpop.permute.xlu0 %6463  ;;  %v4006_v8 = vsel %vm1749_vm6, %v3974_v9, %v6450_v61  ;;  %v4007_v22 = vsel %vm1749_vm6, %v3975_v40, %v6451_v31 }
 0x478   : > { %v6459_v54 = vpop.permute.xlu1 %6458  ;;  %v4038_v17 = vsel %vm1782_vm7, %v4006_v8, %v6455_v45  ;;  %v6465_v60 = vunpack.i.l.bf16 %v6464_v4  ;;  %v4039_v39 = vsel %vm1782_vm7, %v4007_v22, %v6456_v15  ;;  %v6466_v59 = vunpack.i.h.bf16 %v6464_v4  ;;  %v8834_v22 = vld [vmem:[#allocation3 + $0x182] sm:$0xff] }
 0x479   : > { %v6460_v14 = vunpack.i.l.bf16 %v6459_v54  ;;  %4289 = vmatmul.mubr.f32.gmra.mrb[20].mxu1 %v4038_v17  ;;  %6753 = vrot.lane.b32.xlu0 %v8778_v5, %s6810_s19  ;;  %v6461_v20 = vunpack.i.h.bf16 %v6459_v54 }
 0x47a   : > { %6748 = vrot.lane.b32.xlu1 %v6727_v35, %s6808_s12  ;;  %5594 = vmatprep.mubr.msk.f32.mxu1 %vm279_vm0, %v2919_v43  ;;  %v2921_v43 = vld [vmem:[#allocation3 + $0xca] sm:$0xff] }
 0x47b   : > { %v3848_v33 = vsel %vm279_vm0, %v2663_v24, %v6460_v14  ;;  %v6474_v11 = vpop.permute.xlu0 %6473  ;;  %v3849_v35 = vsel %vm279_vm0, %v2664_v41, %v6461_v20 }
 0x47c   : > { %v6469_v50 = vpop.permute.xlu1 %6468  ;;  %v6475_v16 = vunpack.i.l.bf16 %v6474_v11  ;;  %v3880_v49 = vsel %vm1617_vm2, %v3848_v33, %v6465_v60  ;;  %v6476_v62 = vunpack.i.h.bf16 %v6474_v11  ;;  %v3881_v27 = vsel %vm1617_vm2, %v3849_v35, %v6466_v59  ;;  %v2665_v60 = vld [vmem:[#allocation3 + $0xa8] sm:$0xff] }
 0x47d   : > { %v6470_v18 = vunpack.i.l.bf16 %v6469_v50  ;;  %4294 = vmatmul.mubr.f32.gmra.mrb[22].mxu1 %v4039_v39  ;;  %6763 = vrot.lane.b32.xlu0 %v6762_v38, %s6812_s21  ;;  %v6471_v26 = vunpack.i.h.bf16 %v6469_v50  ;;  %v2906_v50 = vld [vmem:[#allocation3 + $0x199] sm:$0xff]  ;;  %v2666_v39 = vld [vmem:[#allocation3 + $0xb0] sm:$0xff] }
 0x47e   : > { %6758 = vrot.lane.b32.xlu1 %v6757_v44, %s6809_s13  ;;  %5595 = vmatprep.mubr.msk.f32.mxu1 %vm279_vm0, %v8558_v58 }
 0x47f   : > { %v3912_v52 = vsel %vm1650_vm3, %v3880_v49, %v6470_v18  ;;  %v6484_v19 = vpop.permute.xlu0 %6483  ;;  %v3913_v45 = vsel %vm1650_vm3, %v3881_v27, %v6471_v26  ;;  %v8849_v26 = vld [vmem:[#allocation3 + $0x18a] sm:$0xff] }
 0x480   : > { %v6479_v3 = vpop.permute.xlu1 %6478  ;;  %v6485_v21 = vunpack.i.l.bf16 %v6484_v19  ;;  %v3944_v58 = vsel %vm1683_vm4, %v3912_v52, %v6475_v16  ;;  %v6486_v4 = vunpack.i.h.bf16 %v6484_v19  ;;  %v3945_v15 = vsel %vm1683_vm4, %v3913_v45, %v6476_v62  ;;  %v2907_v62 = vld [vmem:[#allocation3 + $0x1a1] sm:$0xff] }
 0x481   : > { %v6480_v32 = vunpack.i.l.bf16 %v6479_v3  ;;  %6773 = vrot.lane.b32.xlu0 %v8778_v5, %s6806_s23  ;;  %v6481_v2 = vunpack.i.h.bf16 %v6479_v3  ;;  %v2875_v3 = vld [vmem:[#allocation3 + $0x1a0] sm:$0xff] }
 0x482   : > { %6768 = vrot.lane.b32.xlu1 %v6767_v6, %s6811_s20 }
 0x483   : > { %v6494_v7 = vpop.permute.xlu0 %6493  ;;  %v3976_v31 = vsel %vm1716_vm5, %v3944_v58, %v6480_v32  ;;  %v3977_v23 = vsel %vm1716_vm5, %v3945_v15, %v6481_v2 }
 0x484   : > { %v6489_v61 = vpop.permute.xlu1 %6488  ;;  %v6495_v5 = vunpack.i.l.bf16 %v6494_v7  ;;  %v4008_v8 = vsel %vm1749_vm6, %v3976_v31, %v6485_v21  ;;  %v6496_v57 = vunpack.i.h.bf16 %v6494_v7 }
 0x485   : > { %v6490_v9 = vunpack.i.l.bf16 %v6489_v61  ;;  %6783 = vrot.lane.b32.xlu0 %v6762_v38, %s6808_s12  ;;  %v6491_v54 = vunpack.i.h.bf16 %v6489_v61  ;;  %v4009_v38 = vsel %vm1749_vm6, %v3977_v23, %v6486_v4 }
 0x486   : > { %6778 = vrot.lane.b32.xlu1 %v6757_v44, %s6807_s30  ;;  %v3850_v33 = vsel %vm279_vm0, %v2665_v60, %v6495_v5  ;;  %v3851_v10 = vsel %vm279_vm0, %v2666_v39, %v6496_v57  ;;  %v2667_v57 = vld [vmem:[#allocation3 + $0xc0] sm:$0xff] }
 0x487   : > { %v6504_v17 = vpop.permute.xlu0 %6503  ;;  %v4040_v40 = vsel %vm1782_vm7, %v4008_v8, %v6490_v9  ;;  %v4041_v34 = vsel %vm1782_vm7, %v4009_v38, %v6491_v54  ;;  %v2668_v38 = vld [vmem:[#allocation3 + $0xc8] sm:$0xff] }
 0x488   : > { %v6499_v14 = vpop.permute.xlu1 %6498  ;;  %4299 = vmatmul.mubr.f32.gmra.mrb[24].mxu1 %v4040_v40  ;;  %v6505_v11 = vunpack.i.l.bf16 %v6504_v17  ;;  %v6506_v59 = vunpack.i.h.bf16 %v6504_v17  ;;  %v2923_v17 = vld [vmem:[#allocation3 + $0xe2] sm:$0xff] }
 0x489   : > { %v6501_v24 = vunpack.i.h.bf16 %v6499_v14  ;;  %v6500_v20 = vunpack.i.l.bf16 %v6499_v14  ;;  %5596 = vmatprep.mubr.msk.f32.mxu1 %vm279_vm0, %v2921_v43  ;;  %3544 = vrot.lane.b32.xlu0 %v8834_v22, %s6809_s13 }
 0x48a   : > { %6788 = vrot.lane.b32.xlu1 %v6767_v6, %s6810_s19 }
 0x48b   : > { %v3882_v44 = vsel %vm1617_vm2, %v3850_v33, %v6500_v20  ;;  %v6514_v18 = vpop.permute.xlu0 %6513  ;;  %v3883_v16 = vsel %vm1617_vm2, %v3851_v10, %v6501_v24 }
 0x48c   : > { %v6509_v41 = vpop.permute.xlu1 %6508  ;;  %4304 = vmatmul.mubr.f32.gmra.mrb[26].mxu1 %v4041_v34  ;;  %v6515_v52 = vunpack.i.l.bf16 %v6514_v18  ;;  %v3914_v19 = vsel %vm1650_vm3, %v3882_v44, %v6505_v11  ;;  %v6516_v27 = vunpack.i.h.bf16 %v6514_v18  ;;  %v3915_v21 = vsel %vm1650_vm3, %v3883_v16, %v6506_v59 }
 0x48d   : > { %v6511_v49 = vunpack.i.h.bf16 %v6509_v41  ;;  %v6510_v35 = vunpack.i.l.bf16 %v6509_v41  ;;  %5597 = vmatprep.mubr.msk.f32.mxu1 %vm279_vm0, %v8572_v46  ;;  %3800 = vrot.lane.b32.xlu0 %v2906_v50, %s6811_s20 }
 0x48e   : > { %3546 = vrot.lane.b32.xlu1 %v8849_v26, %s6809_s13 }
 0x48f   : > { %v3946_v6 = vsel %vm1683_vm4, %v3914_v19, %v6510_v35  ;;  %v6524_v32 = vpop.permute.xlu0 %6523  ;;  %v3947_v45 = vsel %vm1683_vm4, %v3915_v21, %v6511_v49 }
 0x490   : > { %v6525_v58 = vunpack.i.l.bf16 %v6524_v32  ;;  %v6519_v46 = vpop.permute.xlu1 %6518  ;;  %v3978_v31 = vsel %vm1716_vm5, %v3946_v6, %v6515_v52  ;;  %v6526_v4 = vunpack.i.h.bf16 %v6524_v32  ;;  %v3979_v15 = vsel %vm1716_vm5, %v3947_v45, %v6516_v27 }
 0x491   : > { %v6521_v2 = vunpack.i.h.bf16 %v6519_v46  ;;  %v6520_v7 = vunpack.i.l.bf16 %v6519_v46  ;;  %3674 = vrot.lane.b32.xlu0 %v2875_v3, %s6812_s21 }
 0x492   : > { %3802 = vrot.lane.b32.xlu1 %v2907_v62, %s6811_s20 }
 0x493   : > { %v6534_v61 = vpop.permute.xlu0 %6533  ;;  %v4010_v9 = vsel %vm1749_vm6, %v3978_v31, %v6520_v7  ;;  %v4011_v40 = vsel %vm1749_vm6, %v3979_v15, %v6521_v2 }
 0x494   : > { %v6529_v5 = vpop.permute.xlu1 %6528  ;;  %v4042_v8 = vsel %vm1782_vm7, %v4010_v9, %v6525_v58  ;;  %v6535_v23 = vunpack.i.l.bf16 %v6534_v61  ;;  %v4043_v20 = vsel %vm1782_vm7, %v4011_v40, %v6526_v4  ;;  %v6536_v11 = vunpack.i.h.bf16 %v6534_v61  ;;  %v2925_v4 = vld [vmem:[#allocation3 + $0xfa] sm:$0xff] }
 0x495   : > { %v6530_v54 = vunpack.i.l.bf16 %v6529_v5  ;;  %4309 = vmatmul.mubr.f32.gmra.mrb[28].mxu1 %v4042_v8  ;;  %v6531_v14 = vunpack.i.h.bf16 %v6529_v5  ;;  %v2669_v5 = vld [vmem:[#allocation3 + $0xd8] sm:$0xff] }
 0x496   : > { %5598 = vmatprep.mubr.msk.f32.mxu1 %vm279_vm0, %v2923_v17 }
 0x497   : > { %v3852_v43 = vsel %vm279_vm0, %v2667_v57, %v6530_v54  ;;  %v6544_v60 = vpop.permute.xlu0 %6543  ;;  %v3853_v44 = vsel %vm279_vm0, %v2668_v38, %v6531_v14 }
 0x498   : > { %v6539_v24 = vpop.permute.xlu1 %6538  ;;  %v6545_v50 = vunpack.i.l.bf16 %v6544_v60  ;;  %v3884_v39 = vsel %vm1617_vm2, %v3852_v43, %v6535_v23  ;;  %v6546_v16 = vunpack.i.h.bf16 %v6544_v60  ;;  %v3885_v49 = vsel %vm1617_vm2, %v3853_v44, %v6536_v11  ;;  %v2670_v23 = vld [vmem:[#allocation3 + $0xe0] sm:$0xff] }
 0x499   : > { %v6540_v33 = vunpack.i.l.bf16 %v6539_v24  ;;  %4314 = vmatmul.mubr.f32.gmra.mrb[30].mxu1 %v4043_v20  ;;  %v6541_v18 = vunpack.i.h.bf16 %v6539_v24 }
 0x49a   : > { %5599 = vmatprep.mubr.msk.f32.mxu1 %vm279_vm0, %v8591_v56 }
 0x49b   : > { %v3916_v34 = vsel %vm1650_vm3, %v3884_v39, %v6540_v33  ;;  %v6554_v10 = vpop.permute.xlu0 %6553  ;;  %v3917_v19 = vsel %vm1650_vm3, %v3885_v49, %v6541_v18 }
 0x49c   : > { %v6549_v59 = vpop.permute.xlu1 %6548  ;;  %v6555_v35 = vunpack.i.l.bf16 %v6554_v10  ;;  %v3948_v52 = vsel %vm1683_vm4, %v3916_v34, %v6545_v50  ;;  %v6556_v27 = vunpack.i.h.bf16 %v6554_v10  ;;  %v3949_v46 = vsel %vm1683_vm4, %v3917_v19, %v6546_v16 }
 0x49d   : > { %v6550_v41 = vunpack.i.l.bf16 %v6549_v59  ;;  %v6551_v3 = vunpack.i.h.bf16 %v6549_v59 }
 0x49f   : > { %v6564_v6 = vpop.permute.xlu0 %6563  ;;  %v3980_v56 = vsel %vm1716_vm5, %v3948_v52, %v6550_v41  ;;  %v3981_v31 = vsel %vm1716_vm5, %v3949_v46, %v6551_v3 }
 0x4a0   : > { %v6559_v32 = vpop.permute.xlu1 %6558  ;;  %v6565_v21 = vunpack.i.l.bf16 %v6564_v6  ;;  %v4012_v58 = vsel %vm1749_vm6, %v3980_v56, %v6555_v35  ;;  %v6566_v61 = vunpack.i.h.bf16 %v6564_v6  ;;  %v4013_v40 = vsel %vm1749_vm6, %v3981_v31, %v6556_v27 }
 0x4a1   : > { %v6560_v62 = vunpack.i.l.bf16 %v6559_v32  ;;  %v6561_v45 = vunpack.i.h.bf16 %v6559_v32 }
 0x4a2   : > { %v3854_v54 = vsel %vm279_vm0, %v2669_v5, %v6565_v21  ;;  %v3855_v60 = vsel %vm279_vm0, %v2670_v23, %v6566_v61 }
 0x4a3   : > { %v6574_v2 = vpop.permute.xlu0 %6573  ;;  %v4044_v7 = vsel %vm1782_vm7, %v4012_v58, %v6560_v62  ;;  %v4045_v43 = vsel %vm1782_vm7, %v4013_v40, %v6561_v45  ;;  %v2671_v58 = vld [vmem:[#allocation3 + $0xf0] sm:$0xff] }
 0x4a4   : > { %v6569_v9 = vpop.permute.xlu1 %6568  ;;  %4319 = vmatmul.mubr.f32.gmra.mrb[32].mxu1 %v4044_v7  ;;  %v6575_v17 = vunpack.i.l.bf16 %v6574_v2  ;;  %v6576_v24 = vunpack.i.h.bf16 %v6574_v2 }
 0x4a5   : > { %v6571_v8 = vunpack.i.h.bf16 %v6569_v9  ;;  %v6570_v15 = vunpack.i.l.bf16 %v6569_v9  ;;  %5600 = vmatprep.mubr.msk.f32.mxu1 %vm279_vm0, %v2925_v4  ;;  %v2672_v4 = vld [vmem:[#allocation3 + $0xf8] sm:$0xff] }
 0x4a7   : > { %v3886_v57 = vsel %vm1617_vm2, %v3854_v54, %v6570_v15  ;;  %v6584_v14 = vpop.permute.xlu0 %6583  ;;  %v3887_v33 = vsel %vm1617_vm2, %v3855_v60, %v6571_v8 }
 0x4a8   : > { %v6579_v20 = vpop.permute.xlu1 %6578  ;;  %4324 = vmatmul.mubr.f32.gmra.mrb[34].mxu1 %v4045_v43  ;;  %v6585_v50 = vunpack.i.l.bf16 %v6584_v14  ;;  %v3918_v39 = vsel %vm1650_vm3, %v3886_v57, %v6575_v17  ;;  %v6586_v34 = vunpack.i.h.bf16 %v6584_v14  ;;  %v3919_v10 = vsel %vm1650_vm3, %v3887_v33, %v6576_v24 }
 0x4a9   : > { %v6581_v11 = vunpack.i.h.bf16 %v6579_v20  ;;  %v6580_v38 = vunpack.i.l.bf16 %v6579_v20  ;;  %5601 = vmatprep.mubr.msk.f32.mxu1 %vm279_vm0, %v8634_v63 }
 0x4ab   : > { %v3950_v44 = vsel %vm1683_vm4, %v3918_v39, %v6580_v38  ;;  %v6594_v18 = vpop.permute.xlu0 %6593  ;;  %v3951_v16 = vsel %vm1683_vm4, %v3919_v10, %v6581_v11 }
 0x4ac   : > { %v6595_v59 = vunpack.i.l.bf16 %v6594_v18  ;;  %v6589_v41 = vpop.permute.xlu1 %6588  ;;  %v3982_v52 = vsel %vm1716_vm5, %v3950_v44, %v6585_v50  ;;  %v6596_v3 = vunpack.i.h.bf16 %v6594_v18  ;;  %v3983_v32 = vsel %vm1716_vm5, %v3951_v16, %v6586_v34 }
 0x4ad   : > { %v6591_v49 = vunpack.i.h.bf16 %v6589_v41  ;;  %v6590_v35 = vunpack.i.l.bf16 %v6589_v41 }
 0x4af   : > { %v6604_v19 = vpop.permute.xlu0 %6603  ;;  %v4014_v63 = vsel %vm1749_vm6, %v3982_v52, %v6590_v35  ;;  %v4015_v27 = vsel %vm1749_vm6, %v3983_v32, %v6591_v49  ;;  %v2673_v35 = vld [vmem:[#allocation3 + $0x108] sm:$0xff] }
 0x4b0   : > { %v6599_v6 = vpop.permute.xlu1 %6598  ;;  %v4046_v56 = vsel %vm1782_vm7, %v4014_v63, %v6595_v59  ;;  %v6605_v21 = vunpack.i.l.bf16 %v6604_v19  ;;  %v4047_v31 = vsel %vm1782_vm7, %v4015_v27, %v6596_v3  ;;  %v6606_v9 = vunpack.i.h.bf16 %v6604_v19 }
 0x4b1   : > { %v6600_v62 = vunpack.i.l.bf16 %v6599_v6  ;;  %4329 = vmatmul.mubr.f32.gmra.mrb[36].mxu1 %v4046_v56  ;;  %v6601_v46 = vunpack.i.h.bf16 %v6599_v6  ;;  %v2674_v56 = vld [vmem:[#allocation3 + $0x110] sm:$0xff] }
 0x4b2   : > { %5602 = vmatprep.mubr.msk.f32.mxu1 %vm279_vm0, %v8636_v55 }
 0x4b3   : > { %v3856_v45 = vsel %vm279_vm0, %v2671_v58, %v6600_v62  ;;  %v6614_v2 = vpop.permute.xlu0 %6613  ;;  %v3857_v15 = vsel %vm279_vm0, %v2672_v4, %v6601_v46 }
 0x4b4   : > { %v6609_v7 = vpop.permute.xlu1 %6608  ;;  %v6615_v5 = vunpack.i.l.bf16 %v6614_v2  ;;  %v3888_v8 = vsel %vm1617_vm2, %v3856_v45, %v6605_v21  ;;  %v6616_v57 = vunpack.i.h.bf16 %v6614_v2  ;;  %v3889_v14 = vsel %vm1617_vm2, %v3857_v15, %v6606_v9 }
 0x4b5   : > { %v6610_v61 = vunpack.i.l.bf16 %v6609_v7  ;;  %4334 = vmatmul.mubr.f32.gmra.mrb[38].mxu1 %v4047_v31  ;;  %v6611_v55 = vunpack.i.h.bf16 %v6609_v7 }
 0x4b6   : > { %5603 = vmatprep.mubr.msk.f32.mxu1 %vm279_vm0, %v8664_v51 }
 0x4b7   : > { %v3920_v54 = vsel %vm1650_vm3, %v3888_v8, %v6610_v61  ;;  %v6624_v17 = vpop.permute.xlu0 %6623  ;;  %v3921_v24 = vsel %vm1650_vm3, %v3889_v14, %v6611_v55 }
 0x4b8   : > { %v6619_v40 = vpop.permute.xlu1 %6618  ;;  %v6625_v43 = vunpack.i.l.bf16 %v6624_v17  ;;  %v3952_v60 = vsel %vm1683_vm4, %v3920_v54, %v6615_v5  ;;  %v6626_v50 = vunpack.i.h.bf16 %v6624_v17  ;;  %v3953_v18 = vsel %vm1683_vm4, %v3921_v24, %v6616_v57 }
 0x4b9   : > { %v6620_v23 = vunpack.i.l.bf16 %v6619_v40  ;;  %v6621_v20 = vunpack.i.h.bf16 %v6619_v40 }
 0x4bb   : > { %v6634_v33 = vpop.permute.xlu0 %6633  ;;  %v3984_v51 = vsel %vm1716_vm5, %v3952_v60, %v6620_v23  ;;  %v3985_v41 = vsel %vm1716_vm5, %v3953_v18, %v6621_v20 }
 0x4bc   : > { %v6629_v11 = vpop.permute.xlu1 %6628  ;;  %v6635_v39 = vunpack.i.l.bf16 %v6634_v33  ;;  %v4016_v44 = vsel %vm1749_vm6, %v3984_v51, %v6625_v43  ;;  %v6636_v16 = vunpack.i.h.bf16 %v6634_v33  ;;  %v4017_v6 = vsel %vm1749_vm6, %v3985_v41, %v6626_v50  ;;  %v2675_v51 = vld [vmem:[#allocation3 + $0x120] sm:$0xff] }
 0x4bd   : > { %v6630_v38 = vunpack.i.l.bf16 %v6629_v11  ;;  %v6631_v34 = vunpack.i.h.bf16 %v6629_v11 }
 0x4be   : > { %v3858_v63 = vsel %vm279_vm0, %v2673_v35, %v6635_v39  ;;  %v3859_v21 = vsel %vm279_vm0, %v2674_v56, %v6636_v16 }
 0x4bf   : > { %v6644_v10 = vpop.permute.xlu0 %6643  ;;  %v4048_v59 = vsel %vm1782_vm7, %v4016_v44, %v6630_v38  ;;  %v4049_v27 = vsel %vm1782_vm7, %v4017_v6, %v6631_v34 }
 0x4c0   : > { %v6639_v49 = vpop.permute.xlu1 %6638  ;;  %4339 = vmatmul.mubr.f32.gmra.mrb[40].mxu1 %v4048_v59  ;;  %v6645_v3 = vunpack.i.l.bf16 %v6644_v10  ;;  %v6646_v58 = vunpack.i.h.bf16 %v6644_v10  ;;  %v2676_v10 = vld [vmem:[#allocation3 + $0x128] sm:$0xff] }
 0x4c1   : > { %v6641_v52 = vunpack.i.h.bf16 %v6639_v49  ;;  %v6640_v19 = vunpack.i.l.bf16 %v6639_v49  ;;  %5604 = vmatprep.mubr.msk.f32.mxu1 %vm279_vm0, %v8666_v47 }
 0x4c3   : > { %v3890_v32 = vsel %vm1617_vm2, %v3858_v63, %v6640_v19  ;;  %v6654_v62 = vpop.permute.xlu0 %6653  ;;  %v3891_v45 = vsel %vm1617_vm2, %v3859_v21, %v6641_v52 }
 0x4c4   : > { %v6649_v46 = vpop.permute.xlu1 %6648  ;;  %4344 = vmatmul.mubr.f32.gmra.mrb[42].mxu1 %v4049_v27  ;;  %v6655_v7 = vunpack.i.l.bf16 %v6654_v62  ;;  %v3922_v31 = vsel %vm1650_vm3, %v3890_v32, %v6645_v3  ;;  %v6656_v4 = vunpack.i.h.bf16 %v6654_v62  ;;  %v3923_v5 = vsel %vm1650_vm3, %v3891_v45, %v6646_v58 }
 0x4c5   : > { %v6651_v2 = vunpack.i.h.bf16 %v6649_v46  ;;  %v6650_v47 = vunpack.i.l.bf16 %v6649_v46  ;;  %5605 = vmatprep.mubr.msk.f32.mxu1 %vm279_vm0, %v8720_v53 }
 0x4c7   : > { %v3954_v61 = vsel %vm1683_vm4, %v3922_v31, %v6650_v47  ;;  %v6664_v9 = vpop.permute.xlu0 %6663  ;;  %v3955_v55 = vsel %vm1683_vm4, %v3923_v5, %v6651_v2 }
 0x4c8   : > { %v6665_v8 = vunpack.i.l.bf16 %v6664_v9  ;;  %v6659_v15 = vpop.permute.xlu1 %6658  ;;  %v3986_v40 = vsel %vm1716_vm5, %v3954_v61, %v6655_v7  ;;  %v6666_v57 = vunpack.i.h.bf16 %v6664_v9  ;;  %v3987_v60 = vsel %vm1716_vm5, %v3955_v55, %v6656_v4 }
 0x4c9   : > { %v6661_v54 = vunpack.i.h.bf16 %v6659_v15  ;;  %v6660_v17 = vunpack.i.l.bf16 %v6659_v15 }
 0x4cb   : > { %v6674_v23 = vpop.permute.xlu0 %6673  ;;  %v4018_v53 = vsel %vm1749_vm6, %v3986_v40, %v6660_v17  ;;  %v4019_v20 = vsel %vm1749_vm6, %v3987_v60, %v6661_v54 }
 0x4cc   : > { %v6669_v14 = vpop.permute.xlu1 %6668  ;;  %v4050_v43 = vsel %vm1782_vm7, %v4018_v53, %v6665_v8  ;;  %v6675_v33 = vunpack.i.l.bf16 %v6674_v23  ;;  %v4051_v44 = vsel %vm1782_vm7, %v4019_v20, %v6666_v57  ;;  %v6676_v34 = vunpack.i.h.bf16 %v6674_v23 }
 0x4cd   : > { %v6670_v24 = vunpack.i.l.bf16 %v6669_v14  ;;  %4349 = vmatmul.mubr.f32.gmra.mrb[44].mxu1 %v4050_v43  ;;  %v6671_v11 = vunpack.i.h.bf16 %v6669_v14 }
 0x4ce   : > { %5606 = vmatprep.mubr.msk.f32.mxu1 %vm279_vm0, %v8722_v1 }
 0x4cf   : > { %v3860_v38 = vsel %vm279_vm0, %v2675_v51, %v6670_v24  ;;  %v6684_v50 = vpop.permute.xlu0 %6683  ;;  %v3861_v16 = vsel %vm279_vm0, %v2676_v10, %v6671_v11 }
 0x4d0   : > { %v6679_v39 = vpop.permute.xlu1 %6678  ;;  %v6685_v59 = vunpack.i.l.bf16 %v6684_v50  ;;  %v3892_v41 = vsel %vm1617_vm2, %v3860_v38, %v6675_v33  ;;  %v6686_v63 = vunpack.i.h.bf16 %v6684_v50  ;;  %v3893_v3 = vsel %vm1617_vm2, %v3861_v16, %v6676_v34 }
 0x4d1   : > { %v6680_v18 = vunpack.i.l.bf16 %v6679_v39  ;;  %4354 = vmatmul.mubr.f32.gmra.mrb[46].mxu1 %v4051_v44  ;;  %v6681_v1 = vunpack.i.h.bf16 %v6679_v39 }
 0x4d2   : > { %5607 = vmatprep.mubr.msk.f32.mxu1 %vm279_vm0, %v8752_v12 }
 0x4d3   : > { %v3924_v49 = vsel %vm1650_vm3, %v3892_v41, %v6680_v18  ;;  %v6694_v35 = vpop.permute.xlu0 %6693  ;;  %v3925_v32 = vsel %vm1650_vm3, %v3893_v3, %v6681_v1 }
 0x4d4   : > { %v6689_v52 = vpop.permute.xlu1 %6688  ;;  %v6695_v6 = vunpack.i.l.bf16 %v6694_v35  ;;  %v3956_v56 = vsel %vm1683_vm4, %v3924_v49, %v6685_v59  ;;  %v6696_v46 = vunpack.i.h.bf16 %v6694_v35  ;;  %v3957_v47 = vsel %vm1683_vm4, %v3925_v32, %v6686_v63 }
 0x4d5   : > { %v6690_v19 = vunpack.i.l.bf16 %v6689_v52  ;;  %v6691_v62 = vunpack.i.h.bf16 %v6689_v52 }
 0x4d7   : > { %v6704_v27 = vpop.permute.xlu0 %6703  ;;  %v3988_v12 = vsel %vm1716_vm5, %v3956_v56, %v6690_v19  ;;  %v3989_v9 = vsel %vm1716_vm5, %v3957_v47, %v6691_v62 }
 0x4d8   : > { %v6699_v21 = vpop.permute.xlu1 %6698  ;;  %v6705_v45 = vunpack.i.l.bf16 %v6704_v27  ;;  %v4020_v2 = vsel %vm1749_vm6, %v3988_v12, %v6695_v6  ;;  %v6706_v4 = vunpack.i.h.bf16 %v6704_v27  ;;  %v4021_v17 = vsel %vm1749_vm6, %v3989_v9, %v6696_v46 }
 0x4d9   : > { %v6700_v58 = vunpack.i.l.bf16 %v6699_v21  ;;  %v6701_v7 = vunpack.i.h.bf16 %v6699_v21 }
 0x4da   : > { %v3862_v55 = vsel %vm279_vm0, %v8679_v0, %v6705_v45  ;;  %v3863_v57 = vsel %vm279_vm0, %v8681_v25, %v6706_v4 }
 0x4db   : > { %v6714_v31 = vpop.permute.xlu0 %6713  ;;  %v4052_v61 = vsel %vm1782_vm7, %v4020_v2, %v6700_v58  ;;  %v4053_v53 = vsel %vm1782_vm7, %v4021_v17, %v6701_v7 }
 0x4dc   : > { %v6709_v5 = vpop.permute.xlu1 %6708  ;;  %4359 = vmatmul.mubr.f32.gmra.mrb[48].mxu1 %v4052_v61  ;;  %v6715_v54 = vunpack.i.l.bf16 %v6714_v31  ;;  %v6716_v14 = vunpack.i.h.bf16 %v6714_v31 }
 0x4dd   : > { %v6711_v8 = vunpack.i.h.bf16 %v6709_v5  ;;  %v6710_v15 = vunpack.i.l.bf16 %v6709_v5  ;;  %5608 = vmatprep.mubr.msk.f32.mxu1 %vm279_vm0, %v8754_v28 }
 0x4df   : > { %v3894_v40 = vsel %vm1617_vm2, %v3862_v55, %v6710_v15  ;;  %v6724_v23 = vpop.permute.xlu0 %6723  ;;  %v3895_v60 = vsel %vm1617_vm2, %v3863_v57, %v6711_v8 }
 0x4e0   : > { %v6719_v43 = vpop.permute.xlu1 %6718  ;;  %4364 = vmatmul.mubr.f32.gmra.mrb[50].mxu1 %v4053_v53  ;;  %v6725_v0 = vunpack.i.l.bf16 %v6724_v23  ;;  %v3926_v20 = vsel %vm1650_vm3, %v3894_v40, %v6715_v54  ;;  %v6726_v11 = vunpack.i.h.bf16 %v6724_v23  ;;  %v3927_v38 = vsel %vm1650_vm3, %v3895_v60, %v6716_v14 }
 0x4e1   : > { %v6721_v28 = vunpack.i.h.bf16 %v6719_v43  ;;  %v6720_v24 = vunpack.i.l.bf16 %v6719_v43  ;;  %5609 = vmatprep.mubr.msk.f32.mxu1 %vm279_vm0, %v8804_v36 }
 0x4e3   : > { %v3958_v33 = vsel %vm1683_vm4, %v3926_v20, %v6720_v24  ;;  %v6734_v51 = vpop.permute.xlu0 %6733  ;;  %v3959_v39 = vsel %vm1683_vm4, %v3927_v38, %v6721_v28  ;;  %v2938_v20 = vld [vmem:[#allocation3 + $0x19a] sm:$0xff] }
 0x4e4   : > { %v6735_v25 = vunpack.i.l.bf16 %v6734_v51  ;;  %v6729_v50 = vpop.permute.xlu1 %6728  ;;  %v3990_v34 = vsel %vm1716_vm5, %v3958_v33, %v6725_v0  ;;  %v6736_v59 = vunpack.i.h.bf16 %v6734_v51  ;;  %v3991_v1 = vsel %vm1716_vm5, %v3959_v39, %v6726_v11 }
 0x4e5   : > { %v6731_v44 = vunpack.i.h.bf16 %v6729_v50  ;;  %v6730_v18 = vunpack.i.l.bf16 %v6729_v50 }
 0x4e7   : > { %v6744_v10 = vpop.permute.xlu0 %6743  ;;  %v4022_v36 = vsel %vm1749_vm6, %v3990_v34, %v6730_v18  ;;  %v4023_v35 = vsel %vm1749_vm6, %v3991_v1, %v6731_v44 }
 0x4e8   : > { %v6739_v41 = vpop.permute.xlu1 %6738  ;;  %v4054_v16 = vsel %vm1782_vm7, %v4022_v36, %v6735_v25  ;;  %v6745_v52 = vunpack.i.l.bf16 %v6744_v10  ;;  %v4055_v56 = vsel %vm1782_vm7, %v4023_v35, %v6736_v59  ;;  %v6746_v62 = vunpack.i.h.bf16 %v6744_v10 }
 0x4e9   : > { %v6740_v49 = vunpack.i.l.bf16 %v6739_v41  ;;  %4369 = vmatmul.mubr.f32.gmra.mrb[52].mxu1 %v4054_v16  ;;  %v6741_v19 = vunpack.i.h.bf16 %v6739_v41  ;;  %v2939_v16 = vld [vmem:[#allocation3 + $0x1a2] sm:$0xff] }
 0x4ea   : > { %5610 = vmatprep.mubr.msk.f32.mxu1 %vm279_vm0, %v8806_v29 }
 0x4eb   : > { %v3864_v63 = vsel %vm279_vm0, %v8713_v37, %v6740_v49  ;;  %v6754_v3 = vpop.permute.xlu0 %6753  ;;  %v3865_v29 = vsel %vm279_vm0, %v8715_v13, %v6741_v19 }
 0x4ec   : > { %v6749_v6 = vpop.permute.xlu1 %6748  ;;  %v6755_v27 = vunpack.i.l.bf16 %v6754_v3  ;;  %v3896_v12 = vsel %vm1617_vm2, %v3864_v63, %v6745_v52  ;;  %v6756_v2 = vunpack.i.h.bf16 %v6754_v3  ;;  %v3897_v47 = vsel %vm1617_vm2, %v3865_v29, %v6746_v62 }
 0x4ed   : > { %v6750_v32 = vunpack.i.l.bf16 %v6749_v6  ;;  %4374 = vmatmul.mubr.f32.gmra.mrb[54].mxu1 %v4055_v56  ;;  %v6751_v21 = vunpack.i.h.bf16 %v6749_v6 }
 0x4ee   : > { %5611 = vmatprep.mubr.msk.f32.mxu1 %vm279_vm0, %v8834_v22 }
 0x4ef   : > { %v3928_v58 = vsel %vm1650_vm3, %v3896_v12, %v6750_v32  ;;  %v6764_v37 = vpop.permute.xlu0 %6763  ;;  %v3929_v61 = vsel %vm1650_vm3, %v3897_v47, %v6751_v21 }
 0x4f0   : > { %v6759_v46 = vpop.permute.xlu1 %6758  ;;  %v6765_v7 = vunpack.i.l.bf16 %v6764_v37  ;;  %v3960_v31 = vsel %vm1683_vm4, %v3928_v58, %v6755_v27  ;;  %v6766_v8 = vunpack.i.h.bf16 %v6764_v37  ;;  %v3961_v54 = vsel %vm1683_vm4, %v3929_v61, %v6756_v2 }
 0x4f1   : > { %v6760_v45 = vunpack.i.l.bf16 %v6759_v46  ;;  %v6761_v9 = vunpack.i.h.bf16 %v6759_v46 }
 0x4f3   : > { %v6774_v4 = vpop.permute.xlu0 %6773  ;;  %v3992_v22 = vsel %vm1716_vm5, %v3960_v31, %v6760_v45  ;;  %v3993_v57 = vsel %vm1716_vm5, %v3961_v54, %v6761_v9 }
 0x4f4   : > { %v6769_v5 = vpop.permute.xlu1 %6768  ;;  %v6775_v15 = vunpack.i.l.bf16 %v6774_v4  ;;  %v4024_v55 = vsel %vm1749_vm6, %v3992_v22, %v6765_v7  ;;  %v6776_v17 = vunpack.i.h.bf16 %v6774_v4  ;;  %v4025_v0 = vsel %vm1749_vm6, %v3993_v57, %v6766_v8 }
 0x4f5   : > { %v6770_v13 = vunpack.i.l.bf16 %v6769_v5  ;;  %v6771_v40 = vunpack.i.h.bf16 %v6769_v5 }
 0x4f6   : > { %v3866_v28 = vsel %vm279_vm0, %v8767_v30, %v6775_v15  ;;  %v3867_v33 = vsel %vm279_vm0, %v8769_v42, %v6776_v17 }
 0x4f7   : > { %v6784_v23 = vpop.permute.xlu0 %6783  ;;  %v4056_v53 = vsel %vm1782_vm7, %v4024_v55, %v6770_v13  ;;  %v4057_v25 = vsel %vm1782_vm7, %v4025_v0, %v6771_v40 }
 0x4f8   : > { %v6779_v14 = vpop.permute.xlu1 %6778  ;;  %4379 = vmatmul.mubr.f32.gmra.mrb[56].mxu1 %v4056_v53  ;;  %v6785_v24 = vunpack.i.l.bf16 %v6784_v23  ;;  %v6786_v51 = vunpack.i.h.bf16 %v6784_v23 }
 0x4f9   : > { %v6781_v43 = vunpack.i.h.bf16 %v6779_v14  ;;  %v6780_v60 = vunpack.i.l.bf16 %v6779_v14  ;;  %5612 = vmatprep.mubr.msk.f32.mxu1 %vm279_vm0, %v8849_v26 }
 0x4fb   : > { %v3898_v11 = vsel %vm1617_vm2, %v3866_v28, %v6780_v60  ;;  %v3545_v38 = vpop.permute.xlu0 %3544  ;;  %v3899_v50 = vsel %vm1617_vm2, %v3867_v33, %v6781_v43  ;;  %vm5073_vm2 = vcmask 654848  }
 0x4fc   : > { %v6789_v39 = vpop.permute.xlu1 %6788  ;;  %4384 = vmatmul.mubr.f32.gmra.mrb[58].mxu1 %v4057_v25  ;;  %v3930_v30 = vsel %vm1650_vm3, %v3898_v11, %v6785_v24  ;;  %v3931_v42 = vsel %vm1650_vm3, %v3899_v50, %v6786_v51  ;;  %vm5110_vm3 = vcmask 786048  }
 0x4fd   : > { %v6791_v26 = vunpack.i.h.bf16 %v6789_v39  ;;  %v6790_v44 = vunpack.i.l.bf16 %v6789_v39  ;;  %5613 = vmatprep.mubr.msk.f32.mxu1 %vm279_vm0, %v2938_v20 }
 0x4ff   : > { %v3962_v18 = vsel %vm1683_vm4, %v3930_v30, %v6790_v44  ;;  %v3801_v34 = vpop.permute.xlu0 %3800  ;;  %v3963_v36 = vsel %vm1683_vm4, %v3931_v42, %v6791_v26  ;;  %vm5147_vm4 = vcmask 917248  }
 0x500   : > { %v3547_v10 = vpop.permute.xlu1 %3546  ;;  %v3994_v59 = vsel %vm1716_vm5, %v3962_v18, %v3545_v38 }
 0x501   : > { %v4026_v41 = vsel %vm1749_vm6, %v3994_v59, %v8569_v48  ;;  %v3995_v49 = vsel %vm1716_vm5, %v3963_v36, %v3547_v10  ;;  %vm5184_vm5 = vcmask 1048448  }
 0x502   : > { %v4058_v1 = vsel %vm1782_vm7, %v4026_v41, %v3801_v34 }
 0x503   : > { %4389 = vmatmul.mubr.f32.gmra.mrb[60].mxu1 %v4058_v1  ;;  %v3675_v35 = vpop.permute.xlu0 %3674 }
 0x504   : > { %v4027_v52 = vsel %vm1749_vm6, %v3995_v49, %v3675_v35  ;;  %v3803_v19 = vpop.permute.xlu1 %3802  ;;  %5614 = vmatprep.mubr.msk.f32.mxu1 %vm279_vm0, %v2939_v16 }
 0x505   : > { %v4059_v63 = vsel %vm1782_vm7, %v4027_v52, %v3803_v19 }
 0x507   : > { %v9014_v3 = vpop.f32.mrb[0].mxu1  ;;  %4394 = vmatmul.mubr.f32.gmra.mrb[62].mxu1 %v4059_v63 }
 0x508   : > { %v4242_v6 = vpop.f32.mrb[1].mxu1  ;;  %v4472_v48 = vmul.f32 %v9014_v3, %v9014_v3  ;;  %v4399_v32 = vsel %vm279_vm0, %v9014_v3, 0.0 }
 0x50a   : > { %v4504_v21 = vsel %vm279_vm0, %v4472_v48, 0.0 }
 0x50b   : > { %v9018_v56 = vpop.f32.mrb[2].mxu1 }
 0x50c   : > { %v4400_v62 = vsel %vm279_vm0, %v9018_v56, 0.0  ;;  %v4473_v27 = vmul.f32 %v9018_v56, %v9018_v56  ;;  %v4247_v12 = vpop.f32.mrb[3].mxu1 }
 0x50d   : > { %v4401_v29 = vadd.f32 %v4400_v62, %v4399_v32 }
 0x50e   : > { %v4505_v58 = vsel %vm279_vm0, %v4473_v27, 0.0 }
 0x50f   : > { %v4506_v37 = vadd.f32 %v4505_v58, %v4504_v21 }
 0x514   : > { %v9028_v46 = vpop.f32.mrb[4].mxu1 }
 0x515   : > { %v4402_v45 = vsel %vm279_vm0, %v9028_v46, 0.0  ;;  %v4474_v2 = vmul.f32 %v9028_v46, %v9028_v46  ;;  %v4252_v47 = vpop.f32.mrb[5].mxu1 }
 0x516   : > { %v4403_v7 = vadd.f32 %v4402_v45, %v4401_v29 }
 0x517   : > { %v4507_v31 = vsel %vm279_vm0, %v4474_v2, 0.0 }
 0x518   : > { %v4508_v61 = vadd.f32 %v4507_v31, %v4506_v37  ;;  %v9035_v9 = vpop.f32.mrb[6].mxu1 }
 0x519   : > { %v4404_v4 = vsel %vm279_vm0, %v9035_v9, 0.0  ;;  %v4475_v22 = vmul.f32 %v9035_v9, %v9035_v9  ;;  %v4257_v5 = vpop.f32.mrb[7].mxu1 }
 0x51a   : > { %v4405_v13 = vadd.f32 %v4404_v4, %v4403_v7 }
 0x51b   : > { %v4509_v8 = vsel %vm279_vm0, %v4475_v22, 0.0 }
 0x51c   : > { %v4510_v15 = vadd.f32 %v4509_v8, %v4508_v61 }
 0x523   : > { %v9042_v55 = vpop.f32.mrb[8].mxu1 }
 0x524   : > { %v4406_v54 = vsel %vm279_vm0, %v9042_v55, 0.0  ;;  %v4476_v17 = vmul.f32 %v9042_v55, %v9042_v55  ;;  %v4262_v40 = vpop.f32.mrb[9].mxu1 }
 0x525   : > { %v4407_v23 = vadd.f32 %v4406_v54, %v4405_v13 }
 0x526   : > { %v4511_v53 = vsel %vm279_vm0, %v4476_v17, 0.0 }
 0x527   : > { %v4512_v57 = vadd.f32 %v4511_v53, %v4510_v15  ;;  %v9049_v14 = vpop.f32.mrb[10].mxu1 }
 0x528   : > { %v4408_v43 = vsel %vm279_vm0, %v9049_v14, 0.0  ;;  %v4477_v60 = vmul.f32 %v9049_v14, %v9049_v14  ;;  %v4267_v28 = vpop.f32.mrb[11].mxu1 }
 0x529   : > { %v4409_v24 = vadd.f32 %v4408_v43, %v4407_v23 }
 0x52a   : > { %v4513_v0 = vsel %vm279_vm0, %v4477_v60, 0.0 }
 0x52b   : > { %v4514_v20 = vadd.f32 %v4513_v0, %v4512_v57 }
 0x530   : > { %v9056_v33 = vpop.f32.mrb[12].mxu1 }
 0x531   : > { %v4410_v51 = vsel %vm279_vm0, %v9056_v33, 0.0  ;;  %v4478_v11 = vmul.f32 %v9056_v33, %v9056_v33  ;;  %v4272_v38 = vpop.f32.mrb[13].mxu1 }
 0x532   : > { %v4411_v25 = vadd.f32 %v4410_v51, %v4409_v24 }
 0x533   : > { %v4515_v50 = vsel %vm279_vm0, %v4478_v11, 0.0 }
 0x534   : > { %v4516_v39 = vadd.f32 %v4515_v50, %v4514_v20  ;;  %v9063_v26 = vpop.f32.mrb[14].mxu1 }
 0x535   : > { %v4412_v44 = vsel %vm279_vm0, %v9063_v26, 0.0  ;;  %v4479_v30 = vmul.f32 %v9063_v26, %v9063_v26  ;;  %v4277_v18 = vpop.f32.mrb[15].mxu1 }
 0x536   : > { %v4413_v34 = vadd.f32 %v4412_v44, %v4411_v25 }
 0x537   : > { %v4517_v42 = vsel %vm279_vm0, %v4479_v30, 0.0 }
 0x538   : > { %v4518_v10 = vadd.f32 %v4517_v42, %v4516_v39 }
 0x53f   : > { %v9070_v36 = vpop.f32.mrb[16].mxu1 }
 0x540   : > { %v4414_v59 = vsel %vm279_vm0, %v9070_v36, 0.0  ;;  %v4480_v41 = vmul.f32 %v9070_v36, %v9070_v36  ;;  %v4282_v16 = vpop.f32.mrb[17].mxu1 }
 0x541   : > { %v4415_v1 = vadd.f32 %v4414_v59, %v4413_v34 }
 0x542   : > { %v4519_v49 = vsel %vm279_vm0, %v4480_v41, 0.0 }
 0x543   : > { %v4520_v35 = vadd.f32 %v4519_v49, %v4518_v10  ;;  %v9077_v52 = vpop.f32.mrb[18].mxu1 }
 0x544   : > { %v4416_v19 = vsel %vm279_vm0, %v9077_v52, 0.0  ;;  %v4481_v63 = vmul.f32 %v9077_v52, %v9077_v52  ;;  %v4287_v6 = vpop.f32.mrb[19].mxu1 }
 0x545   : > { %v4417_v48 = vadd.f32 %v4416_v19, %v4415_v1 }
 0x546   : > { %v4521_v32 = vsel %vm279_vm0, %v4481_v63, 0.0 }
 0x547   : > { %v4522_v62 = vadd.f32 %v4521_v32, %v4520_v35 }
 0x54c   : > { %v9084_v27 = vpop.f32.mrb[20].mxu1 }
 0x54d   : > { %v4418_v12 = vsel %vm279_vm0, %v9084_v27, 0.0  ;;  %v4482_v29 = vmul.f32 %v9084_v27, %v9084_v27  ;;  %v4292_v21 = vpop.f32.mrb[21].mxu1 }
 0x54e   : > { %v4419_v58 = vadd.f32 %v4418_v12, %v4417_v48 }
 0x54f   : > { %v4523_v37 = vsel %vm279_vm0, %v4482_v29, 0.0 }
 0x550   : > { %v4524_v45 = vadd.f32 %v4523_v37, %v4522_v62  ;;  %v9091_v2 = vpop.f32.mrb[22].mxu1 }
 0x551   : > { %v4420_v47 = vsel %vm279_vm0, %v9091_v2, 0.0  ;;  %v4483_v7 = vmul.f32 %v9091_v2, %v9091_v2  ;;  %v4297_v31 = vpop.f32.mrb[23].mxu1 }
 0x552   : > { %v4421_v61 = vadd.f32 %v4420_v47, %v4419_v58 }
 0x553   : > { %v4525_v4 = vsel %vm279_vm0, %v4483_v7, 0.0 }
 0x554   : > { %v4526_v22 = vadd.f32 %v4525_v4, %v4524_v45 }
 0x55b   : > { %v9098_v5 = vpop.f32.mrb[24].mxu1 }
 0x55c   : > { %v4422_v13 = vsel %vm279_vm0, %v9098_v5, 0.0  ;;  %v4484_v8 = vmul.f32 %v9098_v5, %v9098_v5  ;;  %v4302_v15 = vpop.f32.mrb[25].mxu1 }
 0x55d   : > { %v4423_v54 = vadd.f32 %v4422_v13, %v4421_v61 }
 0x55e   : > { %v4527_v17 = vsel %vm279_vm0, %v4484_v8, 0.0 }
 0x55f   : > { %v4528_v40 = vadd.f32 %v4527_v17, %v4526_v22  ;;  %v9105_v23 = vpop.f32.mrb[26].mxu1 }
 0x560   : > { %v4424_v53 = vsel %vm279_vm0, %v9105_v23, 0.0  ;;  %v4485_v57 = vmul.f32 %v9105_v23, %v9105_v23  ;;  %v4307_v43 = vpop.f32.mrb[27].mxu1 }
 0x561   : > { %v4425_v60 = vadd.f32 %v4424_v53, %v4423_v54 }
 0x562   : > { %v4529_v28 = vsel %vm279_vm0, %v4485_v57, 0.0 }
 0x563   : > { %v4530_v24 = vadd.f32 %v4529_v28, %v4528_v40 }
 0x568   : > { %v9112_v0 = vpop.f32.mrb[28].mxu1 }
 0x569   : > { %v4426_v20 = vsel %vm279_vm0, %v9112_v0, 0.0  ;;  %v4486_v51 = vmul.f32 %v9112_v0, %v9112_v0  ;;  %v4312_v11 = vpop.f32.mrb[29].mxu1 }
 0x56a   : > { %v4427_v38 = vadd.f32 %v4426_v20, %v4425_v60 }
 0x56b   : > { %v4531_v25 = vsel %vm279_vm0, %v4486_v51, 0.0 }
 0x56c   : > { %v4532_v50 = vadd.f32 %v4531_v25, %v4530_v24  ;;  %v9119_v39 = vpop.f32.mrb[30].mxu1 }
 0x56d   : > { %v4428_v44 = vsel %vm279_vm0, %v9119_v39, 0.0  ;;  %v4487_v30 = vmul.f32 %v9119_v39, %v9119_v39  ;;  %v4317_v18 = vpop.f32.mrb[31].mxu1 }
 0x56e   : > { %v4429_v34 = vadd.f32 %v4428_v44, %v4427_v38 }
 0x56f   : > { %v4533_v42 = vsel %vm279_vm0, %v4487_v30, 0.0 }
 0x570   : > { %v4534_v10 = vadd.f32 %v4533_v42, %v4532_v50 }
 0x577   : > { %v9126_v59 = vpop.f32.mrb[32].mxu1 }
 0x578   : > { %v4430_v41 = vsel %vm279_vm0, %v9126_v59, 0.0  ;;  %v4488_v16 = vmul.f32 %v9126_v59, %v9126_v59  ;;  %v4322_v1 = vpop.f32.mrb[33].mxu1 }
 0x579   : > { %v4431_v49 = vadd.f32 %v4430_v41, %v4429_v34 }
 0x57a   : > { %v4535_v35 = vsel %vm279_vm0, %v4488_v16, 0.0 }
 0x57b   : > { %v4536_v19 = vadd.f32 %v4535_v35, %v4534_v10  ;;  %v9133_v63 = vpop.f32.mrb[34].mxu1 }
 0x57c   : > { %v4432_v6 = vsel %vm279_vm0, %v9133_v63, 0.0  ;;  %v4489_v48 = vmul.f32 %v9133_v63, %v9133_v63  ;;  %v4327_v32 = vpop.f32.mrb[35].mxu1 }
 0x57d   : > { %v4433_v62 = vadd.f32 %v4432_v6, %v4431_v49 }
 0x57e   : > { %v4537_v12 = vsel %vm279_vm0, %v4489_v48, 0.0 }
 0x57f   : > { %v4538_v29 = vadd.f32 %v4537_v12, %v4536_v19 }
 0x584   : > { %v9140_v21 = vpop.f32.mrb[36].mxu1 }
 0x585   : > { %v4434_v58 = vsel %vm279_vm0, %v9140_v21, 0.0  ;;  %v4490_v37 = vmul.f32 %v9140_v21, %v9140_v21  ;;  %v4332_v45 = vpop.f32.mrb[37].mxu1 }
 0x586   : > { %v4435_v47 = vadd.f32 %v4434_v58, %v4433_v62 }
 0x587   : > { %v4539_v7 = vsel %vm279_vm0, %v4490_v37, 0.0 }
 0x588   : > { %v4540_v31 = vadd.f32 %v4539_v7, %v4538_v29  ;;  %v9147_v61 = vpop.f32.mrb[38].mxu1 }
 0x589   : > { %v4436_v4 = vsel %vm279_vm0, %v9147_v61, 0.0  ;;  %v4491_v22 = vmul.f32 %v9147_v61, %v9147_v61  ;;  %v4337_v13 = vpop.f32.mrb[39].mxu1 }
 0x58a   : > { %v4437_v8 = vadd.f32 %v4436_v4, %v4435_v47 }
 0x58b   : > { %v4541_v15 = vsel %vm279_vm0, %v4491_v22, 0.0 }
 0x58c   : > { %v4542_v54 = vadd.f32 %v4541_v15, %v4540_v31 }
 0x593   : > { %v9154_v17 = vpop.f32.mrb[40].mxu1 }
 0x594   : > { %v4438_v40 = vsel %vm279_vm0, %v9154_v17, 0.0  ;;  %v4492_v53 = vmul.f32 %v9154_v17, %v9154_v17  ;;  %v4342_v57 = vpop.f32.mrb[41].mxu1 }
 0x595   : > { %v4439_v43 = vadd.f32 %v4438_v40, %v4437_v8 }
 0x596   : > { %v4543_v60 = vsel %vm279_vm0, %v4492_v53, 0.0 }
 0x597   : > { %v4544_v28 = vadd.f32 %v4543_v60, %v4542_v54  ;;  %v9161_v24 = vpop.f32.mrb[42].mxu1 }
 0x598   : > { %v4440_v20 = vsel %vm279_vm0, %v9161_v24, 0.0  ;;  %v4493_v51 = vmul.f32 %v9161_v24, %v9161_v24  ;;  %v4347_v11 = vpop.f32.mrb[43].mxu1 }
 0x599   : > { %v4441_v38 = vadd.f32 %v4440_v20, %v4439_v43 }
 0x59a   : > { %v4545_v25 = vsel %vm279_vm0, %v4493_v51, 0.0 }
 0x59b   : > { %v4546_v50 = vadd.f32 %v4545_v25, %v4544_v28 }
 0x5a0   : > { %v9168_v44 = vpop.f32.mrb[44].mxu1 }
 0x5a1   : > { %v4442_v30 = vsel %vm279_vm0, %v9168_v44, 0.0  ;;  %v4494_v18 = vmul.f32 %v9168_v44, %v9168_v44  ;;  %v4352_v34 = vpop.f32.mrb[45].mxu1 }
 0x5a2   : > { %v4443_v42 = vadd.f32 %v4442_v30, %v4441_v38 }
 0x5a3   : > { %v4547_v10 = vsel %vm279_vm0, %v4494_v18, 0.0 }
 0x5a4   : > { %v4548_v41 = vadd.f32 %v4547_v10, %v4546_v50  ;;  %v9175_v16 = vpop.f32.mrb[46].mxu1 }
 0x5a5   : > { %v4444_v1 = vsel %vm279_vm0, %v9175_v16, 0.0  ;;  %v4495_v49 = vmul.f32 %v9175_v16, %v9175_v16  ;;  %v4357_v35 = vpop.f32.mrb[47].mxu1 }
 0x5a6   : > { %v4445_v19 = vadd.f32 %v4444_v1, %v4443_v42 }
 0x5a7   : > { %v4549_v6 = vsel %vm279_vm0, %v4495_v49, 0.0 }
 0x5a8   : > { %v4550_v48 = vadd.f32 %v4549_v6, %v4548_v41 }
 0x5af   : > { %v9182_v32 = vpop.f32.mrb[48].mxu1 }
 0x5b0   : > { %v4446_v62 = vsel %vm279_vm0, %v9182_v32, 0.0  ;;  %v4496_v12 = vmul.f32 %v9182_v32, %v9182_v32  ;;  %v4362_v29 = vpop.f32.mrb[49].mxu1 }
 0x5b1   : > { %v4447_v58 = vadd.f32 %v4446_v62, %v4445_v19 }
 0x5b2   : > { %v4551_v37 = vsel %vm279_vm0, %v4496_v12, 0.0 }
 0x5b3   : > { %v4552_v45 = vadd.f32 %v4551_v37, %v4550_v48  ;;  %v9189_v47 = vpop.f32.mrb[50].mxu1 }
 0x5b4   : > { %v4448_v7 = vsel %vm279_vm0, %v9189_v47, 0.0  ;;  %v4497_v31 = vmul.f32 %v9189_v47, %v9189_v47  ;;  %v4367_v4 = vpop.f32.mrb[51].mxu1 }
 0x5b5   : > { %v4449_v22 = vadd.f32 %v4448_v7, %v4447_v58 }
 0x5b6   : > { %v4553_v13 = vsel %vm279_vm0, %v4497_v31, 0.0 }
 0x5b7   : > { %v4554_v8 = vadd.f32 %v4553_v13, %v4552_v45 }
 0x5bc   : > { %v9196_v15 = vpop.f32.mrb[52].mxu1 }
 0x5bd   : > { %v4450_v54 = vsel %vm279_vm0, %v9196_v15, 0.0  ;;  %v4498_v40 = vmul.f32 %v9196_v15, %v9196_v15  ;;  %v4372_v53 = vpop.f32.mrb[53].mxu1 }
 0x5be   : > { %v4451_v57 = vadd.f32 %v4450_v54, %v4449_v22 }
 0x5bf   : > { %v4555_v43 = vsel %vm279_vm0, %v4498_v40, 0.0 }
 0x5c0   : > { %v4556_v60 = vadd.f32 %v4555_v43, %v4554_v8  ;;  %v9203_v28 = vpop.f32.mrb[54].mxu1 }
 0x5c1   : > { %v4452_v20 = vsel %vm279_vm0, %v9203_v28, 0.0  ;;  %v4499_v51 = vmul.f32 %v9203_v28, %v9203_v28  ;;  %v4377_v11 = vpop.f32.mrb[55].mxu1 }
 0x5c2   : > { %v4453_v38 = vadd.f32 %v4452_v20, %v4451_v57 }
 0x5c3   : > { %v4557_v25 = vsel %vm279_vm0, %v4499_v51, 0.0 }
 0x5c4   : > { %v4558_v50 = vadd.f32 %v4557_v25, %v4556_v60 }
 0x5cb   : > { %v9210_v30 = vpop.f32.mrb[56].mxu1 }
 0x5cc   : > { %v4454_v18 = vsel %vm279_vm0, %v9210_v30, 0.0  ;;  %v4500_v34 = vmul.f32 %v9210_v30, %v9210_v30  ;;  %v4382_v42 = vpop.f32.mrb[57].mxu1 }
 0x5cd   : > { %v4455_v10 = vadd.f32 %v4454_v18, %v4453_v38 }
 0x5ce   : > { %v4559_v41 = vsel %vm279_vm0, %v4500_v34, 0.0 }
 0x5cf   : > { %v4560_v1 = vadd.f32 %v4559_v41, %v4558_v50  ;;  %v9217_v49 = vpop.f32.mrb[58].mxu1 }
 0x5d0   : > { %v4456_v35 = vsel %vm279_vm0, %v9217_v49, 0.0  ;;  %v4501_v19 = vmul.f32 %v9217_v49, %v9217_v49  ;;  %v4387_v6 = vpop.f32.mrb[59].mxu1 }
 0x5d1   : > { %v4457_v48 = vadd.f32 %v4456_v35, %v4455_v10 }
 0x5d2   : > { %v4561_v62 = vsel %vm279_vm0, %v4501_v19, 0.0 }
 0x5d3   : > { %v4562_v12 = vadd.f32 %v4561_v62, %v4560_v1 }
 0x5d6   : > { %v9224_v29 = vpop.f32.mrb[60].mxu1 }
 0x5d7   : > { %v4458_v58 = vsel %vm279_vm0, %v9224_v29, 0.0  ;;  %v4502_v37 = vmul.f32 %v9224_v29, %v9224_v29  ;;  %v4392_v45 = vpop.f32.mrb[61].mxu1 }
 0x5d8   : > { %v4459_v7 = vadd.f32 %v4458_v58, %v4457_v48 }
 0x5d9   : > { %v4563_v31 = vsel %vm279_vm0, %v4502_v37, 0.0 }
 0x5da   : > { %v9231_v4 = vpop.f32.mrb[62].mxu1  ;;  %v4564_v22 = vadd.f32 %v4563_v31, %v4562_v12 }
 0x5db   : > { %v4460_v13 = vsel %vm279_vm0, %v9231_v4, 0.0  ;;  %v4503_v8 = vmul.f32 %v9231_v4, %v9231_v4  ;;  %v4397_v54 = vpop.f32.mrb[63].mxu1 }
 0x5dc   : > { %v4461_v40 = vadd.f32 %v4460_v13, %v4459_v7 }
 0x5dd   : > { %v4565_v53 = vsel %vm279_vm0, %v4503_v8, 0.0 }
 0x5de   : > { %4462 = vadd.xlane.f32.xlu0 %v4461_v40  ;;  %v4566_v57 = vadd.f32 %v4565_v53, %v4564_v22 }
 0x5e0   : > { %4567 = vadd.xlane.f32.xlu1 %v4566_v57 }
 0x66b   : > { %v4463_v43 = vpop.xlane.xlu0 %4462 }
 0x66c   : > { %v4464_v60 = vrot.slane %v4463_v43, 4 }
 0x66d   : > { %v4568_v20 = vpop.xlane.xlu1 %4567 }
 0x66e   : > { %v4465_v51 = vadd.f32 %v4464_v60, %v4463_v43  ;;  %v4569_v11 = vrot.slane %v4568_v20, 4 }
 0x670   : > { %v4466_v38 = vrot.slane %v4465_v51, 2  ;;  %v4570_v25 = vadd.f32 %v4569_v11, %v4568_v20  ;;  %v4665_v20 = vld [vmem:[%s10320_s5 + $0x80] sm:$0xff] }
 0x672   : > { %v4571_v50 = vrot.slane %v4570_v25, 2  ;;  %v4467_v18 = vadd.f32 %v4466_v38, %v4465_v51  ;;  %v4667_v51 = vld [vmem:[%s10320_s5 + $0x90] sm:$0xff] }
 0x674   : > { %v4468_v34 = vrot.slane %v4467_v18, 1  ;;  %v4572_v42 = vadd.f32 %v4571_v50, %v4570_v25 }
 0x676   : > { %v4469_v10 = vadd.f32 %v4468_v34, %v4467_v18  ;;  %v4573_v41 = vrot.slane %v4572_v42, 1  ;;  %v4729_v18 = vld [vmem:[%s10321_s6 + $0x80] sm:$0xff]  ;;  %v4731_v34 = vld [vmem:[%s10321_s6 + $0x90] sm:$0xff] }
 0x678   : > { %5679 = vpush %v4469_v10  ;;  %v4574_v1 = vadd.f32 %v4573_v41, %v4572_v42  ;;  %v4669_v42 = vld [vmem:[%s10320_s5 + $0xa0] sm:$0xff]  ;;  %v4671_v10 = vld [vmem:[%s10320_s5 + $0xb0] sm:$0xff] }
 0x679   : > { %v4673_v41 = vld [vmem:[%s10320_s5 + $0xc0] sm:$0xff] }
 0x67a   : > { %5681 = vpush %v4574_v1 }
 0x6a9   : > { %s5680_s16 = spop %5679 }
 0x6aa   : > { %s4471_s17 = smul.f32 0.00024414063, %s5680_s16 }
 0x6ab   : > { %s5682_s22 = spop %5681 }
 0x6ac   : > { %s4577_s26 = smul.f32 %s4471_s17, %s4471_s17  ;;  %v9238_v35 = vstv %s4471_s17 }
 0x6ad   : > { %v4584_v19 = vsub.f32 %v9014_v3, %v9238_v35  ;;  %v4585_v6 = vsub.f32 %v9018_v56, %v9238_v35  ;;  %v4586_v48 = vsub.f32 %v9028_v46, %v9238_v35  ;;  %v4587_v62 = vsub.f32 %v9035_v9, %v9238_v35  ;;  %s4576_s27 = smul.f32 0.00024414063, %s5682_s22 }
 0x6ae   : > { %v4588_v12 = vsub.f32 %v9042_v55, %v9238_v35  ;;  %v4589_v58 = vsub.f32 %v9049_v14, %v9238_v35  ;;  %v4590_v37 = vsub.f32 %v9056_v33, %v9238_v35  ;;  %v4591_v3 = vsub.f32 %v9063_v26, %v9238_v35 }
 0x6af   : > { %v4592_v56 = vsub.f32 %v9070_v36, %v9238_v35  ;;  %v4593_v46 = vsub.f32 %v9077_v52, %v9238_v35  ;;  %v4594_v9 = vsub.f32 %v9084_v27, %v9238_v35  ;;  %v4595_v55 = vsub.f32 %v9091_v2, %v9238_v35  ;;  %s4578_s28 = ssub.f32 %s4576_s27, %s4577_s26 }
 0x6b0   : > { %v4596_v14 = vsub.f32 %v9098_v5, %v9238_v35  ;;  %v4597_v33 = vsub.f32 %v9105_v23, %v9238_v35  ;;  %v4598_v26 = vsub.f32 %v9112_v0, %v9238_v35  ;;  %v4599_v36 = vsub.f32 %v9119_v39, %v9238_v35 }
 0x6b1   : > { %v4600_v52 = vsub.f32 %v9126_v59, %v9238_v35  ;;  %v4601_v27 = vsub.f32 %v9133_v63, %v9238_v35  ;;  %v4602_v2 = vsub.f32 %v9140_v21, %v9238_v35  ;;  %v4603_v5 = vsub.f32 %v9147_v61, %v9238_v35  ;;  %s4579_s29 = sadd.f32 1e-05, %s4578_s28 }
 0x6b2   : > { %v4604_v23 = vsub.f32 %v9154_v17, %v9238_v35  ;;  %v4605_v0 = vsub.f32 %v9161_v24, %v9238_v35  ;;  %v4606_v39 = vsub.f32 %v9168_v44, %v9238_v35  ;;  %v4607_v59 = vsub.f32 %v9175_v16, %v9238_v35 }
 0x6b3   : > { %v4608_v63 = vsub.f32 %v9182_v32, %v9238_v35  ;;  %v4609_v21 = vsub.f32 %v9189_v47, %v9238_v35  ;;  %v4610_v61 = vsub.f32 %v9196_v15, %v9238_v35  ;;  %v4611_v17 = vsub.f32 %v9203_v28, %v9238_v35  ;;  %v4803_v32 = vld [vmem:[%s7108_s18 + $0xd0] sm:$0xff] }
 0x6b4   : > { %v4612_v24 = vsub.f32 %v9210_v30, %v9238_v35  ;;  %v4613_v44 = vsub.f32 %v9217_v49, %v9238_v35  ;;  %v4614_v16 = vsub.f32 %v9224_v29, %v9238_v35  ;;  %v4580_v45 = vstv %s4579_s29 }
 0x6b5   : > { %6794 = vrsqrt.f32 %v4580_v45 }
 0x6bf   : > { %v6795_v47 = vpop.eup %6794 }
 0x6c0   : > { %5683 = vpush %v6795_v47 }
 0x6f1   : > { %s5684_s8 = spop %5683 }
 0x6f2   : > { %v9304_v15 = vstv %s5684_s8 }
 0x6f3   : > { %v9307_v28 = vmul.f32 %v9304_v15, %v4584_v19  ;;  %v9310_v30 = vmul.f32 %v9304_v15, %v4585_v6  ;;  %v9313_v49 = vmul.f32 %v9304_v15, %v4586_v48  ;;  %v9316_v29 = vmul.f32 %v9304_v15, %v4587_v62  ;;  %v4675_v62 = vld [vmem:[%s10320_s5 + $0xd0] sm:$0xff] }
 0x6f4   : > { %v9319_v7 = vmul.f32 %v9304_v15, %v4588_v12  ;;  %v9322_v31 = vmul.f32 %v9304_v15, %v4589_v58  ;;  %v9325_v22 = vmul.f32 %v9304_v15, %v4590_v37  ;;  %v9328_v13 = vmul.f32 %v9304_v15, %v4591_v3  ;;  %v4677_v12 = vld [vmem:[%s10320_s5 + $0xe0] sm:$0xff]  ;;  %v4679_v58 = vld [vmem:[%s10320_s5 + $0xf0] sm:$0xff] }
 0x6f5   : > { %v9331_v8 = vmul.f32 %v9304_v15, %v4592_v56  ;;  %v9334_v54 = vmul.f32 %v9304_v15, %v4593_v46  ;;  %v9337_v40 = vmul.f32 %v9304_v15, %v4594_v9  ;;  %v9340_v53 = vmul.f32 %v9304_v15, %v4595_v55  ;;  %v4793_v9 = vld [vmem:[%s7108_s18 + $0x80] sm:$0xff]  ;;  %v4795_v55 = vld [vmem:[%s7108_s18 + $0x90] sm:$0xff] }
 0x6f6   : > { %v9343_v57 = vmul.f32 %v9304_v15, %v4596_v14  ;;  %v9346_v43 = vmul.f32 %v9304_v15, %v4597_v33  ;;  %v9349_v60 = vmul.f32 %v9304_v15, %v4598_v26  ;;  %v9358_v11 = vmul.f32 %v9304_v15, %v4599_v36  ;;  %v4733_v14 = vld [vmem:[%s10321_s6 + $0xa0] sm:$0xff]  ;;  %v4735_v33 = vld [vmem:[%s10321_s6 + $0xb0] sm:$0xff] }
 0x6f7   : > { %v4633_v38 = vmul.f32 %v9304_v15, %v4600_v52  ;;  %v9362_v25 = vmul.f32 %v9304_v15, %v4601_v27  ;;  %v4635_v50 = vmul.f32 %v9304_v15, %v4602_v2  ;;  %v9381_v1 = vmul.f32 %v9304_v15, %v4603_v5  ;;  %v4737_v26 = vld [vmem:[%s10321_s6 + $0xc0] sm:$0xff]  ;;  %v4739_v5 = vld [vmem:[%s10321_s6 + $0xd0] sm:$0xff] }
 0x6f8   : > { %v4637_v19 = vmul.f32 %v9304_v15, %v4604_v23  ;;  %v9385_v6 = vmul.f32 %v9304_v15, %v4605_v0  ;;  %v4639_v48 = vmul.f32 %v9304_v15, %v4606_v39  ;;  %v9398_v37 = vmul.f32 %v9304_v15, %v4607_v59  ;;  %v4741_v23 = vld [vmem:[%s10321_s6 + $0xe0] sm:$0xff]  ;;  %v4743_v0 = vld [vmem:[%s10321_s6 + $0xf0] sm:$0xff] }
 0x6f9   : > { %10323 = vst [vmem:[#allocation4_spill] sm:$0xff] %v9381_v1  ;;  %v4641_v3 = vmul.f32 %v9304_v15, %v4608_v63  ;;  %v9402_v56 = vmul.f32 %v9304_v15, %v4609_v21  ;;  %v4643_v46 = vmul.f32 %v9304_v15, %v4610_v61  ;;  %v9417_v36 = vmul.f32 %v9304_v15, %v4611_v17  ;;  %v4797_v61 = vld [vmem:[%s7108_s18 + $0xa0] sm:$0xff]  ;;  %v4799_v17 = vld [vmem:[%s7108_s18 + $0xb0] sm:$0xff] }
 0x6fa   : > { %10324 = vst [vmem:[#allocation5_spill] sm:$0xff] %v9385_v6  ;;  %10325 = vst [vmem:[#allocation6_spill] sm:$0xff] %v9398_v37  ;;  %v4645_v52 = vmul.f32 %v9304_v15, %v4612_v24  ;;  %v9421_v27 = vmul.f32 %v9304_v15, %v4613_v44  ;;  %v4647_v2 = vmul.f32 %v9304_v15, %v4614_v16  ;;  %v4801_v24 = vld [vmem:[%s7108_s18 + $0xc0] sm:$0xff] }
 0x6fb   : > { %10326 = vst [vmem:[#allocation7_spill] sm:$0xff] %v9402_v56  ;;  %10327 = vst [vmem:[#allocation8_spill] sm:$0xff] %v9417_v36  ;;  %v4697_v39 = vmul.f32 %v4665_v20, %v4633_v38  ;;  %v4699_v59 = vmul.f32 %v4667_v51, %v4635_v50  ;;  %v4701_v63 = vmul.f32 %v4669_v42, %v4637_v19  ;;  %v4807_v36 = vld [vmem:[%s7108_s18 + $0xf0] sm:$0xff] }
 0x6fc   : > { %10328 = vst [vmem:[#allocation9_spill] sm:$0xff] %v9421_v27  ;;  %v4703_v21 = vmul.f32 %v4671_v10, %v4639_v48  ;;  %v4705_v44 = vmul.f32 %v4673_v41, %v4641_v3  ;;  %v4707_v16 = vmul.f32 %v4675_v62, %v4643_v46  ;;  %v4709_v45 = vmul.f32 %v4677_v12, %v4645_v52  ;;  %v4805_v27 = vld [vmem:[%s7108_s18 + $0xe0] sm:$0xff]  ;;  %v4652_v46 = vld [vmem:[%s10320_s5 + $0x18] sm:$0xff] }
 0x6fd   : > { %v4711_v47 = vmul.f32 %v4679_v58, %v4647_v2  ;;  %v4761_v56 = vadd.f32 %v4729_v18, %v4697_v39  ;;  %v4763_v37 = vadd.f32 %v4731_v34, %v4699_v59  ;;  %v4765_v6 = vadd.f32 %v4733_v14, %v4701_v63  ;;  %v4649_v18 = vld [vmem:[%s10320_s5] sm:$0xff]  ;;  %v4650_v34 = vld [vmem:[%s10320_s5 + $0x8] sm:$0xff]  ;;  %v4656_v2 = vld [vmem:[%s10320_s5 + $0x38] sm:$0xff] }
 0x6fe   : > { %v4767_v1 = vadd.f32 %v4735_v33, %v4703_v21  ;;  %v4769_v20 = vadd.f32 %v4737_v26, %v4705_v44  ;;  %v4771_v51 = vadd.f32 %v4739_v5, %v4707_v16  ;;  %v4773_v38 = vadd.f32 %v4741_v23, %v4709_v45  ;;  %v4654_v14 = vld [vmem:[%s10320_s5 + $0x28] sm:$0xff]  ;;  %v4657_v5 = vld [vmem:[%s10320_s5 + $0x40] sm:$0xff]  ;;  %v4659_v21 = vld [vmem:[%s10320_s5 + $0x50] sm:$0xff] }
 0x6ff   : > { %v4775_v50 = vadd.f32 %v4743_v0, %v4711_v47  ;;  %v4825_v42 = vadd.f32 %v4793_v9, %v4761_v56  ;;  %v4827_v10 = vadd.f32 %v4795_v55, %v4763_v37  ;;  %v4829_v41 = vadd.f32 %v4797_v61, %v4765_v6  ;;  %v4651_v56 = vld [vmem:[%s10320_s5 + $0x10] sm:$0xff]  ;;  %v4653_v55 = vld [vmem:[%s10320_s5 + $0x20] sm:$0xff]  ;;  %v4658_v63 = vld [vmem:[%s10320_s5 + $0x48] sm:$0xff] }
 0x700   : > { %v4831_v19 = vadd.f32 %v4799_v17, %v4767_v1  ;;  %v4833_v48 = vadd.f32 %v4801_v24, %v4769_v20  ;;  %v4835_v62 = vadd.f32 %v4803_v32, %v4771_v51  ;;  %v4837_v12 = vadd.f32 %v4805_v27, %v4773_v38  ;;  %v4655_v27 = vld [vmem:[%s10320_s5 + $0x30] sm:$0xff]  ;;  %v4660_v61 = vld [vmem:[%s10320_s5 + $0x58] sm:$0xff]  ;;  %v4661_v16 = vld [vmem:[%s10320_s5 + $0x60] sm:$0xff] }
 0x701   : > { %v4839_v58 = vadd.f32 %v4807_v36, %v4775_v50  ;;  %v10329_v3 = vsub.f32 %v9231_v4, %v9238_v35  ;;  %v9451_v1 = vmax.f32 %v4825_v42, 0.0  ;;  %v9453_v32 = vmax.f32 %v4829_v41, 0.0  ;;  %v4662_v45 = vld [vmem:[%s10320_s5 + $0x68] sm:$0xff]  ;;  %v4663_v47 = vld [vmem:[%s10320_s5 + $0x70] sm:$0xff]  ;;  %v4713_v38 = vld [vmem:[%s10321_s6] sm:$0xff] }
 0x702   : > { %v9455_v37 = vmax.f32 %v4831_v19, 0.0  ;;  %v9463_v9 = vmax.f32 %v4833_v48, 0.0  ;;  %v9465_v4 = vmax.f32 %v4835_v62, 0.0  ;;  %v9467_v35 = vmax.f32 %v4837_v12, 0.0  ;;  %v4715_v50 = vld [vmem:[%s10321_s6 + $0x10] sm:$0xff]  ;;  %v4670_v48 = vld [vmem:[%s10320_s5 + $0xa8] sm:$0xff] }
 0x703   : > { %v9449_v6 = vmul.f32 %v9304_v15, %v10329_v3  ;;  %v9469_v15 = vmax.f32 %v4839_v58, 0.0  ;;  %v9477_v33 = vmax.f32 %v4827_v10, 0.0  ;;  %v4942_v26 = vrot.slane %v9451_v1, 1  ;;  %v4672_v62 = vld [vmem:[%s10320_s5 + $0xb8] sm:$0xff]  ;;  %v4674_v12 = vld [vmem:[%s10320_s5 + $0xc8] sm:$0xff]  ;;  %v4717_v3 = vld [vmem:[%s10321_s6 + $0x20] sm:$0xff] }
 0x704   : > { %v4944_v36 = vrot.slane %v9453_v32, 7  ;;  %v4946_v52 = vrot.slane %v9455_v37, 6  ;;  %v4948_v23 = vrot.slane %v9463_v9, 5  ;;  %v4950_v0 = vrot.slane %v9465_v4, 4 }
 0x705   : > { %v4952_v39 = vrot.slane %v9467_v35, 3  ;;  %v4681_v59 = vmul.f32 %v4649_v18, %v9307_v28  ;;  %v4943_v17 = vsel %vm4890_vm8, %v9477_v33, %v4942_v26  ;;  %v4954_v24 = vrot.slane %v9469_v15, 2  ;;  %v4777_v18 = vld [vmem:[%s7108_s18] sm:$0xff] }
 0x706   : > { %v9508_v44 = vmul.f32 %v4650_v34, %v9310_v30  ;;  %v4683_v28 = vmul.f32 %v4651_v56, %v9313_v49  ;;  %v4945_v20 = vsel %vm4893_vm9, %v4944_v36, %v4943_v17  ;;  %v9522_v51 = vmul.f32 %v4652_v46, %v9316_v29  ;;  %v4664_v29 = vld [vmem:[%s10320_s5 + $0x78] sm:$0xff]  ;;  %v4779_v34 = vld [vmem:[%s7108_s18 + $0x10] sm:$0xff]  ;;  %v4721_v26 = vld [vmem:[%s10321_s6 + $0x40] sm:$0xff] }
 0x707   : > { %v4685_v30 = vmul.f32 %v4653_v55, %v9319_v7  ;;  %v9526_v49 = vmul.f32 %v4654_v14, %v9322_v31  ;;  %v4666_v7 = vld [vmem:[%s10320_s5 + $0x88] sm:$0xff]  ;;  %v4668_v31 = vld [vmem:[%s10320_s5 + $0x98] sm:$0xff]  ;;  %v4947_v42 = vsel %vm4896_vm10, %v4946_v52, %v4945_v20  ;;  %v4687_v10 = vmul.f32 %v4655_v27, %v9325_v22  ;;  %v4719_v14 = vld [vmem:[%s10321_s6 + $0x30] sm:$0xff] }
 0x708   : > { %v9546_v41 = vmul.f32 %v4656_v2, %v9328_v13  ;;  %v4689_v19 = vmul.f32 %v4657_v5, %v9331_v8  ;;  %v4949_v58 = vsel %vm4899_vm11, %v4948_v23, %v4947_v42  ;;  %v9560_v22 = vmul.f32 %v4658_v63, %v9334_v54  ;;  %v4676_v56 = vld [vmem:[%s10320_s5 + $0xd8] sm:$0xff]  ;;  %v4678_v54 = vld [vmem:[%s10320_s5 + $0xe8] sm:$0xff]  ;;  %v10330_v52 = vld [vmem:[#allocation4_spill] sm:$0xff] }
 0x709   : > { %v4691_v13 = vmul.f32 %v4659_v21, %v9337_v40  ;;  %v9564_v8 = vmul.f32 %v4660_v61, %v9340_v53  ;;  %v4951_v40 = vsel %vm4902_vm12, %v4950_v0, %v4949_v58  ;;  %v4693_v53 = vmul.f32 %v4661_v16, %v9343_v57  ;;  %v4723_v57 = vld [vmem:[%s10321_s6 + $0x50] sm:$0xff]  ;;  %v4781_v2 = vld [vmem:[%s7108_s18 + $0x20] sm:$0xff]  ;;  %v10331_v0 = vld [vmem:[#allocation5_spill] sm:$0xff] }
 0x70a   : > { %v9580_v46 = vmul.f32 %v4662_v45, %v9346_v43  ;;  %v4695_v55 = vmul.f32 %v4663_v47, %v9349_v60  ;;  %v4953_v43 = vsel %vm4905_vm13, %v4952_v39, %v4951_v40  ;;  %v9594_v36 = vmul.f32 %v4664_v29, %v9358_v11  ;;  %v4725_v5 = vld [vmem:[%s10321_s6 + $0x60] sm:$0xff]  ;;  %v4727_v23 = vld [vmem:[%s10321_s6 + $0x70] sm:$0xff]  ;;  %v10333_v21 = vld [vmem:[#allocation7_spill] sm:$0xff] }
 0x70b   : > { %v9597_v60 = vmul.f32 %v4666_v7, %v9362_v25  ;;  %v9600_v27 = vmul.f32 %v4668_v31, %v10330_v52  ;;  %v4955_v11 = vsel %vm4908_vm14, %v4954_v24, %v4953_v43  ;;  %v9611_v39 = vmul.f32 %v4670_v48, %v10331_v0  ;;  %v10332_v25 = vld [vmem:[#allocation6_spill] sm:$0xff]  ;;  %v4785_v16 = vld [vmem:[%s7108_s18 + $0x40] sm:$0xff]  ;;  %v10335_v29 = vld [vmem:[#allocation9_spill] sm:$0xff] }
 0x70c   : > { %v9614_v63 = vmul.f32 %v4672_v62, %v10332_v25  ;;  %v9617_v61 = vmul.f32 %v4674_v12, %v10333_v21  ;;  %v4783_v17 = vld [vmem:[%s7108_s18 + $0x30] sm:$0xff]  ;;  %4958 = vrot.lane.b32.xlu1 %v4955_v11, %s6806_s23  ;;  %v10334_v47 = vld [vmem:[#allocation8_spill] sm:$0xff]  ;;  %v9627_v7 = vmul.f32 %v4678_v54, %v10335_v29  ;;  %v4745_v24 = vadd.f32 %v4713_v38, %v4681_v59  ;;  %v4680_v62 = vld [vmem:[%s10320_s5 + $0xf8] sm:$0xff] }
 0x70d   : > { %v4787_v45 = vld [vmem:[%s7108_s18 + $0x50] sm:$0xff]  ;;  %v9624_v20 = vmul.f32 %v4676_v56, %v10334_v47  ;;  %v4747_v31 = vadd.f32 %v4715_v50, %v4683_v28  ;;  %v4789_v42 = vld [vmem:[%s7108_s18 + $0x60] sm:$0xff]  ;;  %v4749_v12 = vadd.f32 %v4717_v3, %v4685_v30  ;;  %v4751_v58 = vadd.f32 %v4719_v14, %v4687_v10  ;;  %v4714_v59 = vld [vmem:[%s10321_s6 + $0x8] sm:$0xff] }
 0x70e   : > { %v4791_v48 = vld [vmem:[%s7108_s18 + $0x70] sm:$0xff]  ;;  %v4753_v40 = vadd.f32 %v4721_v26, %v4689_v19  ;;  %v4755_v43 = vadd.f32 %v4723_v57, %v4691_v13  ;;  %v4757_v52 = vadd.f32 %v4725_v5, %v4693_v53  ;;  %v4759_v11 = vadd.f32 %v4727_v23, %v4695_v55  ;;  %v4716_v10 = vld [vmem:[%s10321_s6 + $0x18] sm:$0xff]  ;;  %v4718_v19 = vld [vmem:[%s10321_s6 + $0x28] sm:$0xff] }
 0x70f   : > { %v4809_v0 = vadd.f32 %v4777_v18, %v4745_v24  ;;  %v4811_v56 = vadd.f32 %v4779_v34, %v4747_v31  ;;  %v4813_v25 = vadd.f32 %v4781_v2, %v4749_v12  ;;  %v4815_v21 = vadd.f32 %v4783_v17, %v4751_v58  ;;  %v4720_v3 = vld [vmem:[%s10321_s6 + $0x38] sm:$0xff]  ;;  %v4722_v53 = vld [vmem:[%s10321_s6 + $0x48] sm:$0xff] }
 0x710   : > { %v4817_v54 = vadd.f32 %v4785_v16, %v4753_v40  ;;  %v4819_v47 = vadd.f32 %v4787_v45, %v4755_v43  ;;  %v4712_v28 = vmul.f32 %v4680_v62, %v9449_v6  ;;  %v4821_v38 = vadd.f32 %v4789_v42, %v4757_v52  ;;  %v4724_v2 = vld [vmem:[%s10321_s6 + $0x58] sm:$0xff]  ;;  %v4726_v5 = vld [vmem:[%s10321_s6 + $0x68] sm:$0xff] }
 0x711   : > { %v4823_v50 = vadd.f32 %v4791_v48, %v4759_v11  ;;  %v9638_v30 = vmax.f32 %v4809_v0, 0.0  ;;  %v9646_v13 = vmax.f32 %v4813_v25, 0.0  ;;  %v9648_v18 = vmax.f32 %v4815_v21, 0.0  ;;  %v4730_v23 = vld [vmem:[%s10321_s6 + $0x88] sm:$0xff]  ;;  %v4732_v31 = vld [vmem:[%s10321_s6 + $0x98] sm:$0xff] }
 0x712   : > { %v9650_v34 = vmax.f32 %v4817_v54, 0.0  ;;  %v9652_v6 = vmax.f32 %v4819_v47, 0.0  ;;  %v9660_v55 = vmax.f32 %v4811_v56, 0.0  ;;  %v9662_v14 = vmax.f32 %v4821_v38, 0.0  ;;  %v4794_v24 = vld [vmem:[%s7108_s18 + $0x88] sm:$0xff]  ;;  %v4736_v58 = vld [vmem:[%s10321_s6 + $0xb8] sm:$0xff] }
 0x713   : > { %v9664_v26 = vmax.f32 %v4823_v50, 0.0  ;;  %v4928_v57 = vrot.slane %v9638_v30, 1  ;;  %v4930_v17 = vrot.slane %v9646_v13, 7  ;;  %v4932_v16 = vrot.slane %v9648_v18, 6  ;;  %v4734_v42 = vld [vmem:[%s10321_s6 + $0xa8] sm:$0xff]  ;;  %v4740_v43 = vld [vmem:[%s10321_s6 + $0xd8] sm:$0xff] }
 0x714   : > { %v4934_v45 = vrot.slane %v9650_v34, 5  ;;  %v9680_v29 = vadd.f32 %v4714_v59, %v9508_v44  ;;  %v4936_v62 = vrot.slane %v9652_v6, 4  ;;  %v4938_v12 = vrot.slane %v9662_v14, 3  ;;  %v4738_v40 = vld [vmem:[%s10321_s6 + $0xc8] sm:$0xff]  ;;  %v4796_v25 = vld [vmem:[%s7108_s18 + $0x98] sm:$0xff] }
 0x715   : > { %v4929_v48 = vsel %vm4890_vm8, %v9660_v55, %v4928_v57  ;;  %v4940_v44 = vrot.slane %v9664_v26, 2  ;;  %v9705_v11 = vadd.f32 %v4716_v10, %v9522_v51  ;;  %v9708_v0 = vadd.f32 %v4718_v19, %v9526_v49  ;;  %v4742_v21 = vld [vmem:[%s10321_s6 + $0xe8] sm:$0xff]  ;;  %v4744_v54 = vld [vmem:[%s10321_s6 + $0xf8] sm:$0xff] }
 0x716   : > { %v4931_v52 = vsel %vm4893_vm9, %v4930_v17, %v4929_v48  ;;  %v9711_v56 = vadd.f32 %v4720_v3, %v9546_v41  ;;  %v4754_v49 = vadd.f32 %v4722_v53, %v9560_v22  ;;  %v4756_v47 = vadd.f32 %v4724_v2, %v9564_v8  ;;  %v4798_v59 = vld [vmem:[%s7108_s18 + $0xa8] sm:$0xff]  ;;  %v4800_v38 = vld [vmem:[%s7108_s18 + $0xb8] sm:$0xff] }
 0x717   : > { %v4933_v51 = vsel %vm4896_vm10, %v4932_v16, %v4931_v52  ;;  %v4758_v41 = vadd.f32 %v4726_v5, %v9580_v46  ;;  %v4802_v50 = vld [vmem:[%s7108_s18 + $0xc8] sm:$0xff]  ;;  %v4762_v19 = vadd.f32 %v4730_v23, %v9597_v60  ;;  %v4764_v3 = vadd.f32 %v4732_v31, %v9600_v27  ;;  %v4804_v17 = vld [vmem:[%s7108_s18 + $0xd8] sm:$0xff] }
 0x718   : > { %v4935_v10 = vsel %vm4899_vm11, %v4934_v45, %v4933_v51  ;;  %v4766_v57 = vadd.f32 %v4734_v42, %v9611_v39  ;;  %v4806_v16 = vld [vmem:[%s7108_s18 + $0xe8] sm:$0xff]  ;;  %v4808_v48 = vld [vmem:[%s7108_s18 + $0xf8] sm:$0xff]  ;;  %v4768_v8 = vadd.f32 %v4736_v58, %v9614_v63  ;;  %v4770_v46 = vadd.f32 %v4738_v40, %v9617_v61 }
 0x719   : > { %v4937_v22 = vsel %vm4902_vm12, %v4936_v62, %v4935_v10  ;;  %v4772_v53 = vadd.f32 %v4740_v43, %v9624_v20  ;;  %v4728_v60 = vld [vmem:[%s10321_s6 + $0x78] sm:$0xff]  ;;  %v4774_v39 = vadd.f32 %v4742_v21, %v9627_v7  ;;  %v4776_v2 = vadd.f32 %v4744_v54, %v4712_v28  ;;  %v4778_v31 = vld [vmem:[%s7108_s18 + $0x8] sm:$0xff] }
 0x71a   : > { %v4939_v27 = vsel %vm4905_vm13, %v4938_v12, %v4937_v22  ;;  %v4826_v5 = vadd.f32 %v4794_v24, %v4762_v19  ;;  %v4828_v63 = vadd.f32 %v4796_v25, %v4764_v3  ;;  %v4830_v45 = vadd.f32 %v4798_v59, %v4766_v57  ;;  %v4780_v7 = vld [vmem:[%s7108_s18 + $0x18] sm:$0xff]  ;;  %v4782_v40 = vld [vmem:[%s7108_s18 + $0x28] sm:$0xff] }
 0x71b   : > { %v4941_v23 = vsel %vm4908_vm14, %v4940_v44, %v4939_v27  ;;  %v4832_v61 = vadd.f32 %v4800_v38, %v4768_v8  ;;  %v4834_v20 = vadd.f32 %v4802_v50, %v4770_v46  ;;  %v4836_v42 = vadd.f32 %v4804_v17, %v4772_v53  ;;  %v4784_v43 = vld [vmem:[%s7108_s18 + $0x38] sm:$0xff]  ;;  %v4786_v51 = vld [vmem:[%s7108_s18 + $0x48] sm:$0xff] }
 0x71c   : > { %4956 = vrot.lane.b32.xlu0 %v4941_v23, %s6806_s23  ;;  %v4838_v62 = vadd.f32 %v4806_v16, %v4774_v39  ;;  %v4840_v12 = vadd.f32 %v4808_v48, %v4776_v2  ;;  %v4760_v28 = vadd.f32 %v4728_v60, %v9594_v36  ;;  %v9748_v24 = vmax.f32 %v4826_v5, 0.0  ;;  %v4788_v59 = vld [vmem:[%s7108_s18 + $0x58] sm:$0xff]  ;;  %v4790_v36 = vld [vmem:[%s7108_s18 + $0x68] sm:$0xff] }
 0x71d   : > { %v9750_v44 = vmax.f32 %v4830_v45, 0.0  ;;  %v9752_v58 = vmax.f32 %v4832_v61, 0.0  ;;  %v9756_v52 = vmax.f32 %v4828_v63, 0.0  ;;  %v9758_v25 = vmax.f32 %v4834_v20, 0.0  ;;  %v4792_v3 = vld [vmem:[%s7108_s18 + $0x78] sm:$0xff]  ;;  %s5618_s18 = sshll.u32 %s10337_s25, 5 }
 0x71e   : > { %v9760_v21 = vmax.f32 %v4836_v42, 0.0  ;;  %v9762_v54 = vmax.f32 %v4838_v62, 0.0  ;;  %v9767_v38 = vmax.f32 %v4840_v12, 0.0  ;;  %v5249_v50 = vrot.slane %v9748_v24, 1 }
 0x71f   : > { %v5251_v10 = vrot.slane %v9750_v44, 7  ;;  %v4810_v19 = vadd.f32 %v4778_v31, %v9680_v29  ;;  %v5253_v57 = vrot.slane %v9752_v58, 6  ;;  %v5255_v17 = vrot.slane %v9758_v25, 5 }
 0x720   : > { %v5257_v16 = vrot.slane %v9760_v21, 4  ;;  %v5259_v48 = vrot.slane %v9762_v54, 3  ;;  %v5250_v22 = vsel %vm4890_vm8, %v9756_v52, %v5249_v50  ;;  %v4812_v8 = vadd.f32 %v4780_v7, %v9705_v11 }
 0x721   : > { %v4814_v46 = vadd.f32 %v4782_v40, %v9708_v0  ;;  %v4816_v53 = vadd.f32 %v4784_v43, %v9711_v56  ;;  %v5252_v29 = vsel %vm4893_vm9, %v5251_v10, %v5250_v22  ;;  %v4818_v60 = vadd.f32 %v4786_v51, %v4754_v49 }
 0x722   : > { %v4820_v27 = vadd.f32 %v4788_v59, %v4756_v47  ;;  %v4822_v39 = vadd.f32 %v4790_v36, %v4758_v41  ;;  %v5254_v2 = vsel %vm4896_vm10, %v5253_v57, %v5252_v29  ;;  %v5261_v5 = vrot.slane %v9767_v38, 2 }
 0x723   : > { %v4824_v23 = vadd.f32 %v4792_v3, %v4760_v28  ;;  %v9785_v63 = vmax.f32 %v4810_v19, 0.0  ;;  %v5256_v45 = vsel %vm4899_vm11, %v5255_v17, %v5254_v2  ;;  %v9788_v61 = vmax.f32 %v4814_v46, 0.0 }
 0x724   : > { %v9790_v11 = vmax.f32 %v4816_v53, 0.0  ;;  %v9792_v0 = vmax.f32 %v4818_v60, 0.0  ;;  %v5258_v56 = vsel %vm4902_vm12, %v5257_v16, %v5256_v45  ;;  %v9795_v49 = vmax.f32 %v4820_v27, 0.0 }
 0x725   : > { %v9797_v47 = vmax.f32 %v4822_v39, 0.0  ;;  %v9799_v41 = vmax.f32 %v4824_v23, 0.0  ;;  %v5260_v31 = vsel %vm4905_vm13, %v5259_v48, %v5258_v56  ;;  %v9802_v20 = vmax.f32 %v4812_v8, 0.0 }
 0x726   : > { %v5235_v42 = vrot.slane %v9785_v63, 1  ;;  %v5237_v62 = vrot.slane %v9788_v61, 7  ;;  %v5262_v12 = vsel %vm4908_vm14, %v5261_v5, %v5260_v31  ;;  %v5239_v7 = vrot.slane %v9790_v11, 6 }
 0x727   : > { %v5241_v28 = vrot.slane %v9792_v0, 5  ;;  %v5243_v40 = vrot.slane %v9795_v49, 4  ;;  %5265 = vrot.lane.b32.xlu1 %v5262_v12, %s6806_s23  ;;  %v5245_v51 = vrot.slane %v9797_v47, 3  ;;  %v4979_v59 = vrot.slane %v9451_v1, 2 }
 0x728   : > { %v5236_v43 = vsel %vm4890_vm8, %v9802_v20, %v5235_v42  ;;  %v4980_v36 = vrot.slane %v9477_v33, 1  ;;  %v5247_v10 = vrot.slane %v9799_v41, 2  ;;  %v4983_v19 = vrot.slane %v9455_v37, 7 }
 0x729   : > { %v5238_v50 = vsel %vm4893_vm9, %v5237_v62, %v5236_v43  ;;  %v4985_v3 = vrot.slane %v9463_v9, 6  ;;  %v4987_v16 = vrot.slane %v9465_v4, 5  ;;  %v4989_v48 = vrot.slane %v9467_v35, 4 }
 0x72a   : > { %v5240_v57 = vsel %vm4896_vm10, %v5239_v7, %v5238_v50  ;;  %v4981_v17 = vsel %vm4890_vm8, %v4980_v36, %v4979_v59  ;;  %v4965_v46 = vrot.slane %v9638_v30, 2  ;;  %v4966_v53 = vrot.slane %v9660_v55, 1 }
 0x72b   : > { %v5242_v22 = vsel %vm4899_vm11, %v5241_v28, %v5240_v57  ;;  %v4982_v8 = vsel %vm4893_vm9, %v9453_v32, %v4981_v17  ;;  %v4991_v27 = vrot.slane %v9469_v15, 3  ;;  %v4969_v39 = vrot.slane %v9648_v18, 7 }
 0x72c   : > { %v5244_v29 = vsel %vm4902_vm12, %v5243_v40, %v5242_v22  ;;  %v4984_v60 = vsel %vm4896_vm10, %v4983_v19, %v4982_v8  ;;  %v4967_v23 = vsel %vm4890_vm8, %v4966_v53, %v4965_v46  ;;  %v4971_v45 = vrot.slane %v9650_v34, 6 }
 0x72d   : > { %v5246_v2 = vsel %vm4905_vm13, %v5245_v51, %v5244_v29  ;;  %v4986_v5 = vsel %vm4899_vm11, %v4985_v3, %v4984_v60  ;;  %v4968_v42 = vsel %vm4893_vm9, %v9646_v13, %v4967_v23  ;;  %v4973_v62 = vrot.slane %v9652_v6, 5 }
 0x72e   : > { %v5248_v56 = vsel %vm4908_vm14, %v5247_v10, %v5246_v2  ;;  %v4988_v31 = vsel %vm4902_vm12, %v4987_v16, %v4986_v5  ;;  %v4970_v7 = vsel %vm4896_vm10, %v4969_v39, %v4968_v42  ;;  %v4975_v28 = vrot.slane %v9662_v14, 4 }
 0x72f   : > { %5263 = vrot.lane.b32.xlu0 %v5248_v56, %s6806_s23  ;;  %v4990_v12 = vsel %vm4905_vm13, %v4989_v48, %v4988_v31  ;;  %v5285_v40 = vrot.slane %v9748_v24, 2  ;;  %v4972_v51 = vsel %vm4899_vm11, %v4971_v45, %v4970_v7  ;;  %v4977_v59 = vrot.slane %v9664_v26, 3 }
 0x730   : > { %v4992_v43 = vsel %vm4908_vm14, %v4991_v27, %v4990_v12  ;;  %v5286_v36 = vrot.slane %v9756_v52, 1  ;;  %v4974_v50 = vsel %vm4902_vm12, %v4973_v62, %v4972_v51  ;;  %v5289_v10 = vrot.slane %v9752_v58, 7 }
 0x731   : > { %4995 = vrot.lane.b32.xlu1 %v4992_v43, %s6807_s30  ;;  %v5291_v19 = vrot.slane %v9758_v25, 6  ;;  %v5293_v3 = vrot.slane %v9760_v21, 5  ;;  %v4976_v57 = vsel %vm4905_vm13, %v4975_v28, %v4974_v50  ;;  %v5295_v16 = vrot.slane %v9762_v54, 4 }
 0x732   : > { %v5287_v17 = vsel %vm4890_vm8, %v5286_v36, %v5285_v40  ;;  %v5271_v48 = vrot.slane %v9785_v63, 2  ;;  %v4978_v22 = vsel %vm4908_vm14, %v4977_v59, %v4976_v57  ;;  %v5297_v46 = vrot.slane %v9767_v38, 3 }
 0x733   : > { %v5288_v8 = vsel %vm4893_vm9, %v9750_v44, %v5287_v17  ;;  %v5272_v53 = vrot.slane %v9802_v20, 1  ;;  %4993 = vrot.lane.b32.xlu0 %v4978_v22, %s6807_s30  ;;  %v5275_v60 = vrot.slane %v9790_v11, 7  ;;  %v5277_v27 = vrot.slane %v9792_v0, 6 }
 0x734   : > { %v5290_v29 = vsel %vm4896_vm10, %v5289_v10, %v5288_v8  ;;  %v5279_v39 = vrot.slane %v9795_v49, 5  ;;  %v5281_v23 = vrot.slane %v9797_v47, 4  ;;  %v5016_v45 = vrot.slane %v9451_v1, 3 }
 0x735   : > { %v5292_v2 = vsel %vm4899_vm11, %v5291_v19, %v5290_v29  ;;  %v5273_v5 = vsel %vm4890_vm8, %v5272_v53, %v5271_v48  ;;  %v5017_v42 = vrot.slane %v9477_v33, 2  ;;  %v5019_v62 = vrot.slane %v9453_v32, 1 }
 0x736   : > { %v5294_v56 = vsel %vm4902_vm12, %v5293_v3, %v5292_v2  ;;  %v5274_v31 = vsel %vm4893_vm9, %v9788_v61, %v5273_v5  ;;  %v5283_v28 = vrot.slane %v9799_v41, 3  ;;  %v5022_v40 = vrot.slane %v9463_v9, 7 }
 0x737   : > { %v5296_v12 = vsel %vm4905_vm13, %v5295_v16, %v5294_v56  ;;  %v5276_v7 = vsel %vm4896_vm10, %v5275_v60, %v5274_v31  ;;  %v5018_v59 = vsel %vm4890_vm8, %v5017_v42, %v5016_v45  ;;  %v5024_v36 = vrot.slane %v9465_v4, 6 }
 0x738   : > { %v5298_v43 = vsel %vm4908_vm14, %v5297_v46, %v5296_v12  ;;  %v5278_v51 = vsel %vm4899_vm11, %v5277_v27, %v5276_v7  ;;  %v5020_v10 = vsel %vm4893_vm9, %v5019_v62, %v5018_v59  ;;  %v5026_v19 = vrot.slane %v9467_v35, 5 }
 0x739   : > { %5301 = vrot.lane.b32.xlu1 %v5298_v43, %s6807_s30  ;;  %v5280_v50 = vsel %vm4902_vm12, %v5279_v39, %v5278_v51  ;;  %v5002_v3 = vrot.slane %v9638_v30, 3  ;;  %v5021_v17 = vsel %vm4896_vm10, %v9455_v37, %v5020_v10  ;;  %v5003_v16 = vrot.slane %v9660_v55, 2 }
 0x73a   : > { %v5282_v57 = vsel %vm4905_vm13, %v5281_v23, %v5280_v50  ;;  %v5005_v48 = vrot.slane %v9646_v13, 1  ;;  %v5023_v8 = vsel %vm4899_vm11, %v5022_v40, %v5021_v17  ;;  %v5028_v46 = vrot.slane %v9469_v15, 4 }
 0x73b   : > { %v5284_v22 = vsel %vm4908_vm14, %v5283_v28, %v5282_v57  ;;  %v5008_v53 = vrot.slane %v9650_v34, 7  ;;  %v5025_v29 = vsel %vm4902_vm12, %v5024_v36, %v5023_v8  ;;  %v5004_v60 = vsel %vm4890_vm8, %v5003_v16, %v5002_v3 }
 0x73c   : > { %5299 = vrot.lane.b32.xlu0 %v5284_v22, %s6807_s30  ;;  %v5010_v27 = vrot.slane %v9652_v6, 6  ;;  %v5012_v39 = vrot.slane %v9662_v14, 5  ;;  %v5027_v2 = vsel %vm4905_vm13, %v5026_v19, %v5025_v29  ;;  %v5006_v5 = vsel %vm4893_vm9, %v5005_v48, %v5004_v60  ;;  %s10229_s30 = scalar_lea.vmem %s10322_s7, %s5618_s18 }
 0x73d   : > { %v5321_v23 = vrot.slane %v9748_v24, 3  ;;  %v5322_v45 = vrot.slane %v9756_v52, 2  ;;  %v5029_v56 = vsel %vm4908_vm14, %v5028_v46, %v5027_v2  ;;  %v5007_v31 = vsel %vm4896_vm10, %v9648_v18, %v5006_v5 }
 0x73e   : > { %v5014_v42 = vrot.slane %v9664_v26, 4  ;;  %v5324_v62 = vrot.slane %v9750_v44, 1  ;;  %5032 = vrot.lane.b32.xlu1 %v5029_v56, %s6808_s12  ;;  %v5009_v12 = vsel %vm4899_vm11, %v5008_v53, %v5007_v31  ;;  %v5327_v28 = vrot.slane %v9758_v25, 7 }
 0x73f   : > { %v5323_v7 = vsel %vm4890_vm8, %v5322_v45, %v5321_v23  ;;  %v5329_v40 = vrot.slane %v9760_v21, 6  ;;  %v5011_v43 = vsel %vm4902_vm12, %v5010_v27, %v5009_v12  ;;  %v5331_v59 = vrot.slane %v9762_v54, 5 }
 0x740   : > { %v5325_v51 = vsel %vm4893_vm9, %v5324_v62, %v5323_v7  ;;  %v5307_v36 = vrot.slane %v9785_v63, 3  ;;  %v5013_v50 = vsel %vm4905_vm13, %v5012_v39, %v5011_v43  ;;  %v5308_v19 = vrot.slane %v9802_v20, 2 }
 0x741   : > { %v5326_v10 = vsel %vm4896_vm10, %v9752_v58, %v5325_v51  ;;  %v5310_v3 = vrot.slane %v9788_v61, 1  ;;  %v5015_v57 = vsel %vm4908_vm14, %v5014_v42, %v5013_v50  ;;  %v5333_v16 = vrot.slane %v9767_v38, 4 }
 0x742   : > { %v5328_v17 = vsel %vm4899_vm11, %v5327_v28, %v5326_v10  ;;  %v5313_v48 = vrot.slane %v9792_v0, 7  ;;  %5030 = vrot.lane.b32.xlu0 %v5015_v57, %s6808_s12  ;;  %v5309_v8 = vsel %vm4890_vm8, %v5308_v19, %v5307_v36  ;;  %v5315_v46 = vrot.slane %v9795_v49, 6 }
 0x743   : > { %v5330_v22 = vsel %vm4902_vm12, %v5329_v40, %v5328_v17  ;;  %v5317_v53 = vrot.slane %v9797_v47, 5  ;;  %v5311_v60 = vsel %vm4893_vm9, %v5310_v3, %v5309_v8  ;;  %v5053_v27 = vrot.slane %v9451_v1, 4 }
 0x744   : > { %v5332_v29 = vsel %vm4905_vm13, %v5331_v59, %v5330_v22  ;;  %v5054_v39 = vrot.slane %v9477_v33, 3  ;;  %v5312_v5 = vsel %vm4896_vm10, %v9790_v11, %v5311_v60  ;;  %v5319_v23 = vrot.slane %v9799_v41, 4 }
 0x745   : > { %v5334_v2 = vsel %vm4908_vm14, %v5333_v16, %v5332_v29  ;;  %v5056_v45 = vrot.slane %v9453_v32, 2  ;;  %v5314_v56 = vsel %vm4899_vm11, %v5313_v48, %v5312_v5  ;;  %v5058_v42 = vrot.slane %v9455_v37, 1 }
 0x746   : > { %5337 = vrot.lane.b32.xlu1 %v5334_v2, %s6808_s12  ;;  %v5055_v31 = vsel %vm4890_vm8, %v5054_v39, %v5053_v27  ;;  %v5061_v62 = vrot.slane %v9465_v4, 7  ;;  %v5316_v12 = vsel %vm4902_vm12, %v5315_v46, %v5314_v56  ;;  %v5063_v28 = vrot.slane %v9467_v35, 6 }
 0x747   : > { %v5057_v7 = vsel %vm4893_vm9, %v5056_v45, %v5055_v31  ;;  %v5039_v40 = vrot.slane %v9638_v30, 4  ;;  %v5318_v43 = vsel %vm4905_vm13, %v5317_v53, %v5316_v12  ;;  %v5040_v59 = vrot.slane %v9660_v55, 3 }
 0x748   : > { %v5059_v51 = vsel %vm4896_vm10, %v5058_v42, %v5057_v7  ;;  %v5042_v36 = vrot.slane %v9646_v13, 2  ;;  %v5320_v50 = vsel %vm4908_vm14, %v5319_v23, %v5318_v43  ;;  %v5065_v19 = vrot.slane %v9469_v15, 5 }
 0x749   : > { %v5060_v10 = vsel %vm4899_vm11, %v9463_v9, %v5059_v51  ;;  %v5044_v3 = vrot.slane %v9648_v18, 1  ;;  %5335 = vrot.lane.b32.xlu0 %v5320_v50, %s6808_s12  ;;  %v5041_v17 = vsel %vm4890_vm8, %v5040_v59, %v5039_v40  ;;  %v5047_v16 = vrot.slane %v9652_v6, 7 }
 0x74a   : > { %v5062_v57 = vsel %vm4902_vm12, %v5061_v62, %v5060_v10  ;;  %v5049_v48 = vrot.slane %v9662_v14, 6  ;;  %v5043_v8 = vsel %vm4893_vm9, %v5042_v36, %v5041_v17  ;;  %v5357_v46 = vrot.slane %v9748_v24, 4 }
 0x74b   : > { %v5064_v22 = vsel %vm4905_vm13, %v5063_v28, %v5062_v57  ;;  %v5358_v53 = vrot.slane %v9756_v52, 3  ;;  %v5045_v60 = vsel %vm4896_vm10, %v5044_v3, %v5043_v8  ;;  %v5051_v27 = vrot.slane %v9664_v26, 5 }
 0x74c   : > { %v5066_v29 = vsel %vm4908_vm14, %v5065_v19, %v5064_v22  ;;  %v5360_v39 = vrot.slane %v9750_v44, 2  ;;  %v5046_v2 = vsel %vm4899_vm11, %v9650_v34, %v5045_v60  ;;  %v5362_v23 = vrot.slane %v9752_v58, 1 }
 0x74d   : > { %5069 = vrot.lane.b32.xlu1 %v5066_v29, %s6810_s19  ;;  %v5359_v5 = vsel %vm4890_vm8, %v5358_v53, %v5357_v46  ;;  %v5365_v45 = vrot.slane %v9760_v21, 7  ;;  %v5048_v56 = vsel %vm4902_vm12, %v5047_v16, %v5046_v2  ;;  %v5367_v42 = vrot.slane %v9762_v54, 6 }
 0x74e   : > { %v5361_v31 = vsel %vm4893_vm9, %v5360_v39, %v5359_v5  ;;  %v5343_v62 = vrot.slane %v9785_v63, 4  ;;  %v5050_v12 = vsel %vm4905_vm13, %v5049_v48, %v5048_v56  ;;  %v5344_v28 = vrot.slane %v9802_v20, 3 }
 0x74f   : > { %v5363_v7 = vsel %vm4896_vm10, %v5362_v23, %v5361_v31  ;;  %v5346_v40 = vrot.slane %v9788_v61, 2  ;;  %v5052_v43 = vsel %vm4908_vm14, %v5051_v27, %v5050_v12  ;;  %v5369_v59 = vrot.slane %v9767_v38, 5 }
 0x750   : > { %v5364_v51 = vsel %vm4899_vm11, %v9758_v25, %v5363_v7  ;;  %v5348_v36 = vrot.slane %v9790_v11, 1  ;;  %5067 = vrot.lane.b32.xlu0 %v5052_v43, %s6810_s19  ;;  %v5345_v10 = vsel %vm4890_vm8, %v5344_v28, %v5343_v62  ;;  %v5351_v19 = vrot.slane %v9795_v49, 7 }
 0x751   : > { %v5366_v50 = vsel %vm4902_vm12, %v5365_v45, %v5364_v51  ;;  %v5353_v3 = vrot.slane %v9797_v47, 6  ;;  %v5347_v17 = vsel %vm4893_vm9, %v5346_v40, %v5345_v10  ;;  %v5090_v16 = vrot.slane %v9451_v1, 5 }
 0x752   : > { %v5368_v57 = vsel %vm4905_vm13, %v5367_v42, %v5366_v50  ;;  %v5091_v48 = vrot.slane %v9477_v33, 4  ;;  %v5349_v8 = vsel %vm4896_vm10, %v5348_v36, %v5347_v17  ;;  %v5355_v46 = vrot.slane %v9799_v41, 5 }
 0x753   : > { %v5370_v22 = vsel %vm4908_vm14, %v5369_v59, %v5368_v57  ;;  %v5093_v53 = vrot.slane %v9453_v32, 3  ;;  %v5350_v29 = vsel %vm4899_vm11, %v9792_v0, %v5349_v8  ;;  %v5095_v27 = vrot.slane %v9455_v37, 2 }
 0x754   : > { %5373 = vrot.lane.b32.xlu1 %v5370_v22, %s6810_s19  ;;  %v5092_v60 = vsel %vm4890_vm8, %v5091_v48, %v5090_v16  ;;  %v5097_v39 = vrot.slane %v9463_v9, 1  ;;  %v5352_v2 = vsel %vm4902_vm12, %v5351_v19, %v5350_v29  ;;  %v5100_v23 = vrot.slane %v9467_v35, 7 }
 0x755   : > { %v5094_v5 = vsel %vm4893_vm9, %v5093_v53, %v5092_v60  ;;  %v5076_v45 = vrot.slane %v9638_v30, 5  ;;  %v5354_v56 = vsel %vm4905_vm13, %v5353_v3, %v5352_v2  ;;  %v5077_v42 = vrot.slane %v9660_v55, 4 }
 0x756   : > { %v5096_v31 = vsel %vm4896_vm10, %v5095_v27, %v5094_v5  ;;  %v5079_v62 = vrot.slane %v9646_v13, 3  ;;  %v5356_v12 = vsel %vm4908_vm14, %v5355_v46, %v5354_v56  ;;  %v5102_v28 = vrot.slane %v9469_v15, 6 }
 0x757   : > { %v5098_v7 = vsel %vm4899_vm11, %v5097_v39, %v5096_v31  ;;  %v5081_v40 = vrot.slane %v9648_v18, 2  ;;  %5371 = vrot.lane.b32.xlu0 %v5356_v12, %s6810_s19  ;;  %v5078_v51 = vsel %vm4890_vm8, %v5077_v42, %v5076_v45  ;;  %v5083_v59 = vrot.slane %v9650_v34, 1 }
 0x758   : > { %v5099_v43 = vsel %vm4902_vm12, %v9465_v4, %v5098_v7  ;;  %v5086_v36 = vrot.slane %v9662_v14, 7  ;;  %v5080_v10 = vsel %vm4893_vm9, %v5079_v62, %v5078_v51  ;;  %v5393_v19 = vrot.slane %v9748_v24, 5 }
 0x759   : > { %v5101_v50 = vsel %vm4905_vm13, %v5100_v23, %v5099_v43  ;;  %v5394_v3 = vrot.slane %v9756_v52, 4  ;;  %v5082_v17 = vsel %vm4896_vm10, %v5081_v40, %v5080_v10  ;;  %v5088_v16 = vrot.slane %v9664_v26, 6 }
 0x75a   : > { %v5103_v57 = vsel %vm4908_vm14, %v5102_v28, %v5101_v50  ;;  %v5396_v48 = vrot.slane %v9750_v44, 3  ;;  %v5084_v22 = vsel %vm4899_vm11, %v5083_v59, %v5082_v17  ;;  %v5398_v46 = vrot.slane %v9752_v58, 2 }
 0x75b   : > { %5106 = vrot.lane.b32.xlu1 %v5103_v57, %s6809_s13  ;;  %v5395_v8 = vsel %vm4890_vm8, %v5394_v3, %v5393_v19  ;;  %v5400_v53 = vrot.slane %v9758_v25, 1  ;;  %v5085_v29 = vsel %vm4902_vm12, %v9652_v6, %v5084_v22  ;;  %v5403_v27 = vrot.slane %v9762_v54, 7 }
 0x75c   : > { %v5397_v60 = vsel %vm4893_vm9, %v5396_v48, %v5395_v8  ;;  %v5379_v39 = vrot.slane %v9785_v63, 5  ;;  %v5087_v2 = vsel %vm4905_vm13, %v5086_v36, %v5085_v29  ;;  %v5380_v23 = vrot.slane %v9802_v20, 4 }
 0x75d   : > { %v5399_v5 = vsel %vm4896_vm10, %v5398_v46, %v5397_v60  ;;  %v5382_v45 = vrot.slane %v9788_v61, 3  ;;  %v5089_v56 = vsel %vm4908_vm14, %v5088_v16, %v5087_v2  ;;  %v5405_v42 = vrot.slane %v9767_v38, 6 }
 0x75e   : > { %v5401_v31 = vsel %vm4899_vm11, %v5400_v53, %v5399_v5  ;;  %v5384_v62 = vrot.slane %v9790_v11, 2  ;;  %5104 = vrot.lane.b32.xlu0 %v5089_v56, %s6809_s13  ;;  %v5381_v7 = vsel %vm4890_vm8, %v5380_v23, %v5379_v39  ;;  %v5386_v28 = vrot.slane %v9792_v0, 1 }
 0x75f   : > { %v5402_v12 = vsel %vm4902_vm12, %v9760_v21, %v5401_v31  ;;  %v5389_v40 = vrot.slane %v9797_v47, 7  ;;  %v5383_v51 = vsel %vm4893_vm9, %v5382_v45, %v5381_v7  ;;  %v5127_v59 = vrot.slane %v9451_v1, 6 }
 0x760   : > { %v5404_v43 = vsel %vm4905_vm13, %v5403_v27, %v5402_v12  ;;  %v5128_v36 = vrot.slane %v9477_v33, 5  ;;  %v5385_v10 = vsel %vm4896_vm10, %v5384_v62, %v5383_v51  ;;  %v5391_v19 = vrot.slane %v9799_v41, 6 }
 0x761   : > { %v5406_v50 = vsel %vm4908_vm14, %v5405_v42, %v5404_v43  ;;  %v5130_v3 = vrot.slane %v9453_v32, 4  ;;  %v5387_v57 = vsel %vm4899_vm11, %v5386_v28, %v5385_v10  ;;  %v5132_v16 = vrot.slane %v9455_v37, 3 }
 0x762   : > { %5409 = vrot.lane.b32.xlu1 %v5406_v50, %s6809_s13  ;;  %v5129_v17 = vsel %vm4890_vm8, %v5128_v36, %v5127_v59  ;;  %v5134_v48 = vrot.slane %v9463_v9, 2  ;;  %v5388_v22 = vsel %vm4902_vm12, %v9795_v49, %v5387_v57  ;;  %v5136_v46 = vrot.slane %v9465_v4, 1 }
 0x763   : > { %v5131_v8 = vsel %vm4893_vm9, %v5130_v3, %v5129_v17  ;;  %v5113_v53 = vrot.slane %v9638_v30, 6  ;;  %v5390_v29 = vsel %vm4905_vm13, %v5389_v40, %v5388_v22  ;;  %v5114_v27 = vrot.slane %v9660_v55, 5 }
 0x764   : > { %v5133_v60 = vsel %vm4896_vm10, %v5132_v16, %v5131_v8  ;;  %v5116_v39 = vrot.slane %v9646_v13, 4  ;;  %v5392_v2 = vsel %vm4908_vm14, %v5391_v19, %v5390_v29  ;;  %v5139_v23 = vrot.slane %v9469_v15, 7 }
 0x765   : > { %v5135_v5 = vsel %vm4899_vm11, %v5134_v48, %v5133_v60  ;;  %v5118_v45 = vrot.slane %v9648_v18, 3  ;;  %5407 = vrot.lane.b32.xlu0 %v5392_v2, %s6809_s13  ;;  %v5115_v31 = vsel %vm4890_vm8, %v5114_v27, %v5113_v53  ;;  %v5120_v42 = vrot.slane %v9650_v34, 2 }
 0x766   : > { %v5137_v56 = vsel %vm4902_vm12, %v5136_v46, %v5135_v5  ;;  %v5122_v62 = vrot.slane %v9652_v6, 1  ;;  %v5117_v7 = vsel %vm4893_vm9, %v5116_v39, %v5115_v31  ;;  %v5429_v28 = vrot.slane %v9748_v24, 6 }
 0x767   : > { %v5138_v12 = vsel %vm4905_vm13, %v9467_v35, %v5137_v56  ;;  %v5430_v40 = vrot.slane %v9756_v52, 5  ;;  %v5119_v51 = vsel %vm4896_vm10, %v5118_v45, %v5117_v7  ;;  %v5125_v59 = vrot.slane %v9664_v26, 7 }
 0x768   : > { %v5140_v43 = vsel %vm4908_vm14, %v5139_v23, %v5138_v12  ;;  %v5432_v36 = vrot.slane %v9750_v44, 4  ;;  %v5121_v50 = vsel %vm4899_vm11, %v5120_v42, %v5119_v51  ;;  %v5434_v19 = vrot.slane %v9752_v58, 3 }
 0x769   : > { %5143 = vrot.lane.b32.xlu1 %v5140_v43, %s6812_s21  ;;  %v5431_v10 = vsel %vm4890_vm8, %v5430_v40, %v5429_v28  ;;  %v5436_v3 = vrot.slane %v9758_v25, 2  ;;  %v5123_v57 = vsel %vm4902_vm12, %v5122_v62, %v5121_v50  ;;  %v5438_v16 = vrot.slane %v9760_v21, 1 }
 0x76a   : > { %v5433_v17 = vsel %vm4893_vm9, %v5432_v36, %v5431_v10  ;;  %v5415_v48 = vrot.slane %v9785_v63, 6  ;;  %v5124_v22 = vsel %vm4905_vm13, %v9662_v14, %v5123_v57  ;;  %v5416_v46 = vrot.slane %v9802_v20, 5 }
 0x76b   : > { %v5435_v8 = vsel %vm4896_vm10, %v5434_v19, %v5433_v17  ;;  %v5418_v53 = vrot.slane %v9788_v61, 4  ;;  %v5126_v29 = vsel %vm4908_vm14, %v5125_v59, %v5124_v22  ;;  %v5441_v27 = vrot.slane %v9767_v38, 7 }
 0x76c   : > { %v5437_v60 = vsel %vm4899_vm11, %v5436_v3, %v5435_v8  ;;  %v5420_v39 = vrot.slane %v9790_v11, 3  ;;  %5141 = vrot.lane.b32.xlu0 %v5126_v29, %s6812_s21  ;;  %v5417_v5 = vsel %vm4890_vm8, %v5416_v46, %v5415_v48  ;;  %v5422_v23 = vrot.slane %v9792_v0, 2 }
 0x76d   : > { %v5439_v2 = vsel %vm4902_vm12, %v5438_v16, %v5437_v60  ;;  %v5424_v45 = vrot.slane %v9795_v49, 1  ;;  %v5419_v31 = vsel %vm4893_vm9, %v5418_v53, %v5417_v5  ;;  %v5164_v42 = vrot.slane %v9451_v1, 7 }
 0x76e   : > { %v5440_v56 = vsel %vm4905_vm13, %v9762_v54, %v5439_v2  ;;  %v5165_v62 = vrot.slane %v9477_v33, 6  ;;  %v5421_v7 = vsel %vm4896_vm10, %v5420_v39, %v5419_v31  ;;  %v5427_v28 = vrot.slane %v9799_v41, 7 }
 0x76f   : > { %v5442_v12 = vsel %vm4908_vm14, %v5441_v27, %v5440_v56  ;;  %v5167_v40 = vrot.slane %v9453_v32, 5  ;;  %v5423_v43 = vsel %vm4899_vm11, %v5422_v23, %v5421_v7  ;;  %v5169_v59 = vrot.slane %v9455_v37, 4 }
 0x770   : > { %5445 = vrot.lane.b32.xlu1 %v5442_v12, %s6812_s21  ;;  %v5166_v51 = vsel %vm4890_vm8, %v5165_v62, %v5164_v42  ;;  %v5171_v36 = vrot.slane %v9463_v9, 3  ;;  %v5425_v50 = vsel %vm4902_vm12, %v5424_v45, %v5423_v43  ;;  %v5173_v19 = vrot.slane %v9465_v4, 2 }
 0x771   : > { %v5168_v10 = vsel %vm4893_vm9, %v5167_v40, %v5166_v51  ;;  %v5150_v3 = vrot.slane %v9638_v30, 7  ;;  %v5426_v57 = vsel %vm4905_vm13, %v9797_v47, %v5425_v50  ;;  %v5151_v16 = vrot.slane %v9660_v55, 6 }
 0x772   : > { %v5170_v17 = vsel %vm4896_vm10, %v5169_v59, %v5168_v10  ;;  %v5153_v48 = vrot.slane %v9646_v13, 5  ;;  %v5428_v22 = vsel %vm4908_vm14, %v5427_v28, %v5426_v57  ;;  %v5175_v46 = vrot.slane %v9467_v35, 1 }
 0x773   : > { %v5172_v8 = vsel %vm4899_vm11, %v5171_v36, %v5170_v17  ;;  %v5155_v53 = vrot.slane %v9648_v18, 4  ;;  %5443 = vrot.lane.b32.xlu0 %v5428_v22, %s6812_s21  ;;  %v5152_v60 = vsel %vm4890_vm8, %v5151_v16, %v5150_v3  ;;  %v5157_v27 = vrot.slane %v9650_v34, 3 }
 0x774   : > { %v5174_v29 = vsel %vm4902_vm12, %v5173_v19, %v5172_v8  ;;  %v5159_v39 = vrot.slane %v9652_v6, 2  ;;  %v5154_v5 = vsel %vm4893_vm9, %v5153_v48, %v5152_v60  ;;  %v5465_v23 = vrot.slane %v9748_v24, 7 }
 0x775   : > { %v5176_v2 = vsel %vm4905_vm13, %v5175_v46, %v5174_v29  ;;  %v5466_v45 = vrot.slane %v9756_v52, 6  ;;  %v5156_v31 = vsel %vm4896_vm10, %v5155_v53, %v5154_v5  ;;  %v5161_v42 = vrot.slane %v9662_v14, 1 }
 0x776   : > { %v5177_v56 = vsel %vm4908_vm14, %v9469_v15, %v5176_v2  ;;  %v5468_v62 = vrot.slane %v9750_v44, 5  ;;  %v5158_v12 = vsel %vm4899_vm11, %v5157_v27, %v5156_v31  ;;  %v5470_v28 = vrot.slane %v9752_v58, 4 }
 0x777   : > { %5180 = vrot.lane.b32.xlu1 %v5177_v56, %s6811_s20  ;;  %v5467_v7 = vsel %vm4890_vm8, %v5466_v45, %v5465_v23  ;;  %v5472_v40 = vrot.slane %v9758_v25, 3  ;;  %v5160_v43 = vsel %vm4902_vm12, %v5159_v39, %v5158_v12  ;;  %v5474_v59 = vrot.slane %v9760_v21, 2 }
 0x778   : > { %v5469_v51 = vsel %vm4893_vm9, %v5468_v62, %v5467_v7  ;;  %v5451_v36 = vrot.slane %v9785_v63, 7  ;;  %v5162_v50 = vsel %vm4905_vm13, %v5161_v42, %v5160_v43  ;;  %v5452_v19 = vrot.slane %v9802_v20, 6 }
 0x779   : > { %v5471_v10 = vsel %vm4896_vm10, %v5470_v28, %v5469_v51  ;;  %v5454_v3 = vrot.slane %v9788_v61, 5  ;;  %v5163_v57 = vsel %vm4908_vm14, %v9664_v26, %v5162_v50  ;;  %v5476_v16 = vrot.slane %v9762_v54, 1 }
 0x77a   : > { %v5473_v17 = vsel %vm4899_vm11, %v5472_v40, %v5471_v10  ;;  %5178 = vrot.lane.b32.xlu0 %v5163_v57, %s6811_s20  ;;  %v5453_v22 = vsel %vm4890_vm8, %v5452_v19, %v5451_v36  ;;  %v5456_v8 = vrot.slane %v9790_v11, 4  ;;  %v5458_v46 = vrot.slane %v9792_v0, 3 }
 0x77b   : > { %v5475_v48 = vsel %vm4902_vm12, %v5474_v59, %v5473_v17  ;;  %v5455_v29 = vsel %vm4893_vm9, %v5454_v3, %v5453_v22  ;;  %v4910_v60 = vrot.slane %v9477_v33, 7  ;;  %v4912_v27 = vrot.slane %v9453_v32, 6 }
 0x77c   : > { %v5477_v53 = vsel %vm4905_vm13, %v5476_v16, %v5475_v48  ;;  %v5457_v2 = vsel %vm4896_vm10, %v5456_v8, %v5455_v29  ;;  %v5460_v5 = vrot.slane %v9795_v49, 2  ;;  %v5462_v23 = vrot.slane %v9797_v47, 1 }
 0x77d   : > { %v5478_v39 = vsel %vm4908_vm14, %v9767_v38, %v5477_v53  ;;  %v5459_v45 = vsel %vm4899_vm11, %v5458_v46, %v5457_v2  ;;  %v4914_v56 = vrot.slane %v9455_v37, 5  ;;  %v4916_v33 = vrot.slane %v9463_v9, 4 }
 0x77e   : > { %5481 = vrot.lane.b32.xlu1 %v5478_v39, %s6811_s20  ;;  %v4918_v31 = vrot.slane %v9465_v4, 3  ;;  %v5461_v32 = vsel %vm4902_vm12, %v5460_v5, %v5459_v45  ;;  %v4920_v42 = vrot.slane %v9467_v35, 2  ;;  %v4911_v62 = vsel %vm4890_vm8, %v4910_v60, %v9451_v1  ;;  %v4959_v59 = vpop.permute.xlu1 %4958 }
 0x77f   : > { %v4889_v12 = vrot.slane %v9660_v55, 7  ;;  %v5463_v7 = vsel %vm4905_vm13, %v5462_v23, %v5461_v32  ;;  %v4922_v28 = vrot.slane %v9469_v15, 1  ;;  %v4913_v37 = vsel %vm4893_vm9, %v4912_v27, %v4911_v62 }
 0x780   : > { %v4892_v9 = vrot.slane %v9646_v13, 6  ;;  %v5464_v4 = vsel %vm4908_vm14, %v9799_v41, %v5463_v7  ;;  %v4915_v35 = vsel %vm4896_vm10, %v4914_v56, %v4913_v37  ;;  %v4895_v40 = vrot.slane %v9648_v18, 5 }
 0x781   : > { %5479 = vrot.lane.b32.xlu0 %v5464_v4, %s6811_s20  ;;  %v4917_v1 = vsel %vm4899_vm11, %v4916_v33, %v4915_v35  ;;  %v4898_v55 = vrot.slane %v9650_v34, 4  ;;  %v4901_v15 = vrot.slane %v9652_v6, 3  ;;  %v4891_v43 = vsel %vm4890_vm8, %v4889_v12, %v9638_v30 }
 0x782   : > { %v4919_v13 = vsel %vm4902_vm12, %v4918_v31, %v4917_v1  ;;  %v4894_v18 = vsel %vm4893_vm9, %v4892_v9, %v4891_v43  ;;  %v5217_v51 = vrot.slane %v9756_v52, 7  ;;  %v5219_v34 = vrot.slane %v9750_v44, 6 }
 0x783   : > { %v4921_v6 = vsel %vm4905_vm13, %v4920_v42, %v4919_v13  ;;  %v4904_v30 = vrot.slane %v9662_v14, 2  ;;  %v4907_v36 = vrot.slane %v9664_v26, 1  ;;  %v4897_v50 = vsel %vm4896_vm10, %v4895_v40, %v4894_v18 }
 0x784   : > { %v4923_v10 = vsel %vm4908_vm14, %v4922_v28, %v4921_v6  ;;  %v4900_v19 = vsel %vm4899_vm11, %v4898_v55, %v4897_v50  ;;  %v5218_v52 = vsel %vm4890_vm8, %v5217_v51, %v9748_v24  ;;  %v5221_v3 = vrot.slane %v9752_v58, 5 }
 0x785   : > { %4927 = vst.msk [vmem:[%s10229_s30 + $0x10] sm:$0xff] %vm279_vm0, %v4923_v10  ;;  %v4903_v44 = vsel %vm4902_vm12, %v4901_v15, %v4900_v19  ;;  %v5220_v14 = vsel %vm4893_vm9, %v5219_v34, %v5218_v52  ;;  %v5223_v26 = vrot.slane %v9758_v25, 4  ;;  %v5225_v57 = vrot.slane %v9760_v21, 3 }
 0x786   : > { %4964 = vst.msk [vmem:[%s10229_s30 + $0x10] sm:$0xff] %vm4962_vm15, %v4959_v59  ;;  %v4906_v17 = vsel %vm4905_vm13, %v4904_v30, %v4903_v44  ;;  %v5222_v16 = vsel %vm4896_vm10, %v5221_v3, %v5220_v14  ;;  %v5203_v24 = vrot.slane %v9802_v20, 7  ;;  %v5205_v58 = vrot.slane %v9788_v61, 6 }
 0x787   : > { %v4909_v48 = vsel %vm4908_vm14, %v4907_v36, %v4906_v17  ;;  %v5224_v22 = vsel %vm4899_vm11, %v5223_v26, %v5222_v16  ;;  %v5227_v8 = vrot.slane %v9762_v54, 2  ;;  %v5229_v21 = vrot.slane %v9767_v38, 1 }
 0x788   : > { %4926 = vst.msk [vmem:[%s10229_s30] sm:$0xff] %vm279_vm0, %v4909_v48  ;;  %v5226_v25 = vsel %vm4902_vm12, %v5225_v57, %v5224_v22  ;;  %v5204_v46 = vsel %vm4890_vm8, %v5203_v24, %v9785_v63  ;;  %v5207_v20 = vrot.slane %v9790_v11, 5  ;;  %v5209_v54 = vrot.slane %v9792_v0, 4 }
 0x789   : > { %v5228_v61 = vsel %vm4905_vm13, %v5227_v8, %v5226_v25  ;;  %v5206_v53 = vsel %vm4893_vm9, %v5205_v58, %v5204_v46  ;;  %v5211_v38 = vrot.slane %v9795_v49, 3  ;;  %v5213_v11 = vrot.slane %v9797_v47, 2 }
 0x78a   : > { %v5230_v29 = vsel %vm4908_vm14, %v5229_v21, %v5228_v61  ;;  %v5208_v60 = vsel %vm4896_vm10, %v5207_v20, %v5206_v53  ;;  %v5215_v39 = vrot.slane %v9799_v41, 1 }
 0x78b   : > { %5234 = vst.msk [vmem:[%s10229_s30 + $0x18] sm:$0xff] %vm279_vm0, %v5230_v29  ;;  %v5210_v63 = vsel %vm4899_vm11, %v5209_v54, %v5208_v60 }
 0x78c   : > { %v5212_v27 = vsel %vm4902_vm12, %v5211_v38, %v5210_v63 }
 0x78d   : > { %v5214_v2 = vsel %vm4905_vm13, %v5213_v11, %v5212_v27 }
 0x78e   : > { %v4957_v0 = vpop.permute.xlu0 %4956  ;;  %v5216_v49 = vsel %vm4908_vm14, %v5215_v39, %v5214_v2 }
 0x78f   : > { %4963 = vst.msk [vmem:[%s10229_s30] sm:$0xff] %vm4962_vm15, %v4957_v0 }
 0x790   : > { %5233 = vst.msk [vmem:[%s10229_s30 + $0x8] sm:$0xff] %vm279_vm0, %v5216_v49  ;;  %vm5036_vm0 = vcmask 523648  }
 0x799   : > { %v5266_v5 = vpop.permute.xlu1 %5265 }
 0x79a   : > { %5270 = vst.msk [vmem:[%s10229_s30 + $0x18] sm:$0xff] %vm4962_vm15, %v5266_v5 }
 0x7a1   : > { %v5264_v47 = vpop.permute.xlu0 %5263 }
 0x7a2   : > { %5269 = vst.msk [vmem:[%s10229_s30 + $0x8] sm:$0xff] %vm4962_vm15, %v5264_v47 }
 0x7a3   : > { %v4996_v41 = vpop.permute.xlu1 %4995 }
 0x7a4   : > { %5001 = vst.msk [vmem:[%s10229_s30 + $0x10] sm:$0xff] %vm4999_vm1, %v4996_v41 }
 0x7a5   : > { %v4994_v23 = vpop.permute.xlu0 %4993 }
 0x7a6   : > { %5000 = vst.msk [vmem:[%s10229_s30] sm:$0xff] %vm4999_vm1, %v4994_v23 }
 0x7ab   : > { %v5302_v45 = vpop.permute.xlu1 %5301 }
 0x7ac   : > { %5306 = vst.msk [vmem:[%s10229_s30 + $0x18] sm:$0xff] %vm4999_vm1, %v5302_v45 }
 0x7ae   : > { %v5300_v56 = vpop.permute.xlu0 %5299 }
 0x7af   : > { %5305 = vst.msk [vmem:[%s10229_s30 + $0x8] sm:$0xff] %vm4999_vm1, %v5300_v56 }
 0x7b0   : > { %v5033_v33 = vpop.permute.xlu1 %5032 }
 0x7b1   : > { %5038 = vst.msk [vmem:[%s10229_s30 + $0x10] sm:$0xff] %vm5036_vm0, %v5033_v33 }
 0x7b4   : > { %v5031_v31 = vpop.permute.xlu0 %5030 }
 0x7b5   : > { %5037 = vst.msk [vmem:[%s10229_s30] sm:$0xff] %vm5036_vm0, %v5031_v31 }
 0x7b8   : > { %v5338_v32 = vpop.permute.xlu1 %5337 }
 0x7b9   : > { %5342 = vst.msk [vmem:[%s10229_s30 + $0x18] sm:$0xff] %vm5036_vm0, %v5338_v32 }
 0x7bb   : > { %v5336_v42 = vpop.permute.xlu0 %5335 }
 0x7bc   : > { %5341 = vst.msk [vmem:[%s10229_s30 + $0x8] sm:$0xff] %vm5036_vm0, %v5336_v42 }
 0x7bf   : > { %v5070_v62 = vpop.permute.xlu1 %5069 }
 0x7c0   : > { %5075 = vst.msk [vmem:[%s10229_s30 + $0x10] sm:$0xff] %vm5073_vm2, %v5070_v62 }
 0x7c2   : > { %v5068_v12 = vpop.permute.xlu0 %5067 }
 0x7c3   : > { %5074 = vst.msk [vmem:[%s10229_s30] sm:$0xff] %vm5073_vm2, %v5068_v12 }
 0x7c6   : > { %v5374_v7 = vpop.permute.xlu1 %5373 }
 0x7c7   : > { %5378 = vst.msk [vmem:[%s10229_s30 + $0x18] sm:$0xff] %vm5073_vm2, %v5374_v7 }
 0x7c9   : > { %v5372_v28 = vpop.permute.xlu0 %5371 }
 0x7ca   : > { %5377 = vst.msk [vmem:[%s10229_s30 + $0x8] sm:$0xff] %vm5073_vm2, %v5372_v28 }
 0x7cd   : > { %v5107_v37 = vpop.permute.xlu1 %5106 }
 0x7ce   : > { %5112 = vst.msk [vmem:[%s10229_s30 + $0x10] sm:$0xff] %vm5110_vm3, %v5107_v37 }
 0x7d0   : > { %v5105_v9 = vpop.permute.xlu0 %5104 }
 0x7d1   : > { %5111 = vst.msk [vmem:[%s10229_s30] sm:$0xff] %vm5110_vm3, %v5105_v9 }
 0x7d4   : > { %v5410_v4 = vpop.permute.xlu1 %5409 }
 0x7d5   : > { %5414 = vst.msk [vmem:[%s10229_s30 + $0x18] sm:$0xff] %vm5110_vm3, %v5410_v4 }
 0x7d7   : > { %v5408_v35 = vpop.permute.xlu0 %5407 }
 0x7d8   : > { %5413 = vst.msk [vmem:[%s10229_s30 + $0x8] sm:$0xff] %vm5110_vm3, %v5408_v35 }
 0x7db   : > { %v5144_v40 = vpop.permute.xlu1 %5143 }
 0x7dc   : > { %5149 = vst.msk [vmem:[%s10229_s30 + $0x10] sm:$0xff] %vm5147_vm4, %v5144_v40 }
 0x7de   : > { %v5142_v1 = vpop.permute.xlu0 %5141 }
 0x7df   : > { %5148 = vst.msk [vmem:[%s10229_s30] sm:$0xff] %vm5147_vm4, %v5142_v1 }
 0x7e2   : > { %v5446_v55 = vpop.permute.xlu1 %5445 }
 0x7e3   : > { %5450 = vst.msk [vmem:[%s10229_s30 + $0x18] sm:$0xff] %vm5147_vm4, %v5446_v55 }
 0x7e5   : > { %v5444_v15 = vpop.permute.xlu0 %5443 }
 0x7e6   : > { %5449 = vst.msk [vmem:[%s10229_s30 + $0x8] sm:$0xff] %vm5147_vm4, %v5444_v15 }
 0x7e9   : > { %v5181_v43 = vpop.permute.xlu1 %5180 }
 0x7ea   : > { %5186 = vst.msk [vmem:[%s10229_s30 + $0x10] sm:$0xff] %vm5184_vm5, %v5181_v43 }
 0x7ec   : > { %v5179_v13 = vpop.permute.xlu0 %5178 }
 0x7ed   : > { %5185 = vst.msk [vmem:[%s10229_s30] sm:$0xff] %vm5184_vm5, %v5179_v13 }
 0x7f0   : > { %v5482_v18 = vpop.permute.xlu1 %5481 }
 0x7f1   : > { %5486 = vst.msk [vmem:[%s10229_s30 + $0x18] sm:$0xff] %vm5184_vm5, %v5482_v18 }
 0x7f3   : > { %v5480_v51 = vpop.permute.xlu0 %5479 }
 0x7f4   : > { %5485 = vst.msk [vmem:[%s10229_s30 + $0x8] sm:$0xff] %vm5184_vm5, %v5480_v51 }
 0x7f5 PF: > { %s17_s24 = sadd.s32 1, %s6802_s24  }
 0x7f6   : > { %p14_p4 = scmp.ge.s32.totalorder %s17_s24, 4  }
 0x7f8   :  { %16 = sbr.rel (!%p14_p4) target bundleno = 1 (0x1), region = 82 }

</bundles_post_ra>
